<compile_context>
chip_gen: v7x
topology: tpu7x:2x2x1
jax: 0.10.0
libtpu: 0.0.40
codegen_flags: <defaults>
</compile_context>

<pallas_src>
import math
from functools import partial

import jax
import jax.numpy as jnp
from jax import lax
from jax.experimental import pallas as pl
from jax.experimental.pallas import tpu as pltpu


def _ceil_to(x, m):
    return -(-x // m) * m


# Safe on v5e/v6e (128 MiB physical) and leaves headroom on v7x (64 MiB physical).
_VMEM_LIMIT = 32 * 1024 * 1024


# ----------------------------- Pallas kernels -----------------------------

def _matmul_kernel(a_ref, b_ref, bias_ref, o_ref, acc_ref, *, activation):
    k = pl.program_id(2)

    @pl.when(k == 0)
    def _():
        acc_ref[...] = jnp.zeros_like(acc_ref)

    acc_ref[...] += jnp.dot(a_ref[...], b_ref[...],
                            preferred_element_type=jnp.float32)

    @pl.when(k == pl.num_programs(2) - 1)
    def _():
        y = acc_ref[...] + bias_ref[...]
        if activation == "relu":
            y = jnp.maximum(y, 0.0)
        elif activation == "softplus":
            y = jnp.where(y > 20.0, y,
                          jnp.log(1.0 + jnp.exp(jnp.minimum(y, 20.0))))
        o_ref[...] = y


def pallas_matmul(a, b, bias=None, activation=None):
    """act(A @ B + bias). Tiled/pipelined; bf16 MXU operands, f32 accumulation."""
    M, K = a.shape
    K2, N = b.shape
    assert K == K2
    tm = min(256, _ceil_to(M, 16))      # bf16 sublane granularity = 16
    tn = min(256, _ceil_to(N, 128))     # lane-dense output tiles
    tk = min(1024, _ceil_to(K, 128))
    Mp, Np, Kp = _ceil_to(M, tm), _ceil_to(N, tn), _ceil_to(K, tk)

    a_p = jnp.pad(a.astype(jnp.bfloat16), ((0, Mp - M), (0, Kp - K)))
    b_p = jnp.pad(b.astype(jnp.bfloat16), ((0, Kp - K), (0, Np - N)))
    if bias is None:
        bias = jnp.zeros((N,), jnp.float32)
    bias_p = jnp.pad(bias.astype(jnp.float32), (0, Np - N)).reshape(1, Np)

    out = pl.pallas_call(
        partial(_matmul_kernel, activation=activation),
        out_shape=jax.ShapeDtypeStruct((Mp, Np), jnp.float32),
        grid_spec=pltpu.PrefetchScalarGridSpec(
            num_scalar_prefetch=0,
            grid=(Mp // tm, Np // tn, Kp // tk),
            in_specs=[
                pl.BlockSpec((tm, tk), lambda i, j, k: (i, k)),
                pl.BlockSpec((tk, tn), lambda i, j, k: (k, j)),
                pl.BlockSpec((1, tn), lambda i, j, k: (0, j)),
            ],
            out_specs=pl.BlockSpec((tm, tn), lambda i, j, k: (i, j)),
            scratch_shapes=[pltpu.VMEM((tm, tn), jnp.float32)]),
        compiler_params=pltpu.CompilerParams(
            dimension_semantics=("parallel", "parallel", "arbitrary"),
            vmem_limit_bytes=_VMEM_LIMIT),
    )(a_p, b_p, bias_p)
    return out[:M, :N]


def _layernorm_kernel(x_ref, w_ref, b_ref, o_ref):
    x = x_ref[...]
    mu = jnp.mean(x, axis=-1, keepdims=True)
    var = jnp.mean((x - mu) ** 2, axis=-1, keepdims=True)
    o_ref[...] = (x - mu) * lax.rsqrt(var + 1e-5) * w_ref[...] + b_ref[...]


def pallas_layernorm(x2d, w, b):
    M, C = x2d.shape
    tm = min(1024, _ceil_to(M, 8))
    Mp = _ceil_to(M, tm)
    xp = jnp.pad(x2d.astype(jnp.float32), ((0, Mp - M), (0, 0)))
    out = pl.pallas_call(
        _layernorm_kernel,
        out_shape=jax.ShapeDtypeStruct((Mp, C), jnp.float32),
        grid=(Mp // tm,),
        in_specs=[pl.BlockSpec((tm, C), lambda i: (i, 0)),
                  pl.BlockSpec((1, C), lambda i: (0, 0)),
                  pl.BlockSpec((1, C), lambda i: (0, 0))],
        out_specs=pl.BlockSpec((tm, C), lambda i: (i, 0)),
        compiler_params=pltpu.CompilerParams(dimension_semantics=("parallel",)),
    )(xp, w.reshape(1, C).astype(jnp.float32), b.reshape(1, C).astype(jnp.float32))
    return out[:M]


def _affine_kernel(x_ref, s_ref, t_ref, o_ref, *, relu):
    y = x_ref[...] * s_ref[...] + t_ref[...]
    if relu:
        y = jnp.maximum(y, 0.0)
    o_ref[...] = y


def pallas_affine(x2d, scale, shift, relu=False):
    M, C = x2d.shape
    tm = min(1024, _ceil_to(M, 8))
    Mp = _ceil_to(M, tm)
    xp = jnp.pad(x2d.astype(jnp.float32), ((0, Mp - M), (0, 0)))
    out = pl.pallas_call(
        partial(_affine_kernel, relu=relu),
        out_shape=jax.ShapeDtypeStruct((Mp, C), jnp.float32),
        grid=(Mp // tm,),
        in_specs=[pl.BlockSpec((tm, C), lambda i: (i, 0)),
                  pl.BlockSpec((1, C), lambda i: (0, 0)),
                  pl.BlockSpec((1, C), lambda i: (0, 0))],
        out_specs=pl.BlockSpec((tm, C), lambda i: (i, 0)),
        compiler_params=pltpu.CompilerParams(dimension_semantics=("parallel",)),
    )(xp, scale.reshape(1, C).astype(jnp.float32),
      shift.reshape(1, C).astype(jnp.float32))
    return out[:M]


def batchnorm_fused(x2d, bn_w, bn_b, relu=False, eps=1e-5):
    # Training-mode batch statistics per channel (matches nn.BatchNorm* default
    # forward of a freshly constructed module). Stats reduction stays in XLA,
    # the scale/shift (+ReLU) application is a single fused Pallas pass.
    mean = jnp.mean(x2d, axis=0)
    var = jnp.mean((x2d - mean) ** 2, axis=0)
    scale = bn_w * lax.rsqrt(var + eps)
    shift = bn_b - mean * scale
    return pallas_affine(x2d, scale, shift, relu=relu)


def _mask_pool_kernel(x_ref, o_ref):
    x = x_ref[...]                               # (HW, tile_of_rows)
    m = jax.nn.sigmoid(x)
    s = jnp.sum(m, axis=0, keepdims=True)
    mask = m / s * (x.shape[0] * 0.5)            # Attention_mask: / sum * H * W * 0.5
    o_ref[...] = jnp.mean(x * mask, axis=0, keepdims=True)


def pallas_mask_pool(x_t):
    # x_t: (H*W, B*C*T) -> lane-dense: (b,c,t) rows on lanes, spatial on sublanes.
    HW, R = x_t.shape
    tr = min(1024, _ceil_to(R, 128))
    Rp = _ceil_to(R, tr)
    xp = jnp.pad(x_t.astype(jnp.float32), ((0, 0), (0, Rp - R)))
    out = pl.pallas_call(
        _mask_pool_kernel,
        out_shape=jax.ShapeDtypeStruct((1, Rp), jnp.float32),
        grid=(Rp // tr,),
        in_specs=[pl.BlockSpec((HW, tr), lambda i: (0, i))],
        out_specs=pl.BlockSpec((1, tr), lambda i: (0, i)),
        compiler_params=pltpu.CompilerParams(dimension_semantics=("parallel",)),
    )(xp)
    return out[0, :R]


def _freq_mod_kernel(re_ref, im_ref, dr_ref, di_ref, rb_ref, ib_ref, re_o, im_o):
    re = re_ref[...]
    im = im_ref[...]
    dr = dr_ref[...]
    di = di_ref[...]
    # einsum('bnc,cc->bnc', x, r) == x * diag(r)  (repeated index -> diagonal)
    re_o[...] = jnp.maximum(re * dr - im * di + rb_ref[...], 0.0)
    im_o[...] = jnp.maximum(im * dr + re * di + ib_ref[...], 0.0)


def pallas_freq_mod(re, im, dr, di, rb, ib):
    M, C = re.shape
    tm = min(1024, _ceil_to(M, 8))
    Mp = _ceil_to(M, tm)
    re_p = jnp.pad(re.astype(jnp.float32), ((0, Mp - M), (0, 0)))
    im_p = jnp.pad(im.astype(jnp.float32), ((0, Mp - M), (0, 0)))
    vec = lambda v: v.reshape(1, C).astype(jnp.float32)
    re2, im2 = pl.pallas_call(
        _freq_mod_kernel,
        out_shape=(jax.ShapeDtypeStruct((Mp, C), jnp.float32),
                   jax.ShapeDtypeStruct((Mp, C), jnp.float32)),
        grid=(Mp // tm,),
        in_specs=[pl.BlockSpec((tm, C), lambda i: (i, 0)),
                  pl.BlockSpec((tm, C), lambda i: (i, 0)),
                  pl.BlockSpec((1, C), lambda i: (0, 0)),
                  pl.BlockSpec((1, C), lambda i: (0, 0)),
                  pl.BlockSpec((1, C), lambda i: (0, 0)),
                  pl.BlockSpec((1, C), lambda i: (0, 0))],
        out_specs=(pl.BlockSpec((tm, C), lambda i: (i, 0)),
                   pl.BlockSpec((tm, C), lambda i: (i, 0))),
        compiler_params=pltpu.CompilerParams(dimension_semantics=("parallel",)),
    )(re_p, im_p, vec(dr), vec(di), vec(rb), vec(ib))
    return re2[:M], im2[:M]


def _ssm_kernel(dl_ref, u_ref, bT_ref, c_ref, A_ref, D_ref, y_ref):
    # dl_ref/u_ref/y_ref: (T, d_in)   bT_ref: (d_state, T)   c_ref: (T, d_state)
    # A_ref: (d_state, d_in)          D_ref: (1, d_in)
    # One grid step = one batch element; the whole time recurrence runs here.
    T = dl_ref.shape[0]
    A = A_ref[...]
    D = D_ref[...]
    B_all = bT_ref[...]                              # (d_state, T)

    def step(t, h):
        # one-hot column selector (avoids dynamic lane slicing / in-loop transposes)
        sel = (lax.broadcasted_iota(jnp.int32, (T, 1), 0) == t).astype(jnp.float32)
        b_col = jnp.dot(B_all, sel, preferred_element_type=jnp.float32)   # (d_state,1)
        dl = dl_ref[pl.ds(t, 1), :]                  # (1, d_in)
        u = u_ref[pl.ds(t, 1), :]                    # (1, d_in)
        c_row = c_ref[pl.ds(t, 1), :]                # (1, d_state)
        dA = jnp.exp(dl * A)                         # (d_state, d_in)
        h = dA * h + b_col * (dl * u)
        y = jnp.dot(c_row, h, preferred_element_type=jnp.float32) + D * u
        y_ref[pl.ds(t, 1), :] = y                    # lane-dense (1, d_in) row store
        return h

    lax.fori_loop(0, T, step, jnp.zeros(A.shape, jnp.float32))


def pallas_selective_scan(delta, u, A, Bm, Cm, Dv):
    # delta, u: (Bt, T, d_in);  Bm, Cm: (Bt, T, d_state);  A: (d_in, d_state);  Dv: (d_in,)
    Bt, T, d_in = u.shape
    d_state = A.shape[1]
    y = pl.pallas_call(
        _ssm_kernel,
        out_shape=jax.ShapeDtypeStruct((Bt, T, d_in), jnp.float32),
        grid=(Bt,),
        in_specs=[
            pl.BlockSpec((None, T, d_in), lambda b: (b, 0, 0)),
            pl.BlockSpec((None, T, d_in), lambda b: (b, 0, 0)),
            pl.BlockSpec((None, d_state, T), lambda b: (b, 0, 0)),
            pl.BlockSpec((None, T, d_state), lambda b: (b, 0, 0)),
            pl.BlockSpec((d_state, d_in), lambda b: (0, 0)),
            pl.BlockSpec((1, d_in), lambda b: (0, 0)),
        ],
        out_specs=pl.BlockSpec((None, T, d_in), lambda b: (b, 0, 0)),
        compiler_params=pltpu.CompilerParams(
            dimension_semantics=("parallel",),     # batch axis -> megacore sharding
            vmem_limit_bytes=_VMEM_LIMIT),
    )(delta.astype(jnp.float32), u.astype(jnp.float32),
      jnp.transpose(Bm, (0, 2, 1)).astype(jnp.float32),
      Cm.astype(jnp.float32),
      jnp.transpose(A).astype(jnp.float32),
      Dv.reshape(1, d_in).astype(jnp.float32))
    return y


# ------------------------------- glue ops ---------------------------------

def silu(x):
    return x * jax.nn.sigmoid(x)


def maxpool2(x):
    N, C, H, W = x.shape
    return jnp.max(x.reshape(N, C, H // 2, 2, W // 2, 2), axis=(3, 5))


def conv2d_bn_relu_pool(x, cw, cb, bw, bb, stride, pad):
    # conv (im2col + tiled GEMM with fused bias) + BatchNorm2d(+ReLU) fused apply + maxpool.
    N, Cin, H, W = x.shape
    Cout, _, kh, kw = cw.shape
    xp = jnp.pad(x, ((0, 0), (0, 0), (pad, pad), (pad, pad)))
    Ho = (H + 2 * pad - kh) // stride + 1
    Wo = (W + 2 * pad - kw) // stride + 1
    cols = []
    for i in range(kh):
        for j in range(kw):
            cols.append(xp[:, :, i:i + stride * Ho:stride, j:j + stride * Wo:stride])
    patches = jnp.stack(cols, axis=2)                      # [N, Cin, kh*kw, Ho, Wo]
    pm = patches.transpose(0, 3, 4, 1, 2).reshape(N * Ho * Wo, Cin * kh * kw)
    wm = cw.reshape(Cout, Cin * kh * kw).T
    out = pallas_matmul(pm, wm, bias=cb)                   # (N*Ho*Wo, Cout)
    out = batchnorm_fused(out, bw, bb, relu=True)
    h = out.reshape(N, Ho, Wo, Cout).transpose(0, 3, 1, 2)
    return maxpool2(h)


def conv3d_stem3_bn(x, w, b, bn_w, bn_b):
    # kernel (2,5,5), stride (2,1,1), pad (0,2,2) + BatchNorm3d; channels-last output.
    N, Cin, T, H, W = x.shape
    Cout = w.shape[0]
    xp = jnp.pad(x, ((0, 0), (0, 0), (0, 0), (2, 2), (2, 2)))
    To = (T - 2) // 2 + 1
    cols = []
    for kt in range(2):
        for i in range(5):
            for j in range(5):
                cols.append(xp[:, :, kt:kt + 2 * To:2, i:i + H, j:j + W])
    patches = jnp.stack(cols, axis=2)                      # [N, Cin, 50, To, H, W]
    pm = patches.transpose(0, 3, 4, 5, 1, 2).reshape(N * To * H * W, Cin * 50)
    wm = w.reshape(Cout, Cin * 50).T
    out = pallas_matmul(pm, wm, bias=b)
    out = batchnorm_fused(out, bn_w, bn_b, relu=False)
    return out.reshape(N, To, H, W, Cout)


# ------------------------------ module parts -------------------------------

def fusion_stem(x, p, apha=0.5, belta=0.5):
    N, D, C, H, W = x.shape
    x1 = jnp.concatenate([x[:, :1], x[:, :1], x[:, :D - 2]], axis=1)
    x2 = jnp.concatenate([x[:, :1], x[:, :D - 1]], axis=1)
    x3 = x
    x4 = jnp.concatenate([x[:, 1:], x[:, D - 1:]], axis=1)
    x5 = jnp.concatenate([x[:, 2:], x[:, D - 1:], x[:, D - 1:]], axis=1)
    xdiff_in = jnp.concatenate([x2 - x1, x3 - x2, x4 - x3, x5 - x4],
                               axis=2).reshape(N * D, 12, H, W)

    x_diff = conv2d_bn_relu_pool(xdiff_in, p['stem12_w'], p['stem12_b'],
                                 p['stem12_bn_w'], p['stem12_bn_b'], 2, 3)
    xs = conv2d_bn_relu_pool(x3.reshape(N * D, C, H, W), p['stem11_w'], p['stem11_b'],
                             p['stem11_bn_w'], p['stem11_bn_b'], 2, 3)
    x_path1 = conv2d_bn_relu_pool(apha * xs + belta * x_diff,
                                  p['stem21_w'], p['stem21_b'],
                                  p['stem21_bn_w'], p['stem21_bn_b'], 1, 3)
    x_path2 = conv2d_bn_relu_pool(x_diff, p['stem22_w'], p['stem22_b'],
                                  p['stem22_bn_w'], p['stem22_bn_b'], 1, 3)
    return apha * x_path1 + belta * x_path2


def mamba_forward(x, p):
    # x: (Bt, T, d_model)
    Bt, T, d_model = x.shape
    d_in, d_state = p['A_log'].shape
    dt_rank = p['dt_proj_w'].shape[1]
    d_conv = p['conv1d_w'].shape[2]

    xz = pallas_matmul(x.reshape(Bt * T, d_model),
                       p['in_proj_w'].T).reshape(Bt, T, 2 * d_in)
    xh, z = xz[..., :d_in], xz[..., d_in:]

    # depthwise causal conv1d (kernel d_conv, left pad d_conv-1) + SiLU; tiny -> plain JAX
    xt = xh.transpose(0, 2, 1)                                  # (Bt, d_in, T)
    xp_ = jnp.pad(xt, ((0, 0), (0, 0), (d_conv - 1, 0)))
    xc = sum(p['conv1d_w'][:, 0, k][None, :, None] * xp_[:, :, k:k + T]
             for k in range(d_conv))
    xc = silu(xc + p['conv1d_b'][None, :, None]).transpose(0, 2, 1)   # (Bt, T, d_in)

    x_dbl = pallas_matmul(xc.reshape(Bt * T, d_in), p['x_proj_w'].T)
    dt_low = x_dbl[:, :dt_rank]
    Bm = x_dbl[:, dt_rank:dt_rank + d_state].reshape(Bt, T, d_state)
    Cm = x_dbl[:, dt_rank + d_state:].reshape(Bt, T, d_state)
    # dt projection with bias + softplus fused into the GEMM epilogue
    delta = pallas_matmul(dt_low, p['dt_proj_w'].T, bias=p['dt_proj_b'],
                          activation="softplus").reshape(Bt, T, d_in)

    A = -jnp.exp(p['A_log'])
    y = pallas_selective_scan(delta, xc, A, Bm, Cm, p['D'])
    y = y * silu(z)
    return pallas_matmul(y.reshape(Bt * T, d_in),
                         p['out_proj_w'].T).reshape(Bt, T, d_model)


def freq_ffn(x, p):
    B, T, C = x.shape
    C2 = p['fc1_w'].shape[0]
    h = pallas_matmul(x.reshape(B * T, C), p['fc1_w'].reshape(C2, C).T)
    h = batchnorm_fused(h, p['bn1_w'], p['bn1_b'], relu=True).reshape(B, T, C2)
    # TODO(synk): FFT/IFFT have no Pallas primitive; computed with jnp.fft (XLA).
    xf = jnp.fft.fft(h, axis=1, norm='ortho')
    dr = jnp.diagonal(p['r'])
    di = jnp.diagonal(p['i'])
    re2, im2 = pallas_freq_mod(jnp.real(xf).reshape(B * T, C2),
                               jnp.imag(xf).reshape(B * T, C2),
                               dr, di, p['rb'], p['ib'])
    xf2 = lax.complex(re2, im2).reshape(B, T, C2)
    xr = jnp.real(jnp.fft.ifft(xf2, axis=1, norm='ortho')).astype(jnp.float32)
    out = pallas_matmul(xr.reshape(B * T, C2), p['fc2_w'].reshape(C, C2).T)
    out = batchnorm_fused(out, p['bn2_w'], p['bn2_b'], relu=False)
    return out.reshape(B, T, C)


def block_mamba(x, p):
    B, Dn, C = x.shape
    segment = 4                      # 2 ** (path - 1), path = 3
    tt = Dn // segment
    shifted = [x]
    for i in range(1, segment):
        s = i * tt
        shifted.append(jnp.concatenate([x[:, s:, :], x[:, Dn - s:, :]], axis=1))
    x_o = jnp.concatenate(shifted, axis=0)                      # (segment*B, Dn, C)

    # MambaLayer = LayerNorm + Mamba
    xo_norm = pallas_layernorm(x_o.reshape(-1, C), p['ln_attn_w'],
                               p['ln_attn_b']).reshape(x_o.shape)
    x_o = mamba_forward(xo_norm, p['mamba'])

    parts = [x_o[k * B:(k + 1) * B] for k in range(segment)]
    blocks = [parts[0][:, :tt, :]]
    for i in range(1, segment):
        acc = parts[0][:, tt * i:tt * (i + 1), :]
        for j in range(i):
            acc = acc + parts[j + 1][:, tt * (i - j - 1):tt * (i - j), :]
        blocks.append(acc / (i + 1))
    y = jnp.concatenate(blocks, axis=1)

    # TODO(synk): DropPath (stochastic depth) omitted — identity (inference behaviour).
    x = x + pallas_layernorm(y.reshape(-1, C), p['norm1_w'], p['norm1_b']).reshape(x.shape)
    xn2 = pallas_layernorm(x.reshape(-1, C), p['norm2_w'], p['norm2_b']).reshape(x.shape)
    x = x + freq_ffn(xn2, p['ffn'])
    return x


def rhythm_mamba_forward(x, params, embed_dim):
    B, D, C, H, W = x.shape
    h = fusion_stem(x, params['stem'])                               # [B*D, e/4, H/8, W/8]
    h = h.reshape(B, D, embed_dim // 4, H // 8, W // 8).transpose(0, 2, 1, 3, 4)
    h5 = conv3d_stem3_bn(h, params['stem3_w'], params['stem3_b'],
                         params['stem3_bn_w'], params['stem3_bn_b'])  # (B, To, H8, W8, e)
    Bc, To, Hc, Wc, Cc = h5.shape

    # sigmoid attention mask + spatial mean pool, lane-dense ((b,c,t) rows on lanes)
    xt = h5.transpose(2, 3, 0, 4, 1).reshape(Hc * Wc, Bc * Cc * To)
    pooled = pallas_mask_pool(xt).reshape(Bc, Cc, To)
    x_seq = pooled.transpose(0, 2, 1)                                # [B, T, e]

    for bp in params['blocks']:
        x_seq = block_mamba(x_seq, bp)

    r = x_seq.transpose(0, 2, 1)                                     # [B, e, T]
    r = jnp.repeat(r, 2, axis=-1)                                    # nearest upsample x2
    Bc, Cc, T2 = r.shape
    rows = r.transpose(0, 2, 1).reshape(Bc * T2, Cc)
    out = pallas_matmul(rows, params['last_w'].reshape(1, Cc).T,
                        bias=params['last_b'])                       # (Bc*T2, 1)
    return out.reshape(Bc, T2)


# ---------------------------- parameter init -------------------------------

def init_params(key, embed_dim=32, depth=2, mlp_ratio=2, d_state=48, d_conv=4, expand=2):
    dim4 = embed_dim // 4
    d_model = embed_dim
    d_in = expand * d_model
    dt_rank = math.ceil(d_model / 16)
    keys = iter(jax.random.split(key, 512))

    def nrm(shape, scale=0.02):
        return scale * jax.random.normal(next(keys), shape, dtype=jnp.float32)

    stem = {
        'stem11_w': nrm((dim4 // 2, 3, 7, 7), 0.05), 'stem11_b': jnp.zeros((dim4 // 2,)),
        'stem11_bn_w': jnp.ones((dim4 // 2,)), 'stem11_bn_b': jnp.zeros((dim4 // 2,)),
        'stem12_w': nrm((dim4 // 2, 12, 7, 7), 0.05), 'stem12_b': jnp.zeros((dim4 // 2,)),
        'stem12_bn_w': jnp.ones((dim4 // 2,)), 'stem12_bn_b': jnp.zeros((dim4 // 2,)),
        'stem21_w': nrm((dim4, dim4 // 2, 7, 7), 0.05), 'stem21_b': jnp.zeros((dim4,)),
        'stem21_bn_w': jnp.ones((dim4,)), 'stem21_bn_b': jnp.zeros((dim4,)),
        'stem22_w': nrm((dim4, dim4 // 2, 7, 7), 0.05), 'stem22_b': jnp.zeros((dim4,)),
        'stem22_bn_w': jnp.ones((dim4,)), 'stem22_bn_b': jnp.zeros((dim4,)),
    }

    blocks = []
    for _ in range(depth):
        mamba = {
            'in_proj_w': nrm((2 * d_in, d_model)),
            'conv1d_w': nrm((d_in, 1, d_conv), 0.1),
            'conv1d_b': jnp.zeros((d_in,)),
            'x_proj_w': nrm((dt_rank + 2 * d_state, d_in)),
            'dt_proj_w': nrm((d_in, dt_rank), 0.1),
            'dt_proj_b': jnp.full((d_in,), 0.05, dtype=jnp.float32),
            'A_log': jnp.log(jnp.broadcast_to(
                jnp.arange(1, d_state + 1, dtype=jnp.float32), (d_in, d_state))),
            'D': jnp.ones((d_in,), dtype=jnp.float32),
            'out_proj_w': nrm((d_model, d_in)),
        }
        ffn_dim = d_model * mlp_ratio
        ffn = {
            'fc1_w': nrm((ffn_dim, d_model, 1), 0.05),
            'bn1_w': jnp.ones((ffn_dim,)), 'bn1_b': jnp.zeros((ffn_dim,)),
            'r': nrm((ffn_dim, ffn_dim)), 'i': nrm((ffn_dim, ffn_dim)),
            'rb': nrm((ffn_dim,)), 'ib': nrm((ffn_dim,)),
            'fc2_w': nrm((d_model, ffn_dim, 1), 0.05),
            'bn2_w': jnp.ones((d_model,)), 'bn2_b': jnp.zeros((d_model,)),
        }
        blocks.append({
            'ln_attn_w': jnp.ones((d_model,)), 'ln_attn_b': jnp.zeros((d_model,)),
            'norm1_w': jnp.ones((d_model,)), 'norm1_b': jnp.zeros((d_model,)),
            'norm2_w': jnp.ones((d_model,)), 'norm2_b': jnp.zeros((d_model,)),
            'mamba': mamba, 'ffn': ffn,
        })

    return {
        'stem': stem,
        'stem3_w': nrm((embed_dim, dim4, 2, 5, 5), 0.05),
        'stem3_b': jnp.zeros((embed_dim,)),
        'stem3_bn_w': jnp.ones((embed_dim,)), 'stem3_bn_b': jnp.zeros((embed_dim,)),
        'blocks': blocks,
        'last_w': nrm((1, embed_dim, 1), 0.05),
        'last_b': jnp.zeros((1,)),
    }


# --------------------------------- main ------------------------------------

if __name__ == "__main__":
    key = jax.random.PRNGKey(0)
    kx, kp = jax.random.split(key)

    # small shapes: B=2, D=8 frames, C=3, H=W=16; embed_dim=32, depth=2, mlp_ratio=2
    B, D, C, H, W = 2, 8, 3, 16, 16
    embed_dim, depth, mlp_ratio = 32, 2, 2

    x = jax.random.normal(kx, (B, D, C, H, W), dtype=jnp.float32)
    params = init_params(kp, embed_dim=embed_dim, depth=depth, mlp_ratio=mlp_ratio)

    fwd = jax.jit(partial(rhythm_mamba_forward, embed_dim=embed_dim))
    out = fwd(x, params)
    out = jax.block_until_ready(out)

    assert out.shape == (B, D), f"unexpected output shape {out.shape}"
    assert bool(jnp.all(jnp.isfinite(out)))
    print("KERNEL_OK")
</pallas_src>

<mosaic_0001>
module attributes {stable_mosaic.version = 11 : i64} {
  func.func @_matmul_kernel(%arg0: i32, %arg1: i32, %arg2: i32, %arg3: memref<256x640xbf16, #tpu.memory_space<vmem>>, %arg4: memref<640x128xbf16, #tpu.memory_space<vmem>>, %arg5: memref<1x128xf32, #tpu.memory_space<vmem>>, %arg6: memref<256x128xf32, #tpu.memory_space<vmem>>, %arg7: memref<256x128xf32, #tpu.memory_space<vmem>>) attributes {dimension_semantics = [#tpu.dimension_semantics<parallel>, #tpu.dimension_semantics<parallel>, #tpu.dimension_semantics<arbitrary>], iteration_bounds = array<i64: 4, 1, 1>, scalar_prefetch = 0 : i64, scratch_operands = 1 : i64, tpu.core_type = #tpu.core_type<tc>, window_params = [{transform_indices = @transform_0, window_bounds = array<i64: 256, 640>}, {transform_indices = @transform_1, window_bounds = array<i64: 640, 128>}, {transform_indices = @transform_2, window_bounds = array<i64: 1, 128>}, {transform_indices = @transform_3, window_bounds = array<i64: 256, 128>}]} {
    %c0_i32 = arith.constant 0 : i32
    %0 = arith.cmpi eq, %arg2, %c0_i32 : i32
    %1 = arith.extui %0 : i1 to i32
    %c0_i32_0 = arith.constant 0 : i32
    %2 = arith.cmpi ne, %1, %c0_i32_0 : i32
    scf.if %2 {
      %cst_10 = arith.constant 0.000000e+00 : f32
      %12 = vector.broadcast %cst_10 : f32 to vector<256x128xf32>
      %c0_11 = arith.constant 0 : index
      %c0_12 = arith.constant 0 : index
      %13 = vector.load %arg7[%c0_11, %c0_12] : memref<256x128xf32, #tpu.memory_space<vmem>>, vector<256x128xf32>
      tpu.vector_store %arg7[%c0_11, %c0_12], %12 {strides = array<i32>} : memref<256x128xf32, #tpu.memory_space<vmem>>, vector<256x128xf32>,
    } else {
    }
    %c0 = arith.constant 0 : index
    %c0_1 = arith.constant 0 : index
    %3 = vector.load %arg7[%c0, %c0_1] : memref<256x128xf32, #tpu.memory_space<vmem>>, vector<256x128xf32>
    %c0_2 = arith.constant 0 : index
    %c0_3 = arith.constant 0 : index
    %4 = vector.load %arg3[%c0_2, %c0_3] : memref<256x640xbf16, #tpu.memory_space<vmem>>, vector<256x640xbf16>
    %c0_4 = arith.constant 0 : index
    %c0_5 = arith.constant 0 : index
    %5 = vector.load %arg4[%c0_4, %c0_5] : memref<640x128xbf16, #tpu.memory_space<vmem>>, vector<640x128xbf16>
    %cst = arith.constant dense<0.000000e+00> : vector<256x128xf32>
    %6 = tpu.matmul %4, %5, %cst {dimension_numbers = #tpu.dot_dimension_numbers<[1], [0], [0], [1], [0, 0, 1, 1], [], []>} : vector<256x640xbf16>, vector<640x128xbf16>, vector<256x128xf32> -> vector<256x128xf32>
    %7 = arith.addf %3, %6 : vector<256x128xf32>
    %c0_6 = arith.constant 0 : index
    %c0_7 = arith.constant 0 : index
    %8 = vector.load %arg7[%c0_6, %c0_7] : memref<256x128xf32, #tpu.memory_space<vmem>>, vector<256x128xf32>
    tpu.vector_store %arg7[%c0_6, %c0_7], %7 {strides = array<i32>} : memref<256x128xf32, #tpu.memory_space<vmem>>, vector<256x128xf32>,
    %c0_i32_8 = arith.constant 0 : i32
    %9 = arith.cmpi eq, %arg2, %c0_i32_8 : i32
    %10 = arith.extui %9 : i1 to i32
    %c0_i32_9 = arith.constant 0 : i32
    %11 = arith.cmpi ne, %10, %c0_i32_9 : i32
    scf.if %11 {
      %c0_10 = arith.constant 0 : index
      %c0_11 = arith.constant 0 : index
      %12 = vector.load %arg7[%c0_10, %c0_11] : memref<256x128xf32, #tpu.memory_space<vmem>>, vector<256x128xf32>
      %c0_12 = arith.constant 0 : index
      %c0_13 = arith.constant 0 : index
      %13 = vector.load %arg5[%c0_12, %c0_13] : memref<1x128xf32, #tpu.memory_space<vmem>>, vector<1x128xf32>
      %14 = vector.broadcast %13 : vector<1x128xf32> to vector<256x128xf32>
      %15 = arith.addf %12, %14 : vector<256x128xf32>
      %c0_14 = arith.constant 0 : index
      %c0_15 = arith.constant 0 : index
      %16 = vector.load %arg6[%c0_14, %c0_15] : memref<256x128xf32, #tpu.memory_space<vmem>>, vector<256x128xf32>
      tpu.vector_store %arg6[%c0_14, %c0_15], %15 {strides = array<i32>} : memref<256x128xf32, #tpu.memory_space<vmem>>, vector<256x128xf32>,
    } else {
    }
    return
  }
  func.func @transform_0(%arg0: i32, %arg1: i32, %arg2: i32) -> (i32, i32) {
    %c0_i32 = arith.constant 0 : i32
    return %arg0, %arg2 : i32, i32
  }
  func.func @transform_1(%arg0: i32, %arg1: i32, %arg2: i32) -> (i32, i32) {
    %c0_i32 = arith.constant 0 : i32
    return %arg2, %arg1 : i32, i32
  }
  func.func @transform_2(%arg0: i32, %arg1: i32, %arg2: i32) -> (i32, i32) {
    %c0_i32 = arith.constant 0 : i32
    %c0_i32_0 = arith.constant 0 : i32
    return %c0_i32, %arg1 : i32, i32
  }
  func.func @transform_3(%arg0: i32, %arg1: i32, %arg2: i32) -> (i32, i32) {
    %c0_i32 = arith.constant 0 : i32
    return %arg0, %arg1 : i32, i32
  }
}

module attributes {stable_mosaic.version = 11 : i64} {
  func.func @_affine_kernel(%arg0: i32, %arg1: memref<1024x4xf32, #tpu.memory_space<vmem>>, %arg2: memref<1x4xf32, #tpu.memory_space<vmem>>, %arg3: memref<1x4xf32, #tpu.memory_space<vmem>>, %arg4: memref<1024x4xf32, #tpu.memory_space<vmem>>) attributes {dimension_semantics = [#tpu.dimension_semantics<parallel>], iteration_bounds = array<i64: 1>, scalar_prefetch = 0 : i64, scratch_operands = 0 : i64, tpu.core_type = #tpu.core_type<tc>, window_params = [{transform_indices = @transform_0, window_bounds = array<i64: 1024, 4>}, {pipeline_mode = #tpu.pipeline_mode<synchronous>, transform_indices = @transform_1, window_bounds = array<i64: 1, 4>}, {pipeline_mode = #tpu.pipeline_mode<synchronous>, transform_indices = @transform_2, window_bounds = array<i64: 1, 4>}, {transform_indices = @transform_3, window_bounds = array<i64: 1024, 4>}]} {
    %c0 = arith.constant 0 : index
    %c0_0 = arith.constant 0 : index
    %0 = vector.load %arg1[%c0, %c0_0] : memref<1024x4xf32, #tpu.memory_space<vmem>>, vector<1024x4xf32>
    %c0_1 = arith.constant 0 : index
    %c0_2 = arith.constant 0 : index
    %1 = vector.load %arg2[%c0_1, %c0_2] : memref<1x4xf32, #tpu.memory_space<vmem>>, vector<1x4xf32>
    %2 = vector.broadcast %1 : vector<1x4xf32> to vector<1024x4xf32>
    %3 = arith.mulf %0, %2 : vector<1024x4xf32>
    %c0_3 = arith.constant 0 : index
    %c0_4 = arith.constant 0 : index
    %4 = vector.load %arg3[%c0_3, %c0_4] : memref<1x4xf32, #tpu.memory_space<vmem>>, vector<1x4xf32>
    %5 = vector.broadcast %4 : vector<1x4xf32> to vector<1024x4xf32>
    %6 = arith.addf %3, %5 : vector<1024x4xf32>
    %cst = arith.constant 0.000000e+00 : f32
    %7 = vector.broadcast %cst : f32 to vector<1024x4xf32>
    %8 = arith.maximumf %6, %7 : vector<1024x4xf32>
    %c0_5 = arith.constant 0 : index
    %c0_6 = arith.constant 0 : index
    %9 = vector.load %arg4[%c0_5, %c0_6] : memref<1024x4xf32, #tpu.memory_space<vmem>>, vector<1024x4xf32>
    tpu.vector_store %arg4[%c0_5, %c0_6], %8 {strides = array<i32>} : memref<1024x4xf32, #tpu.memory_space<vmem>>, vector<1024x4xf32>,
    return
  }
  func.func @transform_0(%arg0: i32) -> (i32, i32) {
    %c0_i32 = arith.constant 0 : i32
    %c0_i32_0 = arith.constant 0 : i32
    return %arg0, %c0_i32 : i32, i32
  }
  func.func @transform_1(%arg0: i32) -> (i32, i32) {
    %c0_i32 = arith.constant 0 : i32
    %c0_i32_0 = arith.constant 0 : i32
    %c0_i32_1 = arith.constant 0 : i32
    return %c0_i32, %c0_i32_0 : i32, i32
  }
  func.func @transform_2(%arg0: i32) -> (i32, i32) {
    %c0_i32 = arith.constant 0 : i32
    %c0_i32_0 = arith.constant 0 : i32
    %c0_i32_1 = arith.constant 0 : i32
    return %c0_i32, %c0_i32_0 : i32, i32
  }
  func.func @transform_3(%arg0: i32) -> (i32, i32) {
    %c0_i32 = arith.constant 0 : i32
    %c0_i32_0 = arith.constant 0 : i32
    return %arg0, %c0_i32 : i32, i32
  }
}

module attributes {stable_mosaic.version = 11 : i64} {
  func.func @_matmul_kernel(%arg0: i32, %arg1: i32, %arg2: i32, %arg3: memref<256x256xbf16, #tpu.memory_space<vmem>>, %arg4: memref<256x128xbf16, #tpu.memory_space<vmem>>, %arg5: memref<1x128xf32, #tpu.memory_space<vmem>>, %arg6: memref<256x128xf32, #tpu.memory_space<vmem>>, %arg7: memref<256x128xf32, #tpu.memory_space<vmem>>) attributes {dimension_semantics = [#tpu.dimension_semantics<parallel>, #tpu.dimension_semantics<parallel>, #tpu.dimension_semantics<arbitrary>], iteration_bounds = array<i64: 1, 1, 1>, scalar_prefetch = 0 : i64, scratch_operands = 1 : i64, tpu.core_type = #tpu.core_type<tc>, window_params = [{transform_indices = @transform_0, window_bounds = array<i64: 256, 256>}, {transform_indices = @transform_1, window_bounds = array<i64: 256, 128>}, {transform_indices = @transform_2, window_bounds = array<i64: 1, 128>}, {transform_indices = @transform_3, window_bounds = array<i64: 256, 128>}]} {
    %c0_i32 = arith.constant 0 : i32
    %0 = arith.cmpi eq, %arg2, %c0_i32 : i32
    %1 = arith.extui %0 : i1 to i32
    %c0_i32_0 = arith.constant 0 : i32
    %2 = arith.cmpi ne, %1, %c0_i32_0 : i32
    scf.if %2 {
      %cst_10 = arith.constant 0.000000e+00 : f32
      %12 = vector.broadcast %cst_10 : f32 to vector<256x128xf32>
      %c0_11 = arith.constant 0 : index
      %c0_12 = arith.constant 0 : index
      %13 = vector.load %arg7[%c0_11, %c0_12] : memref<256x128xf32, #tpu.memory_space<vmem>>, vector<256x128xf32>
      tpu.vector_store %arg7[%c0_11, %c0_12], %12 {strides = array<i32>} : memref<256x128xf32, #tpu.memory_space<vmem>>, vector<256x128xf32>,
    } else {
    }
    %c0 = arith.constant 0 : index
    %c0_1 = arith.constant 0 : index
    %3 = vector.load %arg7[%c0, %c0_1] : memref<256x128xf32, #tpu.memory_space<vmem>>, vector<256x128xf32>
    %c0_2 = arith.constant 0 : index
    %c0_3 = arith.constant 0 : index
    %4 = vector.load %arg3[%c0_2, %c0_3] : memref<256x256xbf16, #tpu.memory_space<vmem>>, vector<256x256xbf16>
    %c0_4 = arith.constant 0 : index
    %c0_5 = arith.constant 0 : index
    %5 = vector.load %arg4[%c0_4, %c0_5] : memref<256x128xbf16, #tpu.memory_space<vmem>>, vector<256x128xbf16>
    %cst = arith.constant dense<0.000000e+00> : vector<256x128xf32>
    %6 = tpu.matmul %4, %5, %cst {dimension_numbers = #tpu.dot_dimension_numbers<[1], [0], [0], [1], [0, 0, 1, 1], [], []>} : vector<256x256xbf16>, vector<256x128xbf16>, vector<256x128xf32> -> vector<256x128xf32>
    %7 = arith.addf %3, %6 : vector<256x128xf32>
    %c0_6 = arith.constant 0 : index
    %c0_7 = arith.constant 0 : index
    %8 = vector.load %arg7[%c0_6, %c0_7] : memref<256x128xf32, #tpu.memory_space<vmem>>, vector<256x128xf32>
    tpu.vector_store %arg7[%c0_6, %c0_7], %7 {strides = array<i32>} : memref<256x128xf32, #tpu.memory_space<vmem>>, vector<256x128xf32>,
    %c0_i32_8 = arith.constant 0 : i32
    %9 = arith.cmpi eq, %arg2, %c0_i32_8 : i32
    %10 = arith.extui %9 : i1 to i32
    %c0_i32_9 = arith.constant 0 : i32
    %11 = arith.cmpi ne, %10, %c0_i32_9 : i32
    scf.if %11 {
      %c0_10 = arith.constant 0 : index
      %c0_11 = arith.constant 0 : index
      %12 = vector.load %arg7[%c0_10, %c0_11] : memref<256x128xf32, #tpu.memory_space<vmem>>, vector<256x128xf32>
      %c0_12 = arith.constant 0 : index
      %c0_13 = arith.constant 0 : index
      %13 = vector.load %arg5[%c0_12, %c0_13] : memref<1x128xf32, #tpu.memory_space<vmem>>, vector<1x128xf32>
      %14 = vector.broadcast %13 : vector<1x128xf32> to vector<256x128xf32>
      %15 = arith.addf %12, %14 : vector<256x128xf32>
      %c0_14 = arith.constant 0 : index
      %c0_15 = arith.constant 0 : index
      %16 = vector.load %arg6[%c0_14, %c0_15] : memref<256x128xf32, #tpu.memory_space<vmem>>, vector<256x128xf32>
      tpu.vector_store %arg6[%c0_14, %c0_15], %15 {strides = array<i32>} : memref<256x128xf32, #tpu.memory_space<vmem>>, vector<256x128xf32>,
    } else {
    }
    return
  }
  func.func @transform_0(%arg0: i32, %arg1: i32, %arg2: i32) -> (i32, i32) {
    %c0_i32 = arith.constant 0 : i32
    return %arg0, %arg2 : i32, i32
  }
  func.func @transform_1(%arg0: i32, %arg1: i32, %arg2: i32) -> (i32, i32) {
    %c0_i32 = arith.constant 0 : i32
    return %arg2, %arg1 : i32, i32
  }
  func.func @transform_2(%arg0: i32, %arg1: i32, %arg2: i32) -> (i32, i32) {
    %c0_i32 = arith.constant 0 : i32
    %c0_i32_0 = arith.constant 0 : i32
    return %c0_i32, %arg1 : i32, i32
  }
  func.func @transform_3(%arg0: i32, %arg1: i32, %arg2: i32) -> (i32, i32) {
    %c0_i32 = arith.constant 0 : i32
    return %arg0, %arg1 : i32, i32
  }
}

module attributes {stable_mosaic.version = 11 : i64} {
  func.func @_matmul_kernel(%arg0: i32, %arg1: i32, %arg2: i32, %arg3: memref<256x256xbf16, #tpu.memory_space<vmem>>, %arg4: memref<256x128xbf16, #tpu.memory_space<vmem>>, %arg5: memref<1x128xf32, #tpu.memory_space<vmem>>, %arg6: memref<256x128xf32, #tpu.memory_space<vmem>>, %arg7: memref<256x128xf32, #tpu.memory_space<vmem>>) attributes {dimension_semantics = [#tpu.dimension_semantics<parallel>, #tpu.dimension_semantics<parallel>, #tpu.dimension_semantics<arbitrary>], iteration_bounds = array<i64: 4, 1, 1>, scalar_prefetch = 0 : i64, scratch_operands = 1 : i64, tpu.core_type = #tpu.core_type<tc>, window_params = [{transform_indices = @transform_0, window_bounds = array<i64: 256, 256>}, {transform_indices = @transform_1, window_bounds = array<i64: 256, 128>}, {transform_indices = @transform_2, window_bounds = array<i64: 1, 128>}, {transform_indices = @transform_3, window_bounds = array<i64: 256, 128>}]} {
    %c0_i32 = arith.constant 0 : i32
    %0 = arith.cmpi eq, %arg2, %c0_i32 : i32
    %1 = arith.extui %0 : i1 to i32
    %c0_i32_0 = arith.constant 0 : i32
    %2 = arith.cmpi ne, %1, %c0_i32_0 : i32
    scf.if %2 {
      %cst_10 = arith.constant 0.000000e+00 : f32
      %12 = vector.broadcast %cst_10 : f32 to vector<256x128xf32>
      %c0_11 = arith.constant 0 : index
      %c0_12 = arith.constant 0 : index
      %13 = vector.load %arg7[%c0_11, %c0_12] : memref<256x128xf32, #tpu.memory_space<vmem>>, vector<256x128xf32>
      tpu.vector_store %arg7[%c0_11, %c0_12], %12 {strides = array<i32>} : memref<256x128xf32, #tpu.memory_space<vmem>>, vector<256x128xf32>,
    } else {
    }
    %c0 = arith.constant 0 : index
    %c0_1 = arith.constant 0 : index
    %3 = vector.load %arg7[%c0, %c0_1] : memref<256x128xf32, #tpu.memory_space<vmem>>, vector<256x128xf32>
    %c0_2 = arith.constant 0 : index
    %c0_3 = arith.constant 0 : index
    %4 = vector.load %arg3[%c0_2, %c0_3] : memref<256x256xbf16, #tpu.memory_space<vmem>>, vector<256x256xbf16>
    %c0_4 = arith.constant 0 : index
    %c0_5 = arith.constant 0 : index
    %5 = vector.load %arg4[%c0_4, %c0_5] : memref<256x128xbf16, #tpu.memory_space<vmem>>, vector<256x128xbf16>
    %cst = arith.constant dense<0.000000e+00> : vector<256x128xf32>
    %6 = tpu.matmul %4, %5, %cst {dimension_numbers = #tpu.dot_dimension_numbers<[1], [0], [0], [1], [0, 0, 1, 1], [], []>} : vector<256x256xbf16>, vector<256x128xbf16>, vector<256x128xf32> -> vector<256x128xf32>
    %7 = arith.addf %3, %6 : vector<256x128xf32>
    %c0_6 = arith.constant 0 : index
    %c0_7 = arith.constant 0 : index
    %8 = vector.load %arg7[%c0_6, %c0_7] : memref<256x128xf32, #tpu.memory_space<vmem>>, vector<256x128xf32>
    tpu.vector_store %arg7[%c0_6, %c0_7], %7 {strides = array<i32>} : memref<256x128xf32, #tpu.memory_space<vmem>>, vector<256x128xf32>,
    %c0_i32_8 = arith.constant 0 : i32
    %9 = arith.cmpi eq, %arg2, %c0_i32_8 : i32
    %10 = arith.extui %9 : i1 to i32
    %c0_i32_9 = arith.constant 0 : i32
    %11 = arith.cmpi ne, %10, %c0_i32_9 : i32
    scf.if %11 {
      %c0_10 = arith.constant 0 : index
      %c0_11 = arith.constant 0 : index
      %12 = vector.load %arg7[%c0_10, %c0_11] : memref<256x128xf32, #tpu.memory_space<vmem>>, vector<256x128xf32>
      %c0_12 = arith.constant 0 : index
      %c0_13 = arith.constant 0 : index
      %13 = vector.load %arg5[%c0_12, %c0_13] : memref<1x128xf32, #tpu.memory_space<vmem>>, vector<1x128xf32>
      %14 = vector.broadcast %13 : vector<1x128xf32> to vector<256x128xf32>
      %15 = arith.addf %12, %14 : vector<256x128xf32>
      %c0_14 = arith.constant 0 : index
      %c0_15 = arith.constant 0 : index
      %16 = vector.load %arg6[%c0_14, %c0_15] : memref<256x128xf32, #tpu.memory_space<vmem>>, vector<256x128xf32>
      tpu.vector_store %arg6[%c0_14, %c0_15], %15 {strides = array<i32>} : memref<256x128xf32, #tpu.memory_space<vmem>>, vector<256x128xf32>,
    } else {
    }
    return
  }
  func.func @transform_0(%arg0: i32, %arg1: i32, %arg2: i32) -> (i32, i32) {
    %c0_i32 = arith.constant 0 : i32
    return %arg0, %arg2 : i32, i32
  }
  func.func @transform_1(%arg0: i32, %arg1: i32, %arg2: i32) -> (i32, i32) {
    %c0_i32 = arith.constant 0 : i32
    return %arg2, %arg1 : i32, i32
  }
  func.func @transform_2(%arg0: i32, %arg1: i32, %arg2: i32) -> (i32, i32) {
    %c0_i32 = arith.constant 0 : i32
    %c0_i32_0 = arith.constant 0 : i32
    return %c0_i32, %arg1 : i32, i32
  }
  func.func @transform_3(%arg0: i32, %arg1: i32, %arg2: i32) -> (i32, i32) {
    %c0_i32 = arith.constant 0 : i32
    return %arg0, %arg1 : i32, i32
  }
}

module attributes {stable_mosaic.version = 11 : i64} {
  func.func @_matmul_kernel(%arg0: i32, %arg1: i32, %arg2: i32, %arg3: memref<256x256xbf16, #tpu.memory_space<vmem>>, %arg4: memref<256x128xbf16, #tpu.memory_space<vmem>>, %arg5: memref<1x128xf32, #tpu.memory_space<vmem>>, %arg6: memref<256x128xf32, #tpu.memory_space<vmem>>, %arg7: memref<256x128xf32, #tpu.memory_space<vmem>>) attributes {dimension_semantics = [#tpu.dimension_semantics<parallel>, #tpu.dimension_semantics<parallel>, #tpu.dimension_semantics<arbitrary>], iteration_bounds = array<i64: 1, 1, 1>, scalar_prefetch = 0 : i64, scratch_operands = 1 : i64, tpu.core_type = #tpu.core_type<tc>, window_params = [{transform_indices = @transform_0, window_bounds = array<i64: 256, 256>}, {transform_indices = @transform_1, window_bounds = array<i64: 256, 128>}, {transform_indices = @transform_2, window_bounds = array<i64: 1, 128>}, {transform_indices = @transform_3, window_bounds = array<i64: 256, 128>}]} {
    %c0_i32 = arith.constant 0 : i32
    %0 = arith.cmpi eq, %arg2, %c0_i32 : i32
    %1 = arith.extui %0 : i1 to i32
    %c0_i32_0 = arith.constant 0 : i32
    %2 = arith.cmpi ne, %1, %c0_i32_0 : i32
    scf.if %2 {
      %cst_10 = arith.constant 0.000000e+00 : f32
      %12 = vector.broadcast %cst_10 : f32 to vector<256x128xf32>
      %c0_11 = arith.constant 0 : index
      %c0_12 = arith.constant 0 : index
      %13 = vector.load %arg7[%c0_11, %c0_12] : memref<256x128xf32, #tpu.memory_space<vmem>>, vector<256x128xf32>
      tpu.vector_store %arg7[%c0_11, %c0_12], %12 {strides = array<i32>} : memref<256x128xf32, #tpu.memory_space<vmem>>, vector<256x128xf32>,
    } else {
    }
    %c0 = arith.constant 0 : index
    %c0_1 = arith.constant 0 : index
    %3 = vector.load %arg7[%c0, %c0_1] : memref<256x128xf32, #tpu.memory_space<vmem>>, vector<256x128xf32>
    %c0_2 = arith.constant 0 : index
    %c0_3 = arith.constant 0 : index
    %4 = vector.load %arg3[%c0_2, %c0_3] : memref<256x256xbf16, #tpu.memory_space<vmem>>, vector<256x256xbf16>
    %c0_4 = arith.constant 0 : index
    %c0_5 = arith.constant 0 : index
    %5 = vector.load %arg4[%c0_4, %c0_5] : memref<256x128xbf16, #tpu.memory_space<vmem>>, vector<256x128xbf16>
    %cst = arith.constant dense<0.000000e+00> : vector<256x128xf32>
    %6 = tpu.matmul %4, %5, %cst {dimension_numbers = #tpu.dot_dimension_numbers<[1], [0], [0], [1], [0, 0, 1, 1], [], []>} : vector<256x256xbf16>, vector<256x128xbf16>, vector<256x128xf32> -> vector<256x128xf32>
    %7 = arith.addf %3, %6 : vector<256x128xf32>
    %c0_6 = arith.constant 0 : index
    %c0_7 = arith.constant 0 : index
    %8 = vector.load %arg7[%c0_6, %c0_7] : memref<256x128xf32, #tpu.memory_space<vmem>>, vector<256x128xf32>
    tpu.vector_store %arg7[%c0_6, %c0_7], %7 {strides = array<i32>} : memref<256x128xf32, #tpu.memory_space<vmem>>, vector<256x128xf32>,
    %c0_i32_8 = arith.constant 0 : i32
    %9 = arith.cmpi eq, %arg2, %c0_i32_8 : i32
    %10 = arith.extui %9 : i1 to i32
    %c0_i32_9 = arith.constant 0 : i32
    %11 = arith.cmpi ne, %10, %c0_i32_9 : i32
    scf.if %11 {
      %c0_10 = arith.constant 0 : index
      %c0_11 = arith.constant 0 : index
      %12 = vector.load %arg7[%c0_10, %c0_11] : memref<256x128xf32, #tpu.memory_space<vmem>>, vector<256x128xf32>
      %c0_12 = arith.constant 0 : index
      %c0_13 = arith.constant 0 : index
      %13 = vector.load %arg5[%c0_12, %c0_13] : memref<1x128xf32, #tpu.memory_space<vmem>>, vector<1x128xf32>
      %14 = vector.broadcast %13 : vector<1x128xf32> to vector<256x128xf32>
      %15 = arith.addf %12, %14 : vector<256x128xf32>
      %c0_14 = arith.constant 0 : index
      %c0_15 = arith.constant 0 : index
      %16 = vector.load %arg6[%c0_14, %c0_15] : memref<256x128xf32, #tpu.memory_space<vmem>>, vector<256x128xf32>
      tpu.vector_store %arg6[%c0_14, %c0_15], %15 {strides = array<i32>} : memref<256x128xf32, #tpu.memory_space<vmem>>, vector<256x128xf32>,
    } else {
    }
    return
  }
  func.func @transform_0(%arg0: i32, %arg1: i32, %arg2: i32) -> (i32, i32) {
    %c0_i32 = arith.constant 0 : i32
    return %arg0, %arg2 : i32, i32
  }
  func.func @transform_1(%arg0: i32, %arg1: i32, %arg2: i32) -> (i32, i32) {
    %c0_i32 = arith.constant 0 : i32
    return %arg2, %arg1 : i32, i32
  }
  func.func @transform_2(%arg0: i32, %arg1: i32, %arg2: i32) -> (i32, i32) {
    %c0_i32 = arith.constant 0 : i32
    %c0_i32_0 = arith.constant 0 : i32
    return %c0_i32, %arg1 : i32, i32
  }
  func.func @transform_3(%arg0: i32, %arg1: i32, %arg2: i32) -> (i32, i32) {
    %c0_i32 = arith.constant 0 : i32
    return %arg0, %arg1 : i32, i32
  }
}

module attributes {stable_mosaic.version = 11 : i64} {
  func.func @_affine_kernel(%arg0: i32, %arg1: memref<256x8xf32, #tpu.memory_space<vmem>>, %arg2: memref<1x8xf32, #tpu.memory_space<vmem>>, %arg3: memref<1x8xf32, #tpu.memory_space<vmem>>, %arg4: memref<256x8xf32, #tpu.memory_space<vmem>>) attributes {dimension_semantics = [#tpu.dimension_semantics<parallel>], iteration_bounds = array<i64: 1>, scalar_prefetch = 0 : i64, scratch_operands = 0 : i64, tpu.core_type = #tpu.core_type<tc>, window_params = [{transform_indices = @transform_0, window_bounds = array<i64: 256, 8>}, {pipeline_mode = #tpu.pipeline_mode<synchronous>, transform_indices = @transform_1, window_bounds = array<i64: 1, 8>}, {pipeline_mode = #tpu.pipeline_mode<synchronous>, transform_indices = @transform_2, window_bounds = array<i64: 1, 8>}, {transform_indices = @transform_3, window_bounds = array<i64: 256, 8>}]} {
    %c0 = arith.constant 0 : index
    %c0_0 = arith.constant 0 : index
    %0 = vector.load %arg1[%c0, %c0_0] : memref<256x8xf32, #tpu.memory_space<vmem>>, vector<256x8xf32>
    %c0_1 = arith.constant 0 : index
    %c0_2 = arith.constant 0 : index
    %1 = vector.load %arg2[%c0_1, %c0_2] : memref<1x8xf32, #tpu.memory_space<vmem>>, vector<1x8xf32>
    %2 = vector.broadcast %1 : vector<1x8xf32> to vector<256x8xf32>
    %3 = arith.mulf %0, %2 : vector<256x8xf32>
    %c0_3 = arith.constant 0 : index
    %c0_4 = arith.constant 0 : index
    %4 = vector.load %arg3[%c0_3, %c0_4] : memref<1x8xf32, #tpu.memory_space<vmem>>, vector<1x8xf32>
    %5 = vector.broadcast %4 : vector<1x8xf32> to vector<256x8xf32>
    %6 = arith.addf %3, %5 : vector<256x8xf32>
    %cst = arith.constant 0.000000e+00 : f32
    %7 = vector.broadcast %cst : f32 to vector<256x8xf32>
    %8 = arith.maximumf %6, %7 : vector<256x8xf32>
    %c0_5 = arith.constant 0 : index
    %c0_6 = arith.constant 0 : index
    %9 = vector.load %arg4[%c0_5, %c0_6] : memref<256x8xf32, #tpu.memory_space<vmem>>, vector<256x8xf32>
    tpu.vector_store %arg4[%c0_5, %c0_6], %8 {strides = array<i32>} : memref<256x8xf32, #tpu.memory_space<vmem>>, vector<256x8xf32>,
    return
  }
  func.func @transform_0(%arg0: i32) -> (i32, i32) {
    %c0_i32 = arith.constant 0 : i32
    %c0_i32_0 = arith.constant 0 : i32
    return %arg0, %c0_i32 : i32, i32
  }
  func.func @transform_1(%arg0: i32) -> (i32, i32) {
    %c0_i32 = arith.constant 0 : i32
    %c0_i32_0 = arith.constant 0 : i32
    %c0_i32_1 = arith.constant 0 : i32
    return %c0_i32, %c0_i32_0 : i32, i32
  }
  func.func @transform_2(%arg0: i32) -> (i32, i32) {
    %c0_i32 = arith.constant 0 : i32
    %c0_i32_0 = arith.constant 0 : i32
    %c0_i32_1 = arith.constant 0 : i32
    return %c0_i32, %c0_i32_0 : i32, i32
  }
  func.func @transform_3(%arg0: i32) -> (i32, i32) {
    %c0_i32 = arith.constant 0 : i32
    %c0_i32_0 = arith.constant 0 : i32
    return %arg0, %c0_i32 : i32, i32
  }
}

module attributes {stable_mosaic.version = 11 : i64} {
  func.func @_matmul_kernel(%arg0: i32, %arg1: i32, %arg2: i32, %arg3: memref<32x512xbf16, #tpu.memory_space<vmem>>, %arg4: memref<512x128xbf16, #tpu.memory_space<vmem>>, %arg5: memref<1x128xf32, #tpu.memory_space<vmem>>, %arg6: memref<32x128xf32, #tpu.memory_space<vmem>>, %arg7: memref<32x128xf32, #tpu.memory_space<vmem>>) attributes {dimension_semantics = [#tpu.dimension_semantics<parallel>, #tpu.dimension_semantics<parallel>, #tpu.dimension_semantics<arbitrary>], iteration_bounds = array<i64: 1, 1, 1>, scalar_prefetch = 0 : i64, scratch_operands = 1 : i64, tpu.core_type = #tpu.core_type<tc>, window_params = [{transform_indices = @transform_0, window_bounds = array<i64: 32, 512>}, {transform_indices = @transform_1, window_bounds = array<i64: 512, 128>}, {transform_indices = @transform_2, window_bounds = array<i64: 1, 128>}, {transform_indices = @transform_3, window_bounds = array<i64: 32, 128>}]} {
    %c0_i32 = arith.constant 0 : i32
    %0 = arith.cmpi eq, %arg2, %c0_i32 : i32
    %1 = arith.extui %0 : i1 to i32
    %c0_i32_0 = arith.constant 0 : i32
    %2 = arith.cmpi ne, %1, %c0_i32_0 : i32
    scf.if %2 {
      %cst_10 = arith.constant 0.000000e+00 : f32
      %12 = vector.broadcast %cst_10 : f32 to vector<32x128xf32>
      %c0_11 = arith.constant 0 : index
      %c0_12 = arith.constant 0 : index
      %13 = vector.load %arg7[%c0_11, %c0_12] : memref<32x128xf32, #tpu.memory_space<vmem>>, vector<32x128xf32>
      tpu.vector_store %arg7[%c0_11, %c0_12], %12 {strides = array<i32>} : memref<32x128xf32, #tpu.memory_space<vmem>>, vector<32x128xf32>,
    } else {
    }
    %c0 = arith.constant 0 : index
    %c0_1 = arith.constant 0 : index
    %3 = vector.load %arg7[%c0, %c0_1] : memref<32x128xf32, #tpu.memory_space<vmem>>, vector<32x128xf32>
    %c0_2 = arith.constant 0 : index
    %c0_3 = arith.constant 0 : index
    %4 = vector.load %arg3[%c0_2, %c0_3] : memref<32x512xbf16, #tpu.memory_space<vmem>>, vector<32x512xbf16>
    %c0_4 = arith.constant 0 : index
    %c0_5 = arith.constant 0 : index
    %5 = vector.load %arg4[%c0_4, %c0_5] : memref<512x128xbf16, #tpu.memory_space<vmem>>, vector<512x128xbf16>
    %cst = arith.constant dense<0.000000e+00> : vector<32x128xf32>
    %6 = tpu.matmul %4, %5, %cst {dimension_numbers = #tpu.dot_dimension_numbers<[1], [0], [0], [1], [0, 0, 1, 1], [], []>} : vector<32x512xbf16>, vector<512x128xbf16>, vector<32x128xf32> -> vector<32x128xf32>
    %7 = arith.addf %3, %6 : vector<32x128xf32>
    %c0_6 = arith.constant 0 : index
    %c0_7 = arith.constant 0 : index
    %8 = vector.load %arg7[%c0_6, %c0_7] : memref<32x128xf32, #tpu.memory_space<vmem>>, vector<32x128xf32>
    tpu.vector_store %arg7[%c0_6, %c0_7], %7 {strides = array<i32>} : memref<32x128xf32, #tpu.memory_space<vmem>>, vector<32x128xf32>,
    %c0_i32_8 = arith.constant 0 : i32
    %9 = arith.cmpi eq, %arg2, %c0_i32_8 : i32
    %10 = arith.extui %9 : i1 to i32
    %c0_i32_9 = arith.constant 0 : i32
    %11 = arith.cmpi ne, %10, %c0_i32_9 : i32
    scf.if %11 {
      %c0_10 = arith.constant 0 : index
      %c0_11 = arith.constant 0 : index
      %12 = vector.load %arg7[%c0_10, %c0_11] : memref<32x128xf32, #tpu.memory_space<vmem>>, vector<32x128xf32>
      %c0_12 = arith.constant 0 : index
      %c0_13 = arith.constant 0 : index
      %13 = vector.load %arg5[%c0_12, %c0_13] : memref<1x128xf32, #tpu.memory_space<vmem>>, vector<1x128xf32>
      %14 = vector.broadcast %13 : vector<1x128xf32> to vector<32x128xf32>
      %15 = arith.addf %12, %14 : vector<32x128xf32>
      %c0_14 = arith.constant 0 : index
      %c0_15 = arith.constant 0 : index
      %16 = vector.load %arg6[%c0_14, %c0_15] : memref<32x128xf32, #tpu.memory_space<vmem>>, vector<32x128xf32>
      tpu.vector_store %arg6[%c0_14, %c0_15], %15 {strides = array<i32>} : memref<32x128xf32, #tpu.memory_space<vmem>>, vector<32x128xf32>,
    } else {
    }
    return
  }
  func.func @transform_0(%arg0: i32, %arg1: i32, %arg2: i32) -> (i32, i32) {
    %c0_i32 = arith.constant 0 : i32
    return %arg0, %arg2 : i32, i32
  }
  func.func @transform_1(%arg0: i32, %arg1: i32, %arg2: i32) -> (i32, i32) {
    %c0_i32 = arith.constant 0 : i32
    return %arg2, %arg1 : i32, i32
  }
  func.func @transform_2(%arg0: i32, %arg1: i32, %arg2: i32) -> (i32, i32) {
    %c0_i32 = arith.constant 0 : i32
    %c0_i32_0 = arith.constant 0 : i32
    return %c0_i32, %arg1 : i32, i32
  }
  func.func @transform_3(%arg0: i32, %arg1: i32, %arg2: i32) -> (i32, i32) {
    %c0_i32 = arith.constant 0 : i32
    return %arg0, %arg1 : i32, i32
  }
}

module attributes {stable_mosaic.version = 11 : i64} {
  func.func @_mask_pool_kernel(%arg0: i32, %arg1: memref<4x256xf32, #tpu.memory_space<vmem>>, %arg2: memref<1x256xf32, #tpu.memory_space<vmem>>) attributes {dimension_semantics = [#tpu.dimension_semantics<parallel>], iteration_bounds = array<i64: 1>, scalar_prefetch = 0 : i64, scratch_operands = 0 : i64, tpu.core_type = #tpu.core_type<tc>, window_params = [{transform_indices = @transform_0, window_bounds = array<i64: 4, 256>}, {transform_indices = @transform_1, window_bounds = array<i64: 1, 256>}]} {
    %c0 = arith.constant 0 : index
    %c0_0 = arith.constant 0 : index
    %0 = vector.load %arg1[%c0, %c0_0] : memref<4x256xf32, #tpu.memory_space<vmem>>, vector<4x256xf32>
    %1 = arith.negf %0 : vector<4x256xf32>
    %2 = math.exp %1 : vector<4x256xf32>
    %cst = arith.constant 1.000000e+00 : f32
    %3 = vector.broadcast %cst : f32 to vector<4x256xf32>
    %4 = arith.addf %3, %2 : vector<4x256xf32>
    %5 = arith.divf %3, %4 : vector<4x256xf32>
    %cst_1 = arith.constant dense<0.000000e+00> : vector<256xf32>
    %6 = vector.multi_reduction <add>, %5, %cst_1 [0] : vector<4x256xf32> to vector<256xf32>
    %7 = vector.shape_cast %6 : vector<256xf32> to vector<1x256xf32>
    %8 = vector.broadcast %7 : vector<1x256xf32> to vector<4x256xf32>
    %9 = arith.divf %5, %8 : vector<4x256xf32>
    %cst_2 = arith.constant 2.000000e+00 : f32
    %10 = vector.broadcast %cst_2 : f32 to vector<4x256xf32>
    %11 = arith.mulf %9, %10 : vector<4x256xf32>
    %12 = arith.mulf %0, %11 : vector<4x256xf32>
    %cst_3 = arith.constant dense<0.000000e+00> : vector<256xf32>
    %13 = vector.multi_reduction <add>, %12, %cst_3 [0] : vector<4x256xf32> to vector<256xf32>
    %14 = vector.shape_cast %13 : vector<256xf32> to vector<1x256xf32>
    %cst_4 = arith.constant 4.000000e+00 : f32
    %15 = vector.broadcast %cst_4 : f32 to vector<1x256xf32>
    %16 = arith.divf %14, %15 : vector<1x256xf32>
    %c0_5 = arith.constant 0 : index
    %c0_6 = arith.constant 0 : index
    %17 = vector.load %arg2[%c0_5, %c0_6] : memref<1x256xf32, #tpu.memory_space<vmem>>, vector<1x256xf32>
    tpu.vector_store %arg2[%c0_5, %c0_6], %16 {strides = array<i32>} : memref<1x256xf32, #tpu.memory_space<vmem>>, vector<1x256xf32>,
    return
  }
  func.func @transform_0(%arg0: i32) -> (i32, i32) {
    %c0_i32 = arith.constant 0 : i32
    %c0_i32_0 = arith.constant 0 : i32
    return %c0_i32, %arg0 : i32, i32
  }
  func.func @transform_1(%arg0: i32) -> (i32, i32) {
    %c0_i32 = arith.constant 0 : i32
    %c0_i32_0 = arith.constant 0 : i32
    return %c0_i32, %arg0 : i32, i32
  }
}

module attributes {stable_mosaic.version = 11 : i64} {
  func.func @_affine_kernel(%arg0: i32, %arg1: memref<32x32xf32, #tpu.memory_space<vmem>>, %arg2: memref<1x32xf32, #tpu.memory_space<vmem>>, %arg3: memref<1x32xf32, #tpu.memory_space<vmem>>, %arg4: memref<32x32xf32, #tpu.memory_space<vmem>>) attributes {dimension_semantics = [#tpu.dimension_semantics<parallel>], iteration_bounds = array<i64: 1>, scalar_prefetch = 0 : i64, scratch_operands = 0 : i64, tpu.core_type = #tpu.core_type<tc>, window_params = [{transform_indices = @transform_0, window_bounds = array<i64: 32, 32>}, {pipeline_mode = #tpu.pipeline_mode<synchronous>, transform_indices = @transform_1, window_bounds = array<i64: 1, 32>}, {pipeline_mode = #tpu.pipeline_mode<synchronous>, transform_indices = @transform_2, window_bounds = array<i64: 1, 32>}, {transform_indices = @transform_3, window_bounds = array<i64: 32, 32>}]} {
    %c0 = arith.constant 0 : index
    %c0_0 = arith.constant 0 : index
    %0 = vector.load %arg1[%c0, %c0_0] : memref<32x32xf32, #tpu.memory_space<vmem>>, vector<32x32xf32>
    %c0_1 = arith.constant 0 : index
    %c0_2 = arith.constant 0 : index
    %1 = vector.load %arg2[%c0_1, %c0_2] : memref<1x32xf32, #tpu.memory_space<vmem>>, vector<1x32xf32>
    %2 = vector.broadcast %1 : vector<1x32xf32> to vector<32x32xf32>
    %3 = arith.mulf %0, %2 : vector<32x32xf32>
    %c0_3 = arith.constant 0 : index
    %c0_4 = arith.constant 0 : index
    %4 = vector.load %arg3[%c0_3, %c0_4] : memref<1x32xf32, #tpu.memory_space<vmem>>, vector<1x32xf32>
    %5 = vector.broadcast %4 : vector<1x32xf32> to vector<32x32xf32>
    %6 = arith.addf %3, %5 : vector<32x32xf32>
    %c0_5 = arith.constant 0 : index
    %c0_6 = arith.constant 0 : index
    %7 = vector.load %arg4[%c0_5, %c0_6] : memref<32x32xf32, #tpu.memory_space<vmem>>, vector<32x32xf32>
    tpu.vector_store %arg4[%c0_5, %c0_6], %6 {strides = array<i32>} : memref<32x32xf32, #tpu.memory_space<vmem>>, vector<32x32xf32>,
    return
  }
  func.func @transform_0(%arg0: i32) -> (i32, i32) {
    %c0_i32 = arith.constant 0 : i32
    %c0_i32_0 = arith.constant 0 : i32
    return %arg0, %c0_i32 : i32, i32
  }
  func.func @transform_1(%arg0: i32) -> (i32, i32) {
    %c0_i32 = arith.constant 0 : i32
    %c0_i32_0 = arith.constant 0 : i32
    %c0_i32_1 = arith.constant 0 : i32
    return %c0_i32, %c0_i32_0 : i32, i32
  }
  func.func @transform_2(%arg0: i32) -> (i32, i32) {
    %c0_i32 = arith.constant 0 : i32
    %c0_i32_0 = arith.constant 0 : i32
    %c0_i32_1 = arith.constant 0 : i32
    return %c0_i32, %c0_i32_0 : i32, i32
  }
  func.func @transform_3(%arg0: i32) -> (i32, i32) {
    %c0_i32 = arith.constant 0 : i32
    %c0_i32_0 = arith.constant 0 : i32
    return %arg0, %c0_i32 : i32, i32
  }
}

module attributes {stable_mosaic.version = 11 : i64} {
  func.func @_layernorm_kernel(%arg0: i32, %arg1: memref<32x32xf32, #tpu.memory_space<vmem>>, %arg2: memref<1x32xf32, #tpu.memory_space<vmem>>, %arg3: memref<1x32xf32, #tpu.memory_space<vmem>>, %arg4: memref<32x32xf32, #tpu.memory_space<vmem>>) attributes {dimension_semantics = [#tpu.dimension_semantics<parallel>], iteration_bounds = array<i64: 1>, scalar_prefetch = 0 : i64, scratch_operands = 0 : i64, tpu.core_type = #tpu.core_type<tc>, window_params = [{transform_indices = @transform_0, window_bounds = array<i64: 32, 32>}, {pipeline_mode = #tpu.pipeline_mode<synchronous>, transform_indices = @transform_1, window_bounds = array<i64: 1, 32>}, {pipeline_mode = #tpu.pipeline_mode<synchronous>, transform_indices = @transform_2, window_bounds = array<i64: 1, 32>}, {transform_indices = @transform_3, window_bounds = array<i64: 32, 32>}]} {
    %c0 = arith.constant 0 : index
    %c0_0 = arith.constant 0 : index
    %0 = vector.load %arg1[%c0, %c0_0] : memref<32x32xf32, #tpu.memory_space<vmem>>, vector<32x32xf32>
    %cst = arith.constant dense<0.000000e+00> : vector<32xf32>
    %1 = vector.multi_reduction <add>, %0, %cst [1] : vector<32x32xf32> to vector<32xf32>
    %2 = vector.shape_cast %1 : vector<32xf32> to vector<32x1xf32>
    %cst_1 = arith.constant 3.200000e+01 : f32
    %3 = vector.broadcast %cst_1 : f32 to vector<32x1xf32>
    %4 = arith.divf %2, %3 : vector<32x1xf32>
    %5 = vector.broadcast %4 : vector<32x1xf32> to vector<32x32xf32>
    %6 = arith.subf %0, %5 : vector<32x32xf32>
    %7 = arith.mulf %6, %6 : vector<32x32xf32>
    %cst_2 = arith.constant dense<0.000000e+00> : vector<32xf32>
    %8 = vector.multi_reduction <add>, %7, %cst_2 [1] : vector<32x32xf32> to vector<32xf32>
    %9 = vector.shape_cast %8 : vector<32xf32> to vector<32x1xf32>
    %cst_3 = arith.constant 3.200000e+01 : f32
    %10 = vector.broadcast %cst_3 : f32 to vector<32x1xf32>
    %11 = arith.divf %9, %10 : vector<32x1xf32>
    %12 = vector.broadcast %4 : vector<32x1xf32> to vector<32x32xf32>
    %13 = arith.subf %0, %12 : vector<32x32xf32>
    %cst_4 = arith.constant 9.99999974E-6 : f32
    %14 = vector.broadcast %cst_4 : f32 to vector<32x1xf32>
    %15 = arith.addf %11, %14 : vector<32x1xf32>
    %16 = math.rsqrt %15 : vector<32x1xf32>
    %17 = vector.broadcast %16 : vector<32x1xf32> to vector<32x32xf32>
    %18 = arith.mulf %13, %17 : vector<32x32xf32>
    %c0_5 = arith.constant 0 : index
    %c0_6 = arith.constant 0 : index
    %19 = vector.load %arg2[%c0_5, %c0_6] : memref<1x32xf32, #tpu.memory_space<vmem>>, vector<1x32xf32>
    %20 = vector.broadcast %19 : vector<1x32xf32> to vector<32x32xf32>
    %21 = arith.mulf %18, %20 : vector<32x32xf32>
    %c0_7 = arith.constant 0 : index
    %c0_8 = arith.constant 0 : index
    %22 = vector.load %arg3[%c0_7, %c0_8] : memref<1x32xf32, #tpu.memory_space<vmem>>, vector<1x32xf32>
    %23 = vector.broadcast %22 : vector<1x32xf32> to vector<32x32xf32>
    %24 = arith.addf %21, %23 : vector<32x32xf32>
    %c0_9 = arith.constant 0 : index
    %c0_10 = arith.constant 0 : index
    %25 = vector.load %arg4[%c0_9, %c0_10] : memref<32x32xf32, #tpu.memory_space<vmem>>, vector<32x32xf32>
    tpu.vector_store %arg4[%c0_9, %c0_10], %24 {strides = array<i32>} : memref<32x32xf32, #tpu.memory_space<vmem>>, vector<32x32xf32>,
    return
  }
  func.func @transform_0(%arg0: i32) -> (i32, i32) {
    %c0_i32 = arith.constant 0 : i32
    %c0_i32_0 = arith.constant 0 : i32
    return %arg0, %c0_i32 : i32, i32
  }
  func.func @transform_1(%arg0: i32) -> (i32, i32) {
    %c0_i32 = arith.constant 0 : i32
    %c0_i32_0 = arith.constant 0 : i32
    %c0_i32_1 = arith.constant 0 : i32
    return %c0_i32, %c0_i32_0 : i32, i32
  }
  func.func @transform_2(%arg0: i32) -> (i32, i32) {
    %c0_i32 = arith.constant 0 : i32
    %c0_i32_0 = arith.constant 0 : i32
    %c0_i32_1 = arith.constant 0 : i32
    return %c0_i32, %c0_i32_0 : i32, i32
  }
  func.func @transform_3(%arg0: i32) -> (i32, i32) {
    %c0_i32 = arith.constant 0 : i32
    %c0_i32_0 = arith.constant 0 : i32
    return %arg0, %c0_i32 : i32, i32
  }
}

module attributes {stable_mosaic.version = 11 : i64} {
  func.func @_matmul_kernel(%arg0: i32, %arg1: i32, %arg2: i32, %arg3: memref<32x128xbf16, #tpu.memory_space<vmem>>, %arg4: memref<128x128xbf16, #tpu.memory_space<vmem>>, %arg5: memref<1x128xf32, #tpu.memory_space<vmem>>, %arg6: memref<32x128xf32, #tpu.memory_space<vmem>>, %arg7: memref<32x128xf32, #tpu.memory_space<vmem>>) attributes {dimension_semantics = [#tpu.dimension_semantics<parallel>, #tpu.dimension_semantics<parallel>, #tpu.dimension_semantics<arbitrary>], iteration_bounds = array<i64: 1, 1, 1>, scalar_prefetch = 0 : i64, scratch_operands = 1 : i64, tpu.core_type = #tpu.core_type<tc>, window_params = [{transform_indices = @transform_0, window_bounds = array<i64: 32, 128>}, {transform_indices = @transform_1, window_bounds = array<i64: 128, 128>}, {transform_indices = @transform_2, window_bounds = array<i64: 1, 128>}, {transform_indices = @transform_3, window_bounds = array<i64: 32, 128>}]} {
    %c0_i32 = arith.constant 0 : i32
    %0 = arith.cmpi eq, %arg2, %c0_i32 : i32
    %1 = arith.extui %0 : i1 to i32
    %c0_i32_0 = arith.constant 0 : i32
    %2 = arith.cmpi ne, %1, %c0_i32_0 : i32
    scf.if %2 {
      %cst_10 = arith.constant 0.000000e+00 : f32
      %12 = vector.broadcast %cst_10 : f32 to vector<32x128xf32>
      %c0_11 = arith.constant 0 : index
      %c0_12 = arith.constant 0 : index
      %13 = vector.load %arg7[%c0_11, %c0_12] : memref<32x128xf32, #tpu.memory_space<vmem>>, vector<32x128xf32>
      tpu.vector_store %arg7[%c0_11, %c0_12], %12 {strides = array<i32>} : memref<32x128xf32, #tpu.memory_space<vmem>>, vector<32x128xf32>,
    } else {
    }
    %c0 = arith.constant 0 : index
    %c0_1 = arith.constant 0 : index
    %3 = vector.load %arg7[%c0, %c0_1] : memref<32x128xf32, #tpu.memory_space<vmem>>, vector<32x128xf32>
    %c0_2 = arith.constant 0 : index
    %c0_3 = arith.constant 0 : index
    %4 = vector.load %arg3[%c0_2, %c0_3] : memref<32x128xbf16, #tpu.memory_space<vmem>>, vector<32x128xbf16>
    %c0_4 = arith.constant 0 : index
    %c0_5 = arith.constant 0 : index
    %5 = vector.load %arg4[%c0_4, %c0_5] : memref<128x128xbf16, #tpu.memory_space<vmem>>, vector<128x128xbf16>
    %cst = arith.constant dense<0.000000e+00> : vector<32x128xf32>
    %6 = tpu.matmul %4, %5, %cst {dimension_numbers = #tpu.dot_dimension_numbers<[1], [0], [0], [1], [0, 0, 1, 1], [], []>} : vector<32x128xbf16>, vector<128x128xbf16>, vector<32x128xf32> -> vector<32x128xf32>
    %7 = arith.addf %3, %6 : vector<32x128xf32>
    %c0_6 = arith.constant 0 : index
    %c0_7 = arith.constant 0 : index
    %8 = vector.load %arg7[%c0_6, %c0_7] : memref<32x128xf32, #tpu.memory_space<vmem>>, vector<32x128xf32>
    tpu.vector_store %arg7[%c0_6, %c0_7], %7 {strides = array<i32>} : memref<32x128xf32, #tpu.memory_space<vmem>>, vector<32x128xf32>,
    %c0_i32_8 = arith.constant 0 : i32
    %9 = arith.cmpi eq, %arg2, %c0_i32_8 : i32
    %10 = arith.extui %9 : i1 to i32
    %c0_i32_9 = arith.constant 0 : i32
    %11 = arith.cmpi ne, %10, %c0_i32_9 : i32
    scf.if %11 {
      %c0_10 = arith.constant 0 : index
      %c0_11 = arith.constant 0 : index
      %12 = vector.load %arg7[%c0_10, %c0_11] : memref<32x128xf32, #tpu.memory_space<vmem>>, vector<32x128xf32>
      %c0_12 = arith.constant 0 : index
      %c0_13 = arith.constant 0 : index
      %13 = vector.load %arg5[%c0_12, %c0_13] : memref<1x128xf32, #tpu.memory_space<vmem>>, vector<1x128xf32>
      %14 = vector.broadcast %13 : vector<1x128xf32> to vector<32x128xf32>
      %15 = arith.addf %12, %14 : vector<32x128xf32>
      %c0_14 = arith.constant 0 : index
      %c0_15 = arith.constant 0 : index
      %16 = vector.load %arg6[%c0_14, %c0_15] : memref<32x128xf32, #tpu.memory_space<vmem>>, vector<32x128xf32>
      tpu.vector_store %arg6[%c0_14, %c0_15], %15 {strides = array<i32>} : memref<32x128xf32, #tpu.memory_space<vmem>>, vector<32x128xf32>,
    } else {
    }
    return
  }
  func.func @transform_0(%arg0: i32, %arg1: i32, %arg2: i32) -> (i32, i32) {
    %c0_i32 = arith.constant 0 : i32
    return %arg0, %arg2 : i32, i32
  }
  func.func @transform_1(%arg0: i32, %arg1: i32, %arg2: i32) -> (i32, i32) {
    %c0_i32 = arith.constant 0 : i32
    return %arg2, %arg1 : i32, i32
  }
  func.func @transform_2(%arg0: i32, %arg1: i32, %arg2: i32) -> (i32, i32) {
    %c0_i32 = arith.constant 0 : i32
    %c0_i32_0 = arith.constant 0 : i32
    return %c0_i32, %arg1 : i32, i32
  }
  func.func @transform_3(%arg0: i32, %arg1: i32, %arg2: i32) -> (i32, i32) {
    %c0_i32 = arith.constant 0 : i32
    return %arg0, %arg1 : i32, i32
  }
}

module attributes {stable_mosaic.version = 11 : i64} {
  func.func @_matmul_kernel(%arg0: i32, %arg1: i32, %arg2: i32, %arg3: memref<32x128xbf16, #tpu.memory_space<vmem>>, %arg4: memref<128x128xbf16, #tpu.memory_space<vmem>>, %arg5: memref<1x128xf32, #tpu.memory_space<vmem>>, %arg6: memref<32x128xf32, #tpu.memory_space<vmem>>, %arg7: memref<32x128xf32, #tpu.memory_space<vmem>>) attributes {dimension_semantics = [#tpu.dimension_semantics<parallel>, #tpu.dimension_semantics<parallel>, #tpu.dimension_semantics<arbitrary>], iteration_bounds = array<i64: 1, 1, 1>, scalar_prefetch = 0 : i64, scratch_operands = 1 : i64, tpu.core_type = #tpu.core_type<tc>, window_params = [{transform_indices = @transform_0, window_bounds = array<i64: 32, 128>}, {transform_indices = @transform_1, window_bounds = array<i64: 128, 128>}, {transform_indices = @transform_2, window_bounds = array<i64: 1, 128>}, {transform_indices = @transform_3, window_bounds = array<i64: 32, 128>}]} {
    %c0_i32 = arith.constant 0 : i32
    %0 = arith.cmpi eq, %arg2, %c0_i32 : i32
    %1 = arith.extui %0 : i1 to i32
    %c0_i32_0 = arith.constant 0 : i32
    %2 = arith.cmpi ne, %1, %c0_i32_0 : i32
    scf.if %2 {
      %cst_10 = arith.constant 0.000000e+00 : f32
      %12 = vector.broadcast %cst_10 : f32 to vector<32x128xf32>
      %c0_11 = arith.constant 0 : index
      %c0_12 = arith.constant 0 : index
      %13 = vector.load %arg7[%c0_11, %c0_12] : memref<32x128xf32, #tpu.memory_space<vmem>>, vector<32x128xf32>
      tpu.vector_store %arg7[%c0_11, %c0_12], %12 {strides = array<i32>} : memref<32x128xf32, #tpu.memory_space<vmem>>, vector<32x128xf32>,
    } else {
    }
    %c0 = arith.constant 0 : index
    %c0_1 = arith.constant 0 : index
    %3 = vector.load %arg7[%c0, %c0_1] : memref<32x128xf32, #tpu.memory_space<vmem>>, vector<32x128xf32>
    %c0_2 = arith.constant 0 : index
    %c0_3 = arith.constant 0 : index
    %4 = vector.load %arg3[%c0_2, %c0_3] : memref<32x128xbf16, #tpu.memory_space<vmem>>, vector<32x128xbf16>
    %c0_4 = arith.constant 0 : index
    %c0_5 = arith.constant 0 : index
    %5 = vector.load %arg4[%c0_4, %c0_5] : memref<128x128xbf16, #tpu.memory_space<vmem>>, vector<128x128xbf16>
    %cst = arith.constant dense<0.000000e+00> : vector<32x128xf32>
    %6 = tpu.matmul %4, %5, %cst {dimension_numbers = #tpu.dot_dimension_numbers<[1], [0], [0], [1], [0, 0, 1, 1], [], []>} : vector<32x128xbf16>, vector<128x128xbf16>, vector<32x128xf32> -> vector<32x128xf32>
    %7 = arith.addf %3, %6 : vector<32x128xf32>
    %c0_6 = arith.constant 0 : index
    %c0_7 = arith.constant 0 : index
    %8 = vector.load %arg7[%c0_6, %c0_7] : memref<32x128xf32, #tpu.memory_space<vmem>>, vector<32x128xf32>
    tpu.vector_store %arg7[%c0_6, %c0_7], %7 {strides = array<i32>} : memref<32x128xf32, #tpu.memory_space<vmem>>, vector<32x128xf32>,
    %c0_i32_8 = arith.constant 0 : i32
    %9 = arith.cmpi eq, %arg2, %c0_i32_8 : i32
    %10 = arith.extui %9 : i1 to i32
    %c0_i32_9 = arith.constant 0 : i32
    %11 = arith.cmpi ne, %10, %c0_i32_9 : i32
    scf.if %11 {
      %c0_10 = arith.constant 0 : index
      %c0_11 = arith.constant 0 : index
      %12 = vector.load %arg7[%c0_10, %c0_11] : memref<32x128xf32, #tpu.memory_space<vmem>>, vector<32x128xf32>
      %c0_12 = arith.constant 0 : index
      %c0_13 = arith.constant 0 : index
      %13 = vector.load %arg5[%c0_12, %c0_13] : memref<1x128xf32, #tpu.memory_space<vmem>>, vector<1x128xf32>
      %14 = vector.broadcast %13 : vector<1x128xf32> to vector<32x128xf32>
      %15 = arith.addf %12, %14 : vector<32x128xf32>
      %cst_14 = arith.constant 2.000000e+01 : f32
      %16 = vector.broadcast %cst_14 : f32 to vector<32x128xf32>
      %17 = arith.cmpf ogt, %15, %16 : vector<32x128xf32>
      %cst_15 = arith.constant 2.000000e+01 : f32
      %18 = vector.broadcast %cst_15 : f32 to vector<32x128xf32>
      %19 = arith.minimumf %15, %18 : vector<32x128xf32>
      %20 = math.exp %19 : vector<32x128xf32>
      %cst_16 = arith.constant 1.000000e+00 : f32
      %21 = vector.broadcast %cst_16 : f32 to vector<32x128xf32>
      %22 = arith.addf %21, %20 : vector<32x128xf32>
      %23 = math.log %22 : vector<32x128xf32>
      %24 = arith.select %17, %15, %23 : vector<32x128xi1>, vector<32x128xf32>
      %c0_17 = arith.constant 0 : index
      %c0_18 = arith.constant 0 : index
      %25 = vector.load %arg6[%c0_17, %c0_18] : memref<32x128xf32, #tpu.memory_space<vmem>>, vector<32x128xf32>
      tpu.vector_store %arg6[%c0_17, %c0_18], %24 {strides = array<i32>} : memref<32x128xf32, #tpu.memory_space<vmem>>, vector<32x128xf32>,
    } else {
    }
    return
  }
  func.func @transform_0(%arg0: i32, %arg1: i32, %arg2: i32) -> (i32, i32) {
    %c0_i32 = arith.constant 0 : i32
    return %arg0, %arg2 : i32, i32
  }
  func.func @transform_1(%arg0: i32, %arg1: i32, %arg2: i32) -> (i32, i32) {
    %c0_i32 = arith.constant 0 : i32
    return %arg2, %arg1 : i32, i32
  }
  func.func @transform_2(%arg0: i32, %arg1: i32, %arg2: i32) -> (i32, i32) {
    %c0_i32 = arith.constant 0 : i32
    %c0_i32_0 = arith.constant 0 : i32
    return %c0_i32, %arg1 : i32, i32
  }
  func.func @transform_3(%arg0: i32, %arg1: i32, %arg2: i32) -> (i32, i32) {
    %c0_i32 = arith.constant 0 : i32
    return %arg0, %arg1 : i32, i32
  }
}

module attributes {stable_mosaic.version = 11 : i64} {
  func.func @_ssm_kernel(%arg0: i32, %arg1: memref<1x4x64xf32, #tpu.memory_space<vmem>>, %arg2: memref<1x4x64xf32, #tpu.memory_space<vmem>>, %arg3: memref<1x48x4xf32, #tpu.memory_space<vmem>>, %arg4: memref<1x4x48xf32, #tpu.memory_space<vmem>>, %arg5: memref<48x64xf32, #tpu.memory_space<vmem>>, %arg6: memref<1x64xf32, #tpu.memory_space<vmem>>, %arg7: memref<1x4x64xf32, #tpu.memory_space<vmem>>) attributes {dimension_semantics = [#tpu.dimension_semantics<parallel>], iteration_bounds = array<i64: 8>, scalar_prefetch = 0 : i64, scratch_operands = 0 : i64, tpu.core_type = #tpu.core_type<tc>, window_params = [{transform_indices = @transform_0, window_bounds = array<i64: 1, 4, 64>}, {transform_indices = @transform_1, window_bounds = array<i64: 1, 4, 64>}, {transform_indices = @transform_2, window_bounds = array<i64: 1, 48, 4>}, {transform_indices = @transform_3, window_bounds = array<i64: 1, 4, 48>}, {pipeline_mode = #tpu.pipeline_mode<synchronous>, transform_indices = @transform_4, window_bounds = array<i64: 48, 64>}, {pipeline_mode = #tpu.pipeline_mode<synchronous>, transform_indices = @transform_5, window_bounds = array<i64: 1, 64>}, {transform_indices = @transform_6, window_bounds = array<i64: 1, 4, 64>}]} {
    %c0 = arith.constant 0 : index
    %c0_0 = arith.constant 0 : index
    %0 = vector.load %arg5[%c0, %c0_0] : memref<48x64xf32, #tpu.memory_space<vmem>>, vector<48x64xf32>
    %c0_1 = arith.constant 0 : index
    %c0_2 = arith.constant 0 : index
    %1 = vector.load %arg6[%c0_1, %c0_2] : memref<1x64xf32, #tpu.memory_space<vmem>>, vector<1x64xf32>
    %c0_3 = arith.constant 0 : index
    %c0_4 = arith.constant 0 : index
    %c0_5 = arith.constant 0 : index
    %2 = vector.load %arg3[%c0_3, %c0_4, %c0_5] : memref<1x48x4xf32, #tpu.memory_space<vmem>>, vector<1x48x4xf32>
    %3 = vector.shape_cast %2 : vector<1x48x4xf32> to vector<48x4xf32>
    %cst = arith.constant 0.000000e+00 : f32
    %4 = vector.broadcast %cst : f32 to vector<48x64xf32>
    %c0_i32 = arith.constant 0 : i32
    %c4_i32 = arith.constant 4 : i32
    %5 = arith.addi %c0_i32, %c4_i32 : i32
    %c1_i32 = arith.constant 1 : i32
    %6 = scf.for %arg8 = %c0_i32 to %5 step %c1_i32 iter_args(%arg9 = %4) -> (vector<48x64xf32>)  : i32 {
      %7 = tpu.iota {dimensions = array<i32: 0>} : vector<4x1xi32>
      %8 = vector.broadcast %arg8 : i32 to vector<4x1xi32>
      %9 = arith.cmpi eq, %7, %8 : vector<4x1xi32>
      %10 = arith.extui %9 : vector<4x1xi1> to vector<4x1xi32>
      %11 = arith.sitofp %10 : vector<4x1xi32> to vector<4x1xf32>
      %cst_7 = arith.constant dense<0.000000e+00> : vector<48x1xf32>
      %12 = tpu.matmul %3, %11, %cst_7 {dimension_numbers = #tpu.dot_dimension_numbers<[1], [0], [0], [1], [0, 0, 1, 1], [], []>} : vector<48x4xf32>, vector<4x1xf32>, vector<48x1xf32> -> vector<48x1xf32>
      %c0_8 = arith.constant 0 : index
      %13 = arith.index_cast %arg8 : i32 to index
      %c0_9 = arith.constant 0 : index
      %14 = vector.load %arg1[%c0_8, %13, %c0_9] : memref<1x4x64xf32, #tpu.memory_space<vmem>>, vector<1x1x64xf32>
      %15 = vector.shape_cast %14 : vector<1x1x64xf32> to vector<1x64xf32>
      %c0_10 = arith.constant 0 : index
      %16 = arith.index_cast %arg8 : i32 to index
      %c0_11 = arith.constant 0 : index
      %17 = vector.load %arg2[%c0_10, %16, %c0_11] : memref<1x4x64xf32, #tpu.memory_space<vmem>>, vector<1x1x64xf32>
      %18 = vector.shape_cast %17 : vector<1x1x64xf32> to vector<1x64xf32>
      %c0_12 = arith.constant 0 : index
      %19 = arith.index_cast %arg8 : i32 to index
      %c0_13 = arith.constant 0 : index
      %20 = vector.load %arg4[%c0_12, %19, %c0_13] : memref<1x4x48xf32, #tpu.memory_space<vmem>>, vector<1x1x48xf32>
      %21 = vector.shape_cast %20 : vector<1x1x48xf32> to vector<1x48xf32>
      %22 = vector.broadcast %15 : vector<1x64xf32> to vector<48x64xf32>
      %23 = arith.mulf %22, %0 : vector<48x64xf32>
      %24 = math.exp %23 : vector<48x64xf32>
      %25 = arith.mulf %24, %arg9 : vector<48x64xf32>
      %26 = arith.mulf %15, %18 : vector<1x64xf32>
      %27 = vector.broadcast %12 : vector<48x1xf32> to vector<48x64xf32>
      %28 = vector.broadcast %26 : vector<1x64xf32> to vector<48x64xf32>
      %29 = arith.mulf %27, %28 : vector<48x64xf32>
      %30 = arith.addf %25, %29 : vector<48x64xf32>
      %cst_14 = arith.constant dense<0.000000e+00> : vector<1x64xf32>
      %31 = tpu.matmul %21, %30, %cst_14 {dimension_numbers = #tpu.dot_dimension_numbers<[1], [0], [0], [1], [0, 0, 1, 1], [], []>} : vector<1x48xf32>, vector<48x64xf32>, vector<1x64xf32> -> vector<1x64xf32>
      %32 = arith.mulf %1, %18 : vector<1x64xf32>
      %33 = arith.addf %31, %32 : vector<1x64xf32>
      %c0_15 = arith.constant 0 : index
      %34 = arith.index_cast %arg8 : i32 to index
      %c0_16 = arith.constant 0 : index
      %35 = vector.load %arg7[%c0_15, %34, %c0_16] : memref<1x4x64xf32, #tpu.memory_space<vmem>>, vector<1x1x64xf32>
      %36 = vector.shape_cast %35 : vector<1x1x64xf32> to vector<1x64xf32>
      %37 = vector.shape_cast %33 : vector<1x64xf32> to vector<1x1x64xf32>
      tpu.vector_store %arg7[%c0_15, %34, %c0_16], %37 {strides = array<i32>} : memref<1x4x64xf32, #tpu.memory_space<vmem>>, vector<1x1x64xf32>,
      scf.yield %30 : vector<48x64xf32>
    }
    %c4_i32_6 = arith.constant 4 : i32
    return
  }
  func.func @transform_0(%arg0: i32) -> (i32, i32, i32) {
    %c0_i32 = arith.constant 0 : i32
    %c0_i32_0 = arith.constant 0 : i32
    %c0_i32_1 = arith.constant 0 : i32
    return %arg0, %c0_i32, %c0_i32_0 : i32, i32, i32
  }
  func.func @transform_1(%arg0: i32) -> (i32, i32, i32) {
    %c0_i32 = arith.constant 0 : i32
    %c0_i32_0 = arith.constant 0 : i32
    %c0_i32_1 = arith.constant 0 : i32
    return %arg0, %c0_i32, %c0_i32_0 : i32, i32, i32
  }
  func.func @transform_2(%arg0: i32) -> (i32, i32, i32) {
    %c0_i32 = arith.constant 0 : i32
    %c0_i32_0 = arith.constant 0 : i32
    %c0_i32_1 = arith.constant 0 : i32
    return %arg0, %c0_i32, %c0_i32_0 : i32, i32, i32
  }
  func.func @transform_3(%arg0: i32) -> (i32, i32, i32) {
    %c0_i32 = arith.constant 0 : i32
    %c0_i32_0 = arith.constant 0 : i32
    %c0_i32_1 = arith.constant 0 : i32
    return %arg0, %c0_i32, %c0_i32_0 : i32, i32, i32
  }
  func.func @transform_4(%arg0: i32) -> (i32, i32) {
    %c0_i32 = arith.constant 0 : i32
    %c0_i32_0 = arith.constant 0 : i32
    %c0_i32_1 = arith.constant 0 : i32
    return %c0_i32, %c0_i32_0 : i32, i32
  }
  func.func @transform_5(%arg0: i32) -> (i32, i32) {
    %c0_i32 = arith.constant 0 : i32
    %c0_i32_0 = arith.constant 0 : i32
    %c0_i32_1 = arith.constant 0 : i32
    return %c0_i32, %c0_i32_0 : i32, i32
  }
  func.func @transform_6(%arg0: i32) -> (i32, i32, i32) {
    %c0_i32 = arith.constant 0 : i32
    %c0_i32_0 = arith.constant 0 : i32
    %c0_i32_1 = arith.constant 0 : i32
    return %arg0, %c0_i32, %c0_i32_0 : i32, i32, i32
  }
}

module attributes {stable_mosaic.version = 11 : i64} {
  func.func @_matmul_kernel(%arg0: i32, %arg1: i32, %arg2: i32, %arg3: memref<16x128xbf16, #tpu.memory_space<vmem>>, %arg4: memref<128x128xbf16, #tpu.memory_space<vmem>>, %arg5: memref<1x128xf32, #tpu.memory_space<vmem>>, %arg6: memref<16x128xf32, #tpu.memory_space<vmem>>, %arg7: memref<16x128xf32, #tpu.memory_space<vmem>>) attributes {dimension_semantics = [#tpu.dimension_semantics<parallel>, #tpu.dimension_semantics<parallel>, #tpu.dimension_semantics<arbitrary>], iteration_bounds = array<i64: 1, 1, 1>, scalar_prefetch = 0 : i64, scratch_operands = 1 : i64, tpu.core_type = #tpu.core_type<tc>, window_params = [{transform_indices = @transform_0, window_bounds = array<i64: 16, 128>}, {transform_indices = @transform_1, window_bounds = array<i64: 128, 128>}, {transform_indices = @transform_2, window_bounds = array<i64: 1, 128>}, {transform_indices = @transform_3, window_bounds = array<i64: 16, 128>}]} {
    %c0_i32 = arith.constant 0 : i32
    %0 = arith.cmpi eq, %arg2, %c0_i32 : i32
    %1 = arith.extui %0 : i1 to i32
    %c0_i32_0 = arith.constant 0 : i32
    %2 = arith.cmpi ne, %1, %c0_i32_0 : i32
    scf.if %2 {
      %cst_10 = arith.constant 0.000000e+00 : f32
      %12 = vector.broadcast %cst_10 : f32 to vector<16x128xf32>
      %c0_11 = arith.constant 0 : index
      %c0_12 = arith.constant 0 : index
      %13 = vector.load %arg7[%c0_11, %c0_12] : memref<16x128xf32, #tpu.memory_space<vmem>>, vector<16x128xf32>
      tpu.vector_store %arg7[%c0_11, %c0_12], %12 {strides = array<i32>} : memref<16x128xf32, #tpu.memory_space<vmem>>, vector<16x128xf32>,
    } else {
    }
    %c0 = arith.constant 0 : index
    %c0_1 = arith.constant 0 : index
    %3 = vector.load %arg7[%c0, %c0_1] : memref<16x128xf32, #tpu.memory_space<vmem>>, vector<16x128xf32>
    %c0_2 = arith.constant 0 : index
    %c0_3 = arith.constant 0 : index
    %4 = vector.load %arg3[%c0_2, %c0_3] : memref<16x128xbf16, #tpu.memory_space<vmem>>, vector<16x128xbf16>
    %c0_4 = arith.constant 0 : index
    %c0_5 = arith.constant 0 : index
    %5 = vector.load %arg4[%c0_4, %c0_5] : memref<128x128xbf16, #tpu.memory_space<vmem>>, vector<128x128xbf16>
    %cst = arith.constant dense<0.000000e+00> : vector<16x128xf32>
    %6 = tpu.matmul %4, %5, %cst {dimension_numbers = #tpu.dot_dimension_numbers<[1], [0], [0], [1], [0, 0, 1, 1], [], []>} : vector<16x128xbf16>, vector<128x128xbf16>, vector<16x128xf32> -> vector<16x128xf32>
    %7 = arith.addf %3, %6 : vector<16x128xf32>
    %c0_6 = arith.constant 0 : index
    %c0_7 = arith.constant 0 : index
    %8 = vector.load %arg7[%c0_6, %c0_7] : memref<16x128xf32, #tpu.memory_space<vmem>>, vector<16x128xf32>
    tpu.vector_store %arg7[%c0_6, %c0_7], %7 {strides = array<i32>} : memref<16x128xf32, #tpu.memory_space<vmem>>, vector<16x128xf32>,
    %c0_i32_8 = arith.constant 0 : i32
    %9 = arith.cmpi eq, %arg2, %c0_i32_8 : i32
    %10 = arith.extui %9 : i1 to i32
    %c0_i32_9 = arith.constant 0 : i32
    %11 = arith.cmpi ne, %10, %c0_i32_9 : i32
    scf.if %11 {
      %c0_10 = arith.constant 0 : index
      %c0_11 = arith.constant 0 : index
      %12 = vector.load %arg7[%c0_10, %c0_11] : memref<16x128xf32, #tpu.memory_space<vmem>>, vector<16x128xf32>
      %c0_12 = arith.constant 0 : index
      %c0_13 = arith.constant 0 : index
      %13 = vector.load %arg5[%c0_12, %c0_13] : memref<1x128xf32, #tpu.memory_space<vmem>>, vector<1x128xf32>
      %14 = vector.broadcast %13 : vector<1x128xf32> to vector<16x128xf32>
      %15 = arith.addf %12, %14 : vector<16x128xf32>
      %c0_14 = arith.constant 0 : index
      %c0_15 = arith.constant 0 : index
      %16 = vector.load %arg6[%c0_14, %c0_15] : memref<16x128xf32, #tpu.memory_space<vmem>>, vector<16x128xf32>
      tpu.vector_store %arg6[%c0_14, %c0_15], %15 {strides = array<i32>} : memref<16x128xf32, #tpu.memory_space<vmem>>, vector<16x128xf32>,
    } else {
    }
    return
  }
  func.func @transform_0(%arg0: i32, %arg1: i32, %arg2: i32) -> (i32, i32) {
    %c0_i32 = arith.constant 0 : i32
    return %arg0, %arg2 : i32, i32
  }
  func.func @transform_1(%arg0: i32, %arg1: i32, %arg2: i32) -> (i32, i32) {
    %c0_i32 = arith.constant 0 : i32
    return %arg2, %arg1 : i32, i32
  }
  func.func @transform_2(%arg0: i32, %arg1: i32, %arg2: i32) -> (i32, i32) {
    %c0_i32 = arith.constant 0 : i32
    %c0_i32_0 = arith.constant 0 : i32
    return %c0_i32, %arg1 : i32, i32
  }
  func.func @transform_3(%arg0: i32, %arg1: i32, %arg2: i32) -> (i32, i32) {
    %c0_i32 = arith.constant 0 : i32
    return %arg0, %arg1 : i32, i32
  }
}

module attributes {stable_mosaic.version = 11 : i64} {
  func.func @_layernorm_kernel(%arg0: i32, %arg1: memref<8x32xf32, #tpu.memory_space<vmem>>, %arg2: memref<1x32xf32, #tpu.memory_space<vmem>>, %arg3: memref<1x32xf32, #tpu.memory_space<vmem>>, %arg4: memref<8x32xf32, #tpu.memory_space<vmem>>) attributes {dimension_semantics = [#tpu.dimension_semantics<parallel>], iteration_bounds = array<i64: 1>, scalar_prefetch = 0 : i64, scratch_operands = 0 : i64, tpu.core_type = #tpu.core_type<tc>, window_params = [{transform_indices = @transform_0, window_bounds = array<i64: 8, 32>}, {pipeline_mode = #tpu.pipeline_mode<synchronous>, transform_indices = @transform_1, window_bounds = array<i64: 1, 32>}, {pipeline_mode = #tpu.pipeline_mode<synchronous>, transform_indices = @transform_2, window_bounds = array<i64: 1, 32>}, {transform_indices = @transform_3, window_bounds = array<i64: 8, 32>}]} {
    %c0 = arith.constant 0 : index
    %c0_0 = arith.constant 0 : index
    %0 = vector.load %arg1[%c0, %c0_0] : memref<8x32xf32, #tpu.memory_space<vmem>>, vector<8x32xf32>
    %cst = arith.constant dense<0.000000e+00> : vector<8xf32>
    %1 = vector.multi_reduction <add>, %0, %cst [1] : vector<8x32xf32> to vector<8xf32>
    %2 = vector.shape_cast %1 : vector<8xf32> to vector<8x1xf32>
    %cst_1 = arith.constant 3.200000e+01 : f32
    %3 = vector.broadcast %cst_1 : f32 to vector<8x1xf32>
    %4 = arith.divf %2, %3 : vector<8x1xf32>
    %5 = vector.broadcast %4 : vector<8x1xf32> to vector<8x32xf32>
    %6 = arith.subf %0, %5 : vector<8x32xf32>
    %7 = arith.mulf %6, %6 : vector<8x32xf32>
    %cst_2 = arith.constant dense<0.000000e+00> : vector<8xf32>
    %8 = vector.multi_reduction <add>, %7, %cst_2 [1] : vector<8x32xf32> to vector<8xf32>
    %9 = vector.shape_cast %8 : vector<8xf32> to vector<8x1xf32>
    %cst_3 = arith.constant 3.200000e+01 : f32
    %10 = vector.broadcast %cst_3 : f32 to vector<8x1xf32>
    %11 = arith.divf %9, %10 : vector<8x1xf32>
    %12 = vector.broadcast %4 : vector<8x1xf32> to vector<8x32xf32>
    %13 = arith.subf %0, %12 : vector<8x32xf32>
    %cst_4 = arith.constant 9.99999974E-6 : f32
    %14 = vector.broadcast %cst_4 : f32 to vector<8x1xf32>
    %15 = arith.addf %11, %14 : vector<8x1xf32>
    %16 = math.rsqrt %15 : vector<8x1xf32>
    %17 = vector.broadcast %16 : vector<8x1xf32> to vector<8x32xf32>
    %18 = arith.mulf %13, %17 : vector<8x32xf32>
    %c0_5 = arith.constant 0 : index
    %c0_6 = arith.constant 0 : index
    %19 = vector.load %arg2[%c0_5, %c0_6] : memref<1x32xf32, #tpu.memory_space<vmem>>, vector<1x32xf32>
    %20 = vector.broadcast %19 : vector<1x32xf32> to vector<8x32xf32>
    %21 = arith.mulf %18, %20 : vector<8x32xf32>
    %c0_7 = arith.constant 0 : index
    %c0_8 = arith.constant 0 : index
    %22 = vector.load %arg3[%c0_7, %c0_8] : memref<1x32xf32, #tpu.memory_space<vmem>>, vector<1x32xf32>
    %23 = vector.broadcast %22 : vector<1x32xf32> to vector<8x32xf32>
    %24 = arith.addf %21, %23 : vector<8x32xf32>
    %c0_9 = arith.constant 0 : index
    %c0_10 = arith.constant 0 : index
    %25 = vector.load %arg4[%c0_9, %c0_10] : memref<8x32xf32, #tpu.memory_space<vmem>>, vector<8x32xf32>
    tpu.vector_store %arg4[%c0_9, %c0_10], %24 {strides = array<i32>} : memref<8x32xf32, #tpu.memory_space<vmem>>, vector<8x32xf32>,
    return
  }
  func.func @transform_0(%arg0: i32) -> (i32, i32) {
    %c0_i32 = arith.constant 0 : i32
    %c0_i32_0 = arith.constant 0 : i32
    return %arg0, %c0_i32 : i32, i32
  }
  func.func @transform_1(%arg0: i32) -> (i32, i32) {
    %c0_i32 = arith.constant 0 : i32
    %c0_i32_0 = arith.constant 0 : i32
    %c0_i32_1 = arith.constant 0 : i32
    return %c0_i32, %c0_i32_0 : i32, i32
  }
  func.func @transform_2(%arg0: i32) -> (i32, i32) {
    %c0_i32 = arith.constant 0 : i32
    %c0_i32_0 = arith.constant 0 : i32
    %c0_i32_1 = arith.constant 0 : i32
    return %c0_i32, %c0_i32_0 : i32, i32
  }
  func.func @transform_3(%arg0: i32) -> (i32, i32) {
    %c0_i32 = arith.constant 0 : i32
    %c0_i32_0 = arith.constant 0 : i32
    return %arg0, %c0_i32 : i32, i32
  }
}

module attributes {stable_mosaic.version = 11 : i64} {
  func.func @_affine_kernel(%arg0: i32, %arg1: memref<8x64xf32, #tpu.memory_space<vmem>>, %arg2: memref<1x64xf32, #tpu.memory_space<vmem>>, %arg3: memref<1x64xf32, #tpu.memory_space<vmem>>, %arg4: memref<8x64xf32, #tpu.memory_space<vmem>>) attributes {dimension_semantics = [#tpu.dimension_semantics<parallel>], iteration_bounds = array<i64: 1>, scalar_prefetch = 0 : i64, scratch_operands = 0 : i64, tpu.core_type = #tpu.core_type<tc>, window_params = [{transform_indices = @transform_0, window_bounds = array<i64: 8, 64>}, {pipeline_mode = #tpu.pipeline_mode<synchronous>, transform_indices = @transform_1, window_bounds = array<i64: 1, 64>}, {pipeline_mode = #tpu.pipeline_mode<synchronous>, transform_indices = @transform_2, window_bounds = array<i64: 1, 64>}, {transform_indices = @transform_3, window_bounds = array<i64: 8, 64>}]} {
    %c0 = arith.constant 0 : index
    %c0_0 = arith.constant 0 : index
    %0 = vector.load %arg1[%c0, %c0_0] : memref<8x64xf32, #tpu.memory_space<vmem>>, vector<8x64xf32>
    %c0_1 = arith.constant 0 : index
    %c0_2 = arith.constant 0 : index
    %1 = vector.load %arg2[%c0_1, %c0_2] : memref<1x64xf32, #tpu.memory_space<vmem>>, vector<1x64xf32>
    %2 = vector.broadcast %1 : vector<1x64xf32> to vector<8x64xf32>
    %3 = arith.mulf %0, %2 : vector<8x64xf32>
    %c0_3 = arith.constant 0 : index
    %c0_4 = arith.constant 0 : index
    %4 = vector.load %arg3[%c0_3, %c0_4] : memref<1x64xf32, #tpu.memory_space<vmem>>, vector<1x64xf32>
    %5 = vector.broadcast %4 : vector<1x64xf32> to vector<8x64xf32>
    %6 = arith.addf %3, %5 : vector<8x64xf32>
    %cst = arith.constant 0.000000e+00 : f32
    %7 = vector.broadcast %cst : f32 to vector<8x64xf32>
    %8 = arith.maximumf %6, %7 : vector<8x64xf32>
    %c0_5 = arith.constant 0 : index
    %c0_6 = arith.constant 0 : index
    %9 = vector.load %arg4[%c0_5, %c0_6] : memref<8x64xf32, #tpu.memory_space<vmem>>, vector<8x64xf32>
    tpu.vector_store %arg4[%c0_5, %c0_6], %8 {strides = array<i32>} : memref<8x64xf32, #tpu.memory_space<vmem>>, vector<8x64xf32>,
    return
  }
  func.func @transform_0(%arg0: i32) -> (i32, i32) {
    %c0_i32 = arith.constant 0 : i32
    %c0_i32_0 = arith.constant 0 : i32
    return %arg0, %c0_i32 : i32, i32
  }
  func.func @transform_1(%arg0: i32) -> (i32, i32) {
    %c0_i32 = arith.constant 0 : i32
    %c0_i32_0 = arith.constant 0 : i32
    %c0_i32_1 = arith.constant 0 : i32
    return %c0_i32, %c0_i32_0 : i32, i32
  }
  func.func @transform_2(%arg0: i32) -> (i32, i32) {
    %c0_i32 = arith.constant 0 : i32
    %c0_i32_0 = arith.constant 0 : i32
    %c0_i32_1 = arith.constant 0 : i32
    return %c0_i32, %c0_i32_0 : i32, i32
  }
  func.func @transform_3(%arg0: i32) -> (i32, i32) {
    %c0_i32 = arith.constant 0 : i32
    %c0_i32_0 = arith.constant 0 : i32
    return %arg0, %c0_i32 : i32, i32
  }
}

module attributes {stable_mosaic.version = 11 : i64} {
  func.func @_freq_mod_kernel(%arg0: i32, %arg1: memref<8x64xf32, #tpu.memory_space<vmem>>, %arg2: memref<8x64xf32, #tpu.memory_space<vmem>>, %arg3: memref<1x64xf32, #tpu.memory_space<vmem>>, %arg4: memref<1x64xf32, #tpu.memory_space<vmem>>, %arg5: memref<1x64xf32, #tpu.memory_space<vmem>>, %arg6: memref<1x64xf32, #tpu.memory_space<vmem>>, %arg7: memref<8x64xf32, #tpu.memory_space<vmem>>, %arg8: memref<8x64xf32, #tpu.memory_space<vmem>>) attributes {dimension_semantics = [#tpu.dimension_semantics<parallel>], iteration_bounds = array<i64: 1>, scalar_prefetch = 0 : i64, scratch_operands = 0 : i64, tpu.core_type = #tpu.core_type<tc>, window_params = [{transform_indices = @transform_0, window_bounds = array<i64: 8, 64>}, {transform_indices = @transform_1, window_bounds = array<i64: 8, 64>}, {pipeline_mode = #tpu.pipeline_mode<synchronous>, transform_indices = @transform_2, window_bounds = array<i64: 1, 64>}, {pipeline_mode = #tpu.pipeline_mode<synchronous>, transform_indices = @transform_3, window_bounds = array<i64: 1, 64>}, {pipeline_mode = #tpu.pipeline_mode<synchronous>, transform_indices = @transform_4, window_bounds = array<i64: 1, 64>}, {pipeline_mode = #tpu.pipeline_mode<synchronous>, transform_indices = @transform_5, window_bounds = array<i64: 1, 64>}, {transform_indices = @transform_6, window_bounds = array<i64: 8, 64>}, {transform_indices = @transform_7, window_bounds = array<i64: 8, 64>}]} {
    %c0 = arith.constant 0 : index
    %c0_0 = arith.constant 0 : index
    %0 = vector.load %arg1[%c0, %c0_0] : memref<8x64xf32, #tpu.memory_space<vmem>>, vector<8x64xf32>
    %c0_1 = arith.constant 0 : index
    %c0_2 = arith.constant 0 : index
    %1 = vector.load %arg2[%c0_1, %c0_2] : memref<8x64xf32, #tpu.memory_space<vmem>>, vector<8x64xf32>
    %c0_3 = arith.constant 0 : index
    %c0_4 = arith.constant 0 : index
    %2 = vector.load %arg3[%c0_3, %c0_4] : memref<1x64xf32, #tpu.memory_space<vmem>>, vector<1x64xf32>
    %c0_5 = arith.constant 0 : index
    %c0_6 = arith.constant 0 : index
    %3 = vector.load %arg4[%c0_5, %c0_6] : memref<1x64xf32, #tpu.memory_space<vmem>>, vector<1x64xf32>
    %4 = vector.broadcast %2 : vector<1x64xf32> to vector<8x64xf32>
    %5 = arith.mulf %0, %4 : vector<8x64xf32>
    %6 = vector.broadcast %3 : vector<1x64xf32> to vector<8x64xf32>
    %7 = arith.mulf %1, %6 : vector<8x64xf32>
    %8 = arith.subf %5, %7 : vector<8x64xf32>
    %c0_7 = arith.constant 0 : index
    %c0_8 = arith.constant 0 : index
    %9 = vector.load %arg5[%c0_7, %c0_8] : memref<1x64xf32, #tpu.memory_space<vmem>>, vector<1x64xf32>
    %10 = vector.broadcast %9 : vector<1x64xf32> to vector<8x64xf32>
    %11 = arith.addf %8, %10 : vector<8x64xf32>
    %cst = arith.constant 0.000000e+00 : f32
    %12 = vector.broadcast %cst : f32 to vector<8x64xf32>
    %13 = arith.maximumf %11, %12 : vector<8x64xf32>
    %c0_9 = arith.constant 0 : index
    %c0_10 = arith.constant 0 : index
    %14 = vector.load %arg7[%c0_9, %c0_10] : memref<8x64xf32, #tpu.memory_space<vmem>>, vector<8x64xf32>
    tpu.vector_store %arg7[%c0_9, %c0_10], %13 {strides = array<i32>} : memref<8x64xf32, #tpu.memory_space<vmem>>, vector<8x64xf32>,
    %15 = vector.broadcast %2 : vector<1x64xf32> to vector<8x64xf32>
    %16 = arith.mulf %1, %15 : vector<8x64xf32>
    %17 = vector.broadcast %3 : vector<1x64xf32> to vector<8x64xf32>
    %18 = arith.mulf %0, %17 : vector<8x64xf32>
    %19 = arith.addf %16, %18 : vector<8x64xf32>
    %c0_11 = arith.constant 0 : index
    %c0_12 = arith.constant 0 : index
    %20 = vector.load %arg6[%c0_11, %c0_12] : memref<1x64xf32, #tpu.memory_space<vmem>>, vector<1x64xf32>
    %21 = vector.broadcast %20 : vector<1x64xf32> to vector<8x64xf32>
    %22 = arith.addf %19, %21 : vector<8x64xf32>
    %cst_13 = arith.constant 0.000000e+00 : f32
    %23 = vector.broadcast %cst_13 : f32 to vector<8x64xf32>
    %24 = arith.maximumf %22, %23 : vector<8x64xf32>
    %c0_14 = arith.constant 0 : index
    %c0_15 = arith.constant 0 : index
    %25 = vector.load %arg8[%c0_14, %c0_15] : memref<8x64xf32, #tpu.memory_space<vmem>>, vector<8x64xf32>
    tpu.vector_store %arg8[%c0_14, %c0_15], %24 {strides = array<i32>} : memref<8x64xf32, #tpu.memory_space<vmem>>, vector<8x64xf32>,
    return
  }
  func.func @transform_0(%arg0: i32) -> (i32, i32) {
    %c0_i32 = arith.constant 0 : i32
    %c0_i32_0 = arith.constant 0 : i32
    return %arg0, %c0_i32 : i32, i32
  }
  func.func @transform_1(%arg0: i32) -> (i32, i32) {
    %c0_i32 = arith.constant 0 : i32
    %c0_i32_0 = arith.constant 0 : i32
    return %arg0, %c0_i32 : i32, i32
  }
  func.func @transform_2(%arg0: i32) -> (i32, i32) {
    %c0_i32 = arith.constant 0 : i32
    %c0_i32_0 = arith.constant 0 : i32
    %c0_i32_1 = arith.constant 0 : i32
    return %c0_i32, %c0_i32_0 : i32, i32
  }
  func.func @transform_3(%arg0: i32) -> (i32, i32) {
    %c0_i32 = arith.constant 0 : i32
    %c0_i32_0 = arith.constant 0 : i32
    %c0_i32_1 = arith.constant 0 : i32
    return %c0_i32, %c0_i32_0 : i32, i32
  }
  func.func @transform_4(%arg0: i32) -> (i32, i32) {
    %c0_i32 = arith.constant 0 : i32
    %c0_i32_0 = arith.constant 0 : i32
    %c0_i32_1 = arith.constant 0 : i32
    return %c0_i32, %c0_i32_0 : i32, i32
  }
  func.func @transform_5(%arg0: i32) -> (i32, i32) {
    %c0_i32 = arith.constant 0 : i32
    %c0_i32_0 = arith.constant 0 : i32
    %c0_i32_1 = arith.constant 0 : i32
    return %c0_i32, %c0_i32_0 : i32, i32
  }
  func.func @transform_6(%arg0: i32) -> (i32, i32) {
    %c0_i32 = arith.constant 0 : i32
    %c0_i32_0 = arith.constant 0 : i32
    return %arg0, %c0_i32 : i32, i32
  }
  func.func @transform_7(%arg0: i32) -> (i32, i32) {
    %c0_i32 = arith.constant 0 : i32
    %c0_i32_0 = arith.constant 0 : i32
    return %arg0, %c0_i32 : i32, i32
  }
}

module attributes {stable_mosaic.version = 11 : i64} {
  func.func @_affine_kernel(%arg0: i32, %arg1: memref<8x32xf32, #tpu.memory_space<vmem>>, %arg2: memref<1x32xf32, #tpu.memory_space<vmem>>, %arg3: memref<1x32xf32, #tpu.memory_space<vmem>>, %arg4: memref<8x32xf32, #tpu.memory_space<vmem>>) attributes {dimension_semantics = [#tpu.dimension_semantics<parallel>], iteration_bounds = array<i64: 1>, scalar_prefetch = 0 : i64, scratch_operands = 0 : i64, tpu.core_type = #tpu.core_type<tc>, window_params = [{transform_indices = @transform_0, window_bounds = array<i64: 8, 32>}, {pipeline_mode = #tpu.pipeline_mode<synchronous>, transform_indices = @transform_1, window_bounds = array<i64: 1, 32>}, {pipeline_mode = #tpu.pipeline_mode<synchronous>, transform_indices = @transform_2, window_bounds = array<i64: 1, 32>}, {transform_indices = @transform_3, window_bounds = array<i64: 8, 32>}]} {
    %c0 = arith.constant 0 : index
    %c0_0 = arith.constant 0 : index
    %0 = vector.load %arg1[%c0, %c0_0] : memref<8x32xf32, #tpu.memory_space<vmem>>, vector<8x32xf32>
    %c0_1 = arith.constant 0 : index
    %c0_2 = arith.constant 0 : index
    %1 = vector.load %arg2[%c0_1, %c0_2] : memref<1x32xf32, #tpu.memory_space<vmem>>, vector<1x32xf32>
    %2 = vector.broadcast %1 : vector<1x32xf32> to vector<8x32xf32>
    %3 = arith.mulf %0, %2 : vector<8x32xf32>
    %c0_3 = arith.constant 0 : index
    %c0_4 = arith.constant 0 : index
    %4 = vector.load %arg3[%c0_3, %c0_4] : memref<1x32xf32, #tpu.memory_space<vmem>>, vector<1x32xf32>
    %5 = vector.broadcast %4 : vector<1x32xf32> to vector<8x32xf32>
    %6 = arith.addf %3, %5 : vector<8x32xf32>
    %c0_5 = arith.constant 0 : index
    %c0_6 = arith.constant 0 : index
    %7 = vector.load %arg4[%c0_5, %c0_6] : memref<8x32xf32, #tpu.memory_space<vmem>>, vector<8x32xf32>
    tpu.vector_store %arg4[%c0_5, %c0_6], %6 {strides = array<i32>} : memref<8x32xf32, #tpu.memory_space<vmem>>, vector<8x32xf32>,
    return
  }
  func.func @transform_0(%arg0: i32) -> (i32, i32) {
    %c0_i32 = arith.constant 0 : i32
    %c0_i32_0 = arith.constant 0 : i32
    return %arg0, %c0_i32 : i32, i32
  }
  func.func @transform_1(%arg0: i32) -> (i32, i32) {
    %c0_i32 = arith.constant 0 : i32
    %c0_i32_0 = arith.constant 0 : i32
    %c0_i32_1 = arith.constant 0 : i32
    return %c0_i32, %c0_i32_0 : i32, i32
  }
  func.func @transform_2(%arg0: i32) -> (i32, i32) {
    %c0_i32 = arith.constant 0 : i32
    %c0_i32_0 = arith.constant 0 : i32
    %c0_i32_1 = arith.constant 0 : i32
    return %c0_i32, %c0_i32_0 : i32, i32
  }
  func.func @transform_3(%arg0: i32) -> (i32, i32) {
    %c0_i32 = arith.constant 0 : i32
    %c0_i32_0 = arith.constant 0 : i32
    return %arg0, %c0_i32 : i32, i32
  }
}

</mosaic_0001>

<bundles_post_ra>
// kernel: rhythm_mamba_forward.41
= control target key start
LH: loop header
LB: loop body
LE: loop exit
PB: predicated region body
PF: predicated region fallthrough
CT: control target
= control target key end

     0   :  { %vm540_vm0 = vcmask 31744   ;;  %s1869_s0 = inlined_call_operand.vmem [shape: f32[1024,4], index: 0, kind: input, shape index: {}]   ;;  %s1870_s1 = inlined_call_operand.vmem [shape: f32[1,4], index: 1, kind: input, shape index: {}]   ;;  %s1871_s2 = inlined_call_operand.vmem [shape: f32[1,4], index: 2, kind: input, shape index: {}]   ;;  %s1872_s3 = inlined_call_operand.vmem [shape: f32[1024,4], index: 3, kind: output, shape index: {}]  }
   0x1   :  { %v14_v0 = vld [vmem:[%s1869_s0] sm:$0xff]  ;;  %v15_v4 = vld [vmem:[%s1869_s0 + $0x8] sm:$0xff]  ;;  %v16_v5 = vld [vmem:[%s1869_s0 + $0x10] sm:$0xff] }
   0x2   :  { %v703_v1 = vld [vmem:[%s1870_s1] ss:$0 sm:$0xff]  ;;  %v17_v6 = vld [vmem:[%s1869_s0 + $0x18] sm:$0xff]  ;;  %v19_v11 = vld [vmem:[%s1869_s0 + $0x28] sm:$0xff] }
   0x3   :  { %v708_v2 = vld [vmem:[%s1871_s2] ss:$0 sm:$0xff]  ;;  %v149_v3 = vmul.f32 %v703_v1, %v14_v0  ;;  %v150_v7 = vmul.f32 %v703_v1, %v15_v4  ;;  %v151_v8 = vmul.f32 %v703_v1, %v16_v5  ;;  %v152_v9 = vmul.f32 %v703_v1, %v17_v6  ;;  %v20_v12 = vld [vmem:[%s1869_s0 + $0x30] sm:$0xff]  ;;  %v21_v17 = vld [vmem:[%s1869_s0 + $0x38] sm:$0xff] }
   0x4   :  { %v18_v10 = vld [vmem:[%s1869_s0 + $0x20] sm:$0xff]  ;;  %v154_v15 = vmul.f32 %v703_v1, %v19_v11  ;;  %v155_v16 = vmul.f32 %v703_v1, %v20_v12  ;;  %v156_v21 = vmul.f32 %v703_v1, %v21_v17  ;;  %v23_v27 = vld [vmem:[%s1869_s0 + $0x48] sm:$0xff]  ;;  %v24_v28 = vld [vmem:[%s1869_s0 + $0x50] sm:$0xff] }
   0x5   :  { %v284_v13 = vadd.f32 %v708_v2, %v149_v3  ;;  %v153_v14 = vmul.f32 %v703_v1, %v18_v10  ;;  %v285_v18 = vadd.f32 %v708_v2, %v150_v7  ;;  %v286_v19 = vadd.f32 %v708_v2, %v151_v8  ;;  %v22_v22 = vld [vmem:[%s1869_s0 + $0x40] sm:$0xff]  ;;  %v25_v29 = vld [vmem:[%s1869_s0 + $0x58] sm:$0xff]  ;;  %v27_v35 = vld [vmem:[%s1869_s0 + $0x68] sm:$0xff] }
   0x6   :  { %v287_v20 = vadd.f32 %v708_v2, %v152_v9  ;;  %v289_v25 = vadd.f32 %v708_v2, %v154_v15  ;;  %v290_v26 = vadd.f32 %v708_v2, %v155_v16  ;;  %v291_v33 = vadd.f32 %v708_v2, %v156_v21  ;;  %v26_v34 = vld [vmem:[%s1869_s0 + $0x60] sm:$0xff]  ;;  %v28_v36 = vld [vmem:[%s1869_s0 + $0x70] sm:$0xff]  ;;  %v29_v41 = vld [vmem:[%s1869_s0 + $0x78] sm:$0xff] }
   0x7   :  { %v412_v23 = vmax.f32 %v284_v13, 0.0  ;;  %v288_v24 = vadd.f32 %v708_v2, %v153_v14  ;;  %v413_v30 = vmax.f32 %v285_v18, 0.0  ;;  %v414_v31 = vmax.f32 %v286_v19, 0.0  ;;  %v30_v54 = vld [vmem:[%s1869_s0 + $0x80] sm:$0xff]  ;;  %v31_v59 = vld [vmem:[%s1869_s0 + $0x88] sm:$0xff]  ;;  %v32_v60 = vld [vmem:[%s1869_s0 + $0x90] sm:$0xff] }
   0x8   :  { %v415_v32 = vmax.f32 %v287_v20, 0.0  ;;  %v417_v38 = vmax.f32 %v289_v25, 0.0  ;;  %v418_v39 = vmax.f32 %v290_v26, 0.0  ;;  %v157_v40 = vmul.f32 %v703_v1, %v22_v22  ;;  %v33_v61 = vld [vmem:[%s1869_s0 + $0x98] sm:$0xff]  ;;  %v34_v4 = vld [vmem:[%s1869_s0 + $0xa0] sm:$0xff]  ;;  %v35_v5 = vld [vmem:[%s1869_s0 + $0xa8] sm:$0xff] }
   0x9   :  { %541 = vst.msk [vmem:[%s1872_s3] sm:$0xff] %vm540_vm0, %v412_v23  ;;  %v416_v37 = vmax.f32 %v288_v24, 0.0  ;;  %542 = vst.msk [vmem:[%s1872_s3 + $0x8] sm:$0xff] %vm540_vm0, %v413_v30  ;;  %v419_v42 = vmax.f32 %v291_v33, 0.0  ;;  %v158_v43 = vmul.f32 %v703_v1, %v23_v27  ;;  %v159_v44 = vmul.f32 %v703_v1, %v24_v28  ;;  %v36_v6 = vld [vmem:[%s1869_s0 + $0xb0] sm:$0xff]  ;;  %v37_v11 = vld [vmem:[%s1869_s0 + $0xb8] sm:$0xff] }
   0xa   :  { %543 = vst.msk [vmem:[%s1872_s3 + $0x10] sm:$0xff] %vm540_vm0, %v414_v31  ;;  %544 = vst.msk [vmem:[%s1872_s3 + $0x18] sm:$0xff] %vm540_vm0, %v415_v32  ;;  %v160_v45 = vmul.f32 %v703_v1, %v25_v29  ;;  %v292_v46 = vadd.f32 %v708_v2, %v157_v40  ;;  %v161_v47 = vmul.f32 %v703_v1, %v26_v34  ;;  %v38_v24 = vld [vmem:[%s1869_s0 + $0xc0] sm:$0xff]  ;;  %v39_v29 = vld [vmem:[%s1869_s0 + $0xc8] sm:$0xff] }
   0xb   :  { %545 = vst.msk [vmem:[%s1872_s3 + $0x20] sm:$0xff] %vm540_vm0, %v416_v37  ;;  %546 = vst.msk [vmem:[%s1872_s3 + $0x28] sm:$0xff] %vm540_vm0, %v417_v38  ;;  %v162_v48 = vmul.f32 %v703_v1, %v27_v35  ;;  %v163_v49 = vmul.f32 %v703_v1, %v28_v36  ;;  %v293_v50 = vadd.f32 %v708_v2, %v158_v43  ;;  %v40_v30 = vld [vmem:[%s1869_s0 + $0xd0] sm:$0xff]  ;;  %v41_v31 = vld [vmem:[%s1869_s0 + $0xd8] sm:$0xff] }
   0xc   :  { %547 = vst.msk [vmem:[%s1872_s3 + $0x30] sm:$0xff] %vm540_vm0, %v418_v39  ;;  %548 = vst.msk [vmem:[%s1872_s3 + $0x38] sm:$0xff] %vm540_vm0, %v419_v42  ;;  %v294_v51 = vadd.f32 %v708_v2, %v159_v44  ;;  %v295_v52 = vadd.f32 %v708_v2, %v160_v45  ;;  %v164_v53 = vmul.f32 %v703_v1, %v29_v41  ;;  %v420_v55 = vmax.f32 %v292_v46, 0.0  ;;  %v42_v36 = vld [vmem:[%s1869_s0 + $0xe0] sm:$0xff]  ;;  %v43_v37 = vld [vmem:[%s1869_s0 + $0xe8] sm:$0xff] }
   0xd   :  { %v296_v56 = vadd.f32 %v708_v2, %v161_v47  ;;  %v297_v57 = vadd.f32 %v708_v2, %v162_v48  ;;  %v298_v58 = vadd.f32 %v708_v2, %v163_v49  ;;  %v421_v62 = vmax.f32 %v293_v50, 0.0  ;;  %v44_v38 = vld [vmem:[%s1869_s0 + $0xf0] sm:$0xff]  ;;  %v45_v43 = vld [vmem:[%s1869_s0 + $0xf8] sm:$0xff] }
   0xe   :  { %v422_v63 = vmax.f32 %v294_v51, 0.0  ;;  %v423_v0 = vmax.f32 %v295_v52, 0.0  ;;  %v299_v3 = vadd.f32 %v708_v2, %v164_v53  ;;  %549 = vst.msk [vmem:[%s1872_s3 + $0x40] sm:$0xff] %vm540_vm0, %v420_v55  ;;  %v165_v10 = vmul.f32 %v703_v1, %v30_v54 }
   0xf   :  { %v424_v7 = vmax.f32 %v296_v56, 0.0  ;;  %v425_v8 = vmax.f32 %v297_v57, 0.0  ;;  %v426_v9 = vmax.f32 %v298_v58, 0.0  ;;  %550 = vst.msk [vmem:[%s1872_s3 + $0x48] sm:$0xff] %vm540_vm0, %v421_v62  ;;  %v166_v13 = vmul.f32 %v703_v1, %v31_v59  ;;  %v46_v56 = vld [vmem:[%s1869_s0 + $0x100] sm:$0xff]  ;;  %v48_v62 = vld [vmem:[%s1869_s0 + $0x110] sm:$0xff] }
  0x10   :  { %551 = vst.msk [vmem:[%s1872_s3 + $0x50] sm:$0xff] %vm540_vm0, %v422_v63  ;;  %552 = vst.msk [vmem:[%s1872_s3 + $0x58] sm:$0xff] %vm540_vm0, %v423_v0  ;;  %v427_v12 = vmax.f32 %v299_v3, 0.0  ;;  %v167_v14 = vmul.f32 %v703_v1, %v32_v60  ;;  %v168_v15 = vmul.f32 %v703_v1, %v33_v61  ;;  %v300_v16 = vadd.f32 %v708_v2, %v165_v10  ;;  %v47_v61 = vld [vmem:[%s1869_s0 + $0x108] sm:$0xff]  ;;  %v49_v63 = vld [vmem:[%s1869_s0 + $0x118] sm:$0xff] }
  0x11   :  { %553 = vst.msk [vmem:[%s1872_s3 + $0x60] sm:$0xff] %vm540_vm0, %v424_v7  ;;  %554 = vst.msk [vmem:[%s1872_s3 + $0x68] sm:$0xff] %vm540_vm0, %v425_v8  ;;  %v169_v17 = vmul.f32 %v703_v1, %v34_v4  ;;  %v170_v18 = vmul.f32 %v703_v1, %v35_v5  ;;  %v171_v19 = vmul.f32 %v703_v1, %v36_v6  ;;  %v50_v6 = vld [vmem:[%s1869_s0 + $0x120] sm:$0xff]  ;;  %v51_v7 = vld [vmem:[%s1869_s0 + $0x128] sm:$0xff] }
  0x12   :  { %555 = vst.msk [vmem:[%s1872_s3 + $0x70] sm:$0xff] %vm540_vm0, %v426_v9  ;;  %556 = vst.msk [vmem:[%s1872_s3 + $0x78] sm:$0xff] %vm540_vm0, %v427_v12  ;;  %v301_v20 = vadd.f32 %v708_v2, %v166_v13  ;;  %v302_v21 = vadd.f32 %v708_v2, %v167_v14  ;;  %v303_v22 = vadd.f32 %v708_v2, %v168_v15  ;;  %v428_v25 = vmax.f32 %v300_v16, 0.0  ;;  %v52_v8 = vld [vmem:[%s1869_s0 + $0x130] sm:$0xff]  ;;  %v53_v13 = vld [vmem:[%s1869_s0 + $0x138] sm:$0xff] }
  0x13   :  { %v172_v23 = vmul.f32 %v703_v1, %v37_v11  ;;  %v304_v26 = vadd.f32 %v708_v2, %v169_v17  ;;  %v305_v27 = vadd.f32 %v708_v2, %v170_v18  ;;  %v306_v28 = vadd.f32 %v708_v2, %v171_v19 }
  0x14   :  { %v429_v32 = vmax.f32 %v301_v20, 0.0  ;;  %v430_v33 = vmax.f32 %v302_v21, 0.0  ;;  %v431_v34 = vmax.f32 %v303_v22, 0.0  ;;  %557 = vst.msk [vmem:[%s1872_s3 + $0x80] sm:$0xff] %vm540_vm0, %v428_v25  ;;  %v173_v42 = vmul.f32 %v703_v1, %v38_v24 }
  0x15   :  { %v307_v35 = vadd.f32 %v708_v2, %v172_v23  ;;  %v432_v39 = vmax.f32 %v304_v26, 0.0  ;;  %v433_v40 = vmax.f32 %v305_v27, 0.0  ;;  %v434_v41 = vmax.f32 %v306_v28, 0.0  ;;  %v54_v26 = vld [vmem:[%s1869_s0 + $0x140] sm:$0xff] }
  0x16   :  { %558 = vst.msk [vmem:[%s1872_s3 + $0x88] sm:$0xff] %vm540_vm0, %v429_v32  ;;  %559 = vst.msk [vmem:[%s1872_s3 + $0x90] sm:$0xff] %vm540_vm0, %v430_v33  ;;  %v174_v45 = vmul.f32 %v703_v1, %v39_v29  ;;  %v175_v46 = vmul.f32 %v703_v1, %v40_v30  ;;  %v176_v47 = vmul.f32 %v703_v1, %v41_v31  ;;  %v55_v31 = vld [vmem:[%s1869_s0 + $0x148] sm:$0xff]  ;;  %v56_v32 = vld [vmem:[%s1869_s0 + $0x150] sm:$0xff] }
  0x17   :  { %560 = vst.msk [vmem:[%s1872_s3 + $0x98] sm:$0xff] %vm540_vm0, %v431_v34  ;;  %v435_v44 = vmax.f32 %v307_v35, 0.0  ;;  %561 = vst.msk [vmem:[%s1872_s3 + $0xa0] sm:$0xff] %vm540_vm0, %v432_v39  ;;  %v308_v48 = vadd.f32 %v708_v2, %v173_v42  ;;  %v177_v49 = vmul.f32 %v703_v1, %v42_v36  ;;  %v178_v50 = vmul.f32 %v703_v1, %v43_v37  ;;  %v57_v33 = vld [vmem:[%s1869_s0 + $0x158] sm:$0xff]  ;;  %v59_v39 = vld [vmem:[%s1869_s0 + $0x168] sm:$0xff] }
  0x18   :  { %562 = vst.msk [vmem:[%s1872_s3 + $0xa8] sm:$0xff] %vm540_vm0, %v433_v40  ;;  %563 = vst.msk [vmem:[%s1872_s3 + $0xb0] sm:$0xff] %vm540_vm0, %v434_v41  ;;  %v179_v51 = vmul.f32 %v703_v1, %v44_v38  ;;  %v309_v52 = vadd.f32 %v708_v2, %v174_v45  ;;  %v310_v53 = vadd.f32 %v708_v2, %v175_v46  ;;  %v58_v38 = vld [vmem:[%s1869_s0 + $0x160] sm:$0xff]  ;;  %v60_v40 = vld [vmem:[%s1869_s0 + $0x170] sm:$0xff] }
  0x19   :  { %564 = vst.msk [vmem:[%s1872_s3 + $0xb8] sm:$0xff] %vm540_vm0, %v435_v44  ;;  %v311_v54 = vadd.f32 %v708_v2, %v176_v47  ;;  %v180_v55 = vmul.f32 %v703_v1, %v45_v43  ;;  %v436_v57 = vmax.f32 %v308_v48, 0.0  ;;  %v312_v58 = vadd.f32 %v708_v2, %v177_v49  ;;  %v61_v45 = vld [vmem:[%s1869_s0 + $0x178] sm:$0xff] }
  0x1a   :  { %v313_v59 = vadd.f32 %v708_v2, %v178_v50  ;;  %v314_v60 = vadd.f32 %v708_v2, %v179_v51  ;;  %v437_v0 = vmax.f32 %v309_v52, 0.0  ;;  %v438_v3 = vmax.f32 %v310_v53, 0.0 }
  0x1b   :  { %v439_v4 = vmax.f32 %v311_v54, 0.0  ;;  %v315_v5 = vadd.f32 %v708_v2, %v180_v55  ;;  %565 = vst.msk [vmem:[%s1872_s3 + $0xc0] sm:$0xff] %vm540_vm0, %v436_v57  ;;  %v440_v9 = vmax.f32 %v312_v58, 0.0  ;;  %v181_v12 = vmul.f32 %v703_v1, %v46_v56  ;;  %v62_v58 = vld [vmem:[%s1869_s0 + $0x180] sm:$0xff] }
  0x1c   :  { %v441_v10 = vmax.f32 %v313_v59, 0.0  ;;  %v442_v11 = vmax.f32 %v314_v60, 0.0  ;;  %566 = vst.msk [vmem:[%s1872_s3 + $0xc8] sm:$0xff] %vm540_vm0, %v437_v0  ;;  %567 = vst.msk [vmem:[%s1872_s3 + $0xd0] sm:$0xff] %vm540_vm0, %v438_v3  ;;  %v182_v15 = vmul.f32 %v703_v1, %v47_v61  ;;  %v183_v16 = vmul.f32 %v703_v1, %v48_v62  ;;  %v64_v0 = vld [vmem:[%s1869_s0 + $0x190] sm:$0xff]  ;;  %v65_v3 = vld [vmem:[%s1869_s0 + $0x198] sm:$0xff] }
  0x1d   :  { %568 = vst.msk [vmem:[%s1872_s3 + $0xd8] sm:$0xff] %vm540_vm0, %v439_v4  ;;  %v443_v14 = vmax.f32 %v315_v5, 0.0  ;;  %v184_v17 = vmul.f32 %v703_v1, %v49_v63  ;;  %569 = vst.msk [vmem:[%s1872_s3 + $0xe0] sm:$0xff] %vm540_vm0, %v440_v9  ;;  %v316_v18 = vadd.f32 %v708_v2, %v181_v12  ;;  %v185_v19 = vmul.f32 %v703_v1, %v50_v6  ;;  %v63_v63 = vld [vmem:[%s1869_s0 + $0x188] sm:$0xff] }
  0x1e   :  { %570 = vst.msk [vmem:[%s1872_s3 + $0xe8] sm:$0xff] %vm540_vm0, %v441_v10  ;;  %571 = vst.msk [vmem:[%s1872_s3 + $0xf0] sm:$0xff] %vm540_vm0, %v442_v11  ;;  %v186_v20 = vmul.f32 %v703_v1, %v51_v7  ;;  %v187_v21 = vmul.f32 %v703_v1, %v52_v8  ;;  %v317_v22 = vadd.f32 %v708_v2, %v182_v15  ;;  %v66_v8 = vld [vmem:[%s1869_s0 + $0x1a0] sm:$0xff]  ;;  %v67_v9 = vld [vmem:[%s1869_s0 + $0x1a8] sm:$0xff] }
  0x1f   :  { %572 = vst.msk [vmem:[%s1872_s3 + $0xf8] sm:$0xff] %vm540_vm0, %v443_v14  ;;  %v318_v23 = vadd.f32 %v708_v2, %v183_v16  ;;  %v319_v24 = vadd.f32 %v708_v2, %v184_v17  ;;  %v188_v25 = vmul.f32 %v703_v1, %v53_v13  ;;  %v444_v27 = vmax.f32 %v316_v18, 0.0  ;;  %v68_v10 = vld [vmem:[%s1869_s0 + $0x1b0] sm:$0xff]  ;;  %v69_v15 = vld [vmem:[%s1869_s0 + $0x1b8] sm:$0xff] }
  0x20   :  { %v320_v28 = vadd.f32 %v708_v2, %v185_v19  ;;  %v321_v29 = vadd.f32 %v708_v2, %v186_v20  ;;  %v322_v30 = vadd.f32 %v708_v2, %v187_v21  ;;  %v445_v34 = vmax.f32 %v317_v22, 0.0 }
  0x21   :  { %v446_v35 = vmax.f32 %v318_v23, 0.0  ;;  %v447_v36 = vmax.f32 %v319_v24, 0.0  ;;  %v323_v37 = vadd.f32 %v708_v2, %v188_v25  ;;  %573 = vst.msk [vmem:[%s1872_s3 + $0x100] sm:$0xff] %vm540_vm0, %v444_v27  ;;  %v189_v44 = vmul.f32 %v703_v1, %v54_v26 }
  0x22   :  { %v448_v41 = vmax.f32 %v320_v28, 0.0  ;;  %v449_v42 = vmax.f32 %v321_v29, 0.0  ;;  %v450_v43 = vmax.f32 %v322_v30, 0.0  ;;  %574 = vst.msk [vmem:[%s1872_s3 + $0x108] sm:$0xff] %vm540_vm0, %v445_v34  ;;  %v190_v47 = vmul.f32 %v703_v1, %v55_v31  ;;  %v70_v28 = vld [vmem:[%s1869_s0 + $0x1c0] sm:$0xff]  ;;  %v72_v34 = vld [vmem:[%s1869_s0 + $0x1d0] sm:$0xff] }
  0x23   :  { %575 = vst.msk [vmem:[%s1872_s3 + $0x110] sm:$0xff] %vm540_vm0, %v446_v35  ;;  %576 = vst.msk [vmem:[%s1872_s3 + $0x118] sm:$0xff] %vm540_vm0, %v447_v36  ;;  %v451_v46 = vmax.f32 %v323_v37, 0.0  ;;  %v191_v48 = vmul.f32 %v703_v1, %v56_v32  ;;  %v192_v49 = vmul.f32 %v703_v1, %v57_v33  ;;  %v324_v50 = vadd.f32 %v708_v2, %v189_v44  ;;  %v71_v33 = vld [vmem:[%s1869_s0 + $0x1c8] sm:$0xff]  ;;  %v73_v35 = vld [vmem:[%s1869_s0 + $0x1d8] sm:$0xff] }
  0x24   :  { %577 = vst.msk [vmem:[%s1872_s3 + $0x120] sm:$0xff] %vm540_vm0, %v448_v41  ;;  %578 = vst.msk [vmem:[%s1872_s3 + $0x128] sm:$0xff] %vm540_vm0, %v449_v42  ;;  %v193_v51 = vmul.f32 %v703_v1, %v58_v38  ;;  %v194_v52 = vmul.f32 %v703_v1, %v59_v39  ;;  %v195_v53 = vmul.f32 %v703_v1, %v60_v40  ;;  %v74_v40 = vld [vmem:[%s1869_s0 + $0x1e0] sm:$0xff]  ;;  %v75_v41 = vld [vmem:[%s1869_s0 + $0x1e8] sm:$0xff] }
  0x25   :  { %579 = vst.msk [vmem:[%s1872_s3 + $0x130] sm:$0xff] %vm540_vm0, %v450_v43  ;;  %580 = vst.msk [vmem:[%s1872_s3 + $0x138] sm:$0xff] %vm540_vm0, %v451_v46  ;;  %v325_v54 = vadd.f32 %v708_v2, %v190_v47  ;;  %v326_v55 = vadd.f32 %v708_v2, %v191_v48  ;;  %v327_v56 = vadd.f32 %v708_v2, %v192_v49  ;;  %v452_v59 = vmax.f32 %v324_v50, 0.0  ;;  %v76_v42 = vld [vmem:[%s1869_s0 + $0x1f0] sm:$0xff]  ;;  %v77_v47 = vld [vmem:[%s1869_s0 + $0x1f8] sm:$0xff] }
  0x26   :  { %v196_v57 = vmul.f32 %v703_v1, %v61_v45  ;;  %v328_v60 = vadd.f32 %v708_v2, %v193_v51  ;;  %v329_v61 = vadd.f32 %v708_v2, %v194_v52  ;;  %v330_v62 = vadd.f32 %v708_v2, %v195_v53 }
  0x27   :  { %v453_v4 = vmax.f32 %v325_v54, 0.0  ;;  %v454_v5 = vmax.f32 %v326_v55, 0.0  ;;  %v455_v6 = vmax.f32 %v327_v56, 0.0  ;;  %581 = vst.msk [vmem:[%s1872_s3 + $0x140] sm:$0xff] %vm540_vm0, %v452_v59  ;;  %v197_v14 = vmul.f32 %v703_v1, %v62_v58 }
  0x28   :  { %v331_v7 = vadd.f32 %v708_v2, %v196_v57  ;;  %v456_v11 = vmax.f32 %v328_v60, 0.0  ;;  %v457_v12 = vmax.f32 %v329_v61, 0.0  ;;  %v458_v13 = vmax.f32 %v330_v62, 0.0  ;;  %v78_v60 = vld [vmem:[%s1869_s0 + $0x200] sm:$0xff] }
  0x29   :  { %582 = vst.msk [vmem:[%s1872_s3 + $0x148] sm:$0xff] %vm540_vm0, %v453_v4  ;;  %583 = vst.msk [vmem:[%s1872_s3 + $0x150] sm:$0xff] %vm540_vm0, %v454_v5  ;;  %v198_v17 = vmul.f32 %v703_v1, %v63_v63  ;;  %v199_v18 = vmul.f32 %v703_v1, %v64_v0  ;;  %v200_v19 = vmul.f32 %v703_v1, %v65_v3  ;;  %v79_v3 = vld [vmem:[%s1869_s0 + $0x208] sm:$0xff]  ;;  %v80_v4 = vld [vmem:[%s1869_s0 + $0x210] sm:$0xff] }
  0x2a   :  { %584 = vst.msk [vmem:[%s1872_s3 + $0x158] sm:$0xff] %vm540_vm0, %v455_v6  ;;  %v459_v16 = vmax.f32 %v331_v7, 0.0  ;;  %585 = vst.msk [vmem:[%s1872_s3 + $0x160] sm:$0xff] %vm540_vm0, %v456_v11  ;;  %v332_v20 = vadd.f32 %v708_v2, %v197_v14  ;;  %v201_v21 = vmul.f32 %v703_v1, %v66_v8  ;;  %v202_v22 = vmul.f32 %v703_v1, %v67_v9  ;;  %v81_v5 = vld [vmem:[%s1869_s0 + $0x218] sm:$0xff]  ;;  %v83_v11 = vld [vmem:[%s1869_s0 + $0x228] sm:$0xff] }
  0x2b   :  { %586 = vst.msk [vmem:[%s1872_s3 + $0x168] sm:$0xff] %vm540_vm0, %v457_v12  ;;  %587 = vst.msk [vmem:[%s1872_s3 + $0x170] sm:$0xff] %vm540_vm0, %v458_v13  ;;  %v203_v23 = vmul.f32 %v703_v1, %v68_v10  ;;  %v333_v24 = vadd.f32 %v708_v2, %v198_v17  ;;  %v334_v25 = vadd.f32 %v708_v2, %v199_v18  ;;  %v82_v10 = vld [vmem:[%s1869_s0 + $0x220] sm:$0xff]  ;;  %v84_v12 = vld [vmem:[%s1869_s0 + $0x230] sm:$0xff] }
  0x2c   :  { %588 = vst.msk [vmem:[%s1872_s3 + $0x178] sm:$0xff] %vm540_vm0, %v459_v16  ;;  %v335_v26 = vadd.f32 %v708_v2, %v200_v19  ;;  %v204_v27 = vmul.f32 %v703_v1, %v69_v15  ;;  %v460_v29 = vmax.f32 %v332_v20, 0.0  ;;  %v336_v30 = vadd.f32 %v708_v2, %v201_v21  ;;  %v85_v17 = vld [vmem:[%s1869_s0 + $0x238] sm:$0xff] }
  0x2d   :  { %v337_v31 = vadd.f32 %v708_v2, %v202_v22  ;;  %v338_v32 = vadd.f32 %v708_v2, %v203_v23  ;;  %v461_v36 = vmax.f32 %v333_v24, 0.0  ;;  %v462_v37 = vmax.f32 %v334_v25, 0.0 }
  0x2e   :  { %v463_v38 = vmax.f32 %v335_v26, 0.0  ;;  %v339_v39 = vadd.f32 %v708_v2, %v204_v27  ;;  %589 = vst.msk [vmem:[%s1872_s3 + $0x180] sm:$0xff] %vm540_vm0, %v460_v29  ;;  %v464_v43 = vmax.f32 %v336_v30, 0.0  ;;  %v205_v46 = vmul.f32 %v703_v1, %v70_v28  ;;  %v86_v30 = vld [vmem:[%s1869_s0 + $0x240] sm:$0xff] }
  0x2f   :  { %v465_v44 = vmax.f32 %v337_v31, 0.0  ;;  %v466_v45 = vmax.f32 %v338_v32, 0.0  ;;  %590 = vst.msk [vmem:[%s1872_s3 + $0x188] sm:$0xff] %vm540_vm0, %v461_v36  ;;  %591 = vst.msk [vmem:[%s1872_s3 + $0x190] sm:$0xff] %vm540_vm0, %v462_v37  ;;  %v206_v49 = vmul.f32 %v703_v1, %v71_v33  ;;  %v207_v50 = vmul.f32 %v703_v1, %v72_v34  ;;  %v88_v36 = vld [vmem:[%s1869_s0 + $0x250] sm:$0xff]  ;;  %v89_v37 = vld [vmem:[%s1869_s0 + $0x258] sm:$0xff] }
  0x30   :  { %592 = vst.msk [vmem:[%s1872_s3 + $0x198] sm:$0xff] %vm540_vm0, %v463_v38  ;;  %v467_v48 = vmax.f32 %v339_v39, 0.0  ;;  %v208_v51 = vmul.f32 %v703_v1, %v73_v35  ;;  %593 = vst.msk [vmem:[%s1872_s3 + $0x1a0] sm:$0xff] %vm540_vm0, %v464_v43  ;;  %v340_v52 = vadd.f32 %v708_v2, %v205_v46  ;;  %v209_v53 = vmul.f32 %v703_v1, %v74_v40  ;;  %v87_v35 = vld [vmem:[%s1869_s0 + $0x248] sm:$0xff] }
  0x31   :  { %594 = vst.msk [vmem:[%s1872_s3 + $0x1a8] sm:$0xff] %vm540_vm0, %v465_v44  ;;  %595 = vst.msk [vmem:[%s1872_s3 + $0x1b0] sm:$0xff] %vm540_vm0, %v466_v45  ;;  %v210_v54 = vmul.f32 %v703_v1, %v75_v41  ;;  %v211_v55 = vmul.f32 %v703_v1, %v76_v42  ;;  %v341_v56 = vadd.f32 %v708_v2, %v206_v49  ;;  %v90_v42 = vld [vmem:[%s1869_s0 + $0x260] sm:$0xff]  ;;  %v91_v43 = vld [vmem:[%s1869_s0 + $0x268] sm:$0xff] }
  0x32   :  { %596 = vst.msk [vmem:[%s1872_s3 + $0x1b8] sm:$0xff] %vm540_vm0, %v467_v48  ;;  %v342_v57 = vadd.f32 %v708_v2, %v207_v50  ;;  %v343_v58 = vadd.f32 %v708_v2, %v208_v51  ;;  %v212_v59 = vmul.f32 %v703_v1, %v77_v47  ;;  %v468_v61 = vmax.f32 %v340_v52, 0.0  ;;  %v92_v44 = vld [vmem:[%s1869_s0 + $0x270] sm:$0xff]  ;;  %v93_v49 = vld [vmem:[%s1869_s0 + $0x278] sm:$0xff] }
  0x33   :  { %v344_v62 = vadd.f32 %v708_v2, %v209_v53  ;;  %v345_v63 = vadd.f32 %v708_v2, %v210_v54  ;;  %v346_v0 = vadd.f32 %v708_v2, %v211_v55  ;;  %v469_v6 = vmax.f32 %v341_v56, 0.0 }
  0x34   :  { %v470_v7 = vmax.f32 %v342_v57, 0.0  ;;  %v471_v8 = vmax.f32 %v343_v58, 0.0  ;;  %v347_v9 = vadd.f32 %v708_v2, %v212_v59  ;;  %597 = vst.msk [vmem:[%s1872_s3 + $0x1c0] sm:$0xff] %vm540_vm0, %v468_v61  ;;  %v213_v16 = vmul.f32 %v703_v1, %v78_v60 }
  0x35   :  { %v472_v13 = vmax.f32 %v344_v62, 0.0  ;;  %v473_v14 = vmax.f32 %v345_v63, 0.0  ;;  %v474_v15 = vmax.f32 %v346_v0, 0.0  ;;  %598 = vst.msk [vmem:[%s1872_s3 + $0x1c8] sm:$0xff] %vm540_vm0, %v469_v6  ;;  %v214_v19 = vmul.f32 %v703_v1, %v79_v3  ;;  %v94_v62 = vld [vmem:[%s1869_s0 + $0x280] sm:$0xff]  ;;  %v96_v6 = vld [vmem:[%s1869_s0 + $0x290] sm:$0xff] }
  0x36   :  { %599 = vst.msk [vmem:[%s1872_s3 + $0x1d0] sm:$0xff] %vm540_vm0, %v470_v7  ;;  %600 = vst.msk [vmem:[%s1872_s3 + $0x1d8] sm:$0xff] %vm540_vm0, %v471_v8  ;;  %v475_v18 = vmax.f32 %v347_v9, 0.0  ;;  %v215_v20 = vmul.f32 %v703_v1, %v80_v4  ;;  %v216_v21 = vmul.f32 %v703_v1, %v81_v5  ;;  %v348_v22 = vadd.f32 %v708_v2, %v213_v16  ;;  %v95_v5 = vld [vmem:[%s1869_s0 + $0x288] sm:$0xff]  ;;  %v97_v7 = vld [vmem:[%s1869_s0 + $0x298] sm:$0xff] }
  0x37   :  { %601 = vst.msk [vmem:[%s1872_s3 + $0x1e0] sm:$0xff] %vm540_vm0, %v472_v13  ;;  %602 = vst.msk [vmem:[%s1872_s3 + $0x1e8] sm:$0xff] %vm540_vm0, %v473_v14  ;;  %v217_v23 = vmul.f32 %v703_v1, %v82_v10  ;;  %v218_v24 = vmul.f32 %v703_v1, %v83_v11  ;;  %v219_v25 = vmul.f32 %v703_v1, %v84_v12  ;;  %v98_v12 = vld [vmem:[%s1869_s0 + $0x2a0] sm:$0xff]  ;;  %v99_v13 = vld [vmem:[%s1869_s0 + $0x2a8] sm:$0xff] }
  0x38   :  { %603 = vst.msk [vmem:[%s1872_s3 + $0x1f0] sm:$0xff] %vm540_vm0, %v474_v15  ;;  %604 = vst.msk [vmem:[%s1872_s3 + $0x1f8] sm:$0xff] %vm540_vm0, %v475_v18  ;;  %v349_v26 = vadd.f32 %v708_v2, %v214_v19  ;;  %v350_v27 = vadd.f32 %v708_v2, %v215_v20  ;;  %v351_v28 = vadd.f32 %v708_v2, %v216_v21  ;;  %v476_v31 = vmax.f32 %v348_v22, 0.0  ;;  %v100_v14 = vld [vmem:[%s1869_s0 + $0x2b0] sm:$0xff]  ;;  %v101_v19 = vld [vmem:[%s1869_s0 + $0x2b8] sm:$0xff] }
  0x39   :  { %v220_v29 = vmul.f32 %v703_v1, %v85_v17  ;;  %v352_v32 = vadd.f32 %v708_v2, %v217_v23  ;;  %v353_v33 = vadd.f32 %v708_v2, %v218_v24  ;;  %v354_v34 = vadd.f32 %v708_v2, %v219_v25 }
  0x3a   :  { %v477_v38 = vmax.f32 %v349_v26, 0.0  ;;  %v478_v39 = vmax.f32 %v350_v27, 0.0  ;;  %v479_v40 = vmax.f32 %v351_v28, 0.0  ;;  %605 = vst.msk [vmem:[%s1872_s3 + $0x200] sm:$0xff] %vm540_vm0, %v476_v31  ;;  %v221_v48 = vmul.f32 %v703_v1, %v86_v30 }
  0x3b   :  { %v355_v41 = vadd.f32 %v708_v2, %v220_v29  ;;  %v480_v45 = vmax.f32 %v352_v32, 0.0  ;;  %v481_v46 = vmax.f32 %v353_v33, 0.0  ;;  %v482_v47 = vmax.f32 %v354_v34, 0.0  ;;  %v102_v32 = vld [vmem:[%s1869_s0 + $0x2c0] sm:$0xff] }
  0x3c   :  { %606 = vst.msk [vmem:[%s1872_s3 + $0x208] sm:$0xff] %vm540_vm0, %v477_v38  ;;  %607 = vst.msk [vmem:[%s1872_s3 + $0x210] sm:$0xff] %vm540_vm0, %v478_v39  ;;  %v222_v51 = vmul.f32 %v703_v1, %v87_v35  ;;  %v223_v52 = vmul.f32 %v703_v1, %v88_v36  ;;  %v224_v53 = vmul.f32 %v703_v1, %v89_v37  ;;  %v103_v37 = vld [vmem:[%s1869_s0 + $0x2c8] sm:$0xff]  ;;  %v104_v38 = vld [vmem:[%s1869_s0 + $0x2d0] sm:$0xff] }
  0x3d   :  { %608 = vst.msk [vmem:[%s1872_s3 + $0x218] sm:$0xff] %vm540_vm0, %v479_v40  ;;  %v483_v50 = vmax.f32 %v355_v41, 0.0  ;;  %609 = vst.msk [vmem:[%s1872_s3 + $0x220] sm:$0xff] %vm540_vm0, %v480_v45  ;;  %v356_v54 = vadd.f32 %v708_v2, %v221_v48  ;;  %v225_v55 = vmul.f32 %v703_v1, %v90_v42  ;;  %v226_v56 = vmul.f32 %v703_v1, %v91_v43  ;;  %v105_v39 = vld [vmem:[%s1869_s0 + $0x2d8] sm:$0xff]  ;;  %v107_v45 = vld [vmem:[%s1869_s0 + $0x2e8] sm:$0xff] }
  0x3e   :  { %610 = vst.msk [vmem:[%s1872_s3 + $0x228] sm:$0xff] %vm540_vm0, %v481_v46  ;;  %611 = vst.msk [vmem:[%s1872_s3 + $0x230] sm:$0xff] %vm540_vm0, %v482_v47  ;;  %v227_v57 = vmul.f32 %v703_v1, %v92_v44  ;;  %v357_v58 = vadd.f32 %v708_v2, %v222_v51  ;;  %v358_v59 = vadd.f32 %v708_v2, %v223_v52  ;;  %v106_v44 = vld [vmem:[%s1869_s0 + $0x2e0] sm:$0xff]  ;;  %v108_v46 = vld [vmem:[%s1869_s0 + $0x2f0] sm:$0xff] }
  0x3f   :  { %612 = vst.msk [vmem:[%s1872_s3 + $0x238] sm:$0xff] %vm540_vm0, %v483_v50  ;;  %v359_v60 = vadd.f32 %v708_v2, %v224_v53  ;;  %v228_v61 = vmul.f32 %v703_v1, %v93_v49  ;;  %v484_v63 = vmax.f32 %v356_v54, 0.0  ;;  %v360_v0 = vadd.f32 %v708_v2, %v225_v55  ;;  %v109_v51 = vld [vmem:[%s1869_s0 + $0x2f8] sm:$0xff] }
  0x40   :  { %v361_v3 = vadd.f32 %v708_v2, %v226_v56  ;;  %v362_v4 = vadd.f32 %v708_v2, %v227_v57  ;;  %v485_v8 = vmax.f32 %v357_v58, 0.0  ;;  %v486_v9 = vmax.f32 %v358_v59, 0.0 }
  0x41   :  { %v487_v10 = vmax.f32 %v359_v60, 0.0  ;;  %v363_v11 = vadd.f32 %v708_v2, %v228_v61  ;;  %613 = vst.msk [vmem:[%s1872_s3 + $0x240] sm:$0xff] %vm540_vm0, %v484_v63  ;;  %v488_v15 = vmax.f32 %v360_v0, 0.0  ;;  %v229_v18 = vmul.f32 %v703_v1, %v94_v62  ;;  %v110_v0 = vld [vmem:[%s1869_s0 + $0x300] sm:$0xff] }
  0x42   :  { %v489_v16 = vmax.f32 %v361_v3, 0.0  ;;  %v490_v17 = vmax.f32 %v362_v4, 0.0  ;;  %614 = vst.msk [vmem:[%s1872_s3 + $0x248] sm:$0xff] %vm540_vm0, %v485_v8  ;;  %615 = vst.msk [vmem:[%s1872_s3 + $0x250] sm:$0xff] %vm540_vm0, %v486_v9  ;;  %v230_v21 = vmul.f32 %v703_v1, %v95_v5  ;;  %v231_v22 = vmul.f32 %v703_v1, %v96_v6  ;;  %v112_v8 = vld [vmem:[%s1869_s0 + $0x310] sm:$0xff]  ;;  %v113_v9 = vld [vmem:[%s1869_s0 + $0x318] sm:$0xff] }
  0x43   :  { %616 = vst.msk [vmem:[%s1872_s3 + $0x258] sm:$0xff] %vm540_vm0, %v487_v10  ;;  %v491_v20 = vmax.f32 %v363_v11, 0.0  ;;  %v232_v23 = vmul.f32 %v703_v1, %v97_v7  ;;  %617 = vst.msk [vmem:[%s1872_s3 + $0x260] sm:$0xff] %vm540_vm0, %v488_v15  ;;  %v364_v24 = vadd.f32 %v708_v2, %v229_v18  ;;  %v233_v25 = vmul.f32 %v703_v1, %v98_v12  ;;  %v111_v7 = vld [vmem:[%s1869_s0 + $0x308] sm:$0xff] }
  0x44   :  { %618 = vst.msk [vmem:[%s1872_s3 + $0x268] sm:$0xff] %vm540_vm0, %v489_v16  ;;  %619 = vst.msk [vmem:[%s1872_s3 + $0x270] sm:$0xff] %vm540_vm0, %v490_v17  ;;  %v234_v26 = vmul.f32 %v703_v1, %v99_v13  ;;  %v235_v27 = vmul.f32 %v703_v1, %v100_v14  ;;  %v365_v28 = vadd.f32 %v708_v2, %v230_v21  ;;  %v114_v14 = vld [vmem:[%s1869_s0 + $0x320] sm:$0xff]  ;;  %v115_v15 = vld [vmem:[%s1869_s0 + $0x328] sm:$0xff] }
  0x45   :  { %620 = vst.msk [vmem:[%s1872_s3 + $0x278] sm:$0xff] %vm540_vm0, %v491_v20  ;;  %v366_v29 = vadd.f32 %v708_v2, %v231_v22  ;;  %v367_v30 = vadd.f32 %v708_v2, %v232_v23  ;;  %v236_v31 = vmul.f32 %v703_v1, %v101_v19  ;;  %v492_v33 = vmax.f32 %v364_v24, 0.0  ;;  %v116_v16 = vld [vmem:[%s1869_s0 + $0x330] sm:$0xff]  ;;  %v117_v21 = vld [vmem:[%s1869_s0 + $0x338] sm:$0xff] }
  0x46   :  { %v368_v34 = vadd.f32 %v708_v2, %v233_v25  ;;  %v369_v35 = vadd.f32 %v708_v2, %v234_v26  ;;  %v370_v36 = vadd.f32 %v708_v2, %v235_v27  ;;  %v493_v40 = vmax.f32 %v365_v28, 0.0 }
  0x47   :  { %v494_v41 = vmax.f32 %v366_v29, 0.0  ;;  %v495_v42 = vmax.f32 %v367_v30, 0.0  ;;  %v371_v43 = vadd.f32 %v708_v2, %v236_v31  ;;  %621 = vst.msk [vmem:[%s1872_s3 + $0x280] sm:$0xff] %vm540_vm0, %v492_v33  ;;  %v237_v50 = vmul.f32 %v703_v1, %v102_v32 }
  0x48   :  { %v496_v47 = vmax.f32 %v368_v34, 0.0  ;;  %v497_v48 = vmax.f32 %v369_v35, 0.0  ;;  %v498_v49 = vmax.f32 %v370_v36, 0.0  ;;  %622 = vst.msk [vmem:[%s1872_s3 + $0x288] sm:$0xff] %vm540_vm0, %v493_v40  ;;  %v238_v53 = vmul.f32 %v703_v1, %v103_v37  ;;  %v118_v34 = vld [vmem:[%s1869_s0 + $0x340] sm:$0xff]  ;;  %v120_v40 = vld [vmem:[%s1869_s0 + $0x350] sm:$0xff] }
  0x49   :  { %623 = vst.msk [vmem:[%s1872_s3 + $0x290] sm:$0xff] %vm540_vm0, %v494_v41  ;;  %624 = vst.msk [vmem:[%s1872_s3 + $0x298] sm:$0xff] %vm540_vm0, %v495_v42  ;;  %v499_v52 = vmax.f32 %v371_v43, 0.0  ;;  %v239_v54 = vmul.f32 %v703_v1, %v104_v38  ;;  %v240_v55 = vmul.f32 %v703_v1, %v105_v39  ;;  %v372_v56 = vadd.f32 %v708_v2, %v237_v50  ;;  %v119_v39 = vld [vmem:[%s1869_s0 + $0x348] sm:$0xff] }
  0x4a   :  { %625 = vst.msk [vmem:[%s1872_s3 + $0x2a0] sm:$0xff] %vm540_vm0, %v496_v47  ;;  %626 = vst.msk [vmem:[%s1872_s3 + $0x2a8] sm:$0xff] %vm540_vm0, %v497_v48  ;;  %v241_v57 = vmul.f32 %v703_v1, %v106_v44  ;;  %v242_v58 = vmul.f32 %v703_v1, %v107_v45  ;;  %v243_v59 = vmul.f32 %v703_v1, %v108_v46  ;;  %v1625_v44 = vld [vmem:[%s1871_s2] ss:$0 sm:$0xff]  ;;  %v123_v46 = vld [vmem:[%s1869_s0 + $0x368] sm:$0xff] }
  0x4b   :  { %627 = vst.msk [vmem:[%s1872_s3 + $0x2b0] sm:$0xff] %vm540_vm0, %v498_v49  ;;  %628 = vst.msk [vmem:[%s1872_s3 + $0x2b8] sm:$0xff] %vm540_vm0, %v499_v52  ;;  %v373_v60 = vadd.f32 %v708_v2, %v238_v53  ;;  %v374_v61 = vadd.f32 %v708_v2, %v239_v54  ;;  %v375_v62 = vadd.f32 %v708_v2, %v240_v55  ;;  %v500_v3 = vmax.f32 %v372_v56, 0.0  ;;  %v122_v45 = vld [vmem:[%s1869_s0 + $0x360] sm:$0xff]  ;;  %v124_v47 = vld [vmem:[%s1869_s0 + $0x370] sm:$0xff] }
  0x4c   :  { %v244_v63 = vmul.f32 %v703_v1, %v109_v51  ;;  %v376_v4 = vadd.f32 %v708_v2, %v241_v57  ;;  %v377_v5 = vadd.f32 %v708_v2, %v242_v58  ;;  %v378_v6 = vadd.f32 %v708_v2, %v243_v59  ;;  %v1644_v51 = vld [vmem:[%s1870_s1] ss:$0 sm:$0xff]  ;;  %v125_v53 = vld [vmem:[%s1869_s0 + $0x378] sm:$0xff] }
  0x4d   :  { %v501_v10 = vmax.f32 %v373_v60, 0.0  ;;  %v502_v11 = vmax.f32 %v374_v61, 0.0  ;;  %v503_v12 = vmax.f32 %v375_v62, 0.0  ;;  %629 = vst.msk [vmem:[%s1872_s3 + $0x2c0] sm:$0xff] %vm540_vm0, %v500_v3  ;;  %v245_v20 = vmul.f32 %v703_v1, %v110_v0 }
  0x4e   :  { %v379_v13 = vadd.f32 %v708_v2, %v244_v63  ;;  %v504_v17 = vmax.f32 %v376_v4, 0.0  ;;  %v505_v18 = vmax.f32 %v377_v5, 0.0  ;;  %v506_v19 = vmax.f32 %v378_v6, 0.0  ;;  %v126_v4 = vld [vmem:[%s1869_s0 + $0x380] sm:$0xff] }
  0x4f   :  { %630 = vst.msk [vmem:[%s1872_s3 + $0x2c8] sm:$0xff] %vm540_vm0, %v501_v10  ;;  %631 = vst.msk [vmem:[%s1872_s3 + $0x2d0] sm:$0xff] %vm540_vm0, %v502_v11  ;;  %v246_v23 = vmul.f32 %v703_v1, %v111_v7  ;;  %v247_v24 = vmul.f32 %v703_v1, %v112_v8  ;;  %v248_v25 = vmul.f32 %v703_v1, %v113_v9  ;;  %v127_v9 = vld [vmem:[%s1869_s0 + $0x388] sm:$0xff]  ;;  %v128_v10 = vld [vmem:[%s1869_s0 + $0x390] sm:$0xff] }
  0x50   :  { %632 = vst.msk [vmem:[%s1872_s3 + $0x2d8] sm:$0xff] %vm540_vm0, %v503_v12  ;;  %v507_v22 = vmax.f32 %v379_v13, 0.0  ;;  %633 = vst.msk [vmem:[%s1872_s3 + $0x2e0] sm:$0xff] %vm540_vm0, %v504_v17  ;;  %v380_v26 = vadd.f32 %v708_v2, %v245_v20  ;;  %v249_v27 = vmul.f32 %v703_v1, %v114_v14  ;;  %v250_v28 = vmul.f32 %v703_v1, %v115_v15  ;;  %v129_v11 = vld [vmem:[%s1869_s0 + $0x398] sm:$0xff]  ;;  %v131_v17 = vld [vmem:[%s1869_s0 + $0x3a8] sm:$0xff] }
  0x51   :  { %634 = vst.msk [vmem:[%s1872_s3 + $0x2e8] sm:$0xff] %vm540_vm0, %v505_v18  ;;  %635 = vst.msk [vmem:[%s1872_s3 + $0x2f0] sm:$0xff] %vm540_vm0, %v506_v19  ;;  %v251_v29 = vmul.f32 %v703_v1, %v116_v16  ;;  %v381_v30 = vadd.f32 %v708_v2, %v246_v23  ;;  %v382_v31 = vadd.f32 %v708_v2, %v247_v24  ;;  %v130_v16 = vld [vmem:[%s1869_s0 + $0x3a0] sm:$0xff]  ;;  %v132_v18 = vld [vmem:[%s1869_s0 + $0x3b0] sm:$0xff] }
  0x52   :  { %636 = vst.msk [vmem:[%s1872_s3 + $0x2f8] sm:$0xff] %vm540_vm0, %v507_v22  ;;  %v383_v32 = vadd.f32 %v708_v2, %v248_v25  ;;  %v252_v33 = vmul.f32 %v703_v1, %v117_v21  ;;  %v508_v35 = vmax.f32 %v380_v26, 0.0  ;;  %v384_v36 = vadd.f32 %v708_v2, %v249_v27  ;;  %v121_v1 = vld [vmem:[%s1869_s0 + $0x358] sm:$0xff] }
  0x53   :  { %v385_v37 = vadd.f32 %v708_v2, %v250_v28  ;;  %v386_v38 = vadd.f32 %v708_v2, %v251_v29  ;;  %v509_v41 = vmax.f32 %v381_v30, 0.0  ;;  %v510_v42 = vmax.f32 %v382_v31, 0.0  ;;  %v133_v23 = vld [vmem:[%s1869_s0 + $0x3b8] sm:$0xff] }
  0x54   :  { %v511_v43 = vmax.f32 %v383_v32, 0.0  ;;  %v387_v2 = vadd.f32 %v1625_v44, %v252_v33  ;;  %637 = vst.msk [vmem:[%s1872_s3 + $0x300] sm:$0xff] %vm540_vm0, %v508_v35  ;;  %v512_v48 = vmax.f32 %v384_v36, 0.0  ;;  %v253_v52 = vmul.f32 %v1644_v51, %v118_v34  ;;  %v134_v36 = vld [vmem:[%s1869_s0 + $0x3c0] sm:$0xff] }
  0x55   :  { %v513_v49 = vmax.f32 %v385_v37, 0.0  ;;  %v514_v50 = vmax.f32 %v386_v38, 0.0  ;;  %638 = vst.msk [vmem:[%s1872_s3 + $0x308] sm:$0xff] %vm540_vm0, %v509_v41  ;;  %639 = vst.msk [vmem:[%s1872_s3 + $0x310] sm:$0xff] %vm540_vm0, %v510_v42  ;;  %v254_v55 = vmul.f32 %v1644_v51, %v119_v39  ;;  %v255_v56 = vmul.f32 %v1644_v51, %v120_v40  ;;  %v136_v41 = vld [vmem:[%s1869_s0 + $0x3d0] sm:$0xff]  ;;  %v137_v42 = vld [vmem:[%s1869_s0 + $0x3d8] sm:$0xff] }
  0x56   :  { %640 = vst.msk [vmem:[%s1872_s3 + $0x318] sm:$0xff] %vm540_vm0, %v511_v43  ;;  %v515_v54 = vmax.f32 %v387_v2, 0.0  ;;  %v256_v57 = vmul.f32 %v1644_v51, %v121_v1  ;;  %641 = vst.msk [vmem:[%s1872_s3 + $0x320] sm:$0xff] %vm540_vm0, %v512_v48  ;;  %v388_v58 = vadd.f32 %v1625_v44, %v253_v52  ;;  %v257_v59 = vmul.f32 %v1644_v51, %v122_v45  ;;  %v135_v1 = vld [vmem:[%s1869_s0 + $0x3c8] sm:$0xff] }
  0x57   :  { %642 = vst.msk [vmem:[%s1872_s3 + $0x328] sm:$0xff] %vm540_vm0, %v513_v49  ;;  %643 = vst.msk [vmem:[%s1872_s3 + $0x330] sm:$0xff] %vm540_vm0, %v514_v50  ;;  %v258_v60 = vmul.f32 %v1644_v51, %v123_v46  ;;  %v259_v61 = vmul.f32 %v1644_v51, %v124_v47  ;;  %v389_v62 = vadd.f32 %v1625_v44, %v254_v55  ;;  %v138_v47 = vld [vmem:[%s1869_s0 + $0x3e0] sm:$0xff]  ;;  %v139_v48 = vld [vmem:[%s1869_s0 + $0x3e8] sm:$0xff] }
  0x58   :  { %644 = vst.msk [vmem:[%s1872_s3 + $0x338] sm:$0xff] %vm540_vm0, %v515_v54  ;;  %v390_v63 = vadd.f32 %v1625_v44, %v255_v56  ;;  %v391_v0 = vadd.f32 %v1625_v44, %v256_v57  ;;  %v260_v3 = vmul.f32 %v1644_v51, %v125_v53  ;;  %v516_v5 = vmax.f32 %v388_v58, 0.0  ;;  %v140_v49 = vld [vmem:[%s1869_s0 + $0x3f0] sm:$0xff]  ;;  %v141_v55 = vld [vmem:[%s1869_s0 + $0x3f8] sm:$0xff] }
  0x59   :  { %v392_v6 = vadd.f32 %v1625_v44, %v257_v59  ;;  %v393_v7 = vadd.f32 %v1625_v44, %v258_v60  ;;  %v394_v8 = vadd.f32 %v1625_v44, %v259_v61  ;;  %v517_v12 = vmax.f32 %v389_v62, 0.0 }
  0x5a   :  { %v518_v13 = vmax.f32 %v390_v63, 0.0  ;;  %v519_v14 = vmax.f32 %v391_v0, 0.0  ;;  %v395_v15 = vadd.f32 %v1625_v44, %v260_v3  ;;  %645 = vst.msk [vmem:[%s1872_s3 + $0x340] sm:$0xff] %vm540_vm0, %v516_v5  ;;  %v261_v22 = vmul.f32 %v1644_v51, %v126_v4 }
  0x5b   :  { %v520_v19 = vmax.f32 %v392_v6, 0.0  ;;  %v521_v20 = vmax.f32 %v393_v7, 0.0  ;;  %v522_v21 = vmax.f32 %v394_v8, 0.0  ;;  %646 = vst.msk [vmem:[%s1872_s3 + $0x348] sm:$0xff] %vm540_vm0, %v517_v12  ;;  %v262_v25 = vmul.f32 %v1644_v51, %v127_v9 }
  0x5c   :  { %647 = vst.msk [vmem:[%s1872_s3 + $0x350] sm:$0xff] %vm540_vm0, %v518_v13  ;;  %648 = vst.msk [vmem:[%s1872_s3 + $0x358] sm:$0xff] %vm540_vm0, %v519_v14  ;;  %v523_v24 = vmax.f32 %v395_v15, 0.0  ;;  %v263_v26 = vmul.f32 %v1644_v51, %v128_v10  ;;  %v264_v27 = vmul.f32 %v1644_v51, %v129_v11  ;;  %v396_v28 = vadd.f32 %v1625_v44, %v261_v22 }
  0x5d   :  { %649 = vst.msk [vmem:[%s1872_s3 + $0x360] sm:$0xff] %vm540_vm0, %v520_v19  ;;  %650 = vst.msk [vmem:[%s1872_s3 + $0x368] sm:$0xff] %vm540_vm0, %v521_v20  ;;  %v265_v29 = vmul.f32 %v1644_v51, %v130_v16  ;;  %v266_v30 = vmul.f32 %v1644_v51, %v131_v17  ;;  %v267_v31 = vmul.f32 %v1644_v51, %v132_v18 }
  0x5e   :  { %651 = vst.msk [vmem:[%s1872_s3 + $0x370] sm:$0xff] %vm540_vm0, %v522_v21  ;;  %652 = vst.msk [vmem:[%s1872_s3 + $0x378] sm:$0xff] %vm540_vm0, %v523_v24  ;;  %v397_v32 = vadd.f32 %v1625_v44, %v262_v25  ;;  %v398_v33 = vadd.f32 %v1625_v44, %v263_v26  ;;  %v399_v34 = vadd.f32 %v1625_v44, %v264_v27  ;;  %v524_v37 = vmax.f32 %v396_v28, 0.0 }
  0x5f   :  { %v268_v35 = vmul.f32 %v1644_v51, %v133_v23  ;;  %v400_v38 = vadd.f32 %v1625_v44, %v265_v29  ;;  %v401_v39 = vadd.f32 %v1625_v44, %v266_v30  ;;  %v402_v40 = vadd.f32 %v1625_v44, %v267_v31 }
  0x60   :  { %v525_v43 = vmax.f32 %v397_v32, 0.0  ;;  %v526_v2 = vmax.f32 %v398_v33, 0.0  ;;  %v527_v45 = vmax.f32 %v399_v34, 0.0  ;;  %653 = vst.msk [vmem:[%s1872_s3 + $0x380] sm:$0xff] %vm540_vm0, %v524_v37  ;;  %v269_v54 = vmul.f32 %v1644_v51, %v134_v36 }
  0x61   :  { %v403_v46 = vadd.f32 %v1625_v44, %v268_v35  ;;  %v528_v50 = vmax.f32 %v400_v38, 0.0  ;;  %v529_v52 = vmax.f32 %v401_v39, 0.0  ;;  %v530_v53 = vmax.f32 %v402_v40, 0.0 }
  0x62   :  { %654 = vst.msk [vmem:[%s1872_s3 + $0x388] sm:$0xff] %vm540_vm0, %v525_v43  ;;  %655 = vst.msk [vmem:[%s1872_s3 + $0x390] sm:$0xff] %vm540_vm0, %v526_v2  ;;  %v270_v57 = vmul.f32 %v1644_v51, %v135_v1  ;;  %v271_v58 = vmul.f32 %v1644_v51, %v136_v41  ;;  %v272_v59 = vmul.f32 %v1644_v51, %v137_v42 }
  0x63   :  { %656 = vst.msk [vmem:[%s1872_s3 + $0x398] sm:$0xff] %vm540_vm0, %v527_v45  ;;  %v531_v56 = vmax.f32 %v403_v46, 0.0  ;;  %657 = vst.msk [vmem:[%s1872_s3 + $0x3a0] sm:$0xff] %vm540_vm0, %v528_v50  ;;  %v404_v60 = vadd.f32 %v1625_v44, %v269_v54  ;;  %v273_v61 = vmul.f32 %v1644_v51, %v138_v47  ;;  %v274_v62 = vmul.f32 %v1644_v51, %v139_v48 }
  0x64   :  { %658 = vst.msk [vmem:[%s1872_s3 + $0x3a8] sm:$0xff] %vm540_vm0, %v529_v52  ;;  %659 = vst.msk [vmem:[%s1872_s3 + $0x3b0] sm:$0xff] %vm540_vm0, %v530_v53  ;;  %v275_v63 = vmul.f32 %v1644_v51, %v140_v49  ;;  %v405_v0 = vadd.f32 %v1625_v44, %v270_v57  ;;  %v406_v3 = vadd.f32 %v1625_v44, %v271_v58 }
  0x65   :  { %660 = vst.msk [vmem:[%s1872_s3 + $0x3b8] sm:$0xff] %vm540_vm0, %v531_v56  ;;  %v407_v4 = vadd.f32 %v1625_v44, %v272_v59  ;;  %v276_v5 = vmul.f32 %v1644_v51, %v141_v55  ;;  %v532_v6 = vmax.f32 %v404_v60, 0.0  ;;  %v408_v7 = vadd.f32 %v1625_v44, %v273_v61 }
  0x66   :  { %v409_v8 = vadd.f32 %v1625_v44, %v274_v62  ;;  %v410_v9 = vadd.f32 %v1625_v44, %v275_v63  ;;  %v533_v10 = vmax.f32 %v405_v0, 0.0  ;;  %v534_v11 = vmax.f32 %v406_v3, 0.0 }
  0x67   :  { %v535_v12 = vmax.f32 %v407_v4, 0.0  ;;  %v411_v13 = vadd.f32 %v1625_v44, %v276_v5  ;;  %661 = vst.msk [vmem:[%s1872_s3 + $0x3c0] sm:$0xff] %vm540_vm0, %v532_v6  ;;  %v536_v14 = vmax.f32 %v408_v7, 0.0 }
  0x68   :  { %v537_v15 = vmax.f32 %v409_v8, 0.0  ;;  %v538_v51 = vmax.f32 %v410_v9, 0.0  ;;  %662 = vst.msk [vmem:[%s1872_s3 + $0x3c8] sm:$0xff] %vm540_vm0, %v533_v10  ;;  %663 = vst.msk [vmem:[%s1872_s3 + $0x3d0] sm:$0xff] %vm540_vm0, %v534_v11 }
  0x69   :  { %664 = vst.msk [vmem:[%s1872_s3 + $0x3d8] sm:$0xff] %vm540_vm0, %v535_v12  ;;  %v539_v44 = vmax.f32 %v411_v13, 0.0  ;;  %665 = vst.msk [vmem:[%s1872_s3 + $0x3e0] sm:$0xff] %vm540_vm0, %v536_v14 }
  0x6a   :  { %666 = vst.msk [vmem:[%s1872_s3 + $0x3e8] sm:$0xff] %vm540_vm0, %v537_v15  ;;  %667 = vst.msk [vmem:[%s1872_s3 + $0x3f0] sm:$0xff] %vm540_vm0, %v538_v51 }
  0x6b   :  { %668 = vst.msk [vmem:[%s1872_s3 + $0x3f8] sm:$0xff] %vm540_vm0, %v539_v44 }

// kernel: rhythm_mamba_forward.40
= control target key start
LH: loop header
LB: loop body
LE: loop exit
PB: predicated region body
PF: predicated region fallthrough
CT: control target
= control target key end

     0   :  { %s2602_s12 = smov 0   ;;  %s2604_s13 = smov 0   ;;  %s3017_s0 = inlined_call_operand.vmem [shape: bf16[1024,640], index: 0, kind: input, shape index: {}]   ;;  %s3018_s1 = inlined_call_operand.vmem [shape: bf16[640,128], index: 1, kind: input, shape index: {}]   ;;  %s3019_s2 = inlined_call_operand.vmem [shape: f32[1,128], index: 2, kind: input, shape index: {}]   ;;  %s3020_s3 = inlined_call_operand.vmem [shape: f32[1024,128], index: 3, kind: output, shape index: {}]  }
   0x1   :  { %s2606_s14 = smov 0  }
   0x2 LB: > { %s32_s15 = sadd.s32 1, %s2576_s13  ;;  %p1941_p0 = scmp.ge.s32.totalorder %s2580_s14, 1  ;;  %s2580_s14 = sphi %s2606_s14, %s13_s14   ;;  %s2576_s13 = sphi %s2604_s13, %s3022_s13   ;;  %s2572_s12 = sphi %s2602_s12, %s3021_s12  }
   0x3   : > { %p34_p1 = scmp.ge.s32.totalorder %s32_s15, 4  ;;  %p191_p2 = scmp.lt.s32.totalorder %s2580_s14, 5 }
   0x5   : > { %s3024_s15 = smov (%p34_p1, %s32_s15), 0  ;;  %p192_p3 = pnand %p1941_p0, %p191_p2 }
   0x6   : > { %v2406_v0 = vld [vmem:[%s3018_s1 + $0x40] sm:$0xff] (!%p192_p3)   ;;  %s1942_s18 = sshll.u32 (!%p192_p3), %s2572_s12, 5  ;;  %v2408_v2 = vld [vmem:[%s3018_s1 + $0x48] sm:$0xff] (!%p192_p3)   ;;  %v2410_v4 = vld [vmem:[%s3018_s1 + $0x50] sm:$0xff] (!%p192_p3)  }
   0x7   : > { %195 = sbr.rel (%p192_p3) target bundleno = 415 (0x19f), region = 32  ;;  %v2407_v1 = vld [vmem:[%s3018_s1] sm:$0xff] (!%p192_p3)   ;;  %2069 = vmatprep.subr.bf16.mxu0 (!%p192_p3), %v2406_v0  ;;  %2365 = vmatprep.subr.bf16.mxu1 (!%p192_p3), %v2406_v0  ;;  %p236_p4 = scmp.lt.s32.totalorder (!%p192_p3), %s1942_s18, 127  ;;  %v2409_v3 = vld [vmem:[%s3018_s1 + $0x8] sm:$0xff] (!%p192_p3)   ;;  %v2411_v5 = vld [vmem:[%s3018_s1 + $0x10] sm:$0xff] (!%p192_p3)  }
   0x8   : > { %2070 = vmatpush3.bf16.msra.mxu0 (!%p192_p3), %v2407_v1  ;;  %2373 = vmatpush3.bf16.msra.mxu1 (!%p192_p3), %v2407_v1  ;;  %v2412_v6 = vld [vmem:[%s3018_s1 + $0x58] sm:$0xff] (!%p192_p3)   ;;  %v2414_v8 = vld [vmem:[%s3018_s1 + $0x60] sm:$0xff] (!%p192_p3)   ;;  %v2416_v10 = vld [vmem:[%s3018_s1 + $0x68] sm:$0xff] (!%p192_p3)  }
   0x9   : > { %2071 = vmatprep.subr.bf16.mxu0 (!%p192_p3), %v2408_v2  ;;  %2366 = vmatprep.subr.bf16.mxu1 (!%p192_p3), %v2408_v2  ;;  %v2413_v7 = vld [vmem:[%s3018_s1 + $0x18] sm:$0xff] (!%p192_p3)   ;;  %v2415_v9 = vld [vmem:[%s3018_s1 + $0x20] sm:$0xff] (!%p192_p3)   ;;  %v2417_v13 = vld [vmem:[%s3018_s1 + $0x28] sm:$0xff] (!%p192_p3)  }
   0xa   : > { %v2418_v14 = vld [vmem:[%s3018_s1 + $0x70] sm:$0xff] (!%p192_p3)   ;;  %v2420_v16 = vld [vmem:[%s3018_s1 + $0x78] sm:$0xff] (!%p192_p3)   ;;  %v2428_v18 = vld [vmem:[%s3018_s1 + $0xc0] sm:$0xff] (!%p192_p3)  }
   0xb   : > { %v2419_v15 = vld [vmem:[%s3018_s1 + $0x30] sm:$0xff] (!%p192_p3)   ;;  %v2421_v17 = vld [vmem:[%s3018_s1 + $0x38] sm:$0xff] (!%p192_p3)   ;;  %v2431_v19 = vld [vmem:[%s3018_s1 + $0x100] sm:$0xff] (!%p192_p3)  }
   0xc   : > { %2072 = vmatpush3.bf16.msra.mxu0 (!%p192_p3), %v2409_v3  ;;  %2374 = vmatpush3.bf16.msra.mxu1 (!%p192_p3), %v2409_v3  ;;  %v2429_v22 = vld [vmem:[%s3018_s1 + $0x80] sm:$0xff] (!%p192_p3)   ;;  %v2430_v23 = vld [vmem:[%s3018_s1 + $0xc8] sm:$0xff] (!%p192_p3)   ;;  %v2439_v29 = vld [vmem:[%s3018_s1 + $0xd0] sm:$0xff] (!%p192_p3)  }
   0xd   : > { %2073 = vmatprep.subr.bf16.mxu0 (!%p192_p3), %v2410_v4  ;;  %2367 = vmatprep.subr.bf16.mxu1 (!%p192_p3), %v2410_v4  ;;  %v2450_v26 = vld [vmem:[%s3018_s1 + $0x108] sm:$0xff] (!%p192_p3)   ;;  %v2440_v31 = vld [vmem:[%s3018_s1 + $0x90] sm:$0xff] (!%p192_p3)   ;;  %v2441_v33 = vld [vmem:[%s3018_s1 + $0xd8] sm:$0xff] (!%p192_p3)  }
   0xe   : > { %s3026_s18 = smov (!%p236_p4, %s1942_s18), 127  ;;  %v2432_v27 = vld [vmem:[%s3018_s1 + $0x88] sm:$0xff]   ;;  %v2442_v35 = vld [vmem:[%s3018_s1 + $0x98] sm:$0xff]   ;;  %v2449_v36 = vld [vmem:[%s3018_s1 + $0xe0] sm:$0xff]  }
   0xf   : > { %s2381_s4 = smul.u32 20, %s3026_s18  ;;  %v2463_v38 = vld [vmem:[%s3018_s1 + $0x110] sm:$0xff]   ;;  %v2451_v40 = vld [vmem:[%s3018_s1 + $0xa0] sm:$0xff]   ;;  %v2452_v41 = vld [vmem:[%s3018_s1 + $0xe8] sm:$0xff]  }
  0x10   : > { %2074 = vmatpush3.bf16.msra.mxu0 %v2411_v5  ;;  %2375 = vmatpush3.bf16.msra.mxu1 %v2411_v5  ;;  %v2453_v44 = vld [vmem:[%s3018_s1 + $0xa8] sm:$0xff]   ;;  %v2477_v45 = vld [vmem:[%s3018_s1 + $0x118] sm:$0xff]   ;;  %v2460_v48 = vld [vmem:[%s3018_s1 + $0xf0] sm:$0xff]  }
  0x11   : > { %2075 = vmatprep.subr.bf16.mxu0 %v2412_v6  ;;  %2368 = vmatprep.subr.bf16.mxu1 %v2412_v6  ;;  %s2653_s11 = scalar_lea.vmem %s3017_s0, %s2381_s4  ;;  %v2461_v49 = vld [vmem:[%s3018_s1 + $0xb0] sm:$0xff]   ;;  %v2462_v50 = vld [vmem:[%s3018_s1 + $0xf8] sm:$0xff]   ;;  %v2484_v52 = vld [vmem:[%s3018_s1 + $0x120] sm:$0xff]  }
  0x12   : > { %v2424_v11 = vld [vmem:[%s2653_s11 + $0x4] ss:$20 sps:$4 sm:$0xff]   ;;  %v2422_v20 = vld [vmem:[%s2653_s11] ss:$20 sps:$4 sm:$0xff]   ;;  %v2437_v28 = vld [vmem:[%s2653_s11 + $0x28] ss:$20 sps:$4 sm:$0xff]  }
  0x13   : > { %v2427_v12 = vld [vmem:[%s2653_s11 + $0x1e4] ss:$20 sps:$4 sm:$0xff]   ;;  %1200 = vmatprep.mubr.bf16.mxu0 %v2424_v11  ;;  %v2425_v21 = vld [vmem:[%s2653_s11 + $0x1e0] ss:$20 sps:$4 sm:$0xff]   ;;  %v2438_v30 = vld [vmem:[%s2653_s11 + $0x208] ss:$20 sps:$4 sm:$0xff]  }
  0x14   : > { %2076 = vmatpush3.bf16.msra.mxu0 %v2413_v7  ;;  %2376 = vmatpush3.bf16.msra.mxu1 %v2413_v7  ;;  %v2433_v24 = vld [vmem:[%s2653_s11 + $0x2c] ss:$20 sps:$4 sm:$0xff]   ;;  %v2443_v32 = vld [vmem:[%s2653_s11 + $0x54] ss:$20 sps:$4 sm:$0xff]   ;;  %v2447_v37 = vld [vmem:[%s2653_s11 + $0x50] ss:$20 sps:$4 sm:$0xff]  }
  0x15   : > { %2077 = vmatprep.subr.bf16.mxu0 %v2414_v8  ;;  %2369 = vmatprep.subr.bf16.mxu1 %v2414_v8  ;;  %v2435_v25 = vld [vmem:[%s2653_s11 + $0x20c] ss:$20 sps:$4 sm:$0xff]   ;;  %v2445_v34 = vld [vmem:[%s2653_s11 + $0x234] ss:$20 sps:$4 sm:$0xff]   ;;  %v2448_v39 = vld [vmem:[%s2653_s11 + $0x230] ss:$20 sps:$4 sm:$0xff]  }
  0x16   : > { %1296 = vmatprep.mubr.bf16.mxu1 %v2427_v12  ;;  %v2454_v42 = vld [vmem:[%s2653_s11 + $0x7c] ss:$20 sps:$4 sm:$0xff]   ;;  %v2458_v46 = vld [vmem:[%s2653_s11 + $0x78] ss:$20 sps:$4 sm:$0xff]   ;;  %v2470_v56 = vld [vmem:[%s2653_s11 + $0xa0] ss:$20 sps:$4 sm:$0xff]  }
  0x17   : > { %v2456_v43 = vld [vmem:[%s2653_s11 + $0x25c] ss:$20 sps:$4 sm:$0xff]   ;;  %v2459_v47 = vld [vmem:[%s2653_s11 + $0x258] ss:$20 sps:$4 sm:$0xff]   ;;  %v2473_v59 = vld [vmem:[%s2653_s11 + $0x34] ss:$20 sps:$4 sm:$0xff]  }
  0x18   : > { %2078 = vmatpush3.bf16.msra.mxu0 %v2415_v9  ;;  %2377 = vmatpush3.bf16.msra.mxu1 %v2415_v9  ;;  %v2465_v51 = vld [vmem:[%s2653_s11 + $0xa4] ss:$20 sps:$4 sm:$0xff]   ;;  %v2469_v53 = vld [vmem:[%s2653_s11 + $0xc] ss:$20 sps:$4 sm:$0xff]   ;;  %v2467_v55 = vld [vmem:[%s2653_s11 + $0x8] ss:$20 sps:$4 sm:$0xff]  }
  0x19   : > { %2079 = vmatprep.subr.bf16.mxu0 %v2416_v10  ;;  %2370 = vmatprep.subr.bf16.mxu1 %v2416_v10  ;;  %v2464_v54 = vld [vmem:[%s3018_s1 + $0xb8] sm:$0xff]   ;;  %v2497_v57 = vld [vmem:[%s3018_s1 + $0x128] sm:$0xff]   ;;  %v2504_v60 = vld [vmem:[%s3018_s1 + $0x130] sm:$0xff]  }
  0x1a   : > { %v2471_v58 = vld [vmem:[%s2653_s11 + $0xcc] ss:$20 sps:$4 sm:$0xff]   ;;  %v2475_v61 = vld [vmem:[%s2653_s11 + $0xc8] ss:$20 sps:$4 sm:$0xff]   ;;  %v2476_v62 = vld [vmem:[%s2653_s11 + $0x30] ss:$20 sps:$4 sm:$0xff]  }
  0x1b   : > { %v2478_v63 = vld [vmem:[%s2653_s11 + $0xf4] ss:$20 sps:$4 sm:$0xff]   ;;  %v2480_v0 = vld [vmem:[%s2653_s11 + $0x5c] ss:$20 sps:$4 sm:$0xff]   ;;  %v2483_v3 = vld [vmem:[%s2653_s11 + $0x58] ss:$20 sps:$4 sm:$0xff]  }
  0x1c   : > { %2080 = vmatpush3.bf16.msra.mxu0 %v2417_v13  ;;  %2378 = vmatpush3.bf16.msra.mxu1 %v2417_v13  ;;  %v2517_v1 = vld [vmem:[%s3018_s1 + $0x138] sm:$0xff]   ;;  %v2482_v2 = vld [vmem:[%s2653_s11 + $0xf0] ss:$20 sps:$4 sm:$0xff]   ;;  %v2490_v7 = vld [vmem:[%s2653_s11 + $0x80] ss:$20 sps:$4 sm:$0xff]  }
  0x1d   : > { %2081 = vmatprep.subr.bf16.mxu0 %v2418_v14  ;;  %2371 = vmatprep.subr.bf16.mxu1 %v2418_v14  ;;  %v2485_v4 = vld [vmem:[%s2653_s11 + $0x11c] ss:$20 sps:$4 sm:$0xff]   ;;  %v2487_v5 = vld [vmem:[%s2653_s11 + $0x84] ss:$20 sps:$4 sm:$0xff]   ;;  %v2493_v9 = vld [vmem:[%s2653_s11 + $0xac] ss:$20 sps:$4 sm:$0xff]  }
  0x1e   : > { %v2489_v6 = vld [vmem:[%s2653_s11 + $0x118] ss:$20 sps:$4 sm:$0xff]   ;;  %v2495_v10 = vld [vmem:[%s2653_s11 + $0x140] ss:$20 sps:$4 sm:$0xff]   ;;  %v2496_v11 = vld [vmem:[%s2653_s11 + $0xa8] ss:$20 sps:$4 sm:$0xff]  }
  0x1f   : > { %v2491_v8 = vld [vmem:[%s2653_s11 + $0x144] ss:$20 sps:$4 sm:$0xff]   ;;  %v2498_v12 = vld [vmem:[%s2653_s11 + $0x16c] ss:$20 sps:$4 sm:$0xff]   ;;  %v2500_v13 = vld [vmem:[%s2653_s11 + $0xd4] ss:$20 sps:$4 sm:$0xff]  }
  0x20   : > { %2082 = vmatpush3.bf16.msra.mxu0 %v2419_v15  ;;  %2379 = vmatpush3.bf16.msra.mxu1 %v2419_v15  ;;  %v2502_v14 = vld [vmem:[%s2653_s11 + $0x168] ss:$20 sps:$4 sm:$0xff]   ;;  %v2503_v15 = vld [vmem:[%s2653_s11 + $0xd0] ss:$20 sps:$4 sm:$0xff]  }
  0x21   : > { %2083 = vmatprep.subr.bf16.mxu0 %v2420_v16  ;;  %2372 = vmatprep.subr.bf16.mxu1 %v2420_v16  ;;  %v2505_v16 = vld [vmem:[%s2653_s11 + $0x194] ss:$20 sps:$4 sm:$0xff]  }
  0x24   : > { %2084 = vmatpush3.bf16.msra.mxu0 %v2421_v17  ;;  %2380 = vmatpush3.bf16.msra.mxu1 %v2421_v17  ;;  %v2507_v17 = vld [vmem:[%s2653_s11 + $0xfc] ss:$20 sps:$4 sm:$0xff]  }
  0x25   : > { %2181 = vmatprep.subr.bf16.mxu1 %v2428_v18  ;;  %2317 = vmatprep.subr.bf16.mxu0 %v2431_v19  ;;  %v2509_v18 = vld [vmem:[%s2653_s11 + $0x190] ss:$20 sps:$4 sm:$0xff]  }
  0x27   : > { %1201 = vmatmul.mubr.bf16.vlgmr.msra.gmra.mrb[0].mxu0 %v2422_v20  ;;  %1297 = vmatmul.mubr.bf16.vlgmr.msra.gmra.mrb[0].mxu1 %v2425_v21  ;;  %v2511_v20 = vld [vmem:[%s2653_s11 + $0x1bc] ss:$20 sps:$4 sm:$0xff]   ;;  %v2513_v21 = vld [vmem:[%s2653_s11 + $0x124] ss:$20 sps:$4 sm:$0xff]  }
  0x28   : > { %2182 = vmatpush3.bf16.msra.mxu1 %v2429_v22  ;;  %2318 = vmatpush3.bf16.msra.mxu0 %v2431_v19  ;;  %v2510_v19 = vld [vmem:[%s2653_s11 + $0xf8] ss:$20 sps:$4 sm:$0xff]  }
  0x29   : > { %2183 = vmatprep.subr.bf16.mxu1 %v2430_v23  ;;  %1208 = vmatprep.mubr.bf16.mxu0 %v2433_v24  ;;  %v2515_v22 = vld [vmem:[%s2653_s11 + $0x1b8] ss:$20 sps:$4 sm:$0xff]   ;;  %v2516_v23 = vld [vmem:[%s2653_s11 + $0x120] ss:$20 sps:$4 sm:$0xff]  }
  0x2a   : > { %1304 = vmatprep.mubr.bf16.mxu1 %v2435_v25  ;;  %2319 = vmatprep.subr.bf16.mxu0 %v2450_v26  ;;  %v2518_v24 = vld [vmem:[%s2653_s11 + $0x14c] ss:$20 sps:$4 sm:$0xff]   ;;  %v2520_v25 = vld [vmem:[%s2653_s11 + $0x10] ss:$20 sps:$4 sm:$0xff]  }
  0x2c   : > { %2184 = vmatpush3.bf16.msra.mxu1 %v2432_v27  ;;  %2320 = vmatpush3.bf16.msra.mxu0 %v2450_v26  ;;  %v2521_v26 = vld [vmem:[%s2653_s11 + $0x148] ss:$20 sps:$4 sm:$0xff]   ;;  %v2522_v27 = vld [vmem:[%s2653_s11 + $0x38] ss:$20 sps:$4 sm:$0xff]  }
  0x2d   : > { %2185 = vmatprep.subr.bf16.mxu1 %v2439_v29  ;;  %2321 = vmatprep.subr.bf16.mxu0 %v2463_v38  ;;  %v2525_v29 = vld [vmem:[%s2653_s11 + $0x60] ss:$20 sps:$4 sm:$0xff]  }
  0x2f   : > { %1209 = vmatmul.mubr.bf16.gmra.mrb[4].mxu0 %v2437_v28  ;;  %1305 = vmatmul.mubr.bf16.gmra.mrb[4].mxu1 %v2438_v30  ;;  %v2523_v28 = vld [vmem:[%s2653_s11 + $0x174] ss:$20 sps:$4 sm:$0xff]   ;;  %v2526_v30 = vld [vmem:[%s2653_s11 + $0x170] ss:$20 sps:$4 sm:$0xff]  }
  0x30   : > { %2186 = vmatpush3.bf16.msra.mxu1 %v2440_v31  ;;  %1216 = vmatprep.mubr.bf16.mxu0 %v2443_v32  ;;  %v2527_v31 = vld [vmem:[%s2653_s11 + $0x88] ss:$20 sps:$4 sm:$0xff]  }
  0x31   : > { %2187 = vmatprep.subr.bf16.mxu1 %v2441_v33  ;;  %1312 = vmatprep.mubr.bf16.mxu1 %v2445_v34  ;;  %v2528_v32 = vld [vmem:[%s2653_s11 + $0x19c] ss:$20 sps:$4 sm:$0xff]   ;;  %v2531_v34 = vld [vmem:[%s2653_s11 + $0x198] ss:$20 sps:$4 sm:$0xff]  }
  0x32   : > { %2322 = vmatpush3.bf16.msra.mxu0 %v2463_v38  ;;  %v2530_v33 = vld [vmem:[%s2653_s11 + $0xb0] ss:$20 sps:$4 sm:$0xff]   ;;  %v2536_v38 = vld [vmem:[%s2653_s11 + $0x1c0] ss:$20 sps:$4 sm:$0xff]  }
  0x33   : > { %2323 = vmatprep.subr.bf16.mxu0 %v2477_v45 }
  0x34   : > { %2188 = vmatpush3.bf16.msra.mxu1 %v2442_v35  ;;  %v2532_v35 = vld [vmem:[%s2653_s11 + $0xd8] ss:$20 sps:$4 sm:$0xff]  }
  0x35   : > { %2189 = vmatprep.subr.bf16.mxu1 %v2449_v36  ;;  %v2533_v36 = vld [vmem:[%s2653_s11 + $0x1c4] ss:$20 sps:$4 sm:$0xff]  }
  0x36   : > { %2324 = vmatpush3.bf16.msra.mxu0 %v2477_v45  ;;  %v2545_v45 = vld [vmem:[%s2653_s11 + $0x1a0] ss:$20 sps:$4 sm:$0xff]  }
  0x37   : > { %1217 = vmatmul.mubr.bf16.gmra.mrb[8].mxu0 %v2447_v37  ;;  %1313 = vmatmul.mubr.bf16.gmra.mrb[8].mxu1 %v2448_v39  ;;  %v2535_v37 = vld [vmem:[%s2653_s11 + $0x100] ss:$20 sps:$4 sm:$0xff]   ;;  %v2537_v39 = vld [vmem:[%s2653_s11 + $0x128] ss:$20 sps:$4 sm:$0xff]  }
  0x38   : > { %2190 = vmatpush3.bf16.msra.mxu1 %v2451_v40  ;;  %1224 = vmatprep.mubr.bf16.mxu0 %v2454_v42  ;;  %v2538_v40 = vld [vmem:[%s2653_s11 + $0x1ec] ss:$20 sps:$4 sm:$0xff]   ;;  %v2541_v42 = vld [vmem:[%s2653_s11 + $0x1e8] ss:$20 sps:$4 sm:$0xff]  }
  0x39   : > { %2191 = vmatprep.subr.bf16.mxu1 %v2452_v41  ;;  %1320 = vmatprep.mubr.bf16.mxu1 %v2456_v43  ;;  %v2540_v41 = vld [vmem:[%s2653_s11 + $0x150] ss:$20 sps:$4 sm:$0xff]   ;;  %v2542_v43 = vld [vmem:[%s2653_s11 + $0x178] ss:$20 sps:$4 sm:$0xff]  }
  0x3a   : > { %2325 = vmatprep.subr.bf16.mxu0 %v2484_v52 }
  0x3b   : > { %2326 = vmatpush3.bf16.msra.mxu0 %v2484_v52  ;;  %v2553_v52 = vld [vmem:[%s2653_s11 + $0x264] ss:$20 sps:$4 sm:$0xff]  }
  0x3c   : > { %2192 = vmatpush3.bf16.msra.mxu1 %v2453_v44  ;;  %2327 = vmatprep.subr.bf16.mxu0 %v2497_v57  ;;  %v2543_v44 = vld [vmem:[%s2653_s11 + $0x214] ss:$20 sps:$4 sm:$0xff]  }
  0x3d   : > { %2193 = vmatprep.subr.bf16.mxu1 %v2460_v48  ;;  %v2548_v48 = vld [vmem:[%s2653_s11 + $0x23c] ss:$20 sps:$4 sm:$0xff]  }
  0x3f   : > { %1225 = vmatmul.mubr.bf16.gmra.mrb[12].mxu0 %v2458_v46  ;;  %1321 = vmatmul.mubr.bf16.gmra.mrb[12].mxu1 %v2459_v47  ;;  %v2546_v46 = vld [vmem:[%s2653_s11 + $0x210] ss:$20 sps:$4 sm:$0xff]   ;;  %v2547_v47 = vld [vmem:[%s2653_s11 + $0x1c8] ss:$20 sps:$4 sm:$0xff]  }
  0x40   : > { %2194 = vmatpush3.bf16.msra.mxu1 %v2461_v49  ;;  %1232 = vmatprep.mubr.bf16.mxu0 %v2465_v51  ;;  %v2550_v49 = vld [vmem:[%s2653_s11 + $0x1f0] ss:$20 sps:$4 sm:$0xff]   ;;  %v2552_v51 = vld [vmem:[%s2653_s11 + $0x218] ss:$20 sps:$4 sm:$0xff]  }
  0x41   : > { %2195 = vmatprep.subr.bf16.mxu1 %v2462_v50  ;;  %1361 = vmatprep.mubr.bf16.mxu1 %v2469_v53  ;;  %v2551_v50 = vld [vmem:[%s2653_s11 + $0x238] ss:$20 sps:$4 sm:$0xff]   ;;  %v2555_v53 = vld [vmem:[%s2653_s11 + $0x240] ss:$20 sps:$4 sm:$0xff]  }
  0x42   : > { %2328 = vmatpush3.bf16.msra.mxu0 %v2497_v57 }
  0x43   : > { %2329 = vmatprep.subr.bf16.mxu0 %v2504_v60 }
  0x44   : > { %2196 = vmatpush3.bf16.msra.mxu1 %v2464_v54  ;;  %v2556_v54 = vld [vmem:[%s2653_s11 + $0x260] ss:$20 sps:$4 sm:$0xff]  }
  0x46   : > { %2330 = vmatpush3.bf16.msra.mxu0 %v2504_v60 }
  0x47   : > { %1233 = vmatmul.mubr.bf16.gmra.mrb[16].mxu0 %v2470_v56  ;;  %1362 = vmatmul.mubr.bf16.vlgmr.msra.gmra.mrb[16].mxu1 %v2467_v55  ;;  %v2557_v55 = vld [vmem:[%s2653_s11 + $0x268] ss:$20 sps:$4 sm:$0xff]   ;;  %s1945_s11 = sshll.u32 %s3026_s18, 3 }
  0x48   : > { %1240 = vmatprep.mubr.bf16.mxu0 %v2471_v58  ;;  %1369 = vmatprep.mubr.bf16.mxu1 %v2473_v59  ;;  %s2902_s12 = scalar_lea.vmem %s3020_s3, %s1945_s11 }
  0x49   : > { %2331 = vmatprep.subr.bf16.mxu0 %v2517_v1 }
  0x4a   : > { %2332 = vmatpush3.bf16.msra.mxu0 %v2517_v1 }
  0x4f   : > { %1241 = vmatmul.mubr.bf16.gmra.mrb[20].mxu0 %v2475_v61  ;;  %1370 = vmatmul.mubr.bf16.gmra.mrb[20].mxu1 %v2476_v62 }
  0x50   : > { %1248 = vmatprep.mubr.bf16.mxu0 %v2478_v63  ;;  %1377 = vmatprep.mubr.bf16.mxu1 %v2480_v0 }
  0x57   : > { %1249 = vmatmul.mubr.bf16.gmra.mrb[24].mxu0 %v2482_v2  ;;  %1378 = vmatmul.mubr.bf16.gmra.mrb[24].mxu1 %v2483_v3 }
  0x58   : > { %1256 = vmatprep.mubr.bf16.mxu0 %v2485_v4  ;;  %1385 = vmatprep.mubr.bf16.mxu1 %v2487_v5 }
  0x5f   : > { %1257 = vmatmul.mubr.bf16.gmra.mrb[28].mxu0 %v2489_v6  ;;  %1386 = vmatmul.mubr.bf16.gmra.mrb[28].mxu1 %v2490_v7 }
  0x60   : > { %1264 = vmatprep.mubr.bf16.mxu0 %v2491_v8  ;;  %1393 = vmatprep.mubr.bf16.mxu1 %v2493_v9 }
  0x67   : > { %1265 = vmatmul.mubr.bf16.gmra.mrb[32].mxu0 %v2495_v10  ;;  %1394 = vmatmul.mubr.bf16.gmra.mrb[32].mxu1 %v2496_v11 }
  0x68   : > { %1272 = vmatprep.mubr.bf16.mxu0 %v2498_v12  ;;  %1401 = vmatprep.mubr.bf16.mxu1 %v2500_v13 }
  0x6f   : > { %1273 = vmatmul.mubr.bf16.gmra.mrb[36].mxu0 %v2502_v14  ;;  %1402 = vmatmul.mubr.bf16.gmra.mrb[36].mxu1 %v2503_v15 }
  0x70   : > { %1280 = vmatprep.mubr.bf16.mxu0 %v2505_v16  ;;  %1409 = vmatprep.mubr.bf16.mxu1 %v2507_v17 }
  0x77   : > { %1281 = vmatmul.mubr.bf16.gmra.mrb[40].mxu0 %v2509_v18  ;;  %1410 = vmatmul.mubr.bf16.gmra.mrb[40].mxu1 %v2510_v19 }
  0x78   : > { %1288 = vmatprep.mubr.bf16.mxu0 %v2511_v20  ;;  %1417 = vmatprep.mubr.bf16.mxu1 %v2513_v21 }
  0x7f   : > { %1289 = vmatmul.mubr.bf16.gmra.mrb[44].mxu0 %v2515_v22  ;;  %1418 = vmatmul.mubr.bf16.gmra.mrb[44].mxu1 %v2516_v23 }
  0x80   : > { %1425 = vmatprep.mubr.bf16.mxu1 %v2518_v24  ;;  %2333 = vmatprep.mubr.bf16.mxu0 %v2520_v25 }
  0x87   : > { %1426 = vmatmul.mubr.bf16.gmra.mrb[48].mxu1 %v2521_v26  ;;  %2334 = vmatmul.mubr.bf16.vlgmr.msra.gmra.mrb[48].mxu0 %v2522_v27 }
  0x88   : > { %1433 = vmatprep.mubr.bf16.mxu1 %v2523_v28  ;;  %2337 = vmatprep.mubr.bf16.mxu0 %v2525_v29 }
  0x8f   : > { %1434 = vmatmul.mubr.bf16.gmra.mrb[52].mxu1 %v2526_v30  ;;  %2338 = vmatmul.mubr.bf16.gmra.mrb[52].mxu0 %v2527_v31 }
  0x90   : > { %1441 = vmatprep.mubr.bf16.mxu1 %v2528_v32  ;;  %2341 = vmatprep.mubr.bf16.mxu0 %v2530_v33 }
  0x97   : > { %1442 = vmatmul.mubr.bf16.gmra.mrb[56].mxu1 %v2531_v34  ;;  %2342 = vmatmul.mubr.bf16.gmra.mrb[56].mxu0 %v2532_v35 }
  0x98   : > { %1449 = vmatprep.mubr.bf16.mxu1 %v2533_v36  ;;  %2345 = vmatprep.mubr.bf16.mxu0 %v2535_v37 }
  0x9f   : > { %1450 = vmatmul.mubr.bf16.gmra.mrb[60].mxu1 %v2536_v38  ;;  %2346 = vmatmul.mubr.bf16.gmra.mrb[60].mxu0 %v2537_v39 }
  0xa0   : > { %1457 = vmatprep.mubr.bf16.mxu1 %v2538_v40  ;;  %2349 = vmatprep.mubr.bf16.mxu0 %v2540_v41 }
  0xa7   : > { %1458 = vmatmul.mubr.bf16.gmra.mrb[64].mxu1 %v2541_v42  ;;  %2350 = vmatmul.mubr.bf16.gmra.mrb[64].mxu0 %v2542_v43 }
  0xa8   : > { %1465 = vmatprep.mubr.bf16.mxu1 %v2543_v44  ;;  %2353 = vmatprep.mubr.bf16.mxu0 %v2545_v45 }
  0xaf   : > { %1466 = vmatmul.mubr.bf16.gmra.mrb[68].mxu1 %v2546_v46  ;;  %2354 = vmatmul.mubr.bf16.gmra.mrb[68].mxu0 %v2547_v47 }
  0xb0   : > { %1473 = vmatprep.mubr.bf16.mxu1 %v2548_v48  ;;  %2357 = vmatprep.mubr.bf16.mxu0 %v2550_v49 }
  0xb7   : > { %1474 = vmatmul.mubr.bf16.gmra.mrb[72].mxu1 %v2551_v50  ;;  %2358 = vmatmul.mubr.bf16.gmra.mrb[72].mxu0 %v2552_v51 }
  0xb8   : > { %1481 = vmatprep.mubr.bf16.mxu1 %v2553_v52  ;;  %2361 = vmatprep.mubr.bf16.mxu0 %v2555_v53 }
  0xbf   : > { %1482 = vmatmul.mubr.bf16.gmra.mrb[76].mxu1 %v2556_v54  ;;  %2362 = vmatmul.mubr.bf16.gmra.mrb[76].mxu0 %v2557_v55 }
  0xfa   : > { %v2157_v56 = vpop.f32.mrb[0].mxu1  ;;  %v2085_v57 = vpop.f32.mrb[0].mxu0 }
  0xfb   : > { %v2158_v58 = vpop.f32.mrb[1].mxu1  ;;  %v2086_v59 = vpop.f32.mrb[1].mxu0 }
  0xfc   : > { %v2828_v60 = vadd.f32 %v2158_v58, %v2157_v56  ;;  %v2160_v61 = vpop.f32.mrb[2].mxu1  ;;  %v2087_v62 = vadd.f32 %v2086_v59, %v2085_v57  ;;  %v2088_v63 = vpop.f32.mrb[2].mxu0 }
  0xfd   : > { %v2161_v0 = vpop.f32.mrb[3].mxu1  ;;  %v2089_v1 = vpop.f32.mrb[3].mxu0 }
  0xfe   : > { %v2830_v2 = vadd.f32 %v2161_v0, %v2160_v61  ;;  %v2090_v3 = vadd.f32 %v2089_v1, %v2088_v63 }
 0x102   : > { %v2163_v4 = vpop.f32.mrb[4].mxu1  ;;  %v2091_v5 = vpop.f32.mrb[4].mxu0 }
 0x103   : > { %v2164_v6 = vpop.f32.mrb[5].mxu1  ;;  %v2092_v7 = vpop.f32.mrb[5].mxu0 }
 0x104   : > { %v2832_v8 = vadd.f32 %v2164_v6, %v2163_v4  ;;  %v2166_v9 = vpop.f32.mrb[6].mxu1  ;;  %v2093_v10 = vadd.f32 %v2092_v7, %v2091_v5  ;;  %v2094_v11 = vpop.f32.mrb[6].mxu0 }
 0x105   : > { %v2167_v12 = vpop.f32.mrb[7].mxu1  ;;  %v2095_v13 = vpop.f32.mrb[7].mxu0 }
 0x106   : > { %v2834_v14 = vadd.f32 %v2167_v12, %v2166_v9  ;;  %v2096_v15 = vadd.f32 %v2095_v13, %v2094_v11 }
 0x10a   : > { %v2169_v16 = vpop.f32.mrb[8].mxu1  ;;  %v2097_v17 = vpop.f32.mrb[8].mxu0 }
 0x10b   : > { %v2170_v18 = vpop.f32.mrb[9].mxu1  ;;  %v2098_v19 = vpop.f32.mrb[9].mxu0 }
 0x10c   : > { %v2836_v20 = vadd.f32 %v2170_v18, %v2169_v16  ;;  %v2172_v21 = vpop.f32.mrb[10].mxu1  ;;  %v2099_v22 = vadd.f32 %v2098_v19, %v2097_v17  ;;  %v2100_v23 = vpop.f32.mrb[10].mxu0 }
 0x10d   : > { %v2173_v24 = vpop.f32.mrb[11].mxu1  ;;  %v2101_v25 = vpop.f32.mrb[11].mxu0 }
 0x10e   : > { %v2838_v26 = vadd.f32 %v2173_v24, %v2172_v21  ;;  %v2102_v27 = vadd.f32 %v2101_v25, %v2100_v23 }
 0x112   : > { %v2175_v28 = vpop.f32.mrb[12].mxu1  ;;  %v2103_v29 = vpop.f32.mrb[12].mxu0 }
 0x113   : > { %v2176_v30 = vpop.f32.mrb[13].mxu1  ;;  %v2104_v31 = vpop.f32.mrb[13].mxu0 }
 0x114   : > { %v2840_v32 = vadd.f32 %v2176_v30, %v2175_v28  ;;  %v2178_v33 = vpop.f32.mrb[14].mxu1  ;;  %v2105_v34 = vadd.f32 %v2104_v31, %v2103_v29  ;;  %v2106_v35 = vpop.f32.mrb[14].mxu0 }
 0x115   : > { %v2179_v36 = vpop.f32.mrb[15].mxu1  ;;  %v2107_v37 = vpop.f32.mrb[15].mxu0 }
 0x116   : > { %v2842_v38 = vadd.f32 %v2179_v36, %v2178_v33  ;;  %v2108_v39 = vadd.f32 %v2107_v37, %v2106_v35 }
 0x11a   : > { %v2197_v40 = vpop.f32.mrb[16].mxu1  ;;  %v2109_v41 = vpop.f32.mrb[16].mxu0 }
 0x11b   : > { %v2198_v42 = vpop.f32.mrb[17].mxu1  ;;  %v2110_v43 = vpop.f32.mrb[17].mxu0 }
 0x11c   : > { %v2199_v44 = vadd.f32 %v2198_v42, %v2197_v40  ;;  %v2200_v45 = vpop.f32.mrb[18].mxu1  ;;  %v2111_v46 = vadd.f32 %v2110_v43, %v2109_v41  ;;  %v2112_v47 = vpop.f32.mrb[18].mxu0 }
 0x11d   : > { %v2201_v48 = vpop.f32.mrb[19].mxu1  ;;  %v2113_v49 = vpop.f32.mrb[19].mxu0 }
 0x11e   : > { %v2202_v50 = vadd.f32 %v2201_v48, %v2200_v45  ;;  %v2114_v51 = vadd.f32 %v2113_v49, %v2112_v47  ;;  %v2844_v52 = vadd.f32 %v2199_v44, %v2087_v62 }
 0x120   : > { %v2846_v53 = vadd.f32 %v2202_v50, %v2090_v3 }
 0x122   : > { %v2203_v54 = vpop.f32.mrb[20].mxu1  ;;  %v2115_v55 = vpop.f32.mrb[20].mxu0 }
 0x123   : > { %v2204_v56 = vpop.f32.mrb[21].mxu1  ;;  %v2116_v57 = vpop.f32.mrb[21].mxu0 }
 0x124   : > { %v2205_v58 = vadd.f32 %v2204_v56, %v2203_v54  ;;  %v2206_v59 = vpop.f32.mrb[22].mxu1  ;;  %v2117_v61 = vadd.f32 %v2116_v57, %v2115_v55  ;;  %v2118_v63 = vpop.f32.mrb[22].mxu0 }
 0x125   : > { %v2207_v0 = vpop.f32.mrb[23].mxu1  ;;  %v2119_v1 = vpop.f32.mrb[23].mxu0 }
 0x126   : > { %v2208_v4 = vadd.f32 %v2207_v0, %v2206_v59  ;;  %v2120_v5 = vadd.f32 %v2119_v1, %v2118_v63  ;;  %v2848_v6 = vadd.f32 %v2205_v58, %v2093_v10 }
 0x128   : > { %v2850_v7 = vadd.f32 %v2208_v4, %v2096_v15 }
 0x12a   : > { %v2209_v62 = vpop.f32.mrb[24].mxu1  ;;  %v2121_v9 = vpop.f32.mrb[24].mxu0 }
 0x12b   : > { %v2210_v3 = vpop.f32.mrb[25].mxu1  ;;  %v2122_v11 = vpop.f32.mrb[25].mxu0 }
 0x12c   : > { %v2211_v12 = vadd.f32 %v2210_v3, %v2209_v62  ;;  %v2212_v13 = vpop.f32.mrb[26].mxu1  ;;  %v2123_v16 = vadd.f32 %v2122_v11, %v2121_v9  ;;  %v2124_v17 = vpop.f32.mrb[26].mxu0 }
 0x12d   : > { %v2213_v18 = vpop.f32.mrb[27].mxu1  ;;  %v2125_v19 = vpop.f32.mrb[27].mxu0 }
 0x12e   : > { %v2214_v21 = vadd.f32 %v2213_v18, %v2212_v13  ;;  %v2126_v23 = vadd.f32 %v2125_v19, %v2124_v17  ;;  %v2852_v24 = vadd.f32 %v2211_v12, %v2099_v22 }
 0x130   : > { %v2854_v25 = vadd.f32 %v2214_v21, %v2102_v27 }
 0x132   : > { %v2215_v10 = vpop.f32.mrb[28].mxu1  ;;  %v2127_v28 = vpop.f32.mrb[28].mxu0 }
 0x133   : > { %v2216_v15 = vpop.f32.mrb[29].mxu1  ;;  %v2128_v29 = vpop.f32.mrb[29].mxu0 }
 0x134   : > { %v2217_v30 = vadd.f32 %v2216_v15, %v2215_v10  ;;  %v2218_v31 = vpop.f32.mrb[30].mxu1  ;;  %v2129_v33 = vadd.f32 %v2128_v29, %v2127_v28  ;;  %v2130_v35 = vpop.f32.mrb[30].mxu0 }
 0x135   : > { %v2219_v36 = vpop.f32.mrb[31].mxu1  ;;  %v2131_v37 = vpop.f32.mrb[31].mxu0 }
 0x136   : > { %v2220_v40 = vadd.f32 %v2219_v36, %v2218_v31  ;;  %v2132_v41 = vadd.f32 %v2131_v37, %v2130_v35  ;;  %v2856_v42 = vadd.f32 %v2217_v30, %v2105_v34 }
 0x138   : > { %v2858_v43 = vadd.f32 %v2220_v40, %v2108_v39 }
 0x13a   : > { %v2221_v22 = vpop.f32.mrb[32].mxu1  ;;  %v2133_v44 = vpop.f32.mrb[32].mxu0 }
 0x13b   : > { %v2222_v27 = vpop.f32.mrb[33].mxu1  ;;  %v2134_v45 = vpop.f32.mrb[33].mxu0 }
 0x13c   : > { %v2223_v47 = vadd.f32 %v2222_v27, %v2221_v22  ;;  %v2224_v48 = vpop.f32.mrb[34].mxu1  ;;  %v2860_v49 = vadd.f32 %v2134_v45, %v2133_v44  ;;  %v2136_v50 = vpop.f32.mrb[34].mxu0 }
 0x13d   : > { %v2225_v54 = vpop.f32.mrb[35].mxu1  ;;  %v2137_v55 = vpop.f32.mrb[35].mxu0 }
 0x13e   : > { %v2226_v56 = vadd.f32 %v2225_v54, %v2224_v48  ;;  %v2862_v57 = vadd.f32 %v2137_v55, %v2136_v50  ;;  %v2864_v58 = vadd.f32 %v2223_v47, %v2111_v46 }
 0x140   : > { %v2866_v34 = vadd.f32 %v2226_v56, %v2114_v51 }
 0x142   : > { %v2227_v39 = vpop.f32.mrb[36].mxu1  ;;  %v2139_v59 = vpop.f32.mrb[36].mxu0 }
 0x143   : > { %v2228_v63 = vpop.f32.mrb[37].mxu1  ;;  %v2140_v0 = vpop.f32.mrb[37].mxu0 }
 0x144   : > { %v2229_v1 = vadd.f32 %v2228_v63, %v2227_v39  ;;  %v2230_v4 = vpop.f32.mrb[38].mxu1  ;;  %v2868_v62 = vadd.f32 %v2140_v0, %v2139_v59  ;;  %v2142_v9 = vpop.f32.mrb[38].mxu0  ;;  %v2896_v63 = vld [vmem:[%s3019_s2] ss:$0 sm:$0xff] }
 0x145   : > { %v2231_v3 = vpop.f32.mrb[39].mxu1  ;;  %v2143_v11 = vpop.f32.mrb[39].mxu0 }
 0x146   : > { %v2232_v12 = vadd.f32 %v2231_v3, %v2230_v4  ;;  %v2870_v13 = vadd.f32 %v2143_v11, %v2142_v9  ;;  %v2872_v17 = vadd.f32 %v2229_v1, %v2117_v61 }
 0x148   : > { %v2874_v46 = vadd.f32 %v2232_v12, %v2120_v5 }
 0x14a   : > { %v2233_v51 = vpop.f32.mrb[40].mxu1  ;;  %v2145_v18 = vpop.f32.mrb[40].mxu0 }
 0x14b   : > { %v2234_v19 = vpop.f32.mrb[41].mxu1  ;;  %v2146_v21 = vpop.f32.mrb[41].mxu0 }
 0x14c   : > { %v2235_v10 = vadd.f32 %v2234_v19, %v2233_v51  ;;  %v2236_v28 = vpop.f32.mrb[42].mxu1  ;;  %v2876_v15 = vadd.f32 %v2146_v21, %v2145_v18  ;;  %v2148_v29 = vpop.f32.mrb[42].mxu0 }
 0x14d   : > { %v2237_v30 = vpop.f32.mrb[43].mxu1  ;;  %v2149_v31 = vpop.f32.mrb[43].mxu0 }
 0x14e   : > { %v2238_v35 = vadd.f32 %v2237_v30, %v2236_v28  ;;  %v2878_v36 = vadd.f32 %v2149_v31, %v2148_v29  ;;  %v2880_v37 = vadd.f32 %v2235_v10, %v2123_v16 }
 0x150   : > { %v2882_v61 = vadd.f32 %v2238_v35, %v2126_v23 }
 0x152   : > { %v2239_v5 = vpop.f32.mrb[44].mxu1  ;;  %v2151_v40 = vpop.f32.mrb[44].mxu0 }
 0x153   : > { %v2240_v22 = vpop.f32.mrb[45].mxu1  ;;  %v2152_v44 = vpop.f32.mrb[45].mxu0 }
 0x154   : > { %v2241_v27 = vadd.f32 %v2240_v22, %v2239_v5  ;;  %v2242_v45 = vpop.f32.mrb[46].mxu1  ;;  %v2884_v47 = vadd.f32 %v2152_v44, %v2151_v40  ;;  %v2154_v48 = vpop.f32.mrb[46].mxu0 }
 0x155   : > { %v2243_v50 = vpop.f32.mrb[47].mxu1  ;;  %v2155_v54 = vpop.f32.mrb[47].mxu0 }
 0x156   : > { %v2244_v55 = vadd.f32 %v2243_v50, %v2242_v45  ;;  %v2886_v56 = vadd.f32 %v2155_v54, %v2154_v48  ;;  %v2888_v39 = vadd.f32 %v2241_v27, %v2129_v33 }
 0x158   : > { %v2890_v16 = vadd.f32 %v2244_v55, %v2132_v41 }
 0x15a   : > { %v2245_v23 = vpop.f32.mrb[48].mxu1  ;;  %v2335_v59 = vpop.f32.mrb[48].mxu0 }
 0x15b   : > { %v1533_v0 = vadd.f32 %v2335_v59, %v2848_v6  ;;  %v2246_v1 = vpop.f32.mrb[49].mxu1  ;;  %v1524_v4 = vpop.f32.mrb[49].mxu0 }
 0x15c   : > { %v2247_v33 = vadd.f32 %v2246_v1, %v2245_v23  ;;  %v1525_v41 = vadd.f32 %v1524_v4, %v2844_v52  ;;  %v2248_v9 = vpop.f32.mrb[50].mxu1  ;;  %v2336_v3 = vpop.f32.mrb[50].mxu0 }
 0x15d   : > { %v1759_v11 = vadd.f32 %v2896_v63, %v1533_v0  ;;  %v1536_v6 = vadd.f32 %v2336_v3, %v2850_v7  ;;  %v2249_v12 = vpop.f32.mrb[51].mxu1  ;;  %v1527_v51 = vpop.f32.mrb[51].mxu0 }
 0x15e   : > { %v1757_v18 = vadd.f32 %v2896_v63, %v1525_v41  ;;  %v2250_v19 = vadd.f32 %v2249_v12, %v2248_v9  ;;  %v1528_v21 = vadd.f32 %v1527_v51, %v2846_v53  ;;  %v2910_v10 = vadd.f32 %v2247_v33, %v2860_v49 }
 0x15f   : > { %1791 = vst [vmem:[%s2902_s12 + $0x10] sm:$0xff] %v1759_v11  ;;  %v1760_v52 = vadd.f32 %v2896_v63, %v1536_v6 }
 0x160   : > { %1789 = vst [vmem:[%s2902_s12] sm:$0xff] %v1757_v18  ;;  %v1758_v28 = vadd.f32 %v2896_v63, %v1528_v21  ;;  %v2917_v29 = vadd.f32 %v2250_v19, %v2862_v57 }
 0x161   : > { %1792 = vst [vmem:[%s2902_s12 + $0x18] sm:$0xff] %v1760_v52 }
 0x162   : > { %1790 = vst [vmem:[%s2902_s12 + $0x8] sm:$0xff] %v1758_v28  ;;  %v2251_v7 = vpop.f32.mrb[52].mxu1  ;;  %v2339_v30 = vpop.f32.mrb[52].mxu0 }
 0x163   : > { %v1549_v31 = vadd.f32 %v2339_v30, %v2856_v42  ;;  %v2252_v53 = vpop.f32.mrb[53].mxu1  ;;  %v1540_v49 = vpop.f32.mrb[53].mxu0 }
 0x164   : > { %v2253_v35 = vadd.f32 %v2252_v53, %v2251_v7  ;;  %v1541_v5 = vadd.f32 %v1540_v49, %v2852_v24  ;;  %v2254_v40 = vpop.f32.mrb[54].mxu1  ;;  %v2340_v22 = vpop.f32.mrb[54].mxu0 }
 0x165   : > { %v1763_v57 = vadd.f32 %v2896_v63, %v1549_v31  ;;  %v1552_v44 = vadd.f32 %v2340_v22, %v2858_v43  ;;  %v2255_v27 = vpop.f32.mrb[55].mxu1  ;;  %v1543_v45 = vpop.f32.mrb[55].mxu0 }
 0x166   : > { %v1761_v48 = vadd.f32 %v2896_v63, %v1541_v5  ;;  %v2256_v50 = vadd.f32 %v2255_v27, %v2254_v40  ;;  %v1544_v42 = vadd.f32 %v1543_v45, %v2854_v25  ;;  %v1436_v54 = vadd.f32 %v2253_v35, %v2868_v62 }
 0x167   : > { %1795 = vst [vmem:[%s2902_s12 + $0x30] sm:$0xff] %v1763_v57  ;;  %v1764_v24 = vadd.f32 %v2896_v63, %v1552_v44 }
 0x168   : > { %1793 = vst [vmem:[%s2902_s12 + $0x20] sm:$0xff] %v1761_v48  ;;  %v1762_v55 = vadd.f32 %v2896_v63, %v1544_v42  ;;  %v1439_v23 = vadd.f32 %v2256_v50, %v2870_v13 }
 0x169   : > { %1796 = vst [vmem:[%s2902_s12 + $0x38] sm:$0xff] %v1764_v24 }
 0x16a   : > { %1794 = vst [vmem:[%s2902_s12 + $0x28] sm:$0xff] %v1762_v55  ;;  %v2257_v43 = vpop.f32.mrb[56].mxu1  ;;  %v2343_v59 = vpop.f32.mrb[56].mxu0 }
 0x16b   : > { %v1565_v0 = vadd.f32 %v2343_v59, %v2872_v17  ;;  %v2258_v1 = vpop.f32.mrb[57].mxu1  ;;  %v1556_v25 = vpop.f32.mrb[57].mxu0 }
 0x16c   : > { %v2259_v4 = vadd.f32 %v2258_v1, %v2257_v43  ;;  %v1557_v62 = vadd.f32 %v1556_v25, %v2864_v58  ;;  %v2260_v33 = vpop.f32.mrb[58].mxu1  ;;  %v2344_v41 = vpop.f32.mrb[58].mxu0 }
 0x16d   : > { %v1767_v9 = vadd.f32 %v2896_v63, %v1565_v0  ;;  %v1568_v13 = vadd.f32 %v2344_v41, %v2874_v46  ;;  %v2261_v3 = vpop.f32.mrb[59].mxu1  ;;  %v1559_v11 = vpop.f32.mrb[59].mxu0 }
 0x16e   : > { %v1765_v6 = vadd.f32 %v2896_v63, %v1557_v62  ;;  %v2262_v12 = vadd.f32 %v2261_v3, %v2260_v33  ;;  %v1560_v17 = vadd.f32 %v1559_v11, %v2866_v34  ;;  %v1444_v51 = vadd.f32 %v2259_v4, %v2876_v15 }
 0x16f   : > { %1799 = vst [vmem:[%s2902_s12 + $0x50] sm:$0xff] %v1767_v9  ;;  %v1768_v58 = vadd.f32 %v2896_v63, %v1568_v13 }
 0x170   : > { %1797 = vst [vmem:[%s2902_s12 + $0x40] sm:$0xff] %v1765_v6  ;;  %v1766_v18 = vadd.f32 %v2896_v63, %v1560_v17  ;;  %v2947_v19 = vadd.f32 %v2262_v12, %v2878_v36 }
 0x171   : > { %1800 = vst [vmem:[%s2902_s12 + $0x58] sm:$0xff] %v1768_v58 }
 0x172   : > { %1798 = vst [vmem:[%s2902_s12 + $0x48] sm:$0xff] %v1766_v18  ;;  %v2263_v46 = vpop.f32.mrb[60].mxu1  ;;  %v2347_v21 = vpop.f32.mrb[60].mxu0 }
 0x173   : > { %v1581_v52 = vadd.f32 %v2347_v21, %v2888_v39  ;;  %v2264_v28 = vpop.f32.mrb[61].mxu1  ;;  %v1572_v34 = vpop.f32.mrb[61].mxu0 }
 0x174   : > { %v2265_v15 = vadd.f32 %v2264_v28, %v2263_v46  ;;  %v1573_v7 = vadd.f32 %v1572_v34, %v2880_v37  ;;  %v2266_v30 = vpop.f32.mrb[62].mxu1  ;;  %v2348_v31 = vpop.f32.mrb[62].mxu0 }
 0x175   : > { %v1771_v36 = vadd.f32 %v2896_v63, %v1581_v52  ;;  %v1584_v53 = vadd.f32 %v2348_v31, %v2890_v16  ;;  %v2267_v49 = vpop.f32.mrb[63].mxu1  ;;  %v1575_v35 = vpop.f32.mrb[63].mxu0 }
 0x176   : > { %v1769_v5 = vadd.f32 %v2896_v63, %v1573_v7  ;;  %v2268_v40 = vadd.f32 %v2267_v49, %v2266_v30  ;;  %v1576_v39 = vadd.f32 %v1575_v35, %v2882_v61  ;;  %v1452_v22 = vadd.f32 %v2265_v15, %v2884_v47 }
 0x177   : > { %1803 = vst [vmem:[%s2902_s12 + $0x70] sm:$0xff] %v1771_v36  ;;  %v1772_v37 = vadd.f32 %v2896_v63, %v1584_v53 }
 0x178   : > { %1801 = vst [vmem:[%s2902_s12 + $0x60] sm:$0xff] %v1769_v5  ;;  %v1770_v57 = vadd.f32 %v2896_v63, %v1576_v39  ;;  %v1455_v44 = vadd.f32 %v2268_v40, %v2886_v56 }
 0x179   : > { %1804 = vst [vmem:[%s2902_s12 + $0x78] sm:$0xff] %v1772_v37 }
 0x17a   : > { %1802 = vst [vmem:[%s2902_s12 + $0x68] sm:$0xff] %v1770_v57  ;;  %v2269_v16 = vpop.f32.mrb[64].mxu1  ;;  %v2351_v27 = vpop.f32.mrb[64].mxu0 }
 0x17b   : > { %v1597_v45 = vadd.f32 %v2351_v27, %v1436_v54  ;;  %v2270_v48 = vpop.f32.mrb[65].mxu1  ;;  %v1588_v50 = vpop.f32.mrb[65].mxu0 }
 0x17c   : > { %v2271_v61 = vadd.f32 %v2270_v48, %v2269_v16  ;;  %v1589_v47 = vadd.f32 %v1588_v50, %v2910_v10  ;;  %v2272_v42 = vpop.f32.mrb[66].mxu1  ;;  %v2352_v24 = vpop.f32.mrb[66].mxu0 }
 0x17d   : > { %v1775_v55 = vadd.f32 %v2896_v63, %v1597_v45  ;;  %v1600_v43 = vadd.f32 %v2352_v24, %v1439_v23  ;;  %v2273_v56 = vpop.f32.mrb[67].mxu1  ;;  %v1591_v59 = vpop.f32.mrb[67].mxu0 }
 0x17e   : > { %v1773_v0 = vadd.f32 %v2896_v63, %v1589_v47  ;;  %v2274_v1 = vadd.f32 %v2273_v56, %v2272_v42  ;;  %v1592_v54 = vadd.f32 %v1591_v59, %v2917_v29  ;;  %v1460_v25 = vadd.f32 %v2271_v61, %v2828_v60 }
 0x17f   : > { %1807 = vst [vmem:[%s2902_s12 + $0x90] sm:$0xff] %v1775_v55  ;;  %v1776_v4 = vadd.f32 %v2896_v63, %v1600_v43 }
 0x180   : > { %1805 = vst [vmem:[%s2902_s12 + $0x80] sm:$0xff] %v1773_v0  ;;  %v1774_v10 = vadd.f32 %v2896_v63, %v1592_v54  ;;  %v1463_v62 = vadd.f32 %v2274_v1, %v2830_v2 }
 0x181   : > { %1808 = vst [vmem:[%s2902_s12 + $0x98] sm:$0xff] %v1776_v4 }
 0x182   : > { %1806 = vst [vmem:[%s2902_s12 + $0x88] sm:$0xff] %v1774_v10  ;;  %v2275_v23 = vpop.f32.mrb[68].mxu1  ;;  %v2355_v33 = vpop.f32.mrb[68].mxu0 }
 0x183   : > { %v1613_v41 = vadd.f32 %v2355_v33, %v1452_v22  ;;  %v2276_v9 = vpop.f32.mrb[69].mxu1  ;;  %v1604_v13 = vpop.f32.mrb[69].mxu0 }
 0x184   : > { %v2277_v29 = vadd.f32 %v2276_v9, %v2275_v23  ;;  %v1605_v3 = vadd.f32 %v1604_v13, %v1444_v51  ;;  %v2278_v60 = vpop.f32.mrb[70].mxu1  ;;  %v2356_v11 = vpop.f32.mrb[70].mxu0 }
 0x185   : > { %v1779_v6 = vadd.f32 %v2896_v63, %v1613_v41  ;;  %v1616_v12 = vadd.f32 %v2356_v11, %v1455_v44  ;;  %v2279_v17 = vpop.f32.mrb[71].mxu1  ;;  %v1607_v2 = vpop.f32.mrb[71].mxu0 }
 0x186   : > { %v1777_v58 = vadd.f32 %v2896_v63, %v1605_v3  ;;  %v2280_v18 = vadd.f32 %v2279_v17, %v2278_v60  ;;  %v1608_v46 = vadd.f32 %v1607_v2, %v2947_v19  ;;  %v1468_v21 = vadd.f32 %v2277_v29, %v2832_v8 }
 0x187   : > { %1811 = vst [vmem:[%s2902_s12 + $0xb0] sm:$0xff] %v1779_v6  ;;  %v1780_v52 = vadd.f32 %v2896_v63, %v1616_v12 }
 0x188   : > { %1809 = vst [vmem:[%s2902_s12 + $0xa0] sm:$0xff] %v1777_v58  ;;  %v1778_v51 = vadd.f32 %v2896_v63, %v1608_v46  ;;  %v1471_v28 = vadd.f32 %v2280_v18, %v2834_v14 }
 0x189   : > { %1812 = vst [vmem:[%s2902_s12 + $0xb8] sm:$0xff] %v1780_v52 }
 0x18a   : > { %1810 = vst [vmem:[%s2902_s12 + $0xa8] sm:$0xff] %v1778_v51  ;;  %v2281_v34 = vpop.f32.mrb[72].mxu1  ;;  %v2359_v15 = vpop.f32.mrb[72].mxu0 }
 0x18b   : > { %v1629_v7 = vadd.f32 %v2359_v15, %v1468_v21  ;;  %v2282_v30 = vpop.f32.mrb[73].mxu1  ;;  %v1620_v31 = vpop.f32.mrb[73].mxu0 }
 0x18c   : > { %v2283_v19 = vadd.f32 %v2282_v30, %v2281_v34  ;;  %v1621_v36 = vadd.f32 %v1620_v31, %v1460_v25  ;;  %v2284_v8 = vpop.f32.mrb[74].mxu1  ;;  %v2360_v53 = vpop.f32.mrb[74].mxu0 }
 0x18d   : > { %v1783_v49 = vadd.f32 %v2896_v63, %v1629_v7  ;;  %v1632_v35 = vadd.f32 %v2360_v53, %v1471_v28  ;;  %v2285_v5 = vpop.f32.mrb[75].mxu1  ;;  %v1623_v14 = vpop.f32.mrb[75].mxu0 }
 0x18e   : > { %v1781_v40 = vadd.f32 %v2896_v63, %v1621_v36  ;;  %v2286_v39 = vadd.f32 %v2285_v5, %v2284_v8  ;;  %v1624_v22 = vadd.f32 %v1623_v14, %v1463_v62  ;;  %v1476_v37 = vadd.f32 %v2283_v19, %v2836_v20 }
 0x18f   : > { %1815 = vst [vmem:[%s2902_s12 + $0xd0] sm:$0xff] %v1783_v49  ;;  %v1784_v57 = vadd.f32 %v2896_v63, %v1632_v35 }
 0x190   : > { %1813 = vst [vmem:[%s2902_s12 + $0xc0] sm:$0xff] %v1781_v40  ;;  %v1782_v44 = vadd.f32 %v2896_v63, %v1624_v22  ;;  %v1479_v16 = vadd.f32 %v2286_v39, %v2838_v26 }
 0x191   : > { %1816 = vst [vmem:[%s2902_s12 + $0xd8] sm:$0xff] %v1784_v57 }
 0x192   : > { %1814 = vst [vmem:[%s2902_s12 + $0xc8] sm:$0xff] %v1782_v44  ;;  %v2287_v27 = vpop.f32.mrb[76].mxu1  ;;  %v2363_v45 = vpop.f32.mrb[76].mxu0 }
 0x193   : > { %v2288_v48 = vpop.f32.mrb[77].mxu1  ;;  %v1636_v50 = vpop.f32.mrb[77].mxu0 }
 0x194   : > { %v2289_v61 = vadd.f32 %v2288_v48, %v2287_v27  ;;  %v1637_v47 = vadd.f32 %v1636_v50, %v1476_v37  ;;  %v2290_v20 = vpop.f32.mrb[78].mxu1  ;;  %v2364_v42 = vpop.f32.mrb[78].mxu0 }
 0x195   : > { %v2291_v24 = vpop.f32.mrb[79].mxu1  ;;  %v1639_v55 = vpop.f32.mrb[79].mxu0 }
 0x196   : > { %v1484_v43 = vadd.f32 %v2289_v61, %v2840_v32  ;;  %v1785_v26 = vadd.f32 %v2896_v63, %v1637_v47  ;;  %v2292_v56 = vadd.f32 %v2291_v24, %v2290_v20  ;;  %v1640_v59 = vadd.f32 %v1639_v55, %v1479_v16 }
 0x198   : > { %v1645_v0 = vadd.f32 %v2363_v45, %v1484_v43  ;;  %1817 = vst [vmem:[%s2902_s12 + $0xe0] sm:$0xff] %v1785_v26  ;;  %v1487_v1 = vadd.f32 %v2292_v56, %v2842_v38  ;;  %v1786_v54 = vadd.f32 %v2896_v63, %v1640_v59 }
 0x19a   : > { %v1787_v25 = vadd.f32 %v2896_v63, %v1645_v0  ;;  %v1648_v4 = vadd.f32 %v2364_v42, %v1487_v1  ;;  %1818 = vst [vmem:[%s2902_s12 + $0xe8] sm:$0xff] %v1786_v54 }
 0x19c   : > { %1819 = vst [vmem:[%s2902_s12 + $0xf0] sm:$0xff] %v1787_v25  ;;  %v1788_v10 = vadd.f32 %v2896_v63, %v1648_v4 }
 0x19e   : > { %1820 = vst [vmem:[%s2902_s12 + $0xf8] sm:$0xff] %v1788_v10 }
 0x19f PF: > { %s13_s14 = sadd.s32 1, %s2580_s14   ;;  %s3021_s12 = smov %s2576_s13 }
 0x1a0   : > { %p10_p5 = scmp.ge.s32.totalorder %s13_s14, 6   ;;  %s3022_s13 = smov %s3024_s15 }
 0x1a2   :  { %12 = sbr.rel (!%p10_p5) target bundleno = 2 (0x2), region = 76 }

// kernel: rhythm_mamba_forward.44
= control target key start
LH: loop header
LB: loop body
LE: loop exit
PB: predicated region body
PF: predicated region fallthrough
CT: control target
= control target key end

     0   :  { %s1235_s0 = inlined_call_operand.vmem [shape: bf16[256,256], index: 0, kind: input, shape index: {}]   ;;  %s1236_s1 = inlined_call_operand.vmem [shape: bf16[256,128], index: 1, kind: input, shape index: {}]   ;;  %s1237_s2 = inlined_call_operand.vmem [shape: f32[1,128], index: 2, kind: input, shape index: {}]   ;;  %s1238_s3 = inlined_call_operand.hbm [shape: f32[256,128], index: 3, kind: output, shape index: {}]  }
   0x1   :  { %v931_v0 = vld [vmem:[%s1236_s1 + $0x40] sm:$0xff]   ;;  %v933_v2 = vld [vmem:[%s1236_s1 + $0x48] sm:$0xff]   ;;  %v935_v4 = vld [vmem:[%s1236_s1 + $0x50] sm:$0xff]  }
   0x2   :  { %v932_v1 = vld [vmem:[%s1236_s1] sm:$0xff]   ;;  %800 = vmatprep.subr.bf16.mxu0 %v931_v0  ;;  %912 = vmatprep.subr.bf16.mxu1 %v931_v0  ;;  %v934_v3 = vld [vmem:[%s1236_s1 + $0x8] sm:$0xff]   ;;  %v936_v5 = vld [vmem:[%s1236_s1 + $0x10] sm:$0xff]  }
   0x3   :  { %801 = vmatpush3.bf16.msra.mxu0 %v932_v1  ;;  %920 = vmatpush3.bf16.msra.mxu1 %v932_v1  ;;  %v937_v6 = vld [vmem:[%s1236_s1 + $0x58] sm:$0xff]   ;;  %v939_v8 = vld [vmem:[%s1236_s1 + $0x60] sm:$0xff]   ;;  %v941_v10 = vld [vmem:[%s1236_s1 + $0x68] sm:$0xff]  }
   0x4   :  { %802 = vmatprep.subr.bf16.mxu0 %v933_v2  ;;  %913 = vmatprep.subr.bf16.mxu1 %v933_v2  ;;  %v938_v7 = vld [vmem:[%s1236_s1 + $0x18] sm:$0xff]   ;;  %v940_v9 = vld [vmem:[%s1236_s1 + $0x20] sm:$0xff]   ;;  %v942_v13 = vld [vmem:[%s1236_s1 + $0x28] sm:$0xff]  }
   0x5   :  { %v949_v11 = vld [vmem:[%s1235_s0 + $0x4] ss:$8 sps:$4 sm:$0xff]   ;;  %v943_v14 = vld [vmem:[%s1236_s1 + $0x70] sm:$0xff]   ;;  %v945_v16 = vld [vmem:[%s1236_s1 + $0x78] sm:$0xff]  }
   0x6   :  { %v952_v12 = vld [vmem:[%s1235_s0 + $0x84] ss:$8 sps:$4 sm:$0xff]   ;;  %436 = vmatprep.mubr.bf16.mxu0 %v949_v11  ;;  %v944_v15 = vld [vmem:[%s1236_s1 + $0x30] sm:$0xff]   ;;  %v946_v17 = vld [vmem:[%s1236_s1 + $0x38] sm:$0xff]  }
   0x7   :  { %803 = vmatpush3.bf16.msra.mxu0 %v934_v3  ;;  %921 = vmatpush3.bf16.msra.mxu1 %v934_v3  ;;  %v947_v18 = vld [vmem:[%s1235_s0] ss:$8 sps:$4 sm:$0xff]   ;;  %v953_v20 = vld [vmem:[%s1235_s0 + $0x14] ss:$8 sps:$4 sm:$0xff]  }
   0x8   :  { %804 = vmatprep.subr.bf16.mxu0 %v935_v4  ;;  %914 = vmatprep.subr.bf16.mxu1 %v935_v4  ;;  %v950_v19 = vld [vmem:[%s1235_s0 + $0x80] ss:$8 sps:$4 sm:$0xff]   ;;  %v955_v21 = vld [vmem:[%s1235_s0 + $0x94] ss:$8 sps:$4 sm:$0xff]  }
   0x9   :  { %500 = vmatprep.mubr.bf16.mxu1 %v952_v12 }
   0xb   :  { %805 = vmatpush3.bf16.msra.mxu0 %v936_v5  ;;  %922 = vmatpush3.bf16.msra.mxu1 %v936_v5 }
   0xc   :  { %806 = vmatprep.subr.bf16.mxu0 %v937_v6  ;;  %915 = vmatprep.subr.bf16.mxu1 %v937_v6 }
   0xf   :  { %807 = vmatpush3.bf16.msra.mxu0 %v938_v7  ;;  %923 = vmatpush3.bf16.msra.mxu1 %v938_v7 }
  0x10   :  { %808 = vmatprep.subr.bf16.mxu0 %v939_v8  ;;  %916 = vmatprep.subr.bf16.mxu1 %v939_v8 }
  0x13   :  { %809 = vmatpush3.bf16.msra.mxu0 %v940_v9  ;;  %924 = vmatpush3.bf16.msra.mxu1 %v940_v9 }
  0x14   :  { %810 = vmatprep.subr.bf16.mxu0 %v941_v10  ;;  %917 = vmatprep.subr.bf16.mxu1 %v941_v10 }
  0x17   :  { %811 = vmatpush3.bf16.msra.mxu0 %v942_v13  ;;  %925 = vmatpush3.bf16.msra.mxu1 %v942_v13 }
  0x18   :  { %812 = vmatprep.subr.bf16.mxu0 %v943_v14  ;;  %918 = vmatprep.subr.bf16.mxu1 %v943_v14 }
  0x1b   :  { %813 = vmatpush3.bf16.msra.mxu0 %v944_v15  ;;  %926 = vmatpush3.bf16.msra.mxu1 %v944_v15 }
  0x1c   :  { %814 = vmatprep.subr.bf16.mxu0 %v945_v16  ;;  %919 = vmatprep.subr.bf16.mxu1 %v945_v16 }
  0x1f   :  { %815 = vmatpush3.bf16.msra.mxu0 %v946_v17  ;;  %927 = vmatpush3.bf16.msra.mxu1 %v946_v17 }
  0x22   :  { %437 = vmatmul.mubr.bf16.vlgmr.msra.gmra.mrb[0].mxu0 %v947_v18  ;;  %501 = vmatmul.mubr.bf16.vlgmr.msra.gmra.mrb[0].mxu1 %v950_v19 }
  0x23   :  { %444 = vmatprep.mubr.bf16.mxu0 %v953_v20  ;;  %508 = vmatprep.mubr.bf16.mxu1 %v955_v21 }
  0x24   :  { %8 = vsyncpa [#allocation4], 0  ;;  %v957_v22 = vld [vmem:[%s1235_s0 + $0x10] ss:$8 sps:$4 sm:$0xff]   ;;  %v959_v24 = vld [vmem:[%s1235_s0 + $0x24] ss:$8 sps:$4 sm:$0xff]  }
  0x25   :  { %v958_v23 = vld [vmem:[%s1235_s0 + $0x90] ss:$8 sps:$4 sm:$0xff]   ;;  %v961_v25 = vld [vmem:[%s1235_s0 + $0xa4] ss:$8 sps:$4 sm:$0xff]   ;;  %v963_v26 = vld [vmem:[%s1235_s0 + $0x20] ss:$8 sps:$4 sm:$0xff]  }
  0x26   :  { %v964_v27 = vld [vmem:[%s1235_s0 + $0xa0] ss:$8 sps:$4 sm:$0xff]   ;;  %v965_v28 = vld [vmem:[%s1235_s0 + $0x34] ss:$8 sps:$4 sm:$0xff]   ;;  %v969_v30 = vld [vmem:[%s1235_s0 + $0x30] ss:$8 sps:$4 sm:$0xff]  }
  0x27   :  { %v967_v29 = vld [vmem:[%s1235_s0 + $0xb4] ss:$8 sps:$4 sm:$0xff]   ;;  %v970_v31 = vld [vmem:[%s1235_s0 + $0xb0] ss:$8 sps:$4 sm:$0xff]   ;;  %v971_v32 = vld [vmem:[%s1235_s0 + $0x44] ss:$8 sps:$4 sm:$0xff]  }
  0x28   :  { %v973_v33 = vld [vmem:[%s1235_s0 + $0xc4] ss:$8 sps:$4 sm:$0xff]   ;;  %v975_v34 = vld [vmem:[%s1235_s0 + $0x40] ss:$8 sps:$4 sm:$0xff]   ;;  %v977_v36 = vld [vmem:[%s1235_s0 + $0x54] ss:$8 sps:$4 sm:$0xff]  }
  0x29   :  { %v976_v35 = vld [vmem:[%s1235_s0 + $0xc0] ss:$8 sps:$4 sm:$0xff]   ;;  %v979_v37 = vld [vmem:[%s1235_s0 + $0xd4] ss:$8 sps:$4 sm:$0xff]   ;;  %v981_v38 = vld [vmem:[%s1235_s0 + $0x50] ss:$8 sps:$4 sm:$0xff]  }
  0x2a   :  { %445 = vmatmul.mubr.bf16.gmra.mrb[4].mxu0 %v957_v22  ;;  %509 = vmatmul.mubr.bf16.gmra.mrb[4].mxu1 %v958_v23  ;;  %v982_v39 = vld [vmem:[%s1235_s0 + $0xd0] ss:$8 sps:$4 sm:$0xff]   ;;  %v983_v40 = vld [vmem:[%s1235_s0 + $0x64] ss:$8 sps:$4 sm:$0xff]   ;;  %v987_v42 = vld [vmem:[%s1235_s0 + $0x60] ss:$8 sps:$4 sm:$0xff]  }
  0x2b   :  { %452 = vmatprep.mubr.bf16.mxu0 %v959_v24  ;;  %516 = vmatprep.mubr.bf16.mxu1 %v961_v25  ;;  %v985_v41 = vld [vmem:[%s1235_s0 + $0xe4] ss:$8 sps:$4 sm:$0xff]   ;;  %v988_v43 = vld [vmem:[%s1235_s0 + $0xe0] ss:$8 sps:$4 sm:$0xff]   ;;  %v989_v44 = vld [vmem:[%s1235_s0 + $0x74] ss:$8 sps:$4 sm:$0xff]  }
  0x2c   :  { %v991_v45 = vld [vmem:[%s1235_s0 + $0xf4] ss:$8 sps:$4 sm:$0xff]   ;;  %v993_v46 = vld [vmem:[%s1235_s0 + $0x70] ss:$8 sps:$4 sm:$0xff]   ;;  %v1189_v51 = vld [vmem:[%s1237_s2] ss:$0 sm:$0xff] }
  0x2d   :  { %v994_v47 = vld [vmem:[%s1235_s0 + $0xf0] ss:$8 sps:$4 sm:$0xff]   ;;  %s1019_s0 = smov [#allocation3]  }
  0x2e   :  { %s740_s2 = sshll.u32 %s1019_s0, 4  ;;  %s741_s2 = int_to_ptr.vmem [resolvable:$true] %s740_s2 }
  0x2f   :  { %s995_s27 = scalar_lea.vmem %s741_s2, 4096  ;;  %p1000_p1 = scmp.lt.s32.totalorder %s741_s2, %s741_s2 }
  0x30   :  { %p996_p0 = scmp.ne.s32.totalorder %s741_s2, %s995_s27  ;;  %p1001_p2 = scmp.lt.s32.totalorder %s995_s27, %s995_s27 }
  0x32   :  { %453 = vmatmul.mubr.bf16.gmra.mrb[8].mxu0 %v963_v26  ;;  %517 = vmatmul.mubr.bf16.gmra.mrb[8].mxu1 %v964_v27  ;;  %p1002_p3 = por %p1001_p2, %p1000_p1 }
  0x33   :  { %460 = vmatprep.mubr.bf16.mxu0 %v965_v28  ;;  %524 = vmatprep.mubr.bf16.mxu1 %v967_v29 }
  0x34   :  { %p1003_p4 = pnand %p1002_p3, %p996_p0 }
  0x3a   :  { %461 = vmatmul.mubr.bf16.gmra.mrb[12].mxu0 %v969_v30  ;;  %525 = vmatmul.mubr.bf16.gmra.mrb[12].mxu1 %v970_v31 }
  0x3b   :  { %468 = vmatprep.mubr.bf16.mxu0 %v971_v32  ;;  %532 = vmatprep.mubr.bf16.mxu1 %v973_v33 }
  0x42   :  { %469 = vmatmul.mubr.bf16.gmra.mrb[16].mxu0 %v975_v34  ;;  %533 = vmatmul.mubr.bf16.gmra.mrb[16].mxu1 %v976_v35 }
  0x43   :  { %476 = vmatprep.mubr.bf16.mxu0 %v977_v36  ;;  %540 = vmatprep.mubr.bf16.mxu1 %v979_v37 }
  0x4a   :  { %477 = vmatmul.mubr.bf16.gmra.mrb[20].mxu0 %v981_v38  ;;  %541 = vmatmul.mubr.bf16.gmra.mrb[20].mxu1 %v982_v39 }
  0x4b   :  { %484 = vmatprep.mubr.bf16.mxu0 %v983_v40  ;;  %548 = vmatprep.mubr.bf16.mxu1 %v985_v41 }
  0x52   :  { %485 = vmatmul.mubr.bf16.gmra.mrb[24].mxu0 %v987_v42  ;;  %549 = vmatmul.mubr.bf16.gmra.mrb[24].mxu1 %v988_v43 }
  0x53   :  { %492 = vmatprep.mubr.bf16.mxu0 %v989_v44  ;;  %556 = vmatprep.mubr.bf16.mxu1 %v991_v45 }
  0x5a   :  { %493 = vmatmul.mubr.bf16.gmra.mrb[28].mxu0 %v993_v46  ;;  %557 = vmatmul.mubr.bf16.gmra.mrb[28].mxu1 %v994_v47 }
  0xf5   :  { %v816_v48 = vpop.f32.mrb[0].mxu0  ;;  %v864_v49 = vpop.f32.mrb[0].mxu1 }
  0xf6   :  { %v817_v50 = vpop.f32.mrb[1].mxu0  ;;  %v865_v52 = vpop.f32.mrb[1].mxu1 }
  0xf7   :  { %v818_v53 = vadd.f32 %v817_v50, %v816_v48  ;;  %v866_v54 = vadd.f32 %v865_v52, %v864_v49  ;;  %v819_v55 = vpop.f32.mrb[2].mxu0  ;;  %v867_v56 = vpop.f32.mrb[2].mxu1 }
  0xf8   :  { %v820_v57 = vpop.f32.mrb[3].mxu0  ;;  %v868_v58 = vpop.f32.mrb[3].mxu1 }
  0xf9   :  { %v671_v59 = vadd.f32 %v818_v53, %v1189_v51  ;;  %v687_v60 = vadd.f32 %v866_v54, %v1189_v51  ;;  %v821_v61 = vadd.f32 %v820_v57, %v819_v55  ;;  %v869_v62 = vadd.f32 %v868_v58, %v867_v56 }
  0xfb   :  { %703 = vst [vmem:[#allocation3] sm:$0xff] %v671_v59  ;;  %719 = vst [vmem:[#allocation3 + $0x80] sm:$0xff] %v687_v60  ;;  %v672_v63 = vadd.f32 %v821_v61, %v1189_v51  ;;  %v688_v0 = vadd.f32 %v869_v62, %v1189_v51 }
  0xfd   :  { %704 = vst [vmem:[#allocation3 + $0x8] sm:$0xff] %v672_v63  ;;  %720 = vst [vmem:[#allocation3 + $0x88] sm:$0xff] %v688_v0  ;;  %v822_v1 = vpop.f32.mrb[4].mxu0  ;;  %v870_v2 = vpop.f32.mrb[4].mxu1 }
  0xfe   :  { %v823_v3 = vpop.f32.mrb[5].mxu0  ;;  %v871_v4 = vpop.f32.mrb[5].mxu1 }
  0xff   :  { %v824_v5 = vadd.f32 %v823_v3, %v822_v1  ;;  %v872_v6 = vadd.f32 %v871_v4, %v870_v2  ;;  %v825_v7 = vpop.f32.mrb[6].mxu0  ;;  %v873_v8 = vpop.f32.mrb[6].mxu1 }
 0x100   :  { %v826_v9 = vpop.f32.mrb[7].mxu0  ;;  %v874_v10 = vpop.f32.mrb[7].mxu1 }
 0x101   :  { %v673_v11 = vadd.f32 %v824_v5, %v1189_v51  ;;  %v689_v12 = vadd.f32 %v872_v6, %v1189_v51  ;;  %v827_v13 = vadd.f32 %v826_v9, %v825_v7  ;;  %v875_v14 = vadd.f32 %v874_v10, %v873_v8 }
 0x103   :  { %705 = vst [vmem:[#allocation3 + $0x10] sm:$0xff] %v673_v11  ;;  %721 = vst [vmem:[#allocation3 + $0x90] sm:$0xff] %v689_v12  ;;  %v674_v15 = vadd.f32 %v827_v13, %v1189_v51  ;;  %v690_v16 = vadd.f32 %v875_v14, %v1189_v51 }
 0x105   :  { %706 = vst [vmem:[#allocation3 + $0x18] sm:$0xff] %v674_v15  ;;  %722 = vst [vmem:[#allocation3 + $0x98] sm:$0xff] %v690_v16  ;;  %v828_v17 = vpop.f32.mrb[8].mxu0  ;;  %v876_v18 = vpop.f32.mrb[8].mxu1 }
 0x106   :  { %v829_v19 = vpop.f32.mrb[9].mxu0  ;;  %v877_v20 = vpop.f32.mrb[9].mxu1 }
 0x107   :  { %v830_v21 = vadd.f32 %v829_v19, %v828_v17  ;;  %v878_v22 = vadd.f32 %v877_v20, %v876_v18  ;;  %v831_v23 = vpop.f32.mrb[10].mxu0  ;;  %v879_v24 = vpop.f32.mrb[10].mxu1 }
 0x108   :  { %v832_v25 = vpop.f32.mrb[11].mxu0  ;;  %v880_v26 = vpop.f32.mrb[11].mxu1 }
 0x109   :  { %v675_v27 = vadd.f32 %v830_v21, %v1189_v51  ;;  %v691_v28 = vadd.f32 %v878_v22, %v1189_v51  ;;  %v833_v29 = vadd.f32 %v832_v25, %v831_v23  ;;  %v881_v30 = vadd.f32 %v880_v26, %v879_v24 }
 0x10b   :  { %707 = vst [vmem:[#allocation3 + $0x20] sm:$0xff] %v675_v27  ;;  %723 = vst [vmem:[#allocation3 + $0xa0] sm:$0xff] %v691_v28  ;;  %v676_v31 = vadd.f32 %v833_v29, %v1189_v51  ;;  %v692_v32 = vadd.f32 %v881_v30, %v1189_v51 }
 0x10d   :  { %708 = vst [vmem:[#allocation3 + $0x28] sm:$0xff] %v676_v31  ;;  %724 = vst [vmem:[#allocation3 + $0xa8] sm:$0xff] %v692_v32  ;;  %v834_v33 = vpop.f32.mrb[12].mxu0  ;;  %v882_v34 = vpop.f32.mrb[12].mxu1 }
 0x10e   :  { %v835_v35 = vpop.f32.mrb[13].mxu0  ;;  %v883_v36 = vpop.f32.mrb[13].mxu1 }
 0x10f   :  { %v836_v37 = vadd.f32 %v835_v35, %v834_v33  ;;  %v884_v38 = vadd.f32 %v883_v36, %v882_v34  ;;  %v837_v39 = vpop.f32.mrb[14].mxu0  ;;  %v885_v40 = vpop.f32.mrb[14].mxu1 }
 0x110   :  { %v838_v41 = vpop.f32.mrb[15].mxu0  ;;  %v886_v42 = vpop.f32.mrb[15].mxu1 }
 0x111   :  { %v677_v43 = vadd.f32 %v836_v37, %v1189_v51  ;;  %v693_v44 = vadd.f32 %v884_v38, %v1189_v51  ;;  %v839_v45 = vadd.f32 %v838_v41, %v837_v39  ;;  %v887_v46 = vadd.f32 %v886_v42, %v885_v40 }
 0x113   :  { %709 = vst [vmem:[#allocation3 + $0x30] sm:$0xff] %v677_v43  ;;  %725 = vst [vmem:[#allocation3 + $0xb0] sm:$0xff] %v693_v44  ;;  %v678_v47 = vadd.f32 %v839_v45, %v1189_v51  ;;  %v694_v48 = vadd.f32 %v887_v46, %v1189_v51 }
 0x115   :  { %710 = vst [vmem:[#allocation3 + $0x38] sm:$0xff] %v678_v47  ;;  %726 = vst [vmem:[#allocation3 + $0xb8] sm:$0xff] %v694_v48  ;;  %v840_v49 = vpop.f32.mrb[16].mxu0  ;;  %v888_v50 = vpop.f32.mrb[16].mxu1 }
 0x116   :  { %v841_v52 = vpop.f32.mrb[17].mxu0  ;;  %v889_v53 = vpop.f32.mrb[17].mxu1 }
 0x117   :  { %v842_v54 = vadd.f32 %v841_v52, %v840_v49  ;;  %v890_v55 = vadd.f32 %v889_v53, %v888_v50  ;;  %v843_v56 = vpop.f32.mrb[18].mxu0  ;;  %v891_v57 = vpop.f32.mrb[18].mxu1 }
 0x118   :  { %v844_v58 = vpop.f32.mrb[19].mxu0  ;;  %v892_v59 = vpop.f32.mrb[19].mxu1 }
 0x119   :  { %v679_v60 = vadd.f32 %v842_v54, %v1189_v51  ;;  %v695_v61 = vadd.f32 %v890_v55, %v1189_v51  ;;  %v845_v62 = vadd.f32 %v844_v58, %v843_v56  ;;  %v893_v63 = vadd.f32 %v892_v59, %v891_v57 }
 0x11b   :  { %711 = vst [vmem:[#allocation3 + $0x40] sm:$0xff] %v679_v60  ;;  %727 = vst [vmem:[#allocation3 + $0xc0] sm:$0xff] %v695_v61  ;;  %v680_v0 = vadd.f32 %v845_v62, %v1189_v51  ;;  %v696_v1 = vadd.f32 %v893_v63, %v1189_v51 }
 0x11d   :  { %712 = vst [vmem:[#allocation3 + $0x48] sm:$0xff] %v680_v0  ;;  %728 = vst [vmem:[#allocation3 + $0xc8] sm:$0xff] %v696_v1  ;;  %v846_v2 = vpop.f32.mrb[20].mxu0  ;;  %v894_v3 = vpop.f32.mrb[20].mxu1 }
 0x11e   :  { %v847_v4 = vpop.f32.mrb[21].mxu0  ;;  %v895_v5 = vpop.f32.mrb[21].mxu1 }
 0x11f   :  { %v848_v6 = vadd.f32 %v847_v4, %v846_v2  ;;  %v896_v7 = vadd.f32 %v895_v5, %v894_v3  ;;  %v849_v8 = vpop.f32.mrb[22].mxu0  ;;  %v897_v9 = vpop.f32.mrb[22].mxu1 }
 0x120   :  { %v850_v10 = vpop.f32.mrb[23].mxu0  ;;  %v898_v11 = vpop.f32.mrb[23].mxu1 }
 0x121   :  { %v681_v12 = vadd.f32 %v848_v6, %v1189_v51  ;;  %v697_v13 = vadd.f32 %v896_v7, %v1189_v51  ;;  %v851_v14 = vadd.f32 %v850_v10, %v849_v8  ;;  %v899_v15 = vadd.f32 %v898_v11, %v897_v9 }
 0x123   :  { %713 = vst [vmem:[#allocation3 + $0x50] sm:$0xff] %v681_v12  ;;  %729 = vst [vmem:[#allocation3 + $0xd0] sm:$0xff] %v697_v13  ;;  %v682_v16 = vadd.f32 %v851_v14, %v1189_v51  ;;  %v698_v17 = vadd.f32 %v899_v15, %v1189_v51 }
 0x125   :  { %714 = vst [vmem:[#allocation3 + $0x58] sm:$0xff] %v682_v16  ;;  %730 = vst [vmem:[#allocation3 + $0xd8] sm:$0xff] %v698_v17  ;;  %v852_v18 = vpop.f32.mrb[24].mxu0  ;;  %v900_v19 = vpop.f32.mrb[24].mxu1 }
 0x126   :  { %v853_v20 = vpop.f32.mrb[25].mxu0  ;;  %v901_v21 = vpop.f32.mrb[25].mxu1 }
 0x127   :  { %v854_v22 = vadd.f32 %v853_v20, %v852_v18  ;;  %v902_v23 = vadd.f32 %v901_v21, %v900_v19  ;;  %v855_v24 = vpop.f32.mrb[26].mxu0  ;;  %v903_v25 = vpop.f32.mrb[26].mxu1 }
 0x128   :  { %v856_v26 = vpop.f32.mrb[27].mxu0  ;;  %v904_v27 = vpop.f32.mrb[27].mxu1 }
 0x129   :  { %v683_v28 = vadd.f32 %v854_v22, %v1189_v51  ;;  %v699_v29 = vadd.f32 %v902_v23, %v1189_v51  ;;  %v857_v30 = vadd.f32 %v856_v26, %v855_v24  ;;  %v905_v31 = vadd.f32 %v904_v27, %v903_v25 }
 0x12b   :  { %715 = vst [vmem:[#allocation3 + $0x60] sm:$0xff] %v683_v28  ;;  %731 = vst [vmem:[#allocation3 + $0xe0] sm:$0xff] %v699_v29  ;;  %v684_v32 = vadd.f32 %v857_v30, %v1189_v51  ;;  %v700_v33 = vadd.f32 %v905_v31, %v1189_v51 }
 0x12d   :  { %716 = vst [vmem:[#allocation3 + $0x68] sm:$0xff] %v684_v32  ;;  %732 = vst [vmem:[#allocation3 + $0xe8] sm:$0xff] %v700_v33  ;;  %v858_v34 = vpop.f32.mrb[28].mxu0  ;;  %v906_v35 = vpop.f32.mrb[28].mxu1 }
 0x12e   :  { %v859_v36 = vpop.f32.mrb[29].mxu0  ;;  %v907_v37 = vpop.f32.mrb[29].mxu1 }
 0x12f   :  { %v860_v38 = vadd.f32 %v859_v36, %v858_v34  ;;  %v908_v39 = vadd.f32 %v907_v37, %v906_v35  ;;  %v861_v40 = vpop.f32.mrb[30].mxu0  ;;  %v909_v41 = vpop.f32.mrb[30].mxu1 }
 0x130   :  { %v862_v42 = vpop.f32.mrb[31].mxu0  ;;  %v910_v43 = vpop.f32.mrb[31].mxu1 }
 0x131   :  { %v685_v44 = vadd.f32 %v860_v38, %v1189_v51  ;;  %v701_v45 = vadd.f32 %v908_v39, %v1189_v51  ;;  %v863_v46 = vadd.f32 %v862_v42, %v861_v40  ;;  %v911_v47 = vadd.f32 %v910_v43, %v909_v41 }
 0x133   :  { %717 = vst [vmem:[#allocation3 + $0x70] sm:$0xff] %v685_v44  ;;  %733 = vst [vmem:[#allocation3 + $0xf0] sm:$0xff] %v701_v45  ;;  %v686_v48 = vadd.f32 %v863_v46, %v1189_v51  ;;  %v702_v49 = vadd.f32 %v911_v47, %v1189_v51 }
 0x135   :  { %718 = vst [vmem:[#allocation3 + $0x78] sm:$0xff] %v686_v48  ;;  %734 = vst [vmem:[#allocation3 + $0xf8] sm:$0xff] %v702_v49 }
 0x136   :  { %1006 = shalt.err (!%p1003_p4)
}
 0x137   :  { %s1007_s29 = scalar_lea.hbm %s1238_s3, 4096 }
 0x138   :  { %p1008_p5 = scmp.ne.s32.totalorder %s1238_s3, %s1007_s29  ;;  %p1011_p6 = scmp.lt.u32.totalorder %s1007_s29, %s1238_s3 }
 0x13a   :  { %p1013_p7 = pnand %p1011_p6, %p1008_p5 }
 0x13c   :  { %1016 = shalt.err (!%p1013_p7)
}
 0x13d   :  { %s1020_s7 = smov 128   ;;  %s1021_s8 = smov 8  }
 0x13e   :  { %746 = dma.vmem_to_hbm [thread:$0]  %s741_s2, 4096, %s1238_s3, [#allocation4], %s1020_s7, %s1020_s7, %s1021_s8  }
 0x13f   :  { %1017 = dma.done.wait [#allocation4], 4096  }
 0x140   :  { %1018 = vsyncadd [#allocation4], 4294963200 }
 0x141   :  { %750 = vsyncpa [#allocation4], 1 }

// kernel: rhythm_mamba_forward.38
= control target key start
LH: loop header
LB: loop body
LE: loop exit
PB: predicated region body
PF: predicated region fallthrough
CT: control target
= control target key end

     0   :  { %s1425_s12 = smov 0   ;;  %s1427_s13 = smov 0   ;;  %s1618_s0 = inlined_call_operand.vmem [shape: bf16[1024,256], index: 0, kind: input, shape index: {}]   ;;  %s1619_s1 = inlined_call_operand.vmem [shape: bf16[256,128], index: 1, kind: input, shape index: {}]   ;;  %s1620_s2 = inlined_call_operand.vmem [shape: f32[1,128], index: 2, kind: input, shape index: {}]   ;;  %s1621_s3 = inlined_call_operand.vmem [shape: f32[1024,128], index: 3, kind: output, shape index: {}]  }
   0x1   :  { %s1429_s14 = smov 0  }
   0x2 LB: > { %s32_s15 = sadd.s32 1, %s1399_s13  ;;  %p1107_p0 = scmp.ge.s32.totalorder %s1403_s14, 1  ;;  %s1403_s14 = sphi %s1429_s14, %s13_s14   ;;  %s1399_s13 = sphi %s1427_s13, %s1623_s13   ;;  %s1395_s12 = sphi %s1425_s12, %s1622_s12  }
   0x3   : > { %p34_p1 = scmp.ge.s32.totalorder %s32_s15, 4  ;;  %p191_p2 = scmp.lt.s32.totalorder %s1403_s14, 5 }
   0x5   : > { %s1625_s15 = smov (%p34_p1, %s32_s15), 0  ;;  %p192_p3 = pnand %p1107_p0, %p191_p2 }
   0x6   : > { %v1317_v0 = vld [vmem:[%s1619_s1 + $0x40] sm:$0xff] (!%p192_p3)   ;;  %s1108_s18 = sshll.u32 (!%p192_p3), %s1395_s12, 5  ;;  %v1319_v2 = vld [vmem:[%s1619_s1 + $0x48] sm:$0xff] (!%p192_p3)   ;;  %v1321_v4 = vld [vmem:[%s1619_s1 + $0x50] sm:$0xff] (!%p192_p3)  }
   0x7   : > { %195 = sbr.rel (%p192_p3) target bundleno = 315 (0x13b), region = 32  ;;  %v1318_v1 = vld [vmem:[%s1619_s1] sm:$0xff] (!%p192_p3)   ;;  %1165 = vmatprep.subr.bf16.mxu0 (!%p192_p3), %v1317_v0  ;;  %1277 = vmatprep.subr.bf16.mxu1 (!%p192_p3), %v1317_v0  ;;  %v1320_v3 = vld [vmem:[%s1619_s1 + $0x8] sm:$0xff] (!%p192_p3)   ;;  %p236_p4 = scmp.lt.s32.totalorder (!%p192_p3), %s1108_s18, 127  ;;  %v1322_v5 = vld [vmem:[%s1619_s1 + $0x10] sm:$0xff] (!%p192_p3)  }
   0x8   : > { %1166 = vmatpush3.bf16.msra.mxu0 (!%p192_p3), %v1318_v1  ;;  %1285 = vmatpush3.bf16.msra.mxu1 (!%p192_p3), %v1318_v1  ;;  %v1323_v6 = vld [vmem:[%s1619_s1 + $0x58] sm:$0xff] (!%p192_p3)   ;;  %v1325_v8 = vld [vmem:[%s1619_s1 + $0x60] sm:$0xff] (!%p192_p3)   ;;  %v1327_v10 = vld [vmem:[%s1619_s1 + $0x68] sm:$0xff] (!%p192_p3)  }
   0x9   : > { %1167 = vmatprep.subr.bf16.mxu0 (!%p192_p3), %v1319_v2  ;;  %1278 = vmatprep.subr.bf16.mxu1 (!%p192_p3), %v1319_v2  ;;  %v1324_v7 = vld [vmem:[%s1619_s1 + $0x18] sm:$0xff] (!%p192_p3)   ;;  %v1326_v9 = vld [vmem:[%s1619_s1 + $0x20] sm:$0xff] (!%p192_p3)   ;;  %v1328_v13 = vld [vmem:[%s1619_s1 + $0x28] sm:$0xff] (!%p192_p3)  }
   0xa   : > { %v1329_v14 = vld [vmem:[%s1619_s1 + $0x70] sm:$0xff] (!%p192_p3)   ;;  %v1331_v16 = vld [vmem:[%s1619_s1 + $0x78] sm:$0xff] (!%p192_p3)   ;;  %v1536_v51 = vld [vmem:[%s1620_s2] ss:$0 sm:$0xff] (!%p192_p3) }
   0xb   : > { %v1330_v15 = vld [vmem:[%s1619_s1 + $0x30] sm:$0xff] (!%p192_p3)   ;;  %v1332_v17 = vld [vmem:[%s1619_s1 + $0x38] sm:$0xff] (!%p192_p3)  }
   0xc   : > { %1168 = vmatpush3.bf16.msra.mxu0 (!%p192_p3), %v1320_v3  ;;  %1286 = vmatpush3.bf16.msra.mxu1 (!%p192_p3), %v1320_v3 }
   0xd   : > { %1169 = vmatprep.subr.bf16.mxu0 (!%p192_p3), %v1321_v4  ;;  %1279 = vmatprep.subr.bf16.mxu1 (!%p192_p3), %v1321_v4 }
   0xe   : > { %s1627_s18 = smov (!%p236_p4, %s1108_s18), 127 }
   0xf   : > { %s1164_s6 = sshll.u32 %s1627_s18, 3 }
  0x10   : > { %1170 = vmatpush3.bf16.msra.mxu0 %v1322_v5  ;;  %1287 = vmatpush3.bf16.msra.mxu1 %v1322_v5  ;;  %s1478_s11 = scalar_lea.vmem %s1618_s0, %s1164_s6  ;;  %s1543_s8 = scalar_lea.vmem %s1621_s3, %s1164_s6 }
  0x11   : > { %1171 = vmatprep.subr.bf16.mxu0 %v1323_v6  ;;  %1280 = vmatprep.subr.bf16.mxu1 %v1323_v6  ;;  %v1335_v11 = vld [vmem:[%s1478_s11 + $0x4] ss:$8 sps:$4 sm:$0xff]   ;;  %v1333_v18 = vld [vmem:[%s1478_s11] ss:$8 sps:$4 sm:$0xff]   ;;  %v1339_v20 = vld [vmem:[%s1478_s11 + $0x14] ss:$8 sps:$4 sm:$0xff]  }
  0x12   : > { %v1338_v12 = vld [vmem:[%s1478_s11 + $0x84] ss:$8 sps:$4 sm:$0xff]   ;;  %688 = vmatprep.mubr.bf16.mxu0 %v1335_v11  ;;  %v1336_v19 = vld [vmem:[%s1478_s11 + $0x80] ss:$8 sps:$4 sm:$0xff]   ;;  %v1341_v21 = vld [vmem:[%s1478_s11 + $0x94] ss:$8 sps:$4 sm:$0xff]  }
  0x13   : > { %752 = vmatprep.mubr.bf16.mxu1 %v1338_v12  ;;  %v1343_v22 = vld [vmem:[%s1478_s11 + $0x10] ss:$8 sps:$4 sm:$0xff]   ;;  %v1345_v24 = vld [vmem:[%s1478_s11 + $0x24] ss:$8 sps:$4 sm:$0xff]   ;;  %v1349_v26 = vld [vmem:[%s1478_s11 + $0x20] ss:$8 sps:$4 sm:$0xff]  }
  0x14   : > { %1172 = vmatpush3.bf16.msra.mxu0 %v1324_v7  ;;  %1288 = vmatpush3.bf16.msra.mxu1 %v1324_v7  ;;  %v1344_v23 = vld [vmem:[%s1478_s11 + $0x90] ss:$8 sps:$4 sm:$0xff]   ;;  %v1347_v25 = vld [vmem:[%s1478_s11 + $0xa4] ss:$8 sps:$4 sm:$0xff]   ;;  %v1350_v27 = vld [vmem:[%s1478_s11 + $0xa0] ss:$8 sps:$4 sm:$0xff]  }
  0x15   : > { %1173 = vmatprep.subr.bf16.mxu0 %v1325_v8  ;;  %1281 = vmatprep.subr.bf16.mxu1 %v1325_v8  ;;  %v1351_v28 = vld [vmem:[%s1478_s11 + $0x34] ss:$8 sps:$4 sm:$0xff]   ;;  %v1355_v30 = vld [vmem:[%s1478_s11 + $0x30] ss:$8 sps:$4 sm:$0xff]   ;;  %v1357_v32 = vld [vmem:[%s1478_s11 + $0x44] ss:$8 sps:$4 sm:$0xff]  }
  0x16   : > { %v1353_v29 = vld [vmem:[%s1478_s11 + $0xb4] ss:$8 sps:$4 sm:$0xff]   ;;  %v1356_v31 = vld [vmem:[%s1478_s11 + $0xb0] ss:$8 sps:$4 sm:$0xff]   ;;  %v1359_v33 = vld [vmem:[%s1478_s11 + $0xc4] ss:$8 sps:$4 sm:$0xff]  }
  0x17   : > { %v1361_v34 = vld [vmem:[%s1478_s11 + $0x40] ss:$8 sps:$4 sm:$0xff]   ;;  %v1363_v36 = vld [vmem:[%s1478_s11 + $0x54] ss:$8 sps:$4 sm:$0xff]   ;;  %v1367_v38 = vld [vmem:[%s1478_s11 + $0x50] ss:$8 sps:$4 sm:$0xff]  }
  0x18   : > { %1174 = vmatpush3.bf16.msra.mxu0 %v1326_v9  ;;  %1289 = vmatpush3.bf16.msra.mxu1 %v1326_v9  ;;  %v1362_v35 = vld [vmem:[%s1478_s11 + $0xc0] ss:$8 sps:$4 sm:$0xff]   ;;  %v1365_v37 = vld [vmem:[%s1478_s11 + $0xd4] ss:$8 sps:$4 sm:$0xff]   ;;  %v1368_v39 = vld [vmem:[%s1478_s11 + $0xd0] ss:$8 sps:$4 sm:$0xff]  }
  0x19   : > { %1175 = vmatprep.subr.bf16.mxu0 %v1327_v10  ;;  %1282 = vmatprep.subr.bf16.mxu1 %v1327_v10  ;;  %v1369_v40 = vld [vmem:[%s1478_s11 + $0x64] ss:$8 sps:$4 sm:$0xff]   ;;  %v1373_v42 = vld [vmem:[%s1478_s11 + $0x60] ss:$8 sps:$4 sm:$0xff]   ;;  %v1375_v44 = vld [vmem:[%s1478_s11 + $0x74] ss:$8 sps:$4 sm:$0xff]  }
  0x1a   : > { %v1371_v41 = vld [vmem:[%s1478_s11 + $0xe4] ss:$8 sps:$4 sm:$0xff]   ;;  %v1374_v43 = vld [vmem:[%s1478_s11 + $0xe0] ss:$8 sps:$4 sm:$0xff]   ;;  %v1377_v45 = vld [vmem:[%s1478_s11 + $0xf4] ss:$8 sps:$4 sm:$0xff]  }
  0x1b   : > { %v1379_v46 = vld [vmem:[%s1478_s11 + $0x70] ss:$8 sps:$4 sm:$0xff]  }
  0x1c   : > { %1176 = vmatpush3.bf16.msra.mxu0 %v1328_v13  ;;  %1290 = vmatpush3.bf16.msra.mxu1 %v1328_v13  ;;  %v1380_v47 = vld [vmem:[%s1478_s11 + $0xf0] ss:$8 sps:$4 sm:$0xff]  }
  0x1d   : > { %1177 = vmatprep.subr.bf16.mxu0 %v1329_v14  ;;  %1283 = vmatprep.subr.bf16.mxu1 %v1329_v14 }
  0x20   : > { %1178 = vmatpush3.bf16.msra.mxu0 %v1330_v15  ;;  %1291 = vmatpush3.bf16.msra.mxu1 %v1330_v15 }
  0x21   : > { %1179 = vmatprep.subr.bf16.mxu0 %v1331_v16  ;;  %1284 = vmatprep.subr.bf16.mxu1 %v1331_v16 }
  0x24   : > { %1180 = vmatpush3.bf16.msra.mxu0 %v1332_v17  ;;  %1292 = vmatpush3.bf16.msra.mxu1 %v1332_v17 }
  0x27   : > { %689 = vmatmul.mubr.bf16.vlgmr.msra.gmra.mrb[0].mxu0 %v1333_v18  ;;  %753 = vmatmul.mubr.bf16.vlgmr.msra.gmra.mrb[0].mxu1 %v1336_v19 }
  0x28   : > { %696 = vmatprep.mubr.bf16.mxu0 %v1339_v20  ;;  %760 = vmatprep.mubr.bf16.mxu1 %v1341_v21 }
  0x2f   : > { %697 = vmatmul.mubr.bf16.gmra.mrb[4].mxu0 %v1343_v22  ;;  %761 = vmatmul.mubr.bf16.gmra.mrb[4].mxu1 %v1344_v23 }
  0x30   : > { %704 = vmatprep.mubr.bf16.mxu0 %v1345_v24  ;;  %768 = vmatprep.mubr.bf16.mxu1 %v1347_v25 }
  0x37   : > { %705 = vmatmul.mubr.bf16.gmra.mrb[8].mxu0 %v1349_v26  ;;  %769 = vmatmul.mubr.bf16.gmra.mrb[8].mxu1 %v1350_v27 }
  0x38   : > { %712 = vmatprep.mubr.bf16.mxu0 %v1351_v28  ;;  %776 = vmatprep.mubr.bf16.mxu1 %v1353_v29 }
  0x3f   : > { %713 = vmatmul.mubr.bf16.gmra.mrb[12].mxu0 %v1355_v30  ;;  %777 = vmatmul.mubr.bf16.gmra.mrb[12].mxu1 %v1356_v31 }
  0x40   : > { %720 = vmatprep.mubr.bf16.mxu0 %v1357_v32  ;;  %784 = vmatprep.mubr.bf16.mxu1 %v1359_v33 }
  0x47   : > { %721 = vmatmul.mubr.bf16.gmra.mrb[16].mxu0 %v1361_v34  ;;  %785 = vmatmul.mubr.bf16.gmra.mrb[16].mxu1 %v1362_v35 }
  0x48   : > { %728 = vmatprep.mubr.bf16.mxu0 %v1363_v36  ;;  %792 = vmatprep.mubr.bf16.mxu1 %v1365_v37 }
  0x4f   : > { %729 = vmatmul.mubr.bf16.gmra.mrb[20].mxu0 %v1367_v38  ;;  %793 = vmatmul.mubr.bf16.gmra.mrb[20].mxu1 %v1368_v39 }
  0x50   : > { %736 = vmatprep.mubr.bf16.mxu0 %v1369_v40  ;;  %800 = vmatprep.mubr.bf16.mxu1 %v1371_v41 }
  0x57   : > { %737 = vmatmul.mubr.bf16.gmra.mrb[24].mxu0 %v1373_v42  ;;  %801 = vmatmul.mubr.bf16.gmra.mrb[24].mxu1 %v1374_v43 }
  0x58   : > { %744 = vmatprep.mubr.bf16.mxu0 %v1375_v44  ;;  %808 = vmatprep.mubr.bf16.mxu1 %v1377_v45 }
  0x5f   : > { %745 = vmatmul.mubr.bf16.gmra.mrb[28].mxu0 %v1379_v46  ;;  %809 = vmatmul.mubr.bf16.gmra.mrb[28].mxu1 %v1380_v47 }
  0xfa   : > { %v1181_v48 = vpop.f32.mrb[0].mxu0  ;;  %v1229_v49 = vpop.f32.mrb[0].mxu1 }
  0xfb   : > { %v1182_v50 = vpop.f32.mrb[1].mxu0  ;;  %v1230_v52 = vpop.f32.mrb[1].mxu1 }
  0xfc   : > { %v1183_v53 = vadd.f32 %v1182_v50, %v1181_v48  ;;  %v1231_v54 = vadd.f32 %v1230_v52, %v1229_v49  ;;  %v1184_v55 = vpop.f32.mrb[2].mxu0  ;;  %v1232_v56 = vpop.f32.mrb[2].mxu1 }
  0xfd   : > { %v1185_v57 = vpop.f32.mrb[3].mxu0  ;;  %v1233_v58 = vpop.f32.mrb[3].mxu1 }
  0xfe   : > { %v923_v59 = vadd.f32 %v1183_v53, %v1536_v51  ;;  %v939_v60 = vadd.f32 %v1231_v54, %v1536_v51  ;;  %v1186_v61 = vadd.f32 %v1185_v57, %v1184_v55  ;;  %v1234_v62 = vadd.f32 %v1233_v58, %v1232_v56 }
 0x100   : > { %955 = vst [vmem:[%s1543_s8] sm:$0xff] %v923_v59  ;;  %971 = vst [vmem:[%s1543_s8 + $0x80] sm:$0xff] %v939_v60  ;;  %v924_v63 = vadd.f32 %v1186_v61, %v1536_v51  ;;  %v940_v0 = vadd.f32 %v1234_v62, %v1536_v51 }
 0x102   : > { %956 = vst [vmem:[%s1543_s8 + $0x8] sm:$0xff] %v924_v63  ;;  %972 = vst [vmem:[%s1543_s8 + $0x88] sm:$0xff] %v940_v0  ;;  %v1187_v1 = vpop.f32.mrb[4].mxu0  ;;  %v1235_v2 = vpop.f32.mrb[4].mxu1 }
 0x103   : > { %v1188_v3 = vpop.f32.mrb[5].mxu0  ;;  %v1236_v4 = vpop.f32.mrb[5].mxu1 }
 0x104   : > { %v1189_v5 = vadd.f32 %v1188_v3, %v1187_v1  ;;  %v1237_v6 = vadd.f32 %v1236_v4, %v1235_v2  ;;  %v1190_v7 = vpop.f32.mrb[6].mxu0  ;;  %v1238_v8 = vpop.f32.mrb[6].mxu1 }
 0x105   : > { %v1191_v9 = vpop.f32.mrb[7].mxu0  ;;  %v1239_v10 = vpop.f32.mrb[7].mxu1 }
 0x106   : > { %v925_v11 = vadd.f32 %v1189_v5, %v1536_v51  ;;  %v941_v12 = vadd.f32 %v1237_v6, %v1536_v51  ;;  %v1192_v13 = vadd.f32 %v1191_v9, %v1190_v7  ;;  %v1240_v14 = vadd.f32 %v1239_v10, %v1238_v8 }
 0x108   : > { %957 = vst [vmem:[%s1543_s8 + $0x10] sm:$0xff] %v925_v11  ;;  %973 = vst [vmem:[%s1543_s8 + $0x90] sm:$0xff] %v941_v12  ;;  %v926_v15 = vadd.f32 %v1192_v13, %v1536_v51  ;;  %v942_v16 = vadd.f32 %v1240_v14, %v1536_v51 }
 0x10a   : > { %958 = vst [vmem:[%s1543_s8 + $0x18] sm:$0xff] %v926_v15  ;;  %974 = vst [vmem:[%s1543_s8 + $0x98] sm:$0xff] %v942_v16  ;;  %v1193_v17 = vpop.f32.mrb[8].mxu0  ;;  %v1241_v18 = vpop.f32.mrb[8].mxu1 }
 0x10b   : > { %v1194_v19 = vpop.f32.mrb[9].mxu0  ;;  %v1242_v20 = vpop.f32.mrb[9].mxu1 }
 0x10c   : > { %v1195_v21 = vadd.f32 %v1194_v19, %v1193_v17  ;;  %v1243_v22 = vadd.f32 %v1242_v20, %v1241_v18  ;;  %v1196_v23 = vpop.f32.mrb[10].mxu0  ;;  %v1244_v24 = vpop.f32.mrb[10].mxu1 }
 0x10d   : > { %v1197_v25 = vpop.f32.mrb[11].mxu0  ;;  %v1245_v26 = vpop.f32.mrb[11].mxu1 }
 0x10e   : > { %v927_v27 = vadd.f32 %v1195_v21, %v1536_v51  ;;  %v943_v28 = vadd.f32 %v1243_v22, %v1536_v51  ;;  %v1198_v29 = vadd.f32 %v1197_v25, %v1196_v23  ;;  %v1246_v30 = vadd.f32 %v1245_v26, %v1244_v24 }
 0x110   : > { %959 = vst [vmem:[%s1543_s8 + $0x20] sm:$0xff] %v927_v27  ;;  %975 = vst [vmem:[%s1543_s8 + $0xa0] sm:$0xff] %v943_v28  ;;  %v928_v31 = vadd.f32 %v1198_v29, %v1536_v51  ;;  %v944_v32 = vadd.f32 %v1246_v30, %v1536_v51 }
 0x112   : > { %960 = vst [vmem:[%s1543_s8 + $0x28] sm:$0xff] %v928_v31  ;;  %976 = vst [vmem:[%s1543_s8 + $0xa8] sm:$0xff] %v944_v32  ;;  %v1199_v33 = vpop.f32.mrb[12].mxu0  ;;  %v1247_v34 = vpop.f32.mrb[12].mxu1 }
 0x113   : > { %v1200_v35 = vpop.f32.mrb[13].mxu0  ;;  %v1248_v36 = vpop.f32.mrb[13].mxu1 }
 0x114   : > { %v1201_v37 = vadd.f32 %v1200_v35, %v1199_v33  ;;  %v1249_v38 = vadd.f32 %v1248_v36, %v1247_v34  ;;  %v1202_v39 = vpop.f32.mrb[14].mxu0  ;;  %v1250_v40 = vpop.f32.mrb[14].mxu1 }
 0x115   : > { %v1203_v41 = vpop.f32.mrb[15].mxu0  ;;  %v1251_v42 = vpop.f32.mrb[15].mxu1 }
 0x116   : > { %v929_v43 = vadd.f32 %v1201_v37, %v1536_v51  ;;  %v945_v44 = vadd.f32 %v1249_v38, %v1536_v51  ;;  %v1204_v45 = vadd.f32 %v1203_v41, %v1202_v39  ;;  %v1252_v46 = vadd.f32 %v1251_v42, %v1250_v40 }
 0x118   : > { %961 = vst [vmem:[%s1543_s8 + $0x30] sm:$0xff] %v929_v43  ;;  %977 = vst [vmem:[%s1543_s8 + $0xb0] sm:$0xff] %v945_v44  ;;  %v930_v47 = vadd.f32 %v1204_v45, %v1536_v51  ;;  %v946_v48 = vadd.f32 %v1252_v46, %v1536_v51 }
 0x11a   : > { %962 = vst [vmem:[%s1543_s8 + $0x38] sm:$0xff] %v930_v47  ;;  %978 = vst [vmem:[%s1543_s8 + $0xb8] sm:$0xff] %v946_v48  ;;  %v1205_v49 = vpop.f32.mrb[16].mxu0  ;;  %v1253_v50 = vpop.f32.mrb[16].mxu1 }
 0x11b   : > { %v1206_v52 = vpop.f32.mrb[17].mxu0  ;;  %v1254_v53 = vpop.f32.mrb[17].mxu1 }
 0x11c   : > { %v1207_v54 = vadd.f32 %v1206_v52, %v1205_v49  ;;  %v1255_v55 = vadd.f32 %v1254_v53, %v1253_v50  ;;  %v1208_v56 = vpop.f32.mrb[18].mxu0  ;;  %v1256_v57 = vpop.f32.mrb[18].mxu1 }
 0x11d   : > { %v1209_v58 = vpop.f32.mrb[19].mxu0  ;;  %v1257_v59 = vpop.f32.mrb[19].mxu1 }
 0x11e   : > { %v931_v60 = vadd.f32 %v1207_v54, %v1536_v51  ;;  %v947_v61 = vadd.f32 %v1255_v55, %v1536_v51  ;;  %v1210_v62 = vadd.f32 %v1209_v58, %v1208_v56  ;;  %v1258_v63 = vadd.f32 %v1257_v59, %v1256_v57 }
 0x120   : > { %963 = vst [vmem:[%s1543_s8 + $0x40] sm:$0xff] %v931_v60  ;;  %979 = vst [vmem:[%s1543_s8 + $0xc0] sm:$0xff] %v947_v61  ;;  %v932_v0 = vadd.f32 %v1210_v62, %v1536_v51  ;;  %v948_v1 = vadd.f32 %v1258_v63, %v1536_v51 }
 0x122   : > { %964 = vst [vmem:[%s1543_s8 + $0x48] sm:$0xff] %v932_v0  ;;  %980 = vst [vmem:[%s1543_s8 + $0xc8] sm:$0xff] %v948_v1  ;;  %v1211_v2 = vpop.f32.mrb[20].mxu0  ;;  %v1259_v3 = vpop.f32.mrb[20].mxu1 }
 0x123   : > { %v1212_v4 = vpop.f32.mrb[21].mxu0  ;;  %v1260_v5 = vpop.f32.mrb[21].mxu1 }
 0x124   : > { %v1213_v6 = vadd.f32 %v1212_v4, %v1211_v2  ;;  %v1261_v7 = vadd.f32 %v1260_v5, %v1259_v3  ;;  %v1214_v8 = vpop.f32.mrb[22].mxu0  ;;  %v1262_v9 = vpop.f32.mrb[22].mxu1 }
 0x125   : > { %v1215_v10 = vpop.f32.mrb[23].mxu0  ;;  %v1263_v11 = vpop.f32.mrb[23].mxu1 }
 0x126   : > { %v933_v12 = vadd.f32 %v1213_v6, %v1536_v51  ;;  %v949_v13 = vadd.f32 %v1261_v7, %v1536_v51  ;;  %v1216_v14 = vadd.f32 %v1215_v10, %v1214_v8  ;;  %v1264_v15 = vadd.f32 %v1263_v11, %v1262_v9 }
 0x128   : > { %965 = vst [vmem:[%s1543_s8 + $0x50] sm:$0xff] %v933_v12  ;;  %981 = vst [vmem:[%s1543_s8 + $0xd0] sm:$0xff] %v949_v13  ;;  %v934_v16 = vadd.f32 %v1216_v14, %v1536_v51  ;;  %v950_v17 = vadd.f32 %v1264_v15, %v1536_v51 }
 0x12a   : > { %966 = vst [vmem:[%s1543_s8 + $0x58] sm:$0xff] %v934_v16  ;;  %982 = vst [vmem:[%s1543_s8 + $0xd8] sm:$0xff] %v950_v17  ;;  %v1217_v18 = vpop.f32.mrb[24].mxu0  ;;  %v1265_v19 = vpop.f32.mrb[24].mxu1 }
 0x12b   : > { %v1218_v20 = vpop.f32.mrb[25].mxu0  ;;  %v1266_v21 = vpop.f32.mrb[25].mxu1 }
 0x12c   : > { %v1219_v22 = vadd.f32 %v1218_v20, %v1217_v18  ;;  %v1267_v23 = vadd.f32 %v1266_v21, %v1265_v19  ;;  %v1220_v24 = vpop.f32.mrb[26].mxu0  ;;  %v1268_v25 = vpop.f32.mrb[26].mxu1 }
 0x12d   : > { %v1221_v26 = vpop.f32.mrb[27].mxu0  ;;  %v1269_v27 = vpop.f32.mrb[27].mxu1 }
 0x12e   : > { %v935_v28 = vadd.f32 %v1219_v22, %v1536_v51  ;;  %v951_v29 = vadd.f32 %v1267_v23, %v1536_v51  ;;  %v1222_v30 = vadd.f32 %v1221_v26, %v1220_v24  ;;  %v1270_v31 = vadd.f32 %v1269_v27, %v1268_v25 }
 0x130   : > { %967 = vst [vmem:[%s1543_s8 + $0x60] sm:$0xff] %v935_v28  ;;  %983 = vst [vmem:[%s1543_s8 + $0xe0] sm:$0xff] %v951_v29  ;;  %v936_v32 = vadd.f32 %v1222_v30, %v1536_v51  ;;  %v952_v33 = vadd.f32 %v1270_v31, %v1536_v51 }
 0x132   : > { %968 = vst [vmem:[%s1543_s8 + $0x68] sm:$0xff] %v936_v32  ;;  %984 = vst [vmem:[%s1543_s8 + $0xe8] sm:$0xff] %v952_v33  ;;  %v1223_v34 = vpop.f32.mrb[28].mxu0  ;;  %v1271_v35 = vpop.f32.mrb[28].mxu1 }
 0x133   : > { %v1224_v36 = vpop.f32.mrb[29].mxu0  ;;  %v1272_v37 = vpop.f32.mrb[29].mxu1 }
 0x134   : > { %v1225_v38 = vadd.f32 %v1224_v36, %v1223_v34  ;;  %v1273_v39 = vadd.f32 %v1272_v37, %v1271_v35  ;;  %v1226_v40 = vpop.f32.mrb[30].mxu0  ;;  %v1274_v41 = vpop.f32.mrb[30].mxu1 }
 0x135   : > { %v1227_v42 = vpop.f32.mrb[31].mxu0  ;;  %v1275_v43 = vpop.f32.mrb[31].mxu1 }
 0x136   : > { %v937_v44 = vadd.f32 %v1225_v38, %v1536_v51  ;;  %v953_v45 = vadd.f32 %v1273_v39, %v1536_v51  ;;  %v1228_v46 = vadd.f32 %v1227_v42, %v1226_v40  ;;  %v1276_v47 = vadd.f32 %v1275_v43, %v1274_v41 }
 0x138   : > { %969 = vst [vmem:[%s1543_s8 + $0x70] sm:$0xff] %v937_v44  ;;  %985 = vst [vmem:[%s1543_s8 + $0xf0] sm:$0xff] %v953_v45  ;;  %v938_v48 = vadd.f32 %v1228_v46, %v1536_v51  ;;  %v954_v49 = vadd.f32 %v1276_v47, %v1536_v51 }
 0x13a   : > { %970 = vst [vmem:[%s1543_s8 + $0x78] sm:$0xff] %v938_v48  ;;  %986 = vst [vmem:[%s1543_s8 + $0xf8] sm:$0xff] %v954_v49 }
 0x13b PF: > { %s13_s14 = sadd.s32 1, %s1403_s14   ;;  %s1622_s12 = smov %s1399_s13 }
 0x13c   : > { %p10_p5 = scmp.ge.s32.totalorder %s13_s14, 6   ;;  %s1623_s13 = smov %s1625_s15 }
 0x13e   :  { %12 = sbr.rel (!%p10_p5) target bundleno = 2 (0x2), region = 76 }

// kernel: rhythm_mamba_forward.42
= control target key start
LH: loop header
LB: loop body
LE: loop exit
PB: predicated region body
PF: predicated region fallthrough
CT: control target
= control target key end

     0   :  { %s1276_s1 = inlined_call_operand.vmem [shape: bf16[256,128], index: 1, kind: input, shape index: {}]   ;;  %s1277_s0 = inlined_call_operand.vmem [shape: bf16[256,256], index: 0, kind: input, shape index: {}]   ;;  %s1278_s2 = inlined_call_operand.vmem [shape: f32[1,128], index: 2, kind: input, shape index: {}]   ;;  %s1279_s3 = inlined_call_operand.vmem [shape: f32[256,128], index: 3, kind: output, shape index: {}]  }
   0x1   :  { %v915_v0 = vld [vmem:[%s1276_s1 + $0x40] sm:$0xff]   ;;  %v917_v2 = vld [vmem:[%s1276_s1 + $0x48] sm:$0xff]   ;;  %v919_v4 = vld [vmem:[%s1276_s1 + $0x50] sm:$0xff]  }
   0x2   :  { %v916_v1 = vld [vmem:[%s1276_s1] sm:$0xff]   ;;  %787 = vmatprep.subr.bf16.mxu0 %v915_v0  ;;  %899 = vmatprep.subr.bf16.mxu1 %v915_v0  ;;  %v918_v3 = vld [vmem:[%s1276_s1 + $0x8] sm:$0xff]   ;;  %v920_v5 = vld [vmem:[%s1276_s1 + $0x10] sm:$0xff]  }
   0x3   :  { %788 = vmatpush3.bf16.msra.mxu0 %v916_v1  ;;  %907 = vmatpush3.bf16.msra.mxu1 %v916_v1  ;;  %v921_v6 = vld [vmem:[%s1276_s1 + $0x58] sm:$0xff]   ;;  %v923_v8 = vld [vmem:[%s1276_s1 + $0x60] sm:$0xff]   ;;  %v925_v10 = vld [vmem:[%s1276_s1 + $0x68] sm:$0xff]  }
   0x4   :  { %789 = vmatprep.subr.bf16.mxu0 %v917_v2  ;;  %900 = vmatprep.subr.bf16.mxu1 %v917_v2  ;;  %v922_v7 = vld [vmem:[%s1276_s1 + $0x18] sm:$0xff]   ;;  %v924_v9 = vld [vmem:[%s1276_s1 + $0x20] sm:$0xff]   ;;  %v926_v13 = vld [vmem:[%s1276_s1 + $0x28] sm:$0xff]  }
   0x5   :  { %v933_v11 = vld [vmem:[%s1277_s0 + $0x4] ss:$8 sps:$4 sm:$0xff]   ;;  %v927_v14 = vld [vmem:[%s1276_s1 + $0x70] sm:$0xff]   ;;  %v929_v16 = vld [vmem:[%s1276_s1 + $0x78] sm:$0xff]  }
   0x6   :  { %v936_v12 = vld [vmem:[%s1277_s0 + $0x84] ss:$8 sps:$4 sm:$0xff]   ;;  %435 = vmatprep.mubr.bf16.mxu0 %v933_v11  ;;  %v928_v15 = vld [vmem:[%s1276_s1 + $0x30] sm:$0xff]   ;;  %v930_v17 = vld [vmem:[%s1276_s1 + $0x38] sm:$0xff]  }
   0x7   :  { %790 = vmatpush3.bf16.msra.mxu0 %v918_v3  ;;  %908 = vmatpush3.bf16.msra.mxu1 %v918_v3  ;;  %v931_v18 = vld [vmem:[%s1277_s0] ss:$8 sps:$4 sm:$0xff]   ;;  %v937_v20 = vld [vmem:[%s1277_s0 + $0x14] ss:$8 sps:$4 sm:$0xff]   ;;  %v941_v22 = vld [vmem:[%s1277_s0 + $0x10] ss:$8 sps:$4 sm:$0xff]  }
   0x8   :  { %791 = vmatprep.subr.bf16.mxu0 %v919_v4  ;;  %901 = vmatprep.subr.bf16.mxu1 %v919_v4  ;;  %v934_v19 = vld [vmem:[%s1277_s0 + $0x80] ss:$8 sps:$4 sm:$0xff]   ;;  %v939_v21 = vld [vmem:[%s1277_s0 + $0x94] ss:$8 sps:$4 sm:$0xff]   ;;  %v942_v23 = vld [vmem:[%s1277_s0 + $0x90] ss:$8 sps:$4 sm:$0xff]  }
   0x9   :  { %499 = vmatprep.mubr.bf16.mxu1 %v936_v12  ;;  %v943_v24 = vld [vmem:[%s1277_s0 + $0x24] ss:$8 sps:$4 sm:$0xff]   ;;  %v947_v26 = vld [vmem:[%s1277_s0 + $0x20] ss:$8 sps:$4 sm:$0xff]   ;;  %v949_v28 = vld [vmem:[%s1277_s0 + $0x34] ss:$8 sps:$4 sm:$0xff]  }
   0xa   :  { %v945_v25 = vld [vmem:[%s1277_s0 + $0xa4] ss:$8 sps:$4 sm:$0xff]   ;;  %v948_v27 = vld [vmem:[%s1277_s0 + $0xa0] ss:$8 sps:$4 sm:$0xff]   ;;  %v951_v29 = vld [vmem:[%s1277_s0 + $0xb4] ss:$8 sps:$4 sm:$0xff]  }
   0xb   :  { %792 = vmatpush3.bf16.msra.mxu0 %v920_v5  ;;  %909 = vmatpush3.bf16.msra.mxu1 %v920_v5  ;;  %v953_v30 = vld [vmem:[%s1277_s0 + $0x30] ss:$8 sps:$4 sm:$0xff]   ;;  %v955_v32 = vld [vmem:[%s1277_s0 + $0x44] ss:$8 sps:$4 sm:$0xff]   ;;  %v959_v34 = vld [vmem:[%s1277_s0 + $0x40] ss:$8 sps:$4 sm:$0xff]  }
   0xc   :  { %793 = vmatprep.subr.bf16.mxu0 %v921_v6  ;;  %902 = vmatprep.subr.bf16.mxu1 %v921_v6  ;;  %v954_v31 = vld [vmem:[%s1277_s0 + $0xb0] ss:$8 sps:$4 sm:$0xff]   ;;  %v957_v33 = vld [vmem:[%s1277_s0 + $0xc4] ss:$8 sps:$4 sm:$0xff]   ;;  %v960_v35 = vld [vmem:[%s1277_s0 + $0xc0] ss:$8 sps:$4 sm:$0xff]  }
   0xd   :  { %v961_v36 = vld [vmem:[%s1277_s0 + $0x54] ss:$8 sps:$4 sm:$0xff]   ;;  %v965_v38 = vld [vmem:[%s1277_s0 + $0x50] ss:$8 sps:$4 sm:$0xff]   ;;  %v967_v40 = vld [vmem:[%s1277_s0 + $0x64] ss:$8 sps:$4 sm:$0xff]  }
   0xe   :  { %v963_v37 = vld [vmem:[%s1277_s0 + $0xd4] ss:$8 sps:$4 sm:$0xff]   ;;  %v966_v39 = vld [vmem:[%s1277_s0 + $0xd0] ss:$8 sps:$4 sm:$0xff]   ;;  %v969_v41 = vld [vmem:[%s1277_s0 + $0xe4] ss:$8 sps:$4 sm:$0xff]  }
   0xf   :  { %794 = vmatpush3.bf16.msra.mxu0 %v922_v7  ;;  %910 = vmatpush3.bf16.msra.mxu1 %v922_v7  ;;  %v971_v42 = vld [vmem:[%s1277_s0 + $0x60] ss:$8 sps:$4 sm:$0xff]   ;;  %v973_v44 = vld [vmem:[%s1277_s0 + $0x74] ss:$8 sps:$4 sm:$0xff]   ;;  %v977_v46 = vld [vmem:[%s1277_s0 + $0x70] ss:$8 sps:$4 sm:$0xff]  }
  0x10   :  { %795 = vmatprep.subr.bf16.mxu0 %v923_v8  ;;  %903 = vmatprep.subr.bf16.mxu1 %v923_v8  ;;  %v972_v43 = vld [vmem:[%s1277_s0 + $0xe0] ss:$8 sps:$4 sm:$0xff]   ;;  %v975_v45 = vld [vmem:[%s1277_s0 + $0xf4] ss:$8 sps:$4 sm:$0xff]   ;;  %v978_v47 = vld [vmem:[%s1277_s0 + $0xf0] ss:$8 sps:$4 sm:$0xff]  }
  0x11   :  { %v1146_v51 = vld [vmem:[%s1278_s2] ss:$0 sm:$0xff] }
  0x13   :  { %796 = vmatpush3.bf16.msra.mxu0 %v924_v9  ;;  %911 = vmatpush3.bf16.msra.mxu1 %v924_v9 }
  0x14   :  { %797 = vmatprep.subr.bf16.mxu0 %v925_v10  ;;  %904 = vmatprep.subr.bf16.mxu1 %v925_v10 }
  0x17   :  { %798 = vmatpush3.bf16.msra.mxu0 %v926_v13  ;;  %912 = vmatpush3.bf16.msra.mxu1 %v926_v13 }
  0x18   :  { %799 = vmatprep.subr.bf16.mxu0 %v927_v14  ;;  %905 = vmatprep.subr.bf16.mxu1 %v927_v14 }
  0x1b   :  { %800 = vmatpush3.bf16.msra.mxu0 %v928_v15  ;;  %913 = vmatpush3.bf16.msra.mxu1 %v928_v15 }
  0x1c   :  { %801 = vmatprep.subr.bf16.mxu0 %v929_v16  ;;  %906 = vmatprep.subr.bf16.mxu1 %v929_v16 }
  0x1f   :  { %802 = vmatpush3.bf16.msra.mxu0 %v930_v17  ;;  %914 = vmatpush3.bf16.msra.mxu1 %v930_v17 }
  0x22   :  { %436 = vmatmul.mubr.bf16.vlgmr.msra.gmra.mrb[0].mxu0 %v931_v18  ;;  %500 = vmatmul.mubr.bf16.vlgmr.msra.gmra.mrb[0].mxu1 %v934_v19 }
  0x23   :  { %443 = vmatprep.mubr.bf16.mxu0 %v937_v20  ;;  %507 = vmatprep.mubr.bf16.mxu1 %v939_v21 }
  0x2a   :  { %444 = vmatmul.mubr.bf16.gmra.mrb[4].mxu0 %v941_v22  ;;  %508 = vmatmul.mubr.bf16.gmra.mrb[4].mxu1 %v942_v23 }
  0x2b   :  { %451 = vmatprep.mubr.bf16.mxu0 %v943_v24  ;;  %515 = vmatprep.mubr.bf16.mxu1 %v945_v25 }
  0x32   :  { %452 = vmatmul.mubr.bf16.gmra.mrb[8].mxu0 %v947_v26  ;;  %516 = vmatmul.mubr.bf16.gmra.mrb[8].mxu1 %v948_v27 }
  0x33   :  { %459 = vmatprep.mubr.bf16.mxu0 %v949_v28  ;;  %523 = vmatprep.mubr.bf16.mxu1 %v951_v29 }
  0x3a   :  { %460 = vmatmul.mubr.bf16.gmra.mrb[12].mxu0 %v953_v30  ;;  %524 = vmatmul.mubr.bf16.gmra.mrb[12].mxu1 %v954_v31 }
  0x3b   :  { %467 = vmatprep.mubr.bf16.mxu0 %v955_v32  ;;  %531 = vmatprep.mubr.bf16.mxu1 %v957_v33 }
  0x42   :  { %468 = vmatmul.mubr.bf16.gmra.mrb[16].mxu0 %v959_v34  ;;  %532 = vmatmul.mubr.bf16.gmra.mrb[16].mxu1 %v960_v35 }
  0x43   :  { %475 = vmatprep.mubr.bf16.mxu0 %v961_v36  ;;  %539 = vmatprep.mubr.bf16.mxu1 %v963_v37 }
  0x4a   :  { %476 = vmatmul.mubr.bf16.gmra.mrb[20].mxu0 %v965_v38  ;;  %540 = vmatmul.mubr.bf16.gmra.mrb[20].mxu1 %v966_v39 }
  0x4b   :  { %483 = vmatprep.mubr.bf16.mxu0 %v967_v40  ;;  %547 = vmatprep.mubr.bf16.mxu1 %v969_v41 }
  0x52   :  { %484 = vmatmul.mubr.bf16.gmra.mrb[24].mxu0 %v971_v42  ;;  %548 = vmatmul.mubr.bf16.gmra.mrb[24].mxu1 %v972_v43 }
  0x53   :  { %491 = vmatprep.mubr.bf16.mxu0 %v973_v44  ;;  %555 = vmatprep.mubr.bf16.mxu1 %v975_v45 }
  0x5a   :  { %492 = vmatmul.mubr.bf16.gmra.mrb[28].mxu0 %v977_v46  ;;  %556 = vmatmul.mubr.bf16.gmra.mrb[28].mxu1 %v978_v47 }
  0xf5   :  { %v803_v48 = vpop.f32.mrb[0].mxu0  ;;  %v851_v49 = vpop.f32.mrb[0].mxu1 }
  0xf6   :  { %v804_v50 = vpop.f32.mrb[1].mxu0  ;;  %v852_v52 = vpop.f32.mrb[1].mxu1 }
  0xf7   :  { %v805_v53 = vadd.f32 %v804_v50, %v803_v48  ;;  %v853_v54 = vadd.f32 %v852_v52, %v851_v49  ;;  %v806_v55 = vpop.f32.mrb[2].mxu0  ;;  %v854_v56 = vpop.f32.mrb[2].mxu1 }
  0xf8   :  { %v807_v57 = vpop.f32.mrb[3].mxu0  ;;  %v855_v58 = vpop.f32.mrb[3].mxu1 }
  0xf9   :  { %v670_v59 = vadd.f32 %v805_v53, %v1146_v51  ;;  %v686_v60 = vadd.f32 %v853_v54, %v1146_v51  ;;  %v808_v61 = vadd.f32 %v807_v57, %v806_v55  ;;  %v856_v62 = vadd.f32 %v855_v58, %v854_v56 }
  0xfb   :  { %702 = vst [vmem:[%s1279_s3] sm:$0xff] %v670_v59  ;;  %718 = vst [vmem:[%s1279_s3 + $0x80] sm:$0xff] %v686_v60  ;;  %v671_v63 = vadd.f32 %v808_v61, %v1146_v51  ;;  %v687_v0 = vadd.f32 %v856_v62, %v1146_v51 }
  0xfd   :  { %703 = vst [vmem:[%s1279_s3 + $0x8] sm:$0xff] %v671_v63  ;;  %719 = vst [vmem:[%s1279_s3 + $0x88] sm:$0xff] %v687_v0  ;;  %v809_v1 = vpop.f32.mrb[4].mxu0  ;;  %v857_v2 = vpop.f32.mrb[4].mxu1 }
  0xfe   :  { %v810_v3 = vpop.f32.mrb[5].mxu0  ;;  %v858_v4 = vpop.f32.mrb[5].mxu1 }
  0xff   :  { %v811_v5 = vadd.f32 %v810_v3, %v809_v1  ;;  %v859_v6 = vadd.f32 %v858_v4, %v857_v2  ;;  %v812_v7 = vpop.f32.mrb[6].mxu0  ;;  %v860_v8 = vpop.f32.mrb[6].mxu1 }
 0x100   :  { %v813_v9 = vpop.f32.mrb[7].mxu0  ;;  %v861_v10 = vpop.f32.mrb[7].mxu1 }
 0x101   :  { %v672_v11 = vadd.f32 %v811_v5, %v1146_v51  ;;  %v688_v12 = vadd.f32 %v859_v6, %v1146_v51  ;;  %v814_v13 = vadd.f32 %v813_v9, %v812_v7  ;;  %v862_v14 = vadd.f32 %v861_v10, %v860_v8 }
 0x103   :  { %704 = vst [vmem:[%s1279_s3 + $0x10] sm:$0xff] %v672_v11  ;;  %720 = vst [vmem:[%s1279_s3 + $0x90] sm:$0xff] %v688_v12  ;;  %v673_v15 = vadd.f32 %v814_v13, %v1146_v51  ;;  %v689_v16 = vadd.f32 %v862_v14, %v1146_v51 }
 0x105   :  { %705 = vst [vmem:[%s1279_s3 + $0x18] sm:$0xff] %v673_v15  ;;  %721 = vst [vmem:[%s1279_s3 + $0x98] sm:$0xff] %v689_v16  ;;  %v815_v17 = vpop.f32.mrb[8].mxu0  ;;  %v863_v18 = vpop.f32.mrb[8].mxu1 }
 0x106   :  { %v816_v19 = vpop.f32.mrb[9].mxu0  ;;  %v864_v20 = vpop.f32.mrb[9].mxu1 }
 0x107   :  { %v817_v21 = vadd.f32 %v816_v19, %v815_v17  ;;  %v865_v22 = vadd.f32 %v864_v20, %v863_v18  ;;  %v818_v23 = vpop.f32.mrb[10].mxu0  ;;  %v866_v24 = vpop.f32.mrb[10].mxu1 }
 0x108   :  { %v819_v25 = vpop.f32.mrb[11].mxu0  ;;  %v867_v26 = vpop.f32.mrb[11].mxu1 }
 0x109   :  { %v674_v27 = vadd.f32 %v817_v21, %v1146_v51  ;;  %v690_v28 = vadd.f32 %v865_v22, %v1146_v51  ;;  %v820_v29 = vadd.f32 %v819_v25, %v818_v23  ;;  %v868_v30 = vadd.f32 %v867_v26, %v866_v24 }
 0x10b   :  { %706 = vst [vmem:[%s1279_s3 + $0x20] sm:$0xff] %v674_v27  ;;  %722 = vst [vmem:[%s1279_s3 + $0xa0] sm:$0xff] %v690_v28  ;;  %v675_v31 = vadd.f32 %v820_v29, %v1146_v51  ;;  %v691_v32 = vadd.f32 %v868_v30, %v1146_v51 }
 0x10d   :  { %707 = vst [vmem:[%s1279_s3 + $0x28] sm:$0xff] %v675_v31  ;;  %723 = vst [vmem:[%s1279_s3 + $0xa8] sm:$0xff] %v691_v32  ;;  %v821_v33 = vpop.f32.mrb[12].mxu0  ;;  %v869_v34 = vpop.f32.mrb[12].mxu1 }
 0x10e   :  { %v822_v35 = vpop.f32.mrb[13].mxu0  ;;  %v870_v36 = vpop.f32.mrb[13].mxu1 }
 0x10f   :  { %v823_v37 = vadd.f32 %v822_v35, %v821_v33  ;;  %v871_v38 = vadd.f32 %v870_v36, %v869_v34  ;;  %v824_v39 = vpop.f32.mrb[14].mxu0  ;;  %v872_v40 = vpop.f32.mrb[14].mxu1 }
 0x110   :  { %v825_v41 = vpop.f32.mrb[15].mxu0  ;;  %v873_v42 = vpop.f32.mrb[15].mxu1 }
 0x111   :  { %v676_v43 = vadd.f32 %v823_v37, %v1146_v51  ;;  %v692_v44 = vadd.f32 %v871_v38, %v1146_v51  ;;  %v826_v45 = vadd.f32 %v825_v41, %v824_v39  ;;  %v874_v46 = vadd.f32 %v873_v42, %v872_v40 }
 0x113   :  { %708 = vst [vmem:[%s1279_s3 + $0x30] sm:$0xff] %v676_v43  ;;  %724 = vst [vmem:[%s1279_s3 + $0xb0] sm:$0xff] %v692_v44  ;;  %v677_v47 = vadd.f32 %v826_v45, %v1146_v51  ;;  %v693_v48 = vadd.f32 %v874_v46, %v1146_v51 }
 0x115   :  { %709 = vst [vmem:[%s1279_s3 + $0x38] sm:$0xff] %v677_v47  ;;  %725 = vst [vmem:[%s1279_s3 + $0xb8] sm:$0xff] %v693_v48  ;;  %v827_v49 = vpop.f32.mrb[16].mxu0  ;;  %v875_v50 = vpop.f32.mrb[16].mxu1 }
 0x116   :  { %v828_v52 = vpop.f32.mrb[17].mxu0  ;;  %v876_v53 = vpop.f32.mrb[17].mxu1 }
 0x117   :  { %v829_v54 = vadd.f32 %v828_v52, %v827_v49  ;;  %v877_v55 = vadd.f32 %v876_v53, %v875_v50  ;;  %v830_v56 = vpop.f32.mrb[18].mxu0  ;;  %v878_v57 = vpop.f32.mrb[18].mxu1 }
 0x118   :  { %v831_v58 = vpop.f32.mrb[19].mxu0  ;;  %v879_v59 = vpop.f32.mrb[19].mxu1 }
 0x119   :  { %v678_v60 = vadd.f32 %v829_v54, %v1146_v51  ;;  %v694_v61 = vadd.f32 %v877_v55, %v1146_v51  ;;  %v832_v62 = vadd.f32 %v831_v58, %v830_v56  ;;  %v880_v63 = vadd.f32 %v879_v59, %v878_v57 }
 0x11b   :  { %710 = vst [vmem:[%s1279_s3 + $0x40] sm:$0xff] %v678_v60  ;;  %726 = vst [vmem:[%s1279_s3 + $0xc0] sm:$0xff] %v694_v61  ;;  %v679_v0 = vadd.f32 %v832_v62, %v1146_v51  ;;  %v695_v1 = vadd.f32 %v880_v63, %v1146_v51 }
 0x11d   :  { %711 = vst [vmem:[%s1279_s3 + $0x48] sm:$0xff] %v679_v0  ;;  %727 = vst [vmem:[%s1279_s3 + $0xc8] sm:$0xff] %v695_v1  ;;  %v833_v2 = vpop.f32.mrb[20].mxu0  ;;  %v881_v3 = vpop.f32.mrb[20].mxu1 }
 0x11e   :  { %v834_v4 = vpop.f32.mrb[21].mxu0  ;;  %v882_v5 = vpop.f32.mrb[21].mxu1 }
 0x11f   :  { %v835_v6 = vadd.f32 %v834_v4, %v833_v2  ;;  %v883_v7 = vadd.f32 %v882_v5, %v881_v3  ;;  %v836_v8 = vpop.f32.mrb[22].mxu0  ;;  %v884_v9 = vpop.f32.mrb[22].mxu1 }
 0x120   :  { %v837_v10 = vpop.f32.mrb[23].mxu0  ;;  %v885_v11 = vpop.f32.mrb[23].mxu1 }
 0x121   :  { %v680_v12 = vadd.f32 %v835_v6, %v1146_v51  ;;  %v696_v13 = vadd.f32 %v883_v7, %v1146_v51  ;;  %v838_v14 = vadd.f32 %v837_v10, %v836_v8  ;;  %v886_v15 = vadd.f32 %v885_v11, %v884_v9 }
 0x123   :  { %712 = vst [vmem:[%s1279_s3 + $0x50] sm:$0xff] %v680_v12  ;;  %728 = vst [vmem:[%s1279_s3 + $0xd0] sm:$0xff] %v696_v13  ;;  %v681_v16 = vadd.f32 %v838_v14, %v1146_v51  ;;  %v697_v17 = vadd.f32 %v886_v15, %v1146_v51 }
 0x125   :  { %713 = vst [vmem:[%s1279_s3 + $0x58] sm:$0xff] %v681_v16  ;;  %729 = vst [vmem:[%s1279_s3 + $0xd8] sm:$0xff] %v697_v17  ;;  %v839_v18 = vpop.f32.mrb[24].mxu0  ;;  %v887_v19 = vpop.f32.mrb[24].mxu1 }
 0x126   :  { %v840_v20 = vpop.f32.mrb[25].mxu0  ;;  %v888_v21 = vpop.f32.mrb[25].mxu1 }
 0x127   :  { %v841_v22 = vadd.f32 %v840_v20, %v839_v18  ;;  %v889_v23 = vadd.f32 %v888_v21, %v887_v19  ;;  %v842_v24 = vpop.f32.mrb[26].mxu0  ;;  %v890_v25 = vpop.f32.mrb[26].mxu1 }
 0x128   :  { %v843_v26 = vpop.f32.mrb[27].mxu0  ;;  %v891_v27 = vpop.f32.mrb[27].mxu1 }
 0x129   :  { %v682_v28 = vadd.f32 %v841_v22, %v1146_v51  ;;  %v698_v29 = vadd.f32 %v889_v23, %v1146_v51  ;;  %v844_v30 = vadd.f32 %v843_v26, %v842_v24  ;;  %v892_v31 = vadd.f32 %v891_v27, %v890_v25 }
 0x12b   :  { %714 = vst [vmem:[%s1279_s3 + $0x60] sm:$0xff] %v682_v28  ;;  %730 = vst [vmem:[%s1279_s3 + $0xe0] sm:$0xff] %v698_v29  ;;  %v683_v32 = vadd.f32 %v844_v30, %v1146_v51  ;;  %v699_v33 = vadd.f32 %v892_v31, %v1146_v51 }
 0x12d   :  { %715 = vst [vmem:[%s1279_s3 + $0x68] sm:$0xff] %v683_v32  ;;  %731 = vst [vmem:[%s1279_s3 + $0xe8] sm:$0xff] %v699_v33  ;;  %v845_v34 = vpop.f32.mrb[28].mxu0  ;;  %v893_v35 = vpop.f32.mrb[28].mxu1 }
 0x12e   :  { %v846_v36 = vpop.f32.mrb[29].mxu0  ;;  %v894_v37 = vpop.f32.mrb[29].mxu1 }
 0x12f   :  { %v847_v38 = vadd.f32 %v846_v36, %v845_v34  ;;  %v895_v39 = vadd.f32 %v894_v37, %v893_v35  ;;  %v848_v40 = vpop.f32.mrb[30].mxu0  ;;  %v896_v41 = vpop.f32.mrb[30].mxu1 }
 0x130   :  { %v849_v42 = vpop.f32.mrb[31].mxu0  ;;  %v897_v43 = vpop.f32.mrb[31].mxu1 }
 0x131   :  { %v684_v44 = vadd.f32 %v847_v38, %v1146_v51  ;;  %v700_v45 = vadd.f32 %v895_v39, %v1146_v51  ;;  %v850_v46 = vadd.f32 %v849_v42, %v848_v40  ;;  %v898_v47 = vadd.f32 %v897_v43, %v896_v41 }
 0x133   :  { %716 = vst [vmem:[%s1279_s3 + $0x70] sm:$0xff] %v684_v44  ;;  %732 = vst [vmem:[%s1279_s3 + $0xf0] sm:$0xff] %v700_v45  ;;  %v685_v48 = vadd.f32 %v850_v46, %v1146_v51  ;;  %v701_v49 = vadd.f32 %v898_v47, %v1146_v51 }
 0x135   :  { %717 = vst [vmem:[%s1279_s3 + $0x78] sm:$0xff] %v685_v48  ;;  %733 = vst [vmem:[%s1279_s3 + $0xf8] sm:$0xff] %v701_v49 }

// kernel: rhythm_mamba_forward.43
= control target key start
LH: loop header
LB: loop body
LE: loop exit
PB: predicated region body
PF: predicated region fallthrough
CT: control target
= control target key end

     0   :  { %vm156_vm0 = vcmask 64512   ;;  %s513_s0 = inlined_call_operand.vmem [shape: f32[256,8], index: 0, kind: input, shape index: {}]   ;;  %s514_s1 = inlined_call_operand.vmem [shape: f32[1,8], index: 1, kind: input, shape index: {}]   ;;  %s515_s2 = inlined_call_operand.vmem [shape: f32[1,8], index: 2, kind: input, shape index: {}]   ;;  %s516_s3 = inlined_call_operand.vmem [shape: f32[256,8], index: 3, kind: output, shape index: {}]  }
   0x1   :  { %v14_v0 = vld [vmem:[%s513_s0] sm:$0xff]  ;;  %v15_v4 = vld [vmem:[%s513_s0 + $0x8] sm:$0xff]  ;;  %v16_v5 = vld [vmem:[%s513_s0 + $0x10] sm:$0xff] }
   0x2   :  { %v221_v1 = vld [vmem:[%s514_s1] ss:$0 sm:$0xff]  ;;  %v17_v6 = vld [vmem:[%s513_s0 + $0x18] sm:$0xff]  ;;  %v19_v11 = vld [vmem:[%s513_s0 + $0x28] sm:$0xff] }
   0x3   :  { %v226_v2 = vld [vmem:[%s515_s2] ss:$0 sm:$0xff]  ;;  %v53_v3 = vmul.f32 %v221_v1, %v14_v0  ;;  %v54_v7 = vmul.f32 %v221_v1, %v15_v4  ;;  %v55_v8 = vmul.f32 %v221_v1, %v16_v5  ;;  %v56_v9 = vmul.f32 %v221_v1, %v17_v6  ;;  %v20_v12 = vld [vmem:[%s513_s0 + $0x30] sm:$0xff]  ;;  %v21_v17 = vld [vmem:[%s513_s0 + $0x38] sm:$0xff] }
   0x4   :  { %v18_v10 = vld [vmem:[%s513_s0 + $0x20] sm:$0xff]  ;;  %v58_v15 = vmul.f32 %v221_v1, %v19_v11  ;;  %v59_v16 = vmul.f32 %v221_v1, %v20_v12  ;;  %v60_v21 = vmul.f32 %v221_v1, %v21_v17  ;;  %v23_v27 = vld [vmem:[%s513_s0 + $0x48] sm:$0xff]  ;;  %v24_v28 = vld [vmem:[%s513_s0 + $0x50] sm:$0xff] }
   0x5   :  { %v92_v13 = vadd.f32 %v226_v2, %v53_v3  ;;  %v57_v14 = vmul.f32 %v221_v1, %v18_v10  ;;  %v93_v18 = vadd.f32 %v226_v2, %v54_v7  ;;  %v94_v19 = vadd.f32 %v226_v2, %v55_v8  ;;  %v22_v22 = vld [vmem:[%s513_s0 + $0x40] sm:$0xff]  ;;  %v25_v29 = vld [vmem:[%s513_s0 + $0x58] sm:$0xff]  ;;  %v27_v35 = vld [vmem:[%s513_s0 + $0x68] sm:$0xff] }
   0x6   :  { %v95_v20 = vadd.f32 %v226_v2, %v56_v9  ;;  %v97_v25 = vadd.f32 %v226_v2, %v58_v15  ;;  %v98_v26 = vadd.f32 %v226_v2, %v59_v16  ;;  %v99_v33 = vadd.f32 %v226_v2, %v60_v21  ;;  %v26_v34 = vld [vmem:[%s513_s0 + $0x60] sm:$0xff]  ;;  %v28_v36 = vld [vmem:[%s513_s0 + $0x70] sm:$0xff]  ;;  %v29_v41 = vld [vmem:[%s513_s0 + $0x78] sm:$0xff] }
   0x7   :  { %v124_v23 = vmax.f32 %v92_v13, 0.0  ;;  %v96_v24 = vadd.f32 %v226_v2, %v57_v14  ;;  %v125_v30 = vmax.f32 %v93_v18, 0.0  ;;  %v126_v31 = vmax.f32 %v94_v19, 0.0  ;;  %v30_v54 = vld [vmem:[%s513_s0 + $0x80] sm:$0xff]  ;;  %v31_v59 = vld [vmem:[%s513_s0 + $0x88] sm:$0xff]  ;;  %v32_v60 = vld [vmem:[%s513_s0 + $0x90] sm:$0xff] }
   0x8   :  { %v127_v32 = vmax.f32 %v95_v20, 0.0  ;;  %v129_v38 = vmax.f32 %v97_v25, 0.0  ;;  %v130_v39 = vmax.f32 %v98_v26, 0.0  ;;  %v61_v40 = vmul.f32 %v221_v1, %v22_v22  ;;  %v33_v61 = vld [vmem:[%s513_s0 + $0x98] sm:$0xff]  ;;  %v34_v4 = vld [vmem:[%s513_s0 + $0xa0] sm:$0xff]  ;;  %v35_v5 = vld [vmem:[%s513_s0 + $0xa8] sm:$0xff] }
   0x9   :  { %157 = vst.msk [vmem:[%s516_s3] sm:$0xff] %vm156_vm0, %v124_v23  ;;  %v128_v37 = vmax.f32 %v96_v24, 0.0  ;;  %158 = vst.msk [vmem:[%s516_s3 + $0x8] sm:$0xff] %vm156_vm0, %v125_v30  ;;  %v131_v42 = vmax.f32 %v99_v33, 0.0  ;;  %v62_v43 = vmul.f32 %v221_v1, %v23_v27  ;;  %v63_v44 = vmul.f32 %v221_v1, %v24_v28  ;;  %v36_v6 = vld [vmem:[%s513_s0 + $0xb0] sm:$0xff]  ;;  %v37_v11 = vld [vmem:[%s513_s0 + $0xb8] sm:$0xff] }
   0xa   :  { %159 = vst.msk [vmem:[%s516_s3 + $0x10] sm:$0xff] %vm156_vm0, %v126_v31  ;;  %160 = vst.msk [vmem:[%s516_s3 + $0x18] sm:$0xff] %vm156_vm0, %v127_v32  ;;  %v64_v45 = vmul.f32 %v221_v1, %v25_v29  ;;  %v100_v46 = vadd.f32 %v226_v2, %v61_v40  ;;  %v65_v47 = vmul.f32 %v221_v1, %v26_v34  ;;  %v38_v24 = vld [vmem:[%s513_s0 + $0xc0] sm:$0xff]  ;;  %v39_v29 = vld [vmem:[%s513_s0 + $0xc8] sm:$0xff] }
   0xb   :  { %161 = vst.msk [vmem:[%s516_s3 + $0x20] sm:$0xff] %vm156_vm0, %v128_v37  ;;  %162 = vst.msk [vmem:[%s516_s3 + $0x28] sm:$0xff] %vm156_vm0, %v129_v38  ;;  %v66_v48 = vmul.f32 %v221_v1, %v27_v35  ;;  %v67_v49 = vmul.f32 %v221_v1, %v28_v36  ;;  %v101_v50 = vadd.f32 %v226_v2, %v62_v43  ;;  %v40_v30 = vld [vmem:[%s513_s0 + $0xd0] sm:$0xff]  ;;  %v41_v31 = vld [vmem:[%s513_s0 + $0xd8] sm:$0xff] }
   0xc   :  { %163 = vst.msk [vmem:[%s516_s3 + $0x30] sm:$0xff] %vm156_vm0, %v130_v39  ;;  %164 = vst.msk [vmem:[%s516_s3 + $0x38] sm:$0xff] %vm156_vm0, %v131_v42  ;;  %v102_v51 = vadd.f32 %v226_v2, %v63_v44  ;;  %v103_v52 = vadd.f32 %v226_v2, %v64_v45  ;;  %v68_v53 = vmul.f32 %v221_v1, %v29_v41  ;;  %v132_v55 = vmax.f32 %v100_v46, 0.0  ;;  %v42_v36 = vld [vmem:[%s513_s0 + $0xe0] sm:$0xff]  ;;  %v43_v37 = vld [vmem:[%s513_s0 + $0xe8] sm:$0xff] }
   0xd   :  { %v104_v56 = vadd.f32 %v226_v2, %v65_v47  ;;  %v105_v57 = vadd.f32 %v226_v2, %v66_v48  ;;  %v106_v58 = vadd.f32 %v226_v2, %v67_v49  ;;  %v133_v62 = vmax.f32 %v101_v50, 0.0  ;;  %v44_v38 = vld [vmem:[%s513_s0 + $0xf0] sm:$0xff]  ;;  %v45_v43 = vld [vmem:[%s513_s0 + $0xf8] sm:$0xff] }
   0xe   :  { %v134_v63 = vmax.f32 %v102_v51, 0.0  ;;  %v135_v0 = vmax.f32 %v103_v52, 0.0  ;;  %v107_v3 = vadd.f32 %v226_v2, %v68_v53  ;;  %165 = vst.msk [vmem:[%s516_s3 + $0x40] sm:$0xff] %vm156_vm0, %v132_v55  ;;  %v69_v10 = vmul.f32 %v221_v1, %v30_v54 }
   0xf   :  { %v136_v7 = vmax.f32 %v104_v56, 0.0  ;;  %v137_v8 = vmax.f32 %v105_v57, 0.0  ;;  %v138_v9 = vmax.f32 %v106_v58, 0.0  ;;  %166 = vst.msk [vmem:[%s516_s3 + $0x48] sm:$0xff] %vm156_vm0, %v133_v62  ;;  %v70_v13 = vmul.f32 %v221_v1, %v31_v59 }
  0x10   :  { %167 = vst.msk [vmem:[%s516_s3 + $0x50] sm:$0xff] %vm156_vm0, %v134_v63  ;;  %168 = vst.msk [vmem:[%s516_s3 + $0x58] sm:$0xff] %vm156_vm0, %v135_v0  ;;  %v139_v12 = vmax.f32 %v107_v3, 0.0  ;;  %v71_v14 = vmul.f32 %v221_v1, %v32_v60  ;;  %v72_v15 = vmul.f32 %v221_v1, %v33_v61  ;;  %v108_v16 = vadd.f32 %v226_v2, %v69_v10 }
  0x11   :  { %169 = vst.msk [vmem:[%s516_s3 + $0x60] sm:$0xff] %vm156_vm0, %v136_v7  ;;  %170 = vst.msk [vmem:[%s516_s3 + $0x68] sm:$0xff] %vm156_vm0, %v137_v8  ;;  %v73_v17 = vmul.f32 %v221_v1, %v34_v4  ;;  %v74_v18 = vmul.f32 %v221_v1, %v35_v5  ;;  %v75_v19 = vmul.f32 %v221_v1, %v36_v6 }
  0x12   :  { %171 = vst.msk [vmem:[%s516_s3 + $0x70] sm:$0xff] %vm156_vm0, %v138_v9  ;;  %172 = vst.msk [vmem:[%s516_s3 + $0x78] sm:$0xff] %vm156_vm0, %v139_v12  ;;  %v109_v20 = vadd.f32 %v226_v2, %v70_v13  ;;  %v110_v21 = vadd.f32 %v226_v2, %v71_v14  ;;  %v111_v22 = vadd.f32 %v226_v2, %v72_v15  ;;  %v140_v25 = vmax.f32 %v108_v16, 0.0 }
  0x13   :  { %v76_v23 = vmul.f32 %v221_v1, %v37_v11  ;;  %v112_v26 = vadd.f32 %v226_v2, %v73_v17  ;;  %v113_v27 = vadd.f32 %v226_v2, %v74_v18  ;;  %v114_v28 = vadd.f32 %v226_v2, %v75_v19 }
  0x14   :  { %v141_v32 = vmax.f32 %v109_v20, 0.0  ;;  %v142_v33 = vmax.f32 %v110_v21, 0.0  ;;  %v143_v34 = vmax.f32 %v111_v22, 0.0  ;;  %173 = vst.msk [vmem:[%s516_s3 + $0x80] sm:$0xff] %vm156_vm0, %v140_v25  ;;  %v77_v42 = vmul.f32 %v221_v1, %v38_v24 }
  0x15   :  { %v115_v35 = vadd.f32 %v226_v2, %v76_v23  ;;  %v144_v39 = vmax.f32 %v112_v26, 0.0  ;;  %v145_v40 = vmax.f32 %v113_v27, 0.0  ;;  %v146_v41 = vmax.f32 %v114_v28, 0.0 }
  0x16   :  { %174 = vst.msk [vmem:[%s516_s3 + $0x88] sm:$0xff] %vm156_vm0, %v141_v32  ;;  %175 = vst.msk [vmem:[%s516_s3 + $0x90] sm:$0xff] %vm156_vm0, %v142_v33  ;;  %v78_v45 = vmul.f32 %v221_v1, %v39_v29  ;;  %v79_v46 = vmul.f32 %v221_v1, %v40_v30  ;;  %v80_v47 = vmul.f32 %v221_v1, %v41_v31 }
  0x17   :  { %176 = vst.msk [vmem:[%s516_s3 + $0x98] sm:$0xff] %vm156_vm0, %v143_v34  ;;  %v147_v44 = vmax.f32 %v115_v35, 0.0  ;;  %177 = vst.msk [vmem:[%s516_s3 + $0xa0] sm:$0xff] %vm156_vm0, %v144_v39  ;;  %v116_v48 = vadd.f32 %v226_v2, %v77_v42  ;;  %v81_v49 = vmul.f32 %v221_v1, %v42_v36  ;;  %v82_v50 = vmul.f32 %v221_v1, %v43_v37 }
  0x18   :  { %178 = vst.msk [vmem:[%s516_s3 + $0xa8] sm:$0xff] %vm156_vm0, %v145_v40  ;;  %179 = vst.msk [vmem:[%s516_s3 + $0xb0] sm:$0xff] %vm156_vm0, %v146_v41  ;;  %v83_v51 = vmul.f32 %v221_v1, %v44_v38  ;;  %v117_v52 = vadd.f32 %v226_v2, %v78_v45  ;;  %v118_v53 = vadd.f32 %v226_v2, %v79_v46 }
  0x19   :  { %180 = vst.msk [vmem:[%s516_s3 + $0xb8] sm:$0xff] %vm156_vm0, %v147_v44  ;;  %v119_v54 = vadd.f32 %v226_v2, %v80_v47  ;;  %v84_v55 = vmul.f32 %v221_v1, %v45_v43  ;;  %v148_v56 = vmax.f32 %v116_v48, 0.0  ;;  %v120_v57 = vadd.f32 %v226_v2, %v81_v49 }
  0x1a   :  { %v121_v58 = vadd.f32 %v226_v2, %v82_v50  ;;  %v122_v59 = vadd.f32 %v226_v2, %v83_v51  ;;  %v149_v60 = vmax.f32 %v117_v52, 0.0  ;;  %v150_v61 = vmax.f32 %v118_v53, 0.0 }
  0x1b   :  { %v151_v62 = vmax.f32 %v119_v54, 0.0  ;;  %v123_v63 = vadd.f32 %v226_v2, %v84_v55  ;;  %181 = vst.msk [vmem:[%s516_s3 + $0xc0] sm:$0xff] %vm156_vm0, %v148_v56  ;;  %v152_v0 = vmax.f32 %v120_v57, 0.0 }
  0x1c   :  { %v153_v3 = vmax.f32 %v121_v58, 0.0  ;;  %v154_v1 = vmax.f32 %v122_v59, 0.0  ;;  %182 = vst.msk [vmem:[%s516_s3 + $0xc8] sm:$0xff] %vm156_vm0, %v149_v60  ;;  %183 = vst.msk [vmem:[%s516_s3 + $0xd0] sm:$0xff] %vm156_vm0, %v150_v61 }
  0x1d   :  { %184 = vst.msk [vmem:[%s516_s3 + $0xd8] sm:$0xff] %vm156_vm0, %v151_v62  ;;  %v155_v2 = vmax.f32 %v123_v63, 0.0  ;;  %185 = vst.msk [vmem:[%s516_s3 + $0xe0] sm:$0xff] %vm156_vm0, %v152_v0 }
  0x1e   :  { %186 = vst.msk [vmem:[%s516_s3 + $0xe8] sm:$0xff] %vm156_vm0, %v153_v3  ;;  %187 = vst.msk [vmem:[%s516_s3 + $0xf0] sm:$0xff] %vm156_vm0, %v154_v1 }
  0x1f   :  { %188 = vst.msk [vmem:[%s516_s3 + $0xf8] sm:$0xff] %vm156_vm0, %v155_v2 }

// kernel: rhythm_mamba_forward.46
= control target key start
LH: loop header
LB: loop body
LE: loop exit
PB: predicated region body
PF: predicated region fallthrough
CT: control target
= control target key end

     0   :  { %s759_s1 = inlined_call_operand.vmem [shape: bf16[512,128], index: 1, kind: input, shape index: {}]   ;;  %s760_s0 = inlined_call_operand.vmem [shape: bf16[32,512], index: 0, kind: input, shape index: {}]   ;;  %s761_s2 = inlined_call_operand.vmem [shape: f32[1,128], index: 2, kind: input, shape index: {}]   ;;  %s762_s3 = inlined_call_operand.vmem [shape: f32[32,128], index: 3, kind: output, shape index: {}]  }
   0x1   :  { %v560_v0 = vld [vmem:[%s759_s1 + $0x40] sm:$0xff]   ;;  %v564_v4 = vld [vmem:[%s759_s1 + $0x48] sm:$0xff]   ;;  %v568_v8 = vld [vmem:[%s759_s1 + $0x50] sm:$0xff]  }
   0x2   :  { %v561_v1 = vld [vmem:[%s759_s1 + $0xc0] sm:$0xff]   ;;  %504 = vmatprep.subr.bf16.mxu0 %v560_v0  ;;  %v565_v5 = vld [vmem:[%s759_s1 + $0xc8] sm:$0xff]   ;;  %v569_v9 = vld [vmem:[%s759_s1 + $0xd0] sm:$0xff]  }
   0x3   :  { %v562_v2 = vld [vmem:[%s759_s1] sm:$0xff]   ;;  %532 = vmatprep.subr.bf16.mxu1 %v561_v1  ;;  %v566_v6 = vld [vmem:[%s759_s1 + $0x8] sm:$0xff]   ;;  %v570_v10 = vld [vmem:[%s759_s1 + $0x10] sm:$0xff]  }
   0x4   :  { %v563_v3 = vld [vmem:[%s759_s1 + $0x80] sm:$0xff]   ;;  %505 = vmatpush3.bf16.msra.mxu0 %v562_v2  ;;  %v567_v7 = vld [vmem:[%s759_s1 + $0x88] sm:$0xff]   ;;  %v571_v11 = vld [vmem:[%s759_s1 + $0x90] sm:$0xff]  }
   0x5   :  { %533 = vmatpush3.bf16.msra.mxu1 %v563_v3  ;;  %506 = vmatprep.subr.bf16.mxu0 %v564_v4  ;;  %v572_v12 = vld [vmem:[%s759_s1 + $0x58] sm:$0xff]   ;;  %v576_v16 = vld [vmem:[%s759_s1 + $0x60] sm:$0xff]   ;;  %v580_v20 = vld [vmem:[%s759_s1 + $0x68] sm:$0xff]  }
   0x6   :  { %534 = vmatprep.subr.bf16.mxu1 %v565_v5  ;;  %v573_v13 = vld [vmem:[%s759_s1 + $0xd8] sm:$0xff]   ;;  %v577_v17 = vld [vmem:[%s759_s1 + $0xe0] sm:$0xff]   ;;  %v581_v21 = vld [vmem:[%s759_s1 + $0xe8] sm:$0xff]  }
   0x7   :  { %v574_v14 = vld [vmem:[%s759_s1 + $0x18] sm:$0xff]   ;;  %v578_v18 = vld [vmem:[%s759_s1 + $0x20] sm:$0xff]   ;;  %v582_v22 = vld [vmem:[%s759_s1 + $0x28] sm:$0xff]  }
   0x8   :  { %507 = vmatpush3.bf16.msra.mxu0 %v566_v6  ;;  %v575_v15 = vld [vmem:[%s759_s1 + $0x98] sm:$0xff]   ;;  %v579_v19 = vld [vmem:[%s759_s1 + $0xa0] sm:$0xff]   ;;  %v583_v23 = vld [vmem:[%s759_s1 + $0xa8] sm:$0xff]  }
   0x9   :  { %535 = vmatpush3.bf16.msra.mxu1 %v567_v7  ;;  %508 = vmatprep.subr.bf16.mxu0 %v568_v8  ;;  %v584_v24 = vld [vmem:[%s759_s1 + $0x70] sm:$0xff]   ;;  %v588_v28 = vld [vmem:[%s759_s1 + $0x78] sm:$0xff]   ;;  %v503_v49 = vld [vmem:[%s761_s2] ss:$0 sm:$0xff] }
   0xa   :  { %536 = vmatprep.subr.bf16.mxu1 %v569_v9  ;;  %v585_v25 = vld [vmem:[%s759_s1 + $0xf0] sm:$0xff]   ;;  %v589_v29 = vld [vmem:[%s759_s1 + $0xf8] sm:$0xff]  }
   0xb   :  { %v586_v26 = vld [vmem:[%s759_s1 + $0x30] sm:$0xff]   ;;  %v590_v30 = vld [vmem:[%s759_s1 + $0x38] sm:$0xff]  }
   0xc   :  { %509 = vmatpush3.bf16.msra.mxu0 %v570_v10  ;;  %v587_v27 = vld [vmem:[%s759_s1 + $0xb0] sm:$0xff]   ;;  %v591_v31 = vld [vmem:[%s759_s1 + $0xb8] sm:$0xff]  }
   0xd   :  { %537 = vmatpush3.bf16.msra.mxu1 %v571_v11  ;;  %510 = vmatprep.subr.bf16.mxu0 %v572_v12  ;;  %v592_v32 = vld [vmem:[%s760_s0] ss:$16 sps:$4 sm:$0xff]   ;;  %v594_v33 = vld [vmem:[%s760_s0 + $0x4] ss:$16 sps:$4 sm:$0xff]   ;;  %v595_v34 = vld [vmem:[%s760_s0 + $0x8] ss:$16 sps:$4 sm:$0xff]  }
   0xe   :  { %538 = vmatprep.subr.bf16.mxu1 %v573_v13  ;;  %v597_v35 = vld [vmem:[%s760_s0 + $0xc] ss:$16 sps:$4 sm:$0xff]   ;;  %363 = vmatprep.mubr.bf16.mxu0 %v594_v33  ;;  %v598_v36 = vld [vmem:[%s760_s0 + $0x24] ss:$16 sps:$4 sm:$0xff]   ;;  %v602_v38 = vld [vmem:[%s760_s0 + $0x20] ss:$16 sps:$4 sm:$0xff]  }
   0xf   :  { %412 = vmatprep.mubr.bf16.mxu1 %v597_v35  ;;  %v600_v37 = vld [vmem:[%s760_s0 + $0x2c] ss:$16 sps:$4 sm:$0xff]   ;;  %v603_v39 = vld [vmem:[%s760_s0 + $0x28] ss:$16 sps:$4 sm:$0xff]  }
  0x10   :  { %511 = vmatpush3.bf16.msra.mxu0 %v574_v14 }
  0x11   :  { %539 = vmatpush3.bf16.msra.mxu1 %v575_v15  ;;  %512 = vmatprep.subr.bf16.mxu0 %v576_v16 }
  0x12   :  { %540 = vmatprep.subr.bf16.mxu1 %v577_v17 }
  0x14   :  { %513 = vmatpush3.bf16.msra.mxu0 %v578_v18 }
  0x15   :  { %541 = vmatpush3.bf16.msra.mxu1 %v579_v19  ;;  %514 = vmatprep.subr.bf16.mxu0 %v580_v20 }
  0x16   :  { %542 = vmatprep.subr.bf16.mxu1 %v581_v21 }
  0x18   :  { %515 = vmatpush3.bf16.msra.mxu0 %v582_v22 }
  0x19   :  { %543 = vmatpush3.bf16.msra.mxu1 %v583_v23  ;;  %516 = vmatprep.subr.bf16.mxu0 %v584_v24 }
  0x1a   :  { %544 = vmatprep.subr.bf16.mxu1 %v585_v25 }
  0x1c   :  { %517 = vmatpush3.bf16.msra.mxu0 %v586_v26 }
  0x1d   :  { %545 = vmatpush3.bf16.msra.mxu1 %v587_v27  ;;  %518 = vmatprep.subr.bf16.mxu0 %v588_v28 }
  0x1e   :  { %546 = vmatprep.subr.bf16.mxu1 %v589_v29 }
  0x20   :  { %519 = vmatpush3.bf16.msra.mxu0 %v590_v30 }
  0x21   :  { %547 = vmatpush3.bf16.msra.mxu1 %v591_v31 }
  0x23   :  { %364 = vmatmul.mubr.bf16.vlgmr.msra.gmra.mrb[0].mxu0 %v592_v32 }
  0x24   :  { %413 = vmatmul.mubr.bf16.vlgmr.msra.gmra.mrb[0].mxu1 %v595_v34  ;;  %371 = vmatprep.mubr.bf16.mxu0 %v598_v36 }
  0x25   :  { %420 = vmatprep.mubr.bf16.mxu1 %v600_v37 }
  0x2b   :  { %372 = vmatmul.mubr.bf16.gmra.mrb[4].mxu0 %v602_v38 }
  0x2c   :  { %421 = vmatmul.mubr.bf16.gmra.mrb[4].mxu1 %v603_v39 }
  0xf6   :  { %v520_v40 = vpop.f32.mrb[0].mxu0 }
  0xf7   :  { %v548_v41 = vpop.f32.mrb[0].mxu1  ;;  %v521_v42 = vpop.f32.mrb[1].mxu0 }
  0xf8   :  { %v522_v43 = vadd.f32 %v521_v42, %v520_v40  ;;  %v549_v44 = vpop.f32.mrb[1].mxu1  ;;  %v523_v45 = vpop.f32.mrb[2].mxu0 }
  0xf9   :  { %v550_v46 = vadd.f32 %v549_v44, %v548_v41  ;;  %v551_v47 = vpop.f32.mrb[2].mxu1  ;;  %v524_v48 = vpop.f32.mrb[3].mxu0 }
  0xfa   :  { %v525_v50 = vadd.f32 %v524_v48, %v523_v45  ;;  %v552_v51 = vpop.f32.mrb[3].mxu1 }
  0xfb   :  { %v415_v52 = vadd.f32 %v550_v46, %v522_v43  ;;  %v553_v53 = vadd.f32 %v552_v51, %v551_v47 }
  0xfd   :  { %v451_v54 = vadd.f32 %v503_v49, %v415_v52  ;;  %v418_v55 = vadd.f32 %v553_v53, %v525_v50 }
  0xfe   :  { %v526_v56 = vpop.f32.mrb[4].mxu0 }
  0xff   :  { %455 = vst [vmem:[%s762_s3] sm:$0xff] %v451_v54  ;;  %v452_v57 = vadd.f32 %v503_v49, %v418_v55  ;;  %v554_v58 = vpop.f32.mrb[4].mxu1  ;;  %v527_v59 = vpop.f32.mrb[5].mxu0 }
 0x100   :  { %v528_v60 = vadd.f32 %v527_v59, %v526_v56  ;;  %v555_v61 = vpop.f32.mrb[5].mxu1  ;;  %v529_v62 = vpop.f32.mrb[6].mxu0 }
 0x101   :  { %456 = vst [vmem:[%s762_s3 + $0x8] sm:$0xff] %v452_v57  ;;  %v556_v63 = vadd.f32 %v555_v61, %v554_v58  ;;  %v557_v0 = vpop.f32.mrb[6].mxu1  ;;  %v530_v1 = vpop.f32.mrb[7].mxu0 }
 0x102   :  { %v531_v2 = vadd.f32 %v530_v1, %v529_v62  ;;  %v558_v3 = vpop.f32.mrb[7].mxu1 }
 0x103   :  { %v423_v4 = vadd.f32 %v556_v63, %v528_v60  ;;  %v559_v5 = vadd.f32 %v558_v3, %v557_v0 }
 0x105   :  { %v453_v6 = vadd.f32 %v503_v49, %v423_v4  ;;  %v426_v7 = vadd.f32 %v559_v5, %v531_v2 }
 0x107   :  { %457 = vst [vmem:[%s762_s3 + $0x10] sm:$0xff] %v453_v6  ;;  %v454_v8 = vadd.f32 %v503_v49, %v426_v7 }
 0x109   :  { %458 = vst [vmem:[%s762_s3 + $0x18] sm:$0xff] %v454_v8 }

// kernel: squeeze.9
= control target key start
LH: loop header
LB: loop body
LE: loop exit
PB: predicated region body
PF: predicated region fallthrough
CT: control target
= control target key end

     0   :  { %s354_s8 = smov 116   ;;  %s355_s9 = smov 120   ;;  %vm7_vm0 = vcmask 31744   ;;  %s653_s0 = inlined_call_operand.vmem [shape: f32[256], index: 0, kind: input, shape index: {}]   ;;  %s654_s1 = inlined_call_operand.vmem [shape: f32[2,32,4], index: 1, kind: output, shape index: {}]  }
   0x1   :  { %v4_v0 = vld [vmem:[%s653_s0] sm:$0x3]  ;;  %s353_s0 = smov 124   ;;  %s356_s10 = smov 112  }
   0x2   :  { %5 = vst [vmem:[#allocation0] sm:$0x3] %v4_v0  ;;  %s357_s11 = smov 108   ;;  %s358_s12 = smov 104  }
   0x3   :  { %s359_s13 = smov 100   ;;  %s360_s14 = smov 96  }
   0x4   :  { %s361_s15 = smov 92   ;;  %s362_s16 = smov 88  }
   0x5   :  { %s363_s17 = smov 84   ;;  %s364_s18 = smov 80  }
   0x6   :  { %s365_s19 = smov 76   ;;  %s366_s20 = smov 72  }
   0x7   :  { %s367_s21 = smov 68   ;;  %s368_s22 = smov 64  }
   0x8   :  { %s369_s23 = smov 60   ;;  %s370_s24 = smov 56  }
   0x9   :  { %v11_v1 = vld [vmem:[#allocation0] sm:$0x3]   ;;  %s371_s25 = smov 52   ;;  %s372_s26 = smov 48  }
   0xa   :  { %v27_v2 = vld [vmem:[#allocation0] sm:$0x3]   ;;  %12 = vrot.lane.b32.xlu0 %v11_v1, %s353_s0  ;;  %s373_s27 = smov 44   ;;  %s374_s28 = smov 40  }
   0xb   :  { %28 = vrot.lane.b32.xlu1 %v27_v2, %s354_s8  ;;  %v19_v3 = vld [vmem:[#allocation0] sm:$0x3]   ;;  %s375_s29 = smov 36   ;;  %s376_s30 = smov 32  }
   0xc   :  { %v35_v4 = vld [vmem:[#allocation0] sm:$0x3]   ;;  %s377_s6 = smov 28   ;;  %s378_s7 = smov 24  }
   0xd   :  { %v43_v5 = vld [vmem:[#allocation0] sm:$0x3]   ;;  %s379_s0 = smov 20   ;;  %s380_s8 = smov 16  }
   0xe   :  { %20 = vrot.lane.b32.xlu0 %v19_v3, %s355_s9  ;;  %v51_v6 = vld [vmem:[#allocation0] sm:$0x3]   ;;  %s381_s9 = smov 12  }
   0xf   :  { %36 = vrot.lane.b32.xlu1 %v35_v4, %s356_s10  ;;  %v59_v7 = vld [vmem:[#allocation0] sm:$0x3]   ;;  %s382_s10 = smov 8  }
  0x10   :  { %v67_v8 = vld [vmem:[#allocation0] sm:$0x3]  }
  0x11   :  { %v75_v9 = vld [vmem:[#allocation0] sm:$0x3]  }
  0x12   :  { %44 = vrot.lane.b32.xlu0 %v43_v5, %s357_s11  ;;  %v83_v10 = vld [vmem:[#allocation0] sm:$0x3]   ;;  %s383_s11 = smov 4  }
  0x13   :  { %52 = vrot.lane.b32.xlu1 %v51_v6, %s358_s12  ;;  %v91_v11 = vld [vmem:[#allocation0] sm:$0x3]  }
  0x14   :  { %v99_v12 = vld [vmem:[#allocation0] sm:$0x3]  }
  0x15   :  { %v107_v13 = vld [vmem:[#allocation0] sm:$0x3]  }
  0x16   :  { %60 = vrot.lane.b32.xlu0 %v59_v7, %s359_s13  ;;  %v115_v14 = vld [vmem:[#allocation0] sm:$0x3]  }
  0x17   :  { %68 = vrot.lane.b32.xlu1 %v67_v8, %s360_s14  ;;  %v123_v15 = vld [vmem:[#allocation0] sm:$0x3]  }
  0x18   :  { %v131_v16 = vld [vmem:[#allocation0] sm:$0x3]  }
  0x19   :  { %v139_v17 = vld [vmem:[#allocation0] sm:$0x3]  }
  0x1a   :  { %76 = vrot.lane.b32.xlu0 %v75_v9, %s361_s15  ;;  %v147_v18 = vld [vmem:[#allocation0] sm:$0x3]  }
  0x1b   :  { %84 = vrot.lane.b32.xlu1 %v83_v10, %s362_s16  ;;  %v155_v19 = vld [vmem:[#allocation0] sm:$0x3]  }
  0x1c   :  { %v163_v20 = vld [vmem:[#allocation0] sm:$0x3]  }
  0x1d   :  { %v171_v21 = vld [vmem:[#allocation0] sm:$0x3]  }
  0x1e   :  { %92 = vrot.lane.b32.xlu0 %v91_v11, %s363_s17  ;;  %v179_v22 = vld [vmem:[#allocation0] sm:$0x3]  }
  0x1f   :  { %100 = vrot.lane.b32.xlu1 %v99_v12, %s364_s18  ;;  %v187_v23 = vld [vmem:[#allocation0] sm:$0x3]  }
  0x20   :  { %v195_v24 = vld [vmem:[#allocation0] sm:$0x3]  }
  0x21   :  { %v203_v25 = vld [vmem:[#allocation0] sm:$0x3]  }
  0x22   :  { %108 = vrot.lane.b32.xlu0 %v107_v13, %s365_s19  ;;  %v211_v26 = vld [vmem:[#allocation0] sm:$0x3]  }
  0x23   :  { %116 = vrot.lane.b32.xlu1 %v115_v14, %s366_s20  ;;  %v6_v27 = vld [vmem:[#allocation0] sm:$0x3]  }
  0x24   :  { %8 = vst.msk [vmem:[%s654_s1] sm:$0x1] %vm7_vm0, %v6_v27   ;;  %259 = vst.msk [vmem:[%s654_s1 + $0x1f] sm:$0x2] %vm7_vm0, %v6_v27   ;;  %v219_v28 = vld [vmem:[#allocation0] sm:$0x3]  }
  0x25   :  { %v227_v29 = vld [vmem:[#allocation0] sm:$0x3]  }
  0x26   :  { %124 = vrot.lane.b32.xlu0 %v123_v15, %s367_s21  ;;  %v235_v30 = vld [vmem:[#allocation0] sm:$0x3]  }
  0x27   :  { %132 = vrot.lane.b32.xlu1 %v131_v16, %s368_s22  ;;  %v243_v31 = vld [vmem:[#allocation0] sm:$0x3]  }
  0x28   :  { %v251_v32 = vld [vmem:[#allocation0] sm:$0x3]  }
  0x2a   :  { %140 = vrot.lane.b32.xlu0 %v139_v17, %s369_s23 }
  0x2b   :  { %148 = vrot.lane.b32.xlu1 %v147_v18, %s370_s24 }
  0x2e   :  { %156 = vrot.lane.b32.xlu0 %v155_v19, %s371_s25 }
  0x2f   :  { %164 = vrot.lane.b32.xlu1 %v163_v20, %s372_s26 }
  0x32   :  { %172 = vrot.lane.b32.xlu0 %v171_v21, %s373_s27 }
  0x33   :  { %180 = vrot.lane.b32.xlu1 %v179_v22, %s374_s28 }
  0x36   :  { %188 = vrot.lane.b32.xlu0 %v187_v23, %s375_s29 }
  0x37   :  { %196 = vrot.lane.b32.xlu1 %v195_v24, %s376_s30 }
  0x3a   :  { %204 = vrot.lane.b32.xlu0 %v203_v25, %s377_s6 }
  0x3b   :  { %212 = vrot.lane.b32.xlu1 %v211_v26, %s378_s7 }
  0x3e   :  { %220 = vrot.lane.b32.xlu0 %v219_v28, %s379_s0 }
  0x3f   :  { %228 = vrot.lane.b32.xlu1 %v227_v29, %s380_s8 }
  0x42   :  { %236 = vrot.lane.b32.xlu0 %v235_v30, %s381_s9 }
  0x43   :  { %244 = vrot.lane.b32.xlu1 %v243_v31, %s382_s10 }
  0x46   :  { %252 = vrot.lane.b32.xlu0 %v251_v32, %s383_s11 }
  0x7c   :  { %v13_v33 = vpop.permute.xlu0 %12  }
  0x7d   :  { %v29_v34 = vpop.permute.xlu1 %28   ;;  %260 = vst.msk [vmem:[%s654_s1 + $0x1] sm:$0x1] %vm7_vm0, %v13_v33   ;;  %261 = vst.msk [vmem:[%s654_s1 + $0x20] sm:$0x2] %vm7_vm0, %v13_v33  }
  0x7e   :  { %264 = vst.msk [vmem:[%s654_s1 + $0x3] sm:$0x1] %vm7_vm0, %v29_v34   ;;  %265 = vst.msk [vmem:[%s654_s1 + $0x22] sm:$0x2] %vm7_vm0, %v29_v34  }
  0x80   :  { %v21_v35 = vpop.permute.xlu0 %20  }
  0x81   :  { %v37_v36 = vpop.permute.xlu1 %36   ;;  %262 = vst.msk [vmem:[%s654_s1 + $0x2] sm:$0x1] %vm7_vm0, %v21_v35   ;;  %263 = vst.msk [vmem:[%s654_s1 + $0x21] sm:$0x2] %vm7_vm0, %v21_v35  }
  0x82   :  { %266 = vst.msk [vmem:[%s654_s1 + $0x4] sm:$0x1] %vm7_vm0, %v37_v36   ;;  %267 = vst.msk [vmem:[%s654_s1 + $0x23] sm:$0x2] %vm7_vm0, %v37_v36  }
  0x84   :  { %v45_v37 = vpop.permute.xlu0 %44  }
  0x85   :  { %v53_v38 = vpop.permute.xlu1 %52   ;;  %268 = vst.msk [vmem:[%s654_s1 + $0x5] sm:$0x1] %vm7_vm0, %v45_v37   ;;  %269 = vst.msk [vmem:[%s654_s1 + $0x24] sm:$0x2] %vm7_vm0, %v45_v37  }
  0x86   :  { %270 = vst.msk [vmem:[%s654_s1 + $0x6] sm:$0x1] %vm7_vm0, %v53_v38   ;;  %271 = vst.msk [vmem:[%s654_s1 + $0x25] sm:$0x2] %vm7_vm0, %v53_v38  }
  0x88   :  { %v61_v39 = vpop.permute.xlu0 %60  }
  0x89   :  { %v69_v40 = vpop.permute.xlu1 %68   ;;  %272 = vst.msk [vmem:[%s654_s1 + $0x7] sm:$0x1] %vm7_vm0, %v61_v39   ;;  %273 = vst.msk [vmem:[%s654_s1 + $0x26] sm:$0x2] %vm7_vm0, %v61_v39  }
  0x8a   :  { %274 = vst.msk [vmem:[%s654_s1 + $0x8] sm:$0x1] %vm7_vm0, %v69_v40   ;;  %275 = vst.msk [vmem:[%s654_s1 + $0x27] sm:$0x2] %vm7_vm0, %v69_v40  }
  0x8c   :  { %v77_v41 = vpop.permute.xlu0 %76  }
  0x8d   :  { %v85_v42 = vpop.permute.xlu1 %84   ;;  %276 = vst.msk [vmem:[%s654_s1 + $0x9] sm:$0x1] %vm7_vm0, %v77_v41   ;;  %277 = vst.msk [vmem:[%s654_s1 + $0x28] sm:$0x2] %vm7_vm0, %v77_v41  }
  0x8e   :  { %278 = vst.msk [vmem:[%s654_s1 + $0xa] sm:$0x1] %vm7_vm0, %v85_v42   ;;  %279 = vst.msk [vmem:[%s654_s1 + $0x29] sm:$0x2] %vm7_vm0, %v85_v42  }
  0x90   :  { %v93_v43 = vpop.permute.xlu0 %92  }
  0x91   :  { %v101_v44 = vpop.permute.xlu1 %100   ;;  %280 = vst.msk [vmem:[%s654_s1 + $0xb] sm:$0x1] %vm7_vm0, %v93_v43   ;;  %281 = vst.msk [vmem:[%s654_s1 + $0x2a] sm:$0x2] %vm7_vm0, %v93_v43  }
  0x92   :  { %282 = vst.msk [vmem:[%s654_s1 + $0xc] sm:$0x1] %vm7_vm0, %v101_v44   ;;  %283 = vst.msk [vmem:[%s654_s1 + $0x2b] sm:$0x2] %vm7_vm0, %v101_v44  }
  0x94   :  { %v109_v45 = vpop.permute.xlu0 %108  }
  0x95   :  { %v117_v46 = vpop.permute.xlu1 %116   ;;  %284 = vst.msk [vmem:[%s654_s1 + $0xd] sm:$0x1] %vm7_vm0, %v109_v45   ;;  %285 = vst.msk [vmem:[%s654_s1 + $0x2c] sm:$0x2] %vm7_vm0, %v109_v45  }
  0x96   :  { %286 = vst.msk [vmem:[%s654_s1 + $0xe] sm:$0x1] %vm7_vm0, %v117_v46   ;;  %287 = vst.msk [vmem:[%s654_s1 + $0x2d] sm:$0x2] %vm7_vm0, %v117_v46  }
  0x98   :  { %v125_v47 = vpop.permute.xlu0 %124  }
  0x99   :  { %v133_v48 = vpop.permute.xlu1 %132   ;;  %288 = vst.msk [vmem:[%s654_s1 + $0xf] sm:$0x1] %vm7_vm0, %v125_v47   ;;  %289 = vst.msk [vmem:[%s654_s1 + $0x2e] sm:$0x2] %vm7_vm0, %v125_v47  }
  0x9a   :  { %290 = vst.msk [vmem:[%s654_s1 + $0x10] sm:$0x1] %vm7_vm0, %v133_v48   ;;  %291 = vst.msk [vmem:[%s654_s1 + $0x2f] sm:$0x2] %vm7_vm0, %v133_v48  }
  0x9c   :  { %v141_v49 = vpop.permute.xlu0 %140  }
  0x9d   :  { %v149_v50 = vpop.permute.xlu1 %148   ;;  %292 = vst.msk [vmem:[%s654_s1 + $0x11] sm:$0x1] %vm7_vm0, %v141_v49   ;;  %293 = vst.msk [vmem:[%s654_s1 + $0x30] sm:$0x2] %vm7_vm0, %v141_v49  }
  0x9e   :  { %294 = vst.msk [vmem:[%s654_s1 + $0x12] sm:$0x1] %vm7_vm0, %v149_v50   ;;  %295 = vst.msk [vmem:[%s654_s1 + $0x31] sm:$0x2] %vm7_vm0, %v149_v50  }
  0xa0   :  { %v157_v51 = vpop.permute.xlu0 %156  }
  0xa1   :  { %v165_v52 = vpop.permute.xlu1 %164   ;;  %296 = vst.msk [vmem:[%s654_s1 + $0x13] sm:$0x1] %vm7_vm0, %v157_v51   ;;  %297 = vst.msk [vmem:[%s654_s1 + $0x32] sm:$0x2] %vm7_vm0, %v157_v51  }
  0xa2   :  { %298 = vst.msk [vmem:[%s654_s1 + $0x14] sm:$0x1] %vm7_vm0, %v165_v52   ;;  %299 = vst.msk [vmem:[%s654_s1 + $0x33] sm:$0x2] %vm7_vm0, %v165_v52  }
  0xa4   :  { %v173_v53 = vpop.permute.xlu0 %172  }
  0xa5   :  { %v181_v54 = vpop.permute.xlu1 %180   ;;  %300 = vst.msk [vmem:[%s654_s1 + $0x15] sm:$0x1] %vm7_vm0, %v173_v53   ;;  %301 = vst.msk [vmem:[%s654_s1 + $0x34] sm:$0x2] %vm7_vm0, %v173_v53  }
  0xa6   :  { %302 = vst.msk [vmem:[%s654_s1 + $0x16] sm:$0x1] %vm7_vm0, %v181_v54   ;;  %303 = vst.msk [vmem:[%s654_s1 + $0x35] sm:$0x2] %vm7_vm0, %v181_v54  }
  0xa8   :  { %v189_v55 = vpop.permute.xlu0 %188  }
  0xa9   :  { %v197_v56 = vpop.permute.xlu1 %196   ;;  %304 = vst.msk [vmem:[%s654_s1 + $0x17] sm:$0x1] %vm7_vm0, %v189_v55   ;;  %305 = vst.msk [vmem:[%s654_s1 + $0x36] sm:$0x2] %vm7_vm0, %v189_v55  }
  0xaa   :  { %306 = vst.msk [vmem:[%s654_s1 + $0x18] sm:$0x1] %vm7_vm0, %v197_v56   ;;  %307 = vst.msk [vmem:[%s654_s1 + $0x37] sm:$0x2] %vm7_vm0, %v197_v56  }
  0xac   :  { %v205_v57 = vpop.permute.xlu0 %204  }
  0xad   :  { %v213_v58 = vpop.permute.xlu1 %212   ;;  %308 = vst.msk [vmem:[%s654_s1 + $0x19] sm:$0x1] %vm7_vm0, %v205_v57   ;;  %309 = vst.msk [vmem:[%s654_s1 + $0x38] sm:$0x2] %vm7_vm0, %v205_v57  }
  0xae   :  { %310 = vst.msk [vmem:[%s654_s1 + $0x1a] sm:$0x1] %vm7_vm0, %v213_v58   ;;  %311 = vst.msk [vmem:[%s654_s1 + $0x39] sm:$0x2] %vm7_vm0, %v213_v58  }
  0xb0   :  { %v221_v59 = vpop.permute.xlu0 %220  }
  0xb1   :  { %v229_v60 = vpop.permute.xlu1 %228   ;;  %312 = vst.msk [vmem:[%s654_s1 + $0x1b] sm:$0x1] %vm7_vm0, %v221_v59   ;;  %313 = vst.msk [vmem:[%s654_s1 + $0x3a] sm:$0x2] %vm7_vm0, %v221_v59  }
  0xb2   :  { %314 = vst.msk [vmem:[%s654_s1 + $0x1c] sm:$0x1] %vm7_vm0, %v229_v60   ;;  %315 = vst.msk [vmem:[%s654_s1 + $0x3b] sm:$0x2] %vm7_vm0, %v229_v60  }
  0xb4   :  { %v237_v61 = vpop.permute.xlu0 %236  }
  0xb5   :  { %v245_v62 = vpop.permute.xlu1 %244   ;;  %316 = vst.msk [vmem:[%s654_s1 + $0x1d] sm:$0x1] %vm7_vm0, %v237_v61   ;;  %317 = vst.msk [vmem:[%s654_s1 + $0x3c] sm:$0x2] %vm7_vm0, %v237_v61  }
  0xb6   :  { %318 = vst.msk [vmem:[%s654_s1 + $0x1e] sm:$0x1] %vm7_vm0, %v245_v62   ;;  %319 = vst.msk [vmem:[%s654_s1 + $0x3d] sm:$0x2] %vm7_vm0, %v245_v62  }
  0xb8   :  { %v253_v63 = vpop.permute.xlu0 %252  }
  0xb9   :  { %320 = vst.msk [vmem:[%s654_s1 + $0x1f] sm:$0x1] %vm7_vm0, %v253_v63   ;;  %321 = vst.msk [vmem:[%s654_s1 + $0x3e] sm:$0x2] %vm7_vm0, %v253_v63  }

// kernel: rhythm_mamba_forward.48
= control target key start
LH: loop header
LB: loop body
LE: loop exit
PB: predicated region body
PF: predicated region fallthrough
CT: control target
= control target key end

     0   :  { %vm18_vm0 = vcmask 1043456   ;;  %v96_v35 = vmov 1966171168   ;;  %v67_v37 = vlaneseq  ;;  %s117_s0 = inlined_call_operand.vmem [shape: f32[4,256], index: 0, kind: input, shape index: {}]   ;;  %s118_s1 = inlined_call_operand.vmem [shape: f32[1,256], index: 1, kind: output, shape index: {}]  }
   0x1   :  { %v8_v0 = vld [vmem:[%s117_s0] sm:$0xff]  ;;  %v65_v36 = vunpack.c.l.s4 %v96_v35 }
   0x2   :  { %v88_v1 = vmul.f32 -1.442695, %v8_v0  ;;  %v68_v43 = vshrl.u32 %v67_v37, 7  ;;  %vm81_vm1 = vcmp.lt.s32.totalorder %v67_v37, 256 }
   0x3   :  { %v66_v42 = vunpack.c.0.s8 %v65_v36 }
   0x4   :  { %90 = vpow2.f32 %v88_v1 }
   0x5   :  { %v69_v47 = vsub.s32 %v66_v42, %v68_v43 }
   0xe   :  { %v91_v2 = vpop.eup %90 }
   0xf   :  { %v12_v3 = vadd.f32 1.0, %v91_v2 }
  0x11   :  { %92 = vrcp.f32 %v12_v3 }
  0x1b   :  { %v93_v4 = vpop.eup %92 }
  0x1c   :  { %v16_v5 = vcombine.high %v93_v4, %v93_v4  ;;  %v19_v6 = vsel %vm18_vm0, %v93_v4, 0.0 }
  0x1d   :  { %v20_v7 = vrot.slane %v19_v6, 4 }
  0x1e   :  { %v26_v8 = vsel %vm18_vm0, %v16_v5, 0.0 }
  0x1f   :  { %v21_v9 = vadd.f32 %v20_v7, %v19_v6  ;;  %v27_v10 = vrot.slane %v26_v8, 4 }
  0x21   :  { %v22_v11 = vrot.slane %v21_v9, 2  ;;  %v28_v12 = vadd.f32 %v27_v10, %v26_v8 }
  0x23   :  { %v23_v13 = vadd.f32 %v22_v11, %v21_v9  ;;  %v29_v14 = vrot.slane %v28_v12, 2 }
  0x25   :  { %v24_v15 = vrot.slane %v23_v13, 1  ;;  %v30_v16 = vadd.f32 %v29_v14, %v28_v12 }
  0x27   :  { %v25_v17 = vadd.f32 %v24_v15, %v23_v13  ;;  %v31_v18 = vrot.slane %v30_v16, 1 }
  0x29   :  { %v32_v19 = vadd.f32 %v31_v18, %v30_v16 }
  0x2b   :  { %v35_v20 = vcombine.low %v25_v17, %v32_v19 }
  0x2d   :  { %94 = vrcp.f32 %v35_v20 }
  0x37   :  { %v95_v21 = vpop.eup %94 }
  0x38   :  { %v38_v22 = vmul.f32 %v95_v21, %v93_v4 }
  0x3a   :  { %v39_v23 = vmul.f32 2.0, %v38_v22 }
  0x3c   :  { %v40_v24 = vmul.f32 %v39_v23, %v8_v0 }
  0x3e   :  { %v42_v25 = vcombine.high %v40_v24, %v40_v24  ;;  %v44_v26 = vsel %vm18_vm0, %v40_v24, 0.0 }
  0x3f   :  { %v45_v27 = vrot.slane %v44_v26, 4 }
  0x40   :  { %v51_v28 = vsel %vm18_vm0, %v42_v25, 0.0 }
  0x41   :  { %v46_v29 = vadd.f32 %v45_v27, %v44_v26  ;;  %v52_v30 = vrot.slane %v51_v28, 4 }
  0x43   :  { %v47_v31 = vrot.slane %v46_v29, 2  ;;  %v53_v32 = vadd.f32 %v52_v30, %v51_v28 }
  0x45   :  { %v48_v33 = vadd.f32 %v47_v31, %v46_v29  ;;  %v54_v34 = vrot.slane %v53_v32, 2 }
  0x47   :  { %v49_v38 = vrot.slane %v48_v33, 1  ;;  %v55_v39 = vadd.f32 %v54_v34, %v53_v32 }
  0x49   :  { %v50_v40 = vadd.f32 %v49_v38, %v48_v33  ;;  %v56_v41 = vrot.slane %v55_v39, 1 }
  0x4b   :  { %v57_v44 = vadd.f32 %v56_v41, %v55_v39  ;;  %v59_v45 = vmul.f32 0.25, %v50_v40 }
  0x4d   :  { %v60_v46 = vmul.f32 0.25, %v57_v44 }
  0x4f   :  { %v63_v48 = vcombine.low %v59_v45, %v60_v46 }
  0x51   :  { %v70_v49 = vrot.slane %v63_v48, %v69_v47 }
  0x53   :  { %v77_v50 = vrot.slane %v70_v49, %v69_v47 }
  0x55   :  { %83 = vst.msk [vmem:[%s118_s1] sm:$0x3] %vm81_vm1, %v77_v50 }

// kernel: rhythm_mamba_forward.47
= control target key start
LH: loop header
LB: loop body
LE: loop exit
PB: predicated region body
PF: predicated region fallthrough
CT: control target
= control target key end

     0   :  { %vm40_vm0 = vcmask 261120   ;;  %s101_s0 = inlined_call_operand.vmem [shape: f32[32,32], index: 0, kind: input, shape index: {}]   ;;  %s102_s1 = inlined_call_operand.vmem [shape: f32[1,32], index: 1, kind: input, shape index: {}]   ;;  %s103_s2 = inlined_call_operand.vmem [shape: f32[1,32], index: 2, kind: input, shape index: {}]   ;;  %s104_s3 = inlined_call_operand.vmem [shape: f32[32,32], index: 3, kind: output, shape index: {}]  }
   0x1   :  { %v14_v0 = vld [vmem:[%s101_s0] sm:$0xff]  ;;  %v15_v4 = vld [vmem:[%s101_s0 + $0x8] sm:$0xff]  ;;  %v16_v5 = vld [vmem:[%s101_s0 + $0x10] sm:$0xff] }
   0x2   :  { %v49_v1 = vld [vmem:[%s102_s1] ss:$0 sm:$0xff]  ;;  %v17_v6 = vld [vmem:[%s101_s0 + $0x18] sm:$0xff] }
   0x3   :  { %v50_v2 = vld [vmem:[%s103_s2] ss:$0 sm:$0xff]  ;;  %v25_v3 = vmul.f32 %v49_v1, %v14_v0  ;;  %v26_v7 = vmul.f32 %v49_v1, %v15_v4  ;;  %v27_v8 = vmul.f32 %v49_v1, %v16_v5  ;;  %v28_v9 = vmul.f32 %v49_v1, %v17_v6 }
   0x5   :  { %v36_v10 = vadd.f32 %v50_v2, %v25_v3  ;;  %v37_v11 = vadd.f32 %v50_v2, %v26_v7  ;;  %v38_v12 = vadd.f32 %v50_v2, %v27_v8  ;;  %v39_v13 = vadd.f32 %v50_v2, %v28_v9 }
   0x7   :  { %41 = vst.msk [vmem:[%s104_s3] sm:$0xff] %vm40_vm0, %v36_v10  ;;  %42 = vst.msk [vmem:[%s104_s3 + $0x8] sm:$0xff] %vm40_vm0, %v37_v11 }
   0x8   :  { %43 = vst.msk [vmem:[%s104_s3 + $0x10] sm:$0xff] %vm40_vm0, %v38_v12  ;;  %44 = vst.msk [vmem:[%s104_s3 + $0x18] sm:$0xff] %vm40_vm0, %v39_v13 }

// kernel: rhythm_mamba_forward.49
= control target key start
LH: loop header
LB: loop body
LE: loop exit
PB: predicated region body
PF: predicated region fallthrough
CT: control target
= control target key end

     0   :  { %vm18_vm0 = vcmask 261120   ;;  %s174_s0 = inlined_call_operand.vmem [shape: f32[32,32], index: 0, kind: input, shape index: {}]   ;;  %s175_s1 = inlined_call_operand.vmem [shape: f32[1,32], index: 1, kind: input, shape index: {}]   ;;  %s176_s2 = inlined_call_operand.vmem [shape: f32[1,32], index: 2, kind: input, shape index: {}]   ;;  %s177_s3 = inlined_call_operand.vmem [shape: f32[32,32], index: 3, kind: output, shape index: {}]  }
   0x1   :  { %v14_v0 = vld [vmem:[%s174_s0] sm:$0xff]  ;;  %v16_v1 = vld [vmem:[%s174_s0 + $0x10] sm:$0xff]  ;;  %v15_v2 = vld [vmem:[%s174_s0 + $0x8] sm:$0xff] }
   0x2   :  { %v19_v3 = vsel %vm18_vm0, %v14_v0, 0.0  ;;  %v25_v4 = vsel %vm18_vm0, %v16_v1, 0.0  ;;  %v17_v5 = vld [vmem:[%s174_s0 + $0x18] sm:$0xff]  ;;  %v22_v6 = vsel %vm18_vm0, %v15_v2, 0.0  ;;  %v102_v41 = vld [vmem:[%s175_s1] ss:$0 sm:$0xff] }
   0x3   :  { %20 = vadd.xlane.f32.xlu0 %v19_v3  ;;  %26 = vadd.xlane.f32.xlu1 %v25_v4  ;;  %v28_v7 = vsel %vm18_vm0, %v17_v5, 0.0  ;;  %v103_v43 = vld [vmem:[%s176_s2] ss:$0 sm:$0xff] }
   0x7   :  { %23 = vadd.xlane.f32.xlu0 %v22_v6  ;;  %29 = vadd.xlane.f32.xlu1 %v28_v7 }
  0x90   :  { %v21_v8 = vpop.xlane.xlu0 %20  ;;  %v27_v9 = vpop.xlane.xlu1 %26 }
  0x91   :  { %v32_v10 = vmul.f32 0.03125, %v21_v8  ;;  %v34_v11 = vmul.f32 0.03125, %v27_v9 }
  0x93   :  { %v36_v12 = vsub.f32 %v14_v0, %v32_v10  ;;  %v38_v13 = vsub.f32 %v16_v1, %v34_v11 }
  0x94   :  { %v24_v14 = vpop.xlane.xlu0 %23  ;;  %v30_v15 = vpop.xlane.xlu1 %29 }
  0x95   :  { %v33_v16 = vmul.f32 0.03125, %v24_v14  ;;  %v35_v17 = vmul.f32 0.03125, %v30_v15  ;;  %v40_v18 = vmul.f32 %v36_v12, %v36_v12  ;;  %v42_v19 = vmul.f32 %v38_v13, %v38_v13 }
  0x97   :  { %v37_v20 = vsub.f32 %v15_v2, %v33_v16  ;;  %v39_v21 = vsub.f32 %v17_v5, %v35_v17  ;;  %v44_v22 = vsel %vm18_vm0, %v40_v18, 0.0  ;;  %v50_v23 = vsel %vm18_vm0, %v42_v19, 0.0 }
  0x98   :  { %45 = vadd.xlane.f32.xlu0 %v44_v22 }
  0x99   :  { %v41_v24 = vmul.f32 %v37_v20, %v37_v20  ;;  %v43_v25 = vmul.f32 %v39_v21, %v39_v21 }
  0x9b   :  { %v47_v26 = vsel %vm18_vm0, %v41_v24, 0.0  ;;  %v53_v27 = vsel %vm18_vm0, %v43_v25, 0.0 }
  0x9c   :  { %51 = vadd.xlane.f32.xlu0 %v50_v23  ;;  %48 = vadd.xlane.f32.xlu1 %v47_v26 }
  0xa0   :  { %54 = vadd.xlane.f32.xlu1 %v53_v27 }
 0x125   :  { %v46_v28 = vpop.xlane.xlu0 %45 }
 0x126   :  { %v56_v29 = vmul.f32 0.03125, %v46_v28 }
 0x128   :  { %v60_v30 = vadd.f32 1e-05, %v56_v29 }
 0x129   :  { %v49_v31 = vpop.xlane.xlu1 %48  ;;  %v52_v32 = vpop.xlane.xlu0 %51 }
 0x12a   :  { %104 = vrsqrt.f32 %v60_v30  ;;  %v57_v33 = vmul.f32 0.03125, %v49_v31  ;;  %v58_v34 = vmul.f32 0.03125, %v52_v32 }
 0x12c   :  { %v61_v35 = vadd.f32 1e-05, %v57_v33  ;;  %v62_v36 = vadd.f32 1e-05, %v58_v34 }
 0x12d   :  { %v55_v37 = vpop.xlane.xlu1 %54 }
 0x12e   :  { %106 = vrsqrt.f32 %v61_v35  ;;  %v59_v38 = vmul.f32 0.03125, %v55_v37 }
 0x12f   :  { %108 = vrsqrt.f32 %v62_v36 }
 0x130   :  { %v63_v39 = vadd.f32 1e-05, %v59_v38 }
 0x132   :  { %110 = vrsqrt.f32 %v63_v39 }
 0x134   :  { %v105_v40 = vpop.eup %104 }
 0x135   :  { %v68_v42 = vmul.f32 %v105_v40, %v36_v12 }
 0x137   :  { %v79_v44 = vmul.f32 %v102_v41, %v68_v42 }
 0x138   :  { %v107_v45 = vpop.eup %106 }
 0x139   :  { %v109_v46 = vpop.eup %108  ;;  %v90_v47 = vadd.f32 %v103_v43, %v79_v44  ;;  %v69_v48 = vmul.f32 %v107_v45, %v37_v20 }
 0x13a   :  { %v70_v49 = vmul.f32 %v109_v46, %v38_v13 }
 0x13b   :  { %94 = vst.msk [vmem:[%s177_s3] sm:$0xff] %vm18_vm0, %v90_v47  ;;  %v80_v50 = vmul.f32 %v102_v41, %v69_v48 }
 0x13c   :  { %v111_v51 = vpop.eup %110  ;;  %v81_v52 = vmul.f32 %v102_v41, %v70_v49 }
 0x13d   :  { %v91_v53 = vadd.f32 %v103_v43, %v80_v50  ;;  %v71_v54 = vmul.f32 %v111_v51, %v39_v21 }
 0x13e   :  { %v92_v55 = vadd.f32 %v103_v43, %v81_v52 }
 0x13f   :  { %95 = vst.msk [vmem:[%s177_s3 + $0x8] sm:$0xff] %vm18_vm0, %v91_v53  ;;  %v82_v56 = vmul.f32 %v102_v41, %v71_v54 }
 0x140   :  { %96 = vst.msk [vmem:[%s177_s3 + $0x10] sm:$0xff] %vm18_vm0, %v92_v55 }
 0x141   :  { %v93_v57 = vadd.f32 %v103_v43, %v82_v56 }
 0x143   :  { %97 = vst.msk [vmem:[%s177_s3 + $0x18] sm:$0xff] %vm18_vm0, %v93_v57 }

// kernel: rhythm_mamba_forward.50
= control target key start
LH: loop header
LB: loop body
LE: loop exit
PB: predicated region body
PF: predicated region fallthrough
CT: control target
= control target key end

     0   :  { %s306_s1 = inlined_call_operand.vmem [shape: bf16[128,128], index: 1, kind: input, shape index: {}]   ;;  %s307_s0 = inlined_call_operand.vmem [shape: bf16[32,128], index: 0, kind: input, shape index: {}]   ;;  %s308_s2 = inlined_call_operand.vmem [shape: f32[1,128], index: 2, kind: input, shape index: {}]   ;;  %s309_s3 = inlined_call_operand.vmem [shape: f32[32,128], index: 3, kind: output, shape index: {}]  }
   0x1   :  { %v231_v0 = vld [vmem:[%s306_s1] sm:$0xff]   ;;  %v232_v1 = vld [vmem:[%s306_s1 + $0x8] sm:$0xff]   ;;  %v233_v2 = vld [vmem:[%s306_s1 + $0x10] sm:$0xff]  }
   0x2   :  { %211 = vmatprep.subr.bf16.mxu0 %v231_v0  ;;  %v234_v3 = vld [vmem:[%s306_s1 + $0x18] sm:$0xff]   ;;  %v239_v4 = vld [vmem:[%s307_s0] sm:$0xff]   ;;  %v236_v6 = vld [vmem:[%s306_s1 + $0x28] sm:$0xff]  }
   0x3   :  { %212 = vmatpush3.bf16.msra.mxu0 %v231_v0  ;;  %227 = vmatprep.mubr.bf16.mxu0 %v239_v4  ;;  %v235_v5 = vld [vmem:[%s306_s1 + $0x20] sm:$0xff]   ;;  %v237_v7 = vld [vmem:[%s306_s1 + $0x30] sm:$0xff]   ;;  %v238_v8 = vld [vmem:[%s306_s1 + $0x38] sm:$0xff]  }
   0x4   :  { %213 = vmatprep.subr.bf16.mxu0 %v232_v1  ;;  %v240_v9 = vld [vmem:[%s307_s0 + $0x8] sm:$0xff]   ;;  %v200_v10 = vld [vmem:[%s308_s2] ss:$0 sm:$0xff] }
   0x7   :  { %214 = vmatpush3.bf16.msra.mxu0 %v232_v1 }
   0x8   :  { %215 = vmatprep.subr.bf16.mxu0 %v233_v2 }
   0xb   :  { %216 = vmatpush3.bf16.msra.mxu0 %v233_v2 }
   0xc   :  { %217 = vmatprep.subr.bf16.mxu0 %v234_v3 }
   0xf   :  { %218 = vmatpush3.bf16.msra.mxu0 %v234_v3 }
  0x10   :  { %219 = vmatprep.subr.bf16.mxu0 %v235_v5 }
  0x13   :  { %220 = vmatpush3.bf16.msra.mxu0 %v235_v5 }
  0x14   :  { %221 = vmatprep.subr.bf16.mxu0 %v236_v6 }
  0x17   :  { %222 = vmatpush3.bf16.msra.mxu0 %v236_v6 }
  0x18   :  { %223 = vmatprep.subr.bf16.mxu0 %v237_v7 }
  0x1b   :  { %224 = vmatpush3.bf16.msra.mxu0 %v237_v7 }
  0x1c   :  { %225 = vmatprep.subr.bf16.mxu0 %v238_v8 }
  0x1f   :  { %226 = vmatpush3.bf16.msra.mxu0 %v238_v8 }
  0x22   :  { %228 = vmatmul.mubr.bf16.vlgmr.msra.gmra.mrb[0].mxu0 %v240_v9 }
  0xf5   :  { %v229_v11 = vpop.f32.mrb[0].mxu0 }
  0xf6   :  { %v180_v12 = vadd.f32 %v229_v11, %v200_v10  ;;  %v141_v13 = vpop.f32.mrb[1].mxu0 }
  0xf7   :  { %v178_v14 = vadd.f32 %v200_v10, %v141_v13  ;;  %v230_v15 = vpop.f32.mrb[2].mxu0 }
  0xf8   :  { %184 = vst [vmem:[%s309_s3 + $0x10] sm:$0xff] %v180_v12  ;;  %v181_v16 = vadd.f32 %v230_v15, %v200_v10  ;;  %v144_v17 = vpop.f32.mrb[3].mxu0 }
  0xf9   :  { %182 = vst [vmem:[%s309_s3] sm:$0xff] %v178_v14  ;;  %v179_v18 = vadd.f32 %v200_v10, %v144_v17 }
  0xfa   :  { %185 = vst [vmem:[%s309_s3 + $0x18] sm:$0xff] %v181_v16 }
  0xfb   :  { %183 = vst [vmem:[%s309_s3 + $0x8] sm:$0xff] %v179_v18 }

// kernel: rhythm_mamba_forward.52
= control target key start
LH: loop header
LB: loop body
LE: loop exit
PB: predicated region body
PF: predicated region fallthrough
CT: control target
= control target key end

     0   :  { %s354_s1 = inlined_call_operand.vmem [shape: bf16[128,128], index: 1, kind: input, shape index: {}]   ;;  %s355_s0 = inlined_call_operand.vmem [shape: bf16[32,128], index: 0, kind: input, shape index: {}]   ;;  %s356_s2 = inlined_call_operand.vmem [shape: f32[1,128], index: 2, kind: input, shape index: {}]   ;;  %s357_s3 = inlined_call_operand.vmem [shape: f32[32,128], index: 3, kind: output, shape index: {}]  }
   0x1   :  { %v263_v0 = vld [vmem:[%s354_s1] sm:$0xff]   ;;  %v264_v1 = vld [vmem:[%s354_s1 + $0x8] sm:$0xff]   ;;  %v265_v2 = vld [vmem:[%s354_s1 + $0x10] sm:$0xff]  }
   0x2   :  { %243 = vmatprep.subr.bf16.mxu0 %v263_v0  ;;  %v266_v3 = vld [vmem:[%s354_s1 + $0x18] sm:$0xff]   ;;  %v271_v4 = vld [vmem:[%s355_s0] sm:$0xff]   ;;  %v268_v6 = vld [vmem:[%s354_s1 + $0x28] sm:$0xff]  }
   0x3   :  { %244 = vmatpush3.bf16.msra.mxu0 %v263_v0  ;;  %259 = vmatprep.mubr.bf16.mxu0 %v271_v4  ;;  %v267_v5 = vld [vmem:[%s354_s1 + $0x20] sm:$0xff]   ;;  %v269_v7 = vld [vmem:[%s354_s1 + $0x30] sm:$0xff]   ;;  %v270_v8 = vld [vmem:[%s354_s1 + $0x38] sm:$0xff]  }
   0x4   :  { %245 = vmatprep.subr.bf16.mxu0 %v264_v1  ;;  %v272_v9 = vld [vmem:[%s355_s0 + $0x8] sm:$0xff]   ;;  %v232_v10 = vld [vmem:[%s356_s2] ss:$0 sm:$0xff] }
   0x7   :  { %246 = vmatpush3.bf16.msra.mxu0 %v264_v1 }
   0x8   :  { %247 = vmatprep.subr.bf16.mxu0 %v265_v2 }
   0xb   :  { %248 = vmatpush3.bf16.msra.mxu0 %v265_v2 }
   0xc   :  { %249 = vmatprep.subr.bf16.mxu0 %v266_v3 }
   0xf   :  { %250 = vmatpush3.bf16.msra.mxu0 %v266_v3 }
  0x10   :  { %251 = vmatprep.subr.bf16.mxu0 %v267_v5 }
  0x13   :  { %252 = vmatpush3.bf16.msra.mxu0 %v267_v5 }
  0x14   :  { %253 = vmatprep.subr.bf16.mxu0 %v268_v6 }
  0x17   :  { %254 = vmatpush3.bf16.msra.mxu0 %v268_v6 }
  0x18   :  { %255 = vmatprep.subr.bf16.mxu0 %v269_v7 }
  0x1b   :  { %256 = vmatpush3.bf16.msra.mxu0 %v269_v7 }
  0x1c   :  { %257 = vmatprep.subr.bf16.mxu0 %v270_v8 }
  0x1f   :  { %258 = vmatpush3.bf16.msra.mxu0 %v270_v8 }
  0x22   :  { %260 = vmatmul.mubr.bf16.vlgmr.msra.gmra.mrb[0].mxu0 %v272_v9 }
  0xf5   :  { %v261_v11 = vpop.f32.mrb[0].mxu0 }
  0xf6   :  { %v180_v12 = vadd.f32 %v261_v11, %v232_v10  ;;  %v141_v13 = vpop.f32.mrb[1].mxu0 }
  0xf7   :  { %v178_v14 = vadd.f32 %v232_v10, %v141_v13  ;;  %v262_v15 = vpop.f32.mrb[2].mxu0 }
  0xf8   :  { %v188_v16 = vmin.f32 %v180_v12, 20.0  ;;  %v181_v17 = vadd.f32 %v262_v15, %v232_v10  ;;  %v144_v18 = vpop.f32.mrb[3].mxu0  ;;  %vm184_vm0 = vcmp.gt.f32.partialorder %v180_v12, 20.0 }
  0xf9   :  { %v186_v19 = vmin.f32 %v178_v14, 20.0  ;;  %v179_v20 = vadd.f32 %v232_v10, %v144_v18  ;;  %vm182_vm1 = vcmp.gt.f32.partialorder %v178_v14, 20.0 }
  0xfa   :  { %v194_v21 = vmul.f32 1.442695, %v188_v16  ;;  %v189_v22 = vmin.f32 %v181_v17, 20.0  ;;  %vm185_vm2 = vcmp.gt.f32.partialorder %v181_v17, 20.0 }
  0xfb   :  { %v190_v23 = vmul.f32 1.442695, %v186_v19  ;;  %v187_v24 = vmin.f32 %v179_v20, 20.0  ;;  %vm183_vm3 = vcmp.gt.f32.partialorder %v179_v20, 20.0 }
  0xfc   :  { %273 = vpow2.f32 %v194_v21  ;;  %v196_v25 = vmul.f32 1.442695, %v189_v22 }
  0xfd   :  { %275 = vpow2.f32 %v190_v23  ;;  %v192_v26 = vmul.f32 1.442695, %v187_v24 }
  0xfe   :  { %277 = vpow2.f32 %v196_v25 }
  0xff   :  { %279 = vpow2.f32 %v192_v26 }
 0x106   :  { %v274_v27 = vpop.eup %273 }
 0x107   :  { %v276_v28 = vpop.eup %275  ;;  %v200_v29 = vadd.f32 1.0, %v274_v27 }
 0x108   :  { %v278_v30 = vpop.eup %277  ;;  %v198_v31 = vadd.f32 1.0, %v276_v28 }
 0x109   :  { %v280_v32 = vpop.eup %279  ;;  %281 = vlog2.f32 %v200_v29  ;;  %v201_v33 = vadd.f32 1.0, %v278_v30 }
 0x10a   :  { %283 = vlog2.f32 %v198_v31  ;;  %v199_v34 = vadd.f32 1.0, %v280_v32 }
 0x10b   :  { %285 = vlog2.f32 %v201_v33 }
 0x10c   :  { %287 = vlog2.f32 %v199_v34 }
 0x113   :  { %v282_v35 = vpop.eup %281 }
 0x114   :  { %v284_v36 = vpop.eup %283  ;;  %v207_v37 = vmul.f32 0.6931472, %v282_v35 }
 0x115   :  { %v286_v38 = vpop.eup %285  ;;  %v203_v39 = vmul.f32 0.6931472, %v284_v36 }
 0x116   :  { %v288_v40 = vpop.eup %287  ;;  %v212_v41 = vsel %vm184_vm0, %v180_v12, %v207_v37  ;;  %v209_v42 = vmul.f32 0.6931472, %v286_v38 }
 0x117   :  { %216 = vst [vmem:[%s357_s3 + $0x10] sm:$0xff] %v212_v41  ;;  %v210_v43 = vsel %vm182_vm1, %v178_v14, %v203_v39  ;;  %v205_v44 = vmul.f32 0.6931472, %v288_v40 }
 0x118   :  { %214 = vst [vmem:[%s357_s3] sm:$0xff] %v210_v43  ;;  %v213_v45 = vsel %vm185_vm2, %v181_v17, %v209_v42 }
 0x119   :  { %217 = vst [vmem:[%s357_s3 + $0x18] sm:$0xff] %v213_v45  ;;  %v211_v46 = vsel %vm183_vm3, %v179_v20, %v205_v44 }
 0x11a   :  { %215 = vst [vmem:[%s357_s3 + $0x8] sm:$0xff] %v211_v46 }

// kernel: rhythm_mamba_forward.53
= control target key start
LH: loop header
LB: loop body
LE: loop exit
PB: predicated region body
PF: predicated region fallthrough
CT: control target
= control target key end

     0   :  { %s981_s21 = smov 0   ;;  %s1157_s0 = inlined_call_operand.vmem [shape: f32[8,4,64], index: 0, kind: input, shape index: {}]   ;;  %s1158_s1 = inlined_call_operand.vmem [shape: f32[8,4,64], index: 1, kind: input, shape index: {}]   ;;  %s1159_s2 = inlined_call_operand.vmem [shape: f32[8,48,4], index: 2, kind: input, shape index: {}]   ;;  %s1160_s3 = inlined_call_operand.vmem [shape: f32[8,4,48], index: 3, kind: input, shape index: {}]   ;;  %s1161_s4 = inlined_call_operand.vmem [shape: f32[48,64], index: 4, kind: input, shape index: {}]   ;;  %s1162_s5 = inlined_call_operand.vmem [shape: f32[1,64], index: 5, kind: input, shape index: {}]   ;;  %s1163_s6 = inlined_call_operand.vmem [shape: f32[8,4,64], index: 6, kind: output, shape index: {}]  }
   0x1 LB: > { %s725_s22 = sadd.s32 4294967295, %s912_s21   ;;  %p729_p0 = scmp.ge.s32.totalorder %s912_s21, 1  ;;  %s912_s21 = sphi %s981_s21, %s16_s21  }
   0x2   : > { %p239_p1 = scmp.lt.s32.totalorder %s912_s21, 9 }
   0x4   : > { %p240_p2 = pnand %p729_p0, %p239_p1 }
   0x5   : > { %p280_p3 = scmp.lt.s32.totalorder (!%p240_p2), %s725_s22, 7  ;;  %v992_v0 = vld [vmem:[%s1161_s4] sm:$0xff] (!%p240_p2)  ;;  %v997_v1 = vld [vmem:[%s1161_s4 + $0x8] sm:$0xff] (!%p240_p2)  ;;  %v1002_v2 = vld [vmem:[%s1161_s4 + $0x10] sm:$0xff] (!%p240_p2)  ;;  %v1057_v13 = vmov (!%p240_p2), 0.0   ;;  %v1059_v14 = vmov (!%p240_p2), 0.0  }
   0x6   : > { %243 = sbr.rel (%p240_p2) target bundleno = 604 (0x25c), region = 44  ;;  %v1007_v3 = vld [vmem:[%s1161_s4 + $0x18] sm:$0xff] (!%p240_p2)  ;;  %v1012_v4 = vld [vmem:[%s1161_s4 + $0x20] sm:$0xff] (!%p240_p2)  ;;  %v1017_v5 = vld [vmem:[%s1161_s4 + $0x28] sm:$0xff] (!%p240_p2)  ;;  %v1061_v15 = vmov (!%p240_p2), 0.0   ;;  %v1063_v16 = vmov (!%p240_p2), 0.0  }
   0x7   : > { %v1022_v6 = vld [vmem:[%s1162_s5] sm:$0x1] (!%p240_p2)  ;;  %v1065_v17 = vmov (!%p240_p2), 0.0   ;;  %v1067_v18 = vmov (!%p240_p2), 0.0   ;;  %s1069_s7 = smov (!%p240_p2), 0  }
   0xd   : > { %s1165_s22 = smov (!%p280_p3, %s725_s22), 7 }
   0xe   : > { %s1024_s13 = sshll.u32 %s1165_s22, 2  ;;  %s795_s14 = smul.u32 48, %s1165_s22 }
   0xf   : > { %s283_s17 = scalar_lea.vmem %s1157_s0, %s1024_s13  ;;  %s287_s20 = scalar_lea.vmem %s1158_s1, %s1024_s13 }
  0x10   : > { %s292_s25 = scalar_lea.vmem %s1159_s2, %s795_s14  ;;  %s296_s28 = scalar_lea.vmem %s1160_s3, %s1024_s13 }
  0x11   : > { %s300_s22 = scalar_lea.vmem %s1163_s6, %s1024_s13  ;;  %v1045_v7 = vld [vmem:[%s292_s25] sm:$0xff]  ;;  %v1047_v8 = vld [vmem:[%s292_s25 + $0x8] sm:$0xff]  ;;  %v1049_v9 = vld [vmem:[%s292_s25 + $0x10] sm:$0xff] }
  0x12   : > { %v1051_v10 = vld [vmem:[%s292_s25 + $0x18] sm:$0xff]  ;;  %v1053_v11 = vld [vmem:[%s292_s25 + $0x20] sm:$0xff]  ;;  %v1055_v12 = vld [vmem:[%s292_s25 + $0x28] sm:$0xff] }
  0x13 LB: >> { %v326_v19 = vlaneseq  ;;  %vm332_vm0 = vcmask 31744   ;;  %v328_v21 = vstv %s940_s7  ;;  %vm351_vm1 = vcmask 1043456   ;;  %s450_s10 = scalar_lea.vmem %s283_s17, %s940_s7  ;;  %s452_s14 = scalar_lea.vmem %s287_s20, %s940_s7  ;;  %s940_s7 = sphi %s1069_s7, %s319_s7   ;;  %v936_v18 = vphi %v1067_v18, %v525_v18   ;;  %v932_v17 = vphi %v1065_v17, %v526_v17   ;;  %v928_v16 = vphi %v1063_v16, %v527_v16   ;;  %v924_v15 = vphi %v1061_v15, %v528_v15   ;;  %v920_v14 = vphi %v1059_v14, %v529_v14   ;;  %v916_v13 = vphi %v1057_v13, %v530_v13  }
  0x14   : >> { %762 = vmatprep.mubr.msk.f32.mxu0 %vm332_vm0, %v1045_v7  ;;  %v942_v22 = vmov 0.0   ;;  %v943_v24 = vmov 0   ;;  %v944_v31 = vmov 0.0|0.0   ;;  %vm945_vm3 = vmmov 0   ;;  %v451_v33 = vld [vmem:[%s450_s10] sm:$0x1]  ;;  %s454_s18 = scalar_lea.vmem %s296_s28, %s940_s7  ;;  %s606_s24 = scalar_lea.vmem %s300_s22, %s940_s7 }
  0x15   : >> { %v327_v20 = vshrl.u32 %v326_v19, 7  ;;  %864 = vset.pattern.permute.xlu0 %v943_v24  ;;  %865 = vset.pattern.permute.xlu1 %v943_v24  ;;  %v453_v45 = vld [vmem:[%s452_s14] sm:$0x1]  ;;  %vm532_vm4 = vcmask 392192   ;;  %vm607_vm5 = vcmask 516096   ;;  %s319_s7 = sadd.s32 1, %s940_s7  }
  0x16   : >> { %786 = vmatprep.subr.bf16.mxu1 %v944_v31  ;;  %783 = vmatprep.mubr.msk.f32.mxu1 %vm945_vm3, %v942_v22  ;;  %v484_v48 = vmul.f32 %v453_v45, %v451_v33  ;;  %p316_p4 = scmp.ge.s32.totalorder %s319_s7, 4  }
  0x17   : >> { %vm329_vm2 = vcmp.eq.s32.totalorder %v327_v20, %v328_v21  ;;  %v458_v32 = vsub.s32 0, %v327_v20 }
  0x18   : >> { %v735_v23 = vsel %vm329_vm2, 1.0, %v942_v22 }
  0x19   : >> { %760 = vmatprep.subr.msk.mxu0 %vm351_vm1, %v735_v23  ;;  %v459_v34 = vrot.slane %v451_v33, %v458_v32  ;;  %v518_v50 = vrot.slane %v484_v48, %v458_v32  ;;  %v455_v33 = vld [vmem:[%s454_s18] sm:$0x1] }
  0x1a   : >> { %761 = vmatpush3.msk.msra.mxu0 %vm351_vm1, %v735_v23 }
  0x1b   : >> { %763 = vmatmul.mubr.msk.f32.vlgmr.msra.gmra.mrb[0].mxu0 %vm332_vm0, %v1047_v8  ;;  %v460_v35 = vmul.f32 %v459_v34, %v992_v0  ;;  %v461_v36 = vmul.f32 %v459_v34, %v997_v1  ;;  %v463_v37 = vmul.f32 %v459_v34, %v1007_v3  ;;  %v462_v39 = vmul.f32 %v459_v34, %v1002_v2 }
  0x1c   : >> { %765 = vmatprep.mubr.msk.f32.mxu0 %vm332_vm0, %v1049_v9  ;;  %v464_v42 = vmul.f32 %v459_v34, %v1012_v4  ;;  %v465_v44 = vmul.f32 %v459_v34, %v1017_v5  ;;  %v531_v34 = vmul.f32 %v453_v45, %v1022_v6 }
  0x1d   : >> { %v466_v38 = vmul.f32 1.442695, %v460_v35  ;;  %v468_v40 = vmul.f32 1.442695, %v461_v36  ;;  %v472_v41 = vmul.f32 1.442695, %v463_v37 }
  0x1e   : >> { %v470_v43 = vmul.f32 1.442695, %v462_v39  ;;  %v474_v46 = vmul.f32 1.442695, %v464_v42  ;;  %v476_v47 = vmul.f32 1.442695, %v465_v44 }
  0x1f   : >> { %766 = vmatmul.mubr.msk.f32.gmra.mrb[2].mxu0 %vm332_vm0, %v1051_v10  ;;  %866 = vpow2.f32 %v466_v38 }
  0x20   : >> { %768 = vmatprep.mubr.msk.f32.mxu0 %vm332_vm0, %v1053_v11  ;;  %868 = vpow2.f32 %v468_v40 }
  0x21   : >> { %870 = vpow2.f32 %v472_v41 }
  0x22   : >> { %872 = vpow2.f32 %v470_v43 }
  0x23   : >> { %769 = vmatmul.mubr.msk.f32.gmra.mrb[4].mxu0 %vm332_vm0, %v1055_v12  ;;  %874 = vpow2.f32 %v474_v46 }
  0x24   : >> { %876 = vpow2.f32 %v476_v47 }
  0x29   : >> { %v867_v49 = vpop.eup %866 }
  0x2a   : >> { %v869_v51 = vpop.eup %868  ;;  %v478_v54 = vmul.f32 %v936_v18, %v867_v49 }
  0x2b   : >> { %v871_v53 = vpop.eup %870  ;;  %v479_v58 = vmul.f32 %v932_v17, %v869_v51 }
  0x2c   : >> { %v873_v55 = vpop.eup %872  ;;  %v481_v62 = vmul.f32 %v924_v15, %v871_v53 }
  0x2d   : >> { %v875_v61 = vpop.eup %874  ;;  %v480_v19 = vmul.f32 %v928_v16, %v873_v55 }
  0x2e   : >> { %v877_v20 = vpop.eup %876  ;;  %v482_v24 = vmul.f32 %v920_v14, %v875_v61 }
  0xee   : >> { %v764_v25 = vpop.f32.mrb[0].mxu0 }
  0xef   : >> { %v421_v26 = vpop.f32.mrb[1].mxu0 }
  0xf0   : >> { %487 = vperm.xlu0 %864, %v421_v26  }
  0xf2   : >> { %v767_v27 = vpop.f32.mrb[2].mxu0 }
  0xf3   : >> { %502 = vperm.xlu1 %865, %v767_v27   ;;  %v431_v28 = vpop.f32.mrb[3].mxu0  ;;  %v483_v27 = vmul.f32 %v916_v13, %v877_v20 }
  0xf4   : >> { %492 = vperm.xlu0 %864, %v764_v25  }
  0xf6   : >> { %v770_v29 = vpop.f32.mrb[4].mxu0 }
  0xf7   : >> { %497 = vperm.xlu1 %865, %v431_v28   ;;  %v441_v30 = vpop.f32.mrb[5].mxu0 }
  0xf8   : >> { %507 = vperm.xlu0 %864, %v441_v30  }
  0xfb   : >> { %512 = vperm.xlu1 %865, %v770_v29  }
 0x16f   : >> { %v488_v52 = vpop.permute.xlu0 %487 }
 0x170   : >> { %v519_v56 = vmul.f32 %v518_v50, %v488_v52 }
 0x172   : >> { %v503_v57 = vpop.permute.xlu1 %502  ;;  %v525_v18 = vadd.f32 %v519_v56, %v478_v54  }
 0x173   : >> { %v493_v59 = vpop.permute.xlu0 %492  ;;  %v522_v63 = vmul.f32 %v518_v50, %v503_v57 }
 0x174   : >> { %v520_v60 = vmul.f32 %v518_v50, %v493_v59 }
 0x175   : >> { %v528_v15 = vadd.f32 %v522_v63, %v481_v62  }
 0x176   : >> { %v526_v17 = vadd.f32 %v520_v60, %v479_v58   ;;  %v498_v21 = vpop.permute.xlu1 %497 }
 0x177   : >> { %v521_v22 = vmul.f32 %v518_v50, %v498_v21  ;;  %v508_v23 = vpop.permute.xlu0 %507 }
 0x178   : >> { %v787_v25 = vpack.c.bf16 %v526_v17, %v525_v18  ;;  %v523_v26 = vmul.f32 %v518_v50, %v508_v23 }
 0x179   : >> { %v527_v16 = vadd.f32 %v521_v22, %v480_v19  }
 0x17a   : >> { %v513_v28 = vpop.permute.xlu1 %512  ;;  %788 = vmatpush3.bf16.msra.mxu1 %v787_v25  ;;  %v529_v14 = vadd.f32 %v523_v26, %v482_v24  }
 0x17b   : >> { %v524_v29 = vmul.f32 %v518_v50, %v513_v28  ;;  %789 = vmatprep.subr.bf16.mxu1 %v944_v31  ;;  %v790_v30 = vpack.c.bf16 %v528_v15, %v527_v16 }
 0x17d   : >> { %v530_v13 = vadd.f32 %v524_v29, %v483_v27  }
 0x17e   : >> { %791 = vmatpush3.bf16.msra.mxu1 %v790_v30 }
 0x17f   : >> { %792 = vmatprep.subr.bf16.mxu1 %v944_v31  ;;  %v793_v32 = vpack.c.bf16 %v530_v13, %v529_v14 }
 0x182   : >> { %794 = vmatpush3.bf16.msra.mxu1 %v793_v32 }
 0x185   : >> { %784 = vmatmul.mubr.msk.f32.vlgmr.msra.gmra.mrb[0].mxu1 %vm532_vm4, %v455_v33 }
 0x255   : > { %318 = sbr.rel (!%p316_p4) target bundleno = 19 (0x13), region = 94 }
 0x258   : >> { %v602_v35 = vpop.f32.mrb[0].mxu1 }
 0x259   : >> { %v603_v31 = vadd.f32 %v602_v35, %v531_v34  ;;  %v785_v36 = vpop.f32.mrb[1].mxu1 }
 0x25b   : >> { %608 = vst.msk [vmem:[%s606_s24] sm:$0x1] %vm607_vm5, %v603_v31 }
 0x25c PF: > { %s16_s21 = sadd.s32 1, %s912_s21  }
 0x25d   : > { %p13_p5 = scmp.ge.s32.totalorder %s16_s21, 10  }
 0x25f   :  { %15 = sbr.rel (!%p13_p5) target bundleno = 1 (0x1), region = 105 }

// kernel: rhythm_mamba_forward.57
= control target key start
LH: loop header
LB: loop body
LE: loop exit
PB: predicated region body
PF: predicated region fallthrough
CT: control target
= control target key end

     0   :  { %v210_v0 = vmov 0.0   ;;  %vm211_vm0 = vmmov 0   ;;  %s268_s1 = inlined_call_operand.vmem [shape: bf16[128,128], index: 1, kind: input, shape index: {}]   ;;  %s269_s0 = inlined_call_operand.vmem [shape: bf16[16,128], index: 0, kind: input, shape index: {}]   ;;  %s270_s2 = inlined_call_operand.vmem [shape: f32[1,128], index: 2, kind: input, shape index: {}]   ;;  %s271_s3 = inlined_call_operand.vmem [shape: f32[16,128], index: 3, kind: output, shape index: {}]  }
   0x1   :  { %179 = vmatprep.subr.bf16.mxu0 %v210_v0  ;;  %v201_v1 = vld [vmem:[%s268_s1] sm:$0xff]   ;;  %195 = vmatprep.mubr.msk.bf16.mxu0 %vm211_vm0, %v210_v0  ;;  %v202_v2 = vld [vmem:[%s268_s1 + $0x8] sm:$0xff]   ;;  %v203_v3 = vld [vmem:[%s268_s1 + $0x10] sm:$0xff]  }
   0x2   :  { %180 = vmatpush3.bf16.msra.mxu0 %v201_v1  ;;  %v204_v4 = vld [vmem:[%s268_s1 + $0x18] sm:$0xff]   ;;  %v205_v5 = vld [vmem:[%s268_s1 + $0x20] sm:$0xff]   ;;  %v206_v6 = vld [vmem:[%s268_s1 + $0x28] sm:$0xff]  }
   0x3   :  { %181 = vmatprep.subr.bf16.mxu0 %v210_v0  ;;  %v207_v7 = vld [vmem:[%s268_s1 + $0x30] sm:$0xff]   ;;  %v208_v8 = vld [vmem:[%s268_s1 + $0x38] sm:$0xff]   ;;  %v209_v9 = vld [vmem:[%s269_s0] sm:$0xff]  }
   0x4   :  { %v169_v10 = vld [vmem:[%s270_s2] ss:$0 sm:$0xff] }
   0x6   :  { %182 = vmatpush3.bf16.msra.mxu0 %v202_v2 }
   0x7   :  { %183 = vmatprep.subr.bf16.mxu0 %v210_v0 }
   0xa   :  { %184 = vmatpush3.bf16.msra.mxu0 %v203_v3 }
   0xb   :  { %185 = vmatprep.subr.bf16.mxu0 %v210_v0 }
   0xe   :  { %186 = vmatpush3.bf16.msra.mxu0 %v204_v4 }
   0xf   :  { %187 = vmatprep.subr.bf16.mxu0 %v210_v0 }
  0x12   :  { %188 = vmatpush3.bf16.msra.mxu0 %v205_v5 }
  0x13   :  { %189 = vmatprep.subr.bf16.mxu0 %v210_v0 }
  0x16   :  { %190 = vmatpush3.bf16.msra.mxu0 %v206_v6 }
  0x17   :  { %191 = vmatprep.subr.bf16.mxu0 %v210_v0 }
  0x1a   :  { %192 = vmatpush3.bf16.msra.mxu0 %v207_v7 }
  0x1b   :  { %193 = vmatprep.subr.bf16.mxu0 %v210_v0 }
  0x1e   :  { %194 = vmatpush3.bf16.msra.mxu0 %v208_v8 }
  0x21   :  { %196 = vmatmul.mubr.bf16.vlgmr.msra.gmra.mrb[0].mxu0 %v209_v9 }
  0xf4   :  { %v129_v11 = vpop.f32.mrb[0].mxu0 }
  0xf5   :  { %v152_v12 = vadd.f32 %v169_v10, %v129_v11  ;;  %v197_v13 = vpop.f32.mrb[1].mxu0 }
  0xf6   :  { %v132_v14 = vpop.f32.mrb[2].mxu0 }
  0xf7   :  { %154 = vst [vmem:[%s271_s3] sm:$0xff] %v152_v12  ;;  %v153_v15 = vadd.f32 %v169_v10, %v132_v14  ;;  %v198_v16 = vpop.f32.mrb[3].mxu0 }
  0xf9   :  { %155 = vst [vmem:[%s271_s3 + $0x8] sm:$0xff] %v153_v15 }

// kernel: rhythm_mamba_forward.55
= control target key start
LH: loop header
LB: loop body
LE: loop exit
PB: predicated region body
PF: predicated region fallthrough
CT: control target
= control target key end

     0   :  { %vm15_vm0 = vcmask 261120   ;;  %s90_s0 = inlined_call_operand.vmem [shape: f32[8,32], index: 0, kind: input, shape index: {}]   ;;  %s91_s1 = inlined_call_operand.vmem [shape: f32[1,32], index: 1, kind: input, shape index: {}]   ;;  %s92_s2 = inlined_call_operand.vmem [shape: f32[1,32], index: 2, kind: input, shape index: {}]   ;;  %s93_s3 = inlined_call_operand.vmem [shape: f32[8,32], index: 3, kind: output, shape index: {}]  }
   0x1   :  { %v14_v0 = vld [vmem:[%s90_s0] sm:$0xff] }
   0x2   :  { %v16_v1 = vsel %vm15_vm0, %v14_v0, 0.0  ;;  %v51_v11 = vld [vmem:[%s91_s1] ss:$0 sm:$0xff] }
   0x3   :  { %17 = vadd.xlane.f32.xlu0 %v16_v1  ;;  %v52_v13 = vld [vmem:[%s92_s2] ss:$0 sm:$0xff] }
  0x90   :  { %v18_v2 = vpop.xlane.xlu0 %17 }
  0x91   :  { %v20_v3 = vmul.f32 0.03125, %v18_v2 }
  0x93   :  { %v21_v4 = vsub.f32 %v14_v0, %v20_v3 }
  0x95   :  { %v22_v5 = vmul.f32 %v21_v4, %v21_v4 }
  0x97   :  { %v23_v6 = vsel %vm15_vm0, %v22_v5, 0.0 }
  0x98   :  { %24 = vadd.xlane.f32.xlu0 %v23_v6 }
 0x125   :  { %v25_v7 = vpop.xlane.xlu0 %24 }
 0x126   :  { %v26_v8 = vmul.f32 0.03125, %v25_v7 }
 0x128   :  { %v27_v9 = vadd.f32 1e-05, %v26_v8 }
 0x12a   :  { %53 = vrsqrt.f32 %v27_v9 }
 0x134   :  { %v54_v10 = vpop.eup %53 }
 0x135   :  { %v29_v12 = vmul.f32 %v54_v10, %v21_v4 }
 0x137   :  { %v37_v14 = vmul.f32 %v51_v11, %v29_v12 }
 0x139   :  { %v45_v15 = vadd.f32 %v52_v13, %v37_v14 }
 0x13b   :  { %46 = vst.msk [vmem:[%s93_s3] sm:$0xff] %vm15_vm0, %v45_v15 }

// kernel: rhythm_mamba_forward.58
= control target key start
LH: loop header
LB: loop body
LE: loop exit
PB: predicated region body
PF: predicated region fallthrough
CT: control target
= control target key end

     0   :  { %vm32_vm0 = vcmask 523264   ;;  %s72_s0 = inlined_call_operand.vmem [shape: f32[8,64], index: 0, kind: input, shape index: {}]   ;;  %s73_s1 = inlined_call_operand.vmem [shape: f32[1,64], index: 1, kind: input, shape index: {}]   ;;  %s74_s2 = inlined_call_operand.vmem [shape: f32[1,64], index: 2, kind: input, shape index: {}]   ;;  %s75_s3 = inlined_call_operand.vmem [shape: f32[8,64], index: 3, kind: output, shape index: {}]  }
   0x1   :  { %v14_v0 = vld [vmem:[%s72_s0] sm:$0xff] }
   0x2   :  { %v38_v1 = vld [vmem:[%s73_s1] ss:$0 sm:$0xff] }
   0x3   :  { %v39_v2 = vld [vmem:[%s74_s2] ss:$0 sm:$0xff]  ;;  %v22_v3 = vmul.f32 %v38_v1, %v14_v0 }
   0x5   :  { %v30_v4 = vadd.f32 %v39_v2, %v22_v3 }
   0x7   :  { %v31_v5 = vmax.f32 %v30_v4, 0.0 }
   0x9   :  { %33 = vst.msk [vmem:[%s75_s3] sm:$0xff] %vm32_vm0, %v31_v5 }

// kernel: rhythm_mamba_forward.59
= control target key start
LH: loop header
LB: loop body
LE: loop exit
PB: predicated region body
PF: predicated region fallthrough
CT: control target
= control target key end

     0   :  { %vm53_vm0 = vcmask 523264   ;;  %s144_s0 = inlined_call_operand.vmem [shape: f32[8,64], index: 0, kind: input, shape index: {}]   ;;  %s145_s1 = inlined_call_operand.vmem [shape: f32[8,64], index: 1, kind: input, shape index: {}]   ;;  %s146_s2 = inlined_call_operand.vmem [shape: f32[1,64], index: 2, kind: input, shape index: {}]   ;;  %s147_s3 = inlined_call_operand.vmem [shape: f32[1,64], index: 3, kind: input, shape index: {}]   ;;  %s148_s4 = inlined_call_operand.vmem [shape: f32[1,64], index: 4, kind: input, shape index: {}]   ;;  %s149_s5 = inlined_call_operand.vmem [shape: f32[1,64], index: 5, kind: input, shape index: {}]   ;;  %s150_s6 = inlined_call_operand.vmem [shape: f32[8,64], index: 6, kind: output, shape index: {0}]   ;;  %s151_s7 = inlined_call_operand.vmem [shape: f32[8,64], index: 7, kind: output, shape index: {1}]  }
   0x1   :  { %v25_v0 = vld [vmem:[%s144_s0] sm:$0xff] }
   0x2   :  { %v26_v1 = vld [vmem:[%s145_s1] sm:$0xff] }
   0x3   :  { %v76_v2 = vld [vmem:[%s146_s2] ss:$0 sm:$0xff] }
   0x4   :  { %v77_v3 = vld [vmem:[%s147_s3] ss:$0 sm:$0xff]  ;;  %v35_v4 = vmul.f32 %v76_v2, %v25_v0  ;;  %v55_v5 = vmul.f32 %v76_v2, %v26_v1 }
   0x5   :  { %v42_v6 = vmul.f32 %v77_v3, %v26_v1  ;;  %v56_v7 = vmul.f32 %v77_v3, %v25_v0  ;;  %v78_v8 = vld [vmem:[%s148_s4] ss:$0 sm:$0xff] }
   0x6   :  { %v79_v9 = vld [vmem:[%s149_s5] ss:$0 sm:$0xff] }
   0x7   :  { %v43_v10 = vsub.f32 %v35_v4, %v42_v6  ;;  %v57_v11 = vadd.f32 %v56_v7, %v55_v5 }
   0x9   :  { %v51_v12 = vadd.f32 %v78_v8, %v43_v10  ;;  %v65_v13 = vadd.f32 %v79_v9, %v57_v11 }
   0xb   :  { %v52_v14 = vmax.f32 %v51_v12, 0.0  ;;  %v66_v15 = vmax.f32 %v65_v13, 0.0 }
   0xd   :  { %54 = vst.msk [vmem:[%s150_s6] sm:$0xff] %vm53_vm0, %v52_v14  ;;  %67 = vst.msk [vmem:[%s151_s7] sm:$0xff] %vm53_vm0, %v66_v15 }

// kernel: rhythm_mamba_forward.61
= control target key start
LH: loop header
LB: loop body
LE: loop exit
PB: predicated region body
PF: predicated region fallthrough
CT: control target
= control target key end

     0   :  { %vm31_vm0 = vcmask 261120   ;;  %s71_s0 = inlined_call_operand.vmem [shape: f32[8,32], index: 0, kind: input, shape index: {}]   ;;  %s72_s1 = inlined_call_operand.vmem [shape: f32[1,32], index: 1, kind: input, shape index: {}]   ;;  %s73_s2 = inlined_call_operand.vmem [shape: f32[1,32], index: 2, kind: input, shape index: {}]   ;;  %s74_s3 = inlined_call_operand.vmem [shape: f32[8,32], index: 3, kind: output, shape index: {}]  }
   0x1   :  { %v14_v0 = vld [vmem:[%s71_s0] sm:$0xff] }
   0x2   :  { %v37_v1 = vld [vmem:[%s72_s1] ss:$0 sm:$0xff] }
   0x3   :  { %v38_v2 = vld [vmem:[%s73_s2] ss:$0 sm:$0xff]  ;;  %v22_v3 = vmul.f32 %v37_v1, %v14_v0 }
   0x5   :  { %v30_v4 = vadd.f32 %v38_v2, %v22_v3 }
   0x7   :  { %32 = vst.msk [vmem:[%s74_s3] sm:$0xff] %vm31_vm0, %v30_v4 }

</bundles_post_ra>
